<compile_context>
chip_gen: v7x
topology: tpu7x:2x2x1
jax: 0.10.0
libtpu: 0.0.40
codegen_flags: <defaults>
</compile_context>

<pallas_src>
import functools

import jax
import jax.numpy as jnp
import numpy as np
from jax.experimental import pallas as pl
from jax.experimental.pallas import tpu as pltpu

EPS = 1e-4
BN_EPS = 1e-5


# ----------------------------------------------------------------------------
# Fused whole-network Pallas kernel
# ----------------------------------------------------------------------------
def dgstgcn_fused_kernel(*refs, plan):
    """Whole DGSTGCN stack for a batch of B samples, resident in VMEM.

    refs = (x, bn_scale, bn_shift, *per_block_weights, out).
    Per-block weights are consumed in the fixed order produced by the wrapper:
      wpre, bpre, wg(=A folded into post), bpost, [wdown, bdown],
      wtcn(all taps), btcn, [wres, bres], mix, [sub].
    `plan` is a static per-block description (channels, stride, residual kind).
    """
    x_ref, bn_s_ref, bn_t_ref = refs[0], refs[1], refs[2]
    o_ref = refs[-1]
    w_iter = iter(refs[3:-1])

    def nxt():
        return next(w_iter)[...]

    B = x_ref.shape[0]

    # data_bn (eval mode): per-(joint, channel) scale/shift on the raw input.
    h = x_ref[...].astype(jnp.float32)
    h = h * bn_s_ref[...] + bn_t_ref[...]                  # (B, T0, V*C0)

    for cfg in plan:
        T, vcin = h.shape[1], h.shape[2]
        vcout, stride, ks = cfg['v_cout'], cfg['stride'], cfg['ks']
        pad = (ks - 1) // 2
        t_out = (T + 2 * pad - ks) // stride + 1

        # -- fetch this block's weights (order fixed by the wrapper) ---------
        wpre, bpre, wg, bpost = nxt(), nxt(), nxt(), nxt()
        if cfg['gcn_down']:
            wdown, bdown = nxt(), nxt()
        wt, btcn = nxt(), nxt()
        if cfg['res'] == 'conv':
            wres, bres = nxt(), nxt()
        mix = nxt()                                        # (B*t_out, ks*B*T)
        if cfg['res'] == 'conv' and stride > 1:
            sub = nxt()                                    # (B*t_out, B*T)

        rows = h.reshape(B * T, vcin)                      # leading-dim merge
        rows_b = rows.astype(jnp.bfloat16)

        # -- GCN: pre 1x1 (+BN, ReLU) -> adjacency folded into post 1x1 (+BN)
        pre = jnp.maximum(
            jnp.dot(rows_b, wpre, preferred_element_type=jnp.float32) + bpre,
            0.0)                                           # (B*T, V*K*mid)
        post = jnp.dot(pre.astype(jnp.bfloat16), wg,
                       preferred_element_type=jnp.float32) + bpost
        if cfg['gcn_down']:                                # 1x1 down conv + BN
            gres = jnp.dot(rows_b, wdown,
                           preferred_element_type=jnp.float32) + bdown
        else:                                              # identity (Cin==Cout)
            gres = rows
        y = jnp.maximum(post + gres, 0.0)                  # (B*T, V*Cout)

        # -- TCN (unit_tcn, kernel (ks,1), stride (s,1), pad ((ks-1)//2,0)) --
        # One matmul contracts the channels of all ks taps at once; the
        # temporal shift + zero padding + stride are a single 0/1 "mix" matmul.
        u = jnp.dot(y.astype(jnp.bfloat16), wt,
                    preferred_element_type=jnp.float32)    # (B*T, ks*V*Cout)
        u_stack = jnp.concatenate(
            [u[:, k * vcout:(k + 1) * vcout] for k in range(ks)], axis=0)
        out_t = jnp.dot(mix, u_stack,
                        preferred_element_type=jnp.float32) + btcn

        # -- block residual + final ReLU -------------------------------------
        if cfg['res'] == 'zero':
            z = out_t
        elif cfg['res'] == 'identity':                     # stride==1, Cin==Cout
            z = out_t + rows
        else:                                              # strided 1x1 conv+BN
            rsub = (jnp.dot(sub, rows, preferred_element_type=jnp.float32)
                    if stride > 1 else rows)
            z = out_t + jnp.dot(rsub.astype(jnp.bfloat16), wres,
                                preferred_element_type=jnp.float32) + bres

        h = jnp.maximum(z, 0.0).reshape(B, t_out, vcout)

    assert next(w_iter, None) is None                      # all weights consumed
    o_ref[...] = h.astype(o_ref.dtype)                     # lane-dense store


# ----------------------------------------------------------------------------
# Wrapper: weight folding, selection matrices, pallas_call plumbing
# ----------------------------------------------------------------------------
def _full_spec(shape):
    nd = len(shape)
    return pl.BlockSpec(shape, lambda i, nd=nd: (0,) * nd)


def _pick_batch_block(nm, max_b=8):
    """Largest divisor of nm <= max_b, preferring an even grid (v7x megacore)."""
    divs = [d for d in range(1, nm + 1) if nm % d == 0 and d <= max_b]
    even = [d for d in divs if (nm // d) % 2 == 0]
    return max(even) if even else max(divs)


def _block_diag(w, V):
    """(Cin, Cout) 1x1-conv weight -> block-diagonal (V*Cin, V*Cout) matrix."""
    cin, cout = w.shape
    eye = jnp.eye(V, dtype=jnp.float32)
    return (eye[:, None, :, None] * w[None, :, None, :]).reshape(V * cin, V * cout)


def _fold_adjacency(A, wpost, mid):
    """Fold the K adjacency subsets into the gcn post conv.

    Wg[v*(K*mid) + k*mid + m, w*Cout + c] = A[k, v, w] * wpost[k*mid + m, c],
    matching pyskl dggcn: out[..., w] = sum_v pre[..., v] * A[k, v, w] followed
    by the 1x1 post conv over (k, m)."""
    K, V, _ = A.shape
    cout = wpost.shape[1]
    wp = wpost.reshape(K, mid, cout)
    wg = jnp.einsum('kvw,kmc->vkmwc', A, wp)
    return wg.reshape(V * K * mid, V * cout)


def _mix_matrix(B, T, t_out, ks, stride, pad):
    """mix[b*t_out+o, k*B*T + b'*T + t'] = 1 iff b==b' and t' == stride*o+k-pad
    (temporal conv taps with stride + zero padding folded in)."""
    r = np.arange(B * t_out)[:, None]
    c = np.arange(ks * B * T)[None, :]
    b_r, o = r // t_out, r % t_out
    k, rem = c // (B * T), c % (B * T)
    b_c, t_in = rem // T, rem % T
    m = (b_r == b_c) & (t_in == stride * o + k - pad)
    return jnp.asarray(m, dtype=jnp.float32)


def _subsample_matrix(B, T, t_out, stride):
    """sub[b*t_out+o, b'*T+t] = 1 iff b==b' and t == stride*o."""
    r = np.arange(B * t_out)[:, None]
    c = np.arange(B * T)[None, :]
    m = ((r // t_out) == (c // T)) & ((c % T) == stride * (r % t_out))
    return jnp.asarray(m, dtype=jnp.float32)


def pack_dgstgcn_params(params, V):
    """Fold module parameters into the fused kernel's layout (block-diagonal
    per-joint 1x1 convs, adjacency folded into post, all tcn taps concatenated,
    matmul weights in bf16, biases/BN in f32)."""
    bn_scale, bn_shift = params['data_bn']
    block_weights, plan = [], []
    for blk in params['blocks']:
        g, t = blk['gcn'], blk['tcn']
        cout = blk['cout']
        K = g['A'].shape[0]
        mid = g['wpre'].shape[1] // K

        wl = [_block_diag(g['wpre'], V).astype(jnp.bfloat16),
              jnp.tile(g['bpre'], V).reshape(1, -1),
              _fold_adjacency(g['A'], g['wpost'], mid).astype(jnp.bfloat16),
              jnp.tile(g['bpost'], V).reshape(1, -1)]
        gcn_down = g['wdown'] is not None
        if gcn_down:
            wl += [_block_diag(g['wdown'], V).astype(jnp.bfloat16),
                   jnp.tile(g['bdown'], V).reshape(1, -1)]
        wl += [jnp.concatenate([_block_diag(t['w'][k], V)
                                for k in range(t['ks'])],
                               axis=1).astype(jnp.bfloat16),
               jnp.tile(t['b'], V).reshape(1, -1)]
        if blk['res_kind'] == 'conv':
            r = blk['res']
            wl += [_block_diag(r['w'][0], V).astype(jnp.bfloat16),
                   jnp.tile(r['b'], V).reshape(1, -1)]

        block_weights.append(wl)
        plan.append(dict(v_cout=V * cout, stride=blk['stride'], ks=t['ks'],
                         gcn_down=gcn_down, res=blk['res_kind']))

    return dict(V=V,
                bn_s=bn_scale.reshape(1, -1).astype(jnp.float32),
                bn_t=bn_shift.reshape(1, -1).astype(jnp.float32),
                plan=plan, block_weights=block_weights)


def dgstgcn_forward(packed, x):
    """x: (N, M, T, V, C) -> (N, M, C_out, T_out, V), as DGSTGCN.forward."""
    V, plan = packed['V'], packed['plan']
    bn_s, bn_t = packed['bn_s'], packed['bn_t']

    N, M, T, Vx, C = x.shape
    assert Vx == V
    NM = N * M
    # (N,M,T,V,C) -> (N*M, T, V*C): pure reshape, lane index = v*C + c (matches
    # the BatchNorm1d(V*C) channel order of the reference permute/view chain).
    xm = x.reshape(NM, T, V * C).astype(jnp.float32)

    B = _pick_batch_block(NM)
    grid = (NM // B,)

    call_args = [xm, bn_s, bn_t]
    in_specs = [pl.BlockSpec((B, T, V * C), lambda i: (i, 0, 0)),
                _full_spec(bn_s.shape), _full_spec(bn_t.shape)]

    t_cur = T
    for cfg, wlist in zip(plan, packed['block_weights']):
        ks, stride = cfg['ks'], cfg['stride']
        pad = (ks - 1) // 2
        t_next = (t_cur + 2 * pad - ks) // stride + 1
        extra = [_mix_matrix(B, t_cur, t_next, ks, stride, pad)]
        if cfg['res'] == 'conv' and stride > 1:
            extra.append(_subsample_matrix(B, t_cur, t_next, stride))
        for a in wlist + extra:
            call_args.append(a)
            in_specs.append(_full_spec(a.shape))
        t_cur = t_next

    vc_out = plan[-1]['v_cout']
    c_out = vc_out // V

    out = pl.pallas_call(
        functools.partial(dgstgcn_fused_kernel, plan=plan),
        out_shape=jax.ShapeDtypeStruct((NM, t_cur, vc_out), jnp.float32),
        grid=grid,
        in_specs=in_specs,
        out_specs=pl.BlockSpec((B, t_cur, vc_out), lambda i: (i, 0, 0)),
        compiler_params=pltpu.CompilerParams(
            dimension_semantics=("parallel",),
            vmem_limit_bytes=32 * 1024 * 1024),
    )(*call_args)

    # (NM, T_out, V*C_out) -> (N, M, C_out, T_out, V) (PyTorch output layout).
    return out.reshape(N, M, t_cur, V, c_out).transpose(0, 1, 4, 2, 3)


# ----------------------------------------------------------------------------
# Deterministic parameter construction (mirrors DGSTGCN.__init__ structure)
# ----------------------------------------------------------------------------
def _bn_fold(key, c):
    k1, k2, k3, k4 = jax.random.split(key, 4)
    gamma = 1.0 + 0.1 * jax.random.normal(k1, (c,), jnp.float32)
    beta = 0.1 * jax.random.normal(k2, (c,), jnp.float32)
    mean = 0.1 * jax.random.normal(k3, (c,), jnp.float32)
    var = jax.random.uniform(k4, (c,), jnp.float32, 0.5, 1.5)
    scale = gamma / jnp.sqrt(var + BN_EPS)
    shift = beta - mean * scale
    return scale, shift


def _conv(key, cin, cout, ks=1):
    kw, kb = jax.random.split(key)
    w = jax.random.normal(kw, (ks, cin, cout), jnp.float32) * (2.0 / (cin * ks)) ** 0.5
    b = 0.05 * jax.random.normal(kb, (cout,), jnp.float32)
    return w, b


def build_graph(V, num_subsets=3):
    """Deterministic chain-skeleton graph -> (K, V, V) adjacency
    [identity, normalized inward, normalized outward], as in pyskl Graph."""
    eye = jnp.eye(V, dtype=jnp.float32)
    inward = jnp.zeros((V, V), jnp.float32)
    for i in range(V - 1):
        inward = inward.at[i, i + 1].set(1.0)
    outward = inward.T

    def norm(adj):
        d = adj.sum(0)
        d = jnp.where(d > 0, 1.0 / d, 0.0)
        return adj * d[None, :]

    subsets = [eye, norm(inward), norm(outward)][:num_subsets]
    return jnp.stack(subsets, 0)


def build_dgstgcn_params(key, *, V, in_channels=3, base_channels=16, ch_ratio=2,
                         num_stages=4, inflate_stages=(3,), down_stages=(3,),
                         ratio=0.25, num_subsets=3):
    keys = list(jax.random.split(key, 256))
    it = iter(keys)
    A = build_graph(V, num_subsets)
    params = {'data_bn': _bn_fold(next(it), V * in_channels)}  # BatchNorm1d(V*C)

    def make_gcn(cin, cout):
        mid = int(ratio * cout)
        kmid = mid * num_subsets
        wpre, bpre = _conv(next(it), cin, kmid)
        wpre = wpre[0]
        s, t = _bn_fold(next(it), kmid)                        # pre BN
        wpre, bpre = wpre * s[None, :], bpre * s + t
        wpost, bpost = _conv(next(it), kmid, cout)
        wpost = wpost[0]
        s, t = _bn_fold(next(it), cout)                        # gcn output BN
        wpost, bpost = wpost * s[None, :], bpost * s + t
        if cin != cout:
            wdown, bdown = _conv(next(it), cin, cout)
            wdown = wdown[0]
            s, t = _bn_fold(next(it), cout)                    # down BN
            wdown, bdown = wdown * s[None, :], bdown * s + t
        else:
            wdown, bdown = None, None                          # identity down
        return dict(A=A, wpre=wpre, bpre=bpre, wpost=wpost, bpost=bpost,
                    wdown=wdown, bdown=bdown)

    def make_tcn(cin, cout, ks, stride):
        w, b = _conv(next(it), cin, cout, ks)
        s, t = _bn_fold(next(it), cout)
        return dict(w=w * s[None, None, :], b=b * s + t, ks=ks, stride=stride)

    stage_cfg = []
    if in_channels != base_channels:
        stage_cfg.append((in_channels, base_channels, 1, 'zero'))  # residual=False
    inflate_times = 0
    cur = base_channels
    for i in range(2, num_stages + 1):
        stride = 1 + (i in down_stages)
        cin = cur
        if i in inflate_stages:
            inflate_times += 1
        cout = int(base_channels * ch_ratio ** inflate_times + EPS)
        cur = cout
        res_kind = 'identity' if (cin == cout and stride == 1) else 'conv'
        stage_cfg.append((cin, cout, stride, res_kind))

    blocks = []
    for (cin, cout, stride, res_kind) in stage_cfg:
        blk = dict(gcn=make_gcn(cin, cout), tcn=make_tcn(cout, cout, 9, stride),
                   res_kind=res_kind, stride=stride, cin=cin, cout=cout)
        if res_kind == 'conv':
            blk['res'] = make_tcn(cin, cout, 1, stride)        # unit_tcn(k=1, s)
        blocks.append(blk)
    params['blocks'] = blocks
    return params


# ----------------------------------------------------------------------------
# Pure-JAX (f32) reference of the same forward pass (for validation)
# ----------------------------------------------------------------------------
def dgstgcn_reference(params, x):
    N, M, T, V, C = x.shape
    s, t = params['data_bn']
    h = x.reshape(N * M, T, V, C) * s.reshape(V, C) + t.reshape(V, C)
    for blk in params['blocks']:
        g, tc = blk['gcn'], blk['tcn']
        cout, stride = blk['cout'], blk['stride']
        K = g['A'].shape[0]
        mid = g['wpre'].shape[1] // K
        pre = jnp.maximum(jnp.einsum('ntvc,cd->ntvd', h, g['wpre']) + g['bpre'], 0.0)
        pre = pre.reshape(pre.shape[0], pre.shape[1], V, K, mid)
        agg = jnp.einsum('ntvkm,kvw->ntwkm', pre, g['A'])
        post = jnp.einsum('ntwkm,kmc->ntwc', agg,
                          g['wpost'].reshape(K, mid, cout)) + g['bpost']
        gres = (jnp.einsum('ntvc,cd->ntvd', h, g['wdown']) + g['bdown']
                if g['wdown'] is not None else h)
        y = jnp.maximum(post + gres, 0.0)

        ks, pad = tc['ks'], (tc['ks'] - 1) // 2
        t_out = (y.shape[1] + 2 * pad - ks) // stride + 1
        ypad = jnp.pad(y, ((0, 0), (pad, pad), (0, 0), (0, 0)))
        out = jnp.zeros((y.shape[0], t_out, V, cout), jnp.float32) + tc['b']
        for k in range(ks):
            taps = ypad[:, k:k + stride * (t_out - 1) + 1:stride]
            out = out + jnp.einsum('ntvc,cd->ntvd', taps, tc['w'][k])

        if blk['res_kind'] == 'zero':
            res = 0.0
        elif blk['res_kind'] == 'identity':
            res = h
        else:
            r = blk['res']
            res = jnp.einsum('ntvc,cd->ntvd', h[:, ::stride], r['w'][0]) + r['b']
        h = jnp.maximum(out + res, 0.0)
    _, Tf, Vf, Cf = h.shape
    return h.transpose(0, 3, 1, 2).reshape(N, M, Cf, Tf, Vf)


if __name__ == "__main__":
    key = jax.random.PRNGKey(0)
    kx, kp = jax.random.split(key)

    N, M, T, V, C = 2, 2, 8, 8, 3
    x = jax.random.normal(kx, (N, M, T, V, C), jnp.float32)

    params = build_dgstgcn_params(
        kp, V=V, in_channels=C, base_channels=16, ch_ratio=2,
        num_stages=4, inflate_stages=(3,), down_stages=(3,))
    packed = pack_dgstgcn_params(params, V)

    out = dgstgcn_forward(packed, x)
    out = jax.block_until_ready(out)

    # Stage 3 downsamples T once (stride 2) and inflates channels 16 -> 32.
    assert out.shape == (N, M, 32, 4, V), out.shape
    assert bool(jnp.all(jnp.isfinite(out)))

    # Cross-check against the pure-JAX f32 reference (bf16 matmuls -> loose tol).
    ref = dgstgcn_reference(params, x)
    err = float(jnp.max(jnp.abs(out - ref)) /
                jnp.maximum(jnp.max(jnp.abs(ref)), 1.0))
    assert err < 0.15, err

    print("KERNEL_OK")
</pallas_src>

<mosaic_0001>
module attributes {stable_mosaic.version = 11 : i64} {
  func.func @dgstgcn_fused_kernel(%arg0: i32, %arg1: memref<2x8x24xf32, #tpu.memory_space<vmem>>, %arg2: memref<1x24xf32, #tpu.memory_space<vmem>>, %arg3: memref<1x24xf32, #tpu.memory_space<vmem>>, %arg4: memref<24x96xbf16, #tpu.memory_space<vmem>>, %arg5: memref<1x96xf32, #tpu.memory_space<vmem>>, %arg6: memref<96x128xbf16, #tpu.memory_space<vmem>>, %arg7: memref<1x128xf32, #tpu.memory_space<vmem>>, %arg8: memref<24x128xbf16, #tpu.memory_space<vmem>>, %arg9: memref<1x128xf32, #tpu.memory_space<vmem>>, %arg10: memref<128x1152xbf16, #tpu.memory_space<vmem>>, %arg11: memref<1x128xf32, #tpu.memory_space<vmem>>, %arg12: memref<16x144xf32, #tpu.memory_space<vmem>>, %arg13: memref<128x96xbf16, #tpu.memory_space<vmem>>, %arg14: memref<1x96xf32, #tpu.memory_space<vmem>>, %arg15: memref<96x128xbf16, #tpu.memory_space<vmem>>, %arg16: memref<1x128xf32, #tpu.memory_space<vmem>>, %arg17: memref<128x1152xbf16, #tpu.memory_space<vmem>>, %arg18: memref<1x128xf32, #tpu.memory_space<vmem>>, %arg19: memref<16x144xf32, #tpu.memory_space<vmem>>, %arg20: memref<128x192xbf16, #tpu.memory_space<vmem>>, %arg21: memref<1x192xf32, #tpu.memory_space<vmem>>, %arg22: memref<192x256xbf16, #tpu.memory_space<vmem>>, %arg23: memref<1x256xf32, #tpu.memory_space<vmem>>, %arg24: memref<128x256xbf16, #tpu.memory_space<vmem>>, %arg25: memref<1x256xf32, #tpu.memory_space<vmem>>, %arg26: memref<256x2304xbf16, #tpu.memory_space<vmem>>, %arg27: memref<1x256xf32, #tpu.memory_space<vmem>>, %arg28: memref<128x256xbf16, #tpu.memory_space<vmem>>, %arg29: memref<1x256xf32, #tpu.memory_space<vmem>>, %arg30: memref<8x144xf32, #tpu.memory_space<vmem>>, %arg31: memref<8x16xf32, #tpu.memory_space<vmem>>, %arg32: memref<256x192xbf16, #tpu.memory_space<vmem>>, %arg33: memref<1x192xf32, #tpu.memory_space<vmem>>, %arg34: memref<192x256xbf16, #tpu.memory_space<vmem>>, %arg35: memref<1x256xf32, #tpu.memory_space<vmem>>, %arg36: memref<256x2304xbf16, #tpu.memory_space<vmem>>, %arg37: memref<1x256xf32, #tpu.memory_space<vmem>>, %arg38: memref<8x72xf32, #tpu.memory_space<vmem>>, %arg39: memref<2x4x256xf32, #tpu.memory_space<vmem>>) attributes {dimension_semantics = [#tpu.dimension_semantics<parallel>], iteration_bounds = array<i64: 2>, scalar_prefetch = 0 : i64, scratch_operands = 0 : i64, tpu.core_type = #tpu.core_type<tc>, window_params = [{transform_indices = @transform_0, window_bounds = array<i64: 2, 8, 24>}, {pipeline_mode = #tpu.pipeline_mode<synchronous>, transform_indices = @transform_1, window_bounds = array<i64: 1, 24>}, {pipeline_mode = #tpu.pipeline_mode<synchronous>, transform_indices = @transform_2, window_bounds = array<i64: 1, 24>}, {pipeline_mode = #tpu.pipeline_mode<synchronous>, transform_indices = @transform_3, window_bounds = array<i64: 24, 96>}, {pipeline_mode = #tpu.pipeline_mode<synchronous>, transform_indices = @transform_4, window_bounds = array<i64: 1, 96>}, {pipeline_mode = #tpu.pipeline_mode<synchronous>, transform_indices = @transform_5, window_bounds = array<i64: 96, 128>}, {pipeline_mode = #tpu.pipeline_mode<synchronous>, transform_indices = @transform_6, window_bounds = array<i64: 1, 128>}, {pipeline_mode = #tpu.pipeline_mode<synchronous>, transform_indices = @transform_7, window_bounds = array<i64: 24, 128>}, {pipeline_mode = #tpu.pipeline_mode<synchronous>, transform_indices = @transform_8, window_bounds = array<i64: 1, 128>}, {pipeline_mode = #tpu.pipeline_mode<synchronous>, transform_indices = @transform_9, window_bounds = array<i64: 128, 1152>}, {pipeline_mode = #tpu.pipeline_mode<synchronous>, transform_indices = @transform_10, window_bounds = array<i64: 1, 128>}, {pipeline_mode = #tpu.pipeline_mode<synchronous>, transform_indices = @transform_11, window_bounds = array<i64: 16, 144>}, {pipeline_mode = #tpu.pipeline_mode<synchronous>, transform_indices = @transform_12, window_bounds = array<i64: 128, 96>}, {pipeline_mode = #tpu.pipeline_mode<synchronous>, transform_indices = @transform_13, window_bounds = array<i64: 1, 96>}, {pipeline_mode = #tpu.pipeline_mode<synchronous>, transform_indices = @transform_14, window_bounds = array<i64: 96, 128>}, {pipeline_mode = #tpu.pipeline_mode<synchronous>, transform_indices = @transform_15, window_bounds = array<i64: 1, 128>}, {pipeline_mode = #tpu.pipeline_mode<synchronous>, transform_indices = @transform_16, window_bounds = array<i64: 128, 1152>}, {pipeline_mode = #tpu.pipeline_mode<synchronous>, transform_indices = @transform_17, window_bounds = array<i64: 1, 128>}, {pipeline_mode = #tpu.pipeline_mode<synchronous>, transform_indices = @transform_18, window_bounds = array<i64: 16, 144>}, {pipeline_mode = #tpu.pipeline_mode<synchronous>, transform_indices = @transform_19, window_bounds = array<i64: 128, 192>}, {pipeline_mode = #tpu.pipeline_mode<synchronous>, transform_indices = @transform_20, window_bounds = array<i64: 1, 192>}, {pipeline_mode = #tpu.pipeline_mode<synchronous>, transform_indices = @transform_21, window_bounds = array<i64: 192, 256>}, {pipeline_mode = #tpu.pipeline_mode<synchronous>, transform_indices = @transform_22, window_bounds = array<i64: 1, 256>}, {pipeline_mode = #tpu.pipeline_mode<synchronous>, transform_indices = @transform_23, window_bounds = array<i64: 128, 256>}, {pipeline_mode = #tpu.pipeline_mode<synchronous>, transform_indices = @transform_24, window_bounds = array<i64: 1, 256>}, {pipeline_mode = #tpu.pipeline_mode<synchronous>, transform_indices = @transform_25, window_bounds = array<i64: 256, 2304>}, {pipeline_mode = #tpu.pipeline_mode<synchronous>, transform_indices = @transform_26, window_bounds = array<i64: 1, 256>}, {pipeline_mode = #tpu.pipeline_mode<synchronous>, transform_indices = @transform_27, window_bounds = array<i64: 128, 256>}, {pipeline_mode = #tpu.pipeline_mode<synchronous>, transform_indices = @transform_28, window_bounds = array<i64: 1, 256>}, {pipeline_mode = #tpu.pipeline_mode<synchronous>, transform_indices = @transform_29, window_bounds = array<i64: 8, 144>}, {pipeline_mode = #tpu.pipeline_mode<synchronous>, transform_indices = @transform_30, window_bounds = array<i64: 8, 16>}, {pipeline_mode = #tpu.pipeline_mode<synchronous>, transform_indices = @transform_31, window_bounds = array<i64: 256, 192>}, {pipeline_mode = #tpu.pipeline_mode<synchronous>, transform_indices = @transform_32, window_bounds = array<i64: 1, 192>}, {pipeline_mode = #tpu.pipeline_mode<synchronous>, transform_indices = @transform_33, window_bounds = array<i64: 192, 256>}, {pipeline_mode = #tpu.pipeline_mode<synchronous>, transform_indices = @transform_34, window_bounds = array<i64: 1, 256>}, {pipeline_mode = #tpu.pipeline_mode<synchronous>, transform_indices = @transform_35, window_bounds = array<i64: 256, 2304>}, {pipeline_mode = #tpu.pipeline_mode<synchronous>, transform_indices = @transform_36, window_bounds = array<i64: 1, 256>}, {pipeline_mode = #tpu.pipeline_mode<synchronous>, transform_indices = @transform_37, window_bounds = array<i64: 8, 72>}, {transform_indices = @transform_38, window_bounds = array<i64: 2, 4, 256>}]} {
    %c0 = arith.constant 0 : index
    %c0_0 = arith.constant 0 : index
    %c0_1 = arith.constant 0 : index
    %0 = vector.load %arg1[%c0, %c0_0, %c0_1] : memref<2x8x24xf32, #tpu.memory_space<vmem>>, vector<2x8x24xf32>
    %c0_2 = arith.constant 0 : index
    %c0_3 = arith.constant 0 : index
    %1 = vector.load %arg2[%c0_2, %c0_3] : memref<1x24xf32, #tpu.memory_space<vmem>>, vector<1x24xf32>
    %2 = vector.shape_cast %1 : vector<1x24xf32> to vector<1x1x24xf32>
    %3 = vector.broadcast %2 : vector<1x1x24xf32> to vector<2x8x24xf32>
    %4 = arith.mulf %0, %3 : vector<2x8x24xf32>
    %c0_4 = arith.constant 0 : index
    %c0_5 = arith.constant 0 : index
    %5 = vector.load %arg3[%c0_4, %c0_5] : memref<1x24xf32, #tpu.memory_space<vmem>>, vector<1x24xf32>
    %6 = vector.shape_cast %5 : vector<1x24xf32> to vector<1x1x24xf32>
    %7 = vector.broadcast %6 : vector<1x1x24xf32> to vector<2x8x24xf32>
    %8 = arith.addf %4, %7 : vector<2x8x24xf32>
    %c0_6 = arith.constant 0 : index
    %c0_7 = arith.constant 0 : index
    %9 = vector.load %arg4[%c0_6, %c0_7] : memref<24x96xbf16, #tpu.memory_space<vmem>>, vector<24x96xbf16>
    %c0_8 = arith.constant 0 : index
    %c0_9 = arith.constant 0 : index
    %10 = vector.load %arg5[%c0_8, %c0_9] : memref<1x96xf32, #tpu.memory_space<vmem>>, vector<1x96xf32>
    %c0_10 = arith.constant 0 : index
    %c0_11 = arith.constant 0 : index
    %11 = vector.load %arg6[%c0_10, %c0_11] : memref<96x128xbf16, #tpu.memory_space<vmem>>, vector<96x128xbf16>
    %c0_12 = arith.constant 0 : index
    %c0_13 = arith.constant 0 : index
    %12 = vector.load %arg7[%c0_12, %c0_13] : memref<1x128xf32, #tpu.memory_space<vmem>>, vector<1x128xf32>
    %c0_14 = arith.constant 0 : index
    %c0_15 = arith.constant 0 : index
    %13 = vector.load %arg8[%c0_14, %c0_15] : memref<24x128xbf16, #tpu.memory_space<vmem>>, vector<24x128xbf16>
    %c0_16 = arith.constant 0 : index
    %c0_17 = arith.constant 0 : index
    %14 = vector.load %arg9[%c0_16, %c0_17] : memref<1x128xf32, #tpu.memory_space<vmem>>, vector<1x128xf32>
    %c0_18 = arith.constant 0 : index
    %c0_19 = arith.constant 0 : index
    %15 = vector.load %arg10[%c0_18, %c0_19] : memref<128x1152xbf16, #tpu.memory_space<vmem>>, vector<128x1152xbf16>
    %c0_20 = arith.constant 0 : index
    %c0_21 = arith.constant 0 : index
    %16 = vector.load %arg11[%c0_20, %c0_21] : memref<1x128xf32, #tpu.memory_space<vmem>>, vector<1x128xf32>
    %c0_22 = arith.constant 0 : index
    %c0_23 = arith.constant 0 : index
    %17 = vector.load %arg12[%c0_22, %c0_23] : memref<16x144xf32, #tpu.memory_space<vmem>>, vector<16x144xf32>
    %18 = vector.shape_cast %8 : vector<2x8x24xf32> to vector<16x24xf32>
    %19 = arith.truncf %18 : vector<16x24xf32> to vector<16x24xbf16>
    %cst = arith.constant dense<0.000000e+00> : vector<16x96xf32>
    %20 = tpu.matmul %19, %9, %cst {dimension_numbers = #tpu.dot_dimension_numbers<[1], [0], [0], [1], [0, 0, 1, 1], [], []>} : vector<16x24xbf16>, vector<24x96xbf16>, vector<16x96xf32> -> vector<16x96xf32>
    %21 = vector.broadcast %10 : vector<1x96xf32> to vector<16x96xf32>
    %22 = arith.addf %20, %21 : vector<16x96xf32>
    %cst_24 = arith.constant 0.000000e+00 : f32
    %23 = vector.broadcast %cst_24 : f32 to vector<16x96xf32>
    %24 = arith.maximumf %22, %23 : vector<16x96xf32>
    %25 = arith.truncf %24 : vector<16x96xf32> to vector<16x96xbf16>
    %cst_25 = arith.constant dense<0.000000e+00> : vector<16x128xf32>
    %26 = tpu.matmul %25, %11, %cst_25 {dimension_numbers = #tpu.dot_dimension_numbers<[1], [0], [0], [1], [0, 0, 1, 1], [], []>} : vector<16x96xbf16>, vector<96x128xbf16>, vector<16x128xf32> -> vector<16x128xf32>
    %27 = vector.broadcast %12 : vector<1x128xf32> to vector<16x128xf32>
    %28 = arith.addf %26, %27 : vector<16x128xf32>
    %cst_26 = arith.constant dense<0.000000e+00> : vector<16x128xf32>
    %29 = tpu.matmul %19, %13, %cst_26 {dimension_numbers = #tpu.dot_dimension_numbers<[1], [0], [0], [1], [0, 0, 1, 1], [], []>} : vector<16x24xbf16>, vector<24x128xbf16>, vector<16x128xf32> -> vector<16x128xf32>
    %30 = vector.broadcast %14 : vector<1x128xf32> to vector<16x128xf32>
    %31 = arith.addf %29, %30 : vector<16x128xf32>
    %32 = arith.addf %28, %31 : vector<16x128xf32>
    %cst_27 = arith.constant 0.000000e+00 : f32
    %33 = vector.broadcast %cst_27 : f32 to vector<16x128xf32>
    %34 = arith.maximumf %32, %33 : vector<16x128xf32>
    %35 = arith.truncf %34 : vector<16x128xf32> to vector<16x128xbf16>
    %cst_28 = arith.constant dense<0.000000e+00> : vector<16x1152xf32>
    %36 = tpu.matmul %35, %15, %cst_28 {dimension_numbers = #tpu.dot_dimension_numbers<[1], [0], [0], [1], [0, 0, 1, 1], [], []>} : vector<16x128xbf16>, vector<128x1152xbf16>, vector<16x1152xf32> -> vector<16x1152xf32>
    %37 = vector.extract_strided_slice %36 {offsets = [0, 0], sizes = [16, 128], strides = [1, 1]} : vector<16x1152xf32> to vector<16x128xf32>
    %38 = vector.extract_strided_slice %36 {offsets = [0, 128], sizes = [16, 128], strides = [1, 1]} : vector<16x1152xf32> to vector<16x128xf32>
    %39 = vector.extract_strided_slice %36 {offsets = [0, 256], sizes = [16, 128], strides = [1, 1]} : vector<16x1152xf32> to vector<16x128xf32>
    %40 = vector.extract_strided_slice %36 {offsets = [0, 384], sizes = [16, 128], strides = [1, 1]} : vector<16x1152xf32> to vector<16x128xf32>
    %41 = vector.extract_strided_slice %36 {offsets = [0, 512], sizes = [16, 128], strides = [1, 1]} : vector<16x1152xf32> to vector<16x128xf32>
    %42 = vector.extract_strided_slice %36 {offsets = [0, 640], sizes = [16, 128], strides = [1, 1]} : vector<16x1152xf32> to vector<16x128xf32>
    %43 = vector.extract_strided_slice %36 {offsets = [0, 768], sizes = [16, 128], strides = [1, 1]} : vector<16x1152xf32> to vector<16x128xf32>
    %44 = vector.extract_strided_slice %36 {offsets = [0, 896], sizes = [16, 128], strides = [1, 1]} : vector<16x1152xf32> to vector<16x128xf32>
    %45 = vector.extract_strided_slice %36 {offsets = [0, 1024], sizes = [16, 128], strides = [1, 1]} : vector<16x1152xf32> to vector<16x128xf32>
    %46 = tpu.concatenate %37, %38, %39, %40, %41, %42, %43, %44, %45 in 0 : vector<16x128xf32>, vector<16x128xf32>, vector<16x128xf32>, vector<16x128xf32>, vector<16x128xf32>, vector<16x128xf32>, vector<16x128xf32>, vector<16x128xf32>, vector<16x128xf32> -> vector<144x128xf32>
    %cst_29 = arith.constant dense<0.000000e+00> : vector<16x128xf32>
    %47 = tpu.matmul %17, %46, %cst_29 {dimension_numbers = #tpu.dot_dimension_numbers<[1], [0], [0], [1], [0, 0, 1, 1], [], []>} : vector<16x144xf32>, vector<144x128xf32>, vector<16x128xf32> -> vector<16x128xf32>
    %48 = vector.broadcast %16 : vector<1x128xf32> to vector<16x128xf32>
    %49 = arith.addf %47, %48 : vector<16x128xf32>
    %cst_30 = arith.constant 0.000000e+00 : f32
    %50 = vector.broadcast %cst_30 : f32 to vector<16x128xf32>
    %51 = arith.maximumf %49, %50 : vector<16x128xf32>
    %52 = vector.shape_cast %51 : vector<16x128xf32> to vector<2x8x128xf32>
    %c0_31 = arith.constant 0 : index
    %c0_32 = arith.constant 0 : index
    %53 = vector.load %arg13[%c0_31, %c0_32] : memref<128x96xbf16, #tpu.memory_space<vmem>>, vector<128x96xbf16>
    %c0_33 = arith.constant 0 : index
    %c0_34 = arith.constant 0 : index
    %54 = vector.load %arg14[%c0_33, %c0_34] : memref<1x96xf32, #tpu.memory_space<vmem>>, vector<1x96xf32>
    %c0_35 = arith.constant 0 : index
    %c0_36 = arith.constant 0 : index
    %55 = vector.load %arg15[%c0_35, %c0_36] : memref<96x128xbf16, #tpu.memory_space<vmem>>, vector<96x128xbf16>
    %c0_37 = arith.constant 0 : index
    %c0_38 = arith.constant 0 : index
    %56 = vector.load %arg16[%c0_37, %c0_38] : memref<1x128xf32, #tpu.memory_space<vmem>>, vector<1x128xf32>
    %c0_39 = arith.constant 0 : index
    %c0_40 = arith.constant 0 : index
    %57 = vector.load %arg17[%c0_39, %c0_40] : memref<128x1152xbf16, #tpu.memory_space<vmem>>, vector<128x1152xbf16>
    %c0_41 = arith.constant 0 : index
    %c0_42 = arith.constant 0 : index
    %58 = vector.load %arg18[%c0_41, %c0_42] : memref<1x128xf32, #tpu.memory_space<vmem>>, vector<1x128xf32>
    %c0_43 = arith.constant 0 : index
    %c0_44 = arith.constant 0 : index
    %59 = vector.load %arg19[%c0_43, %c0_44] : memref<16x144xf32, #tpu.memory_space<vmem>>, vector<16x144xf32>
    %60 = vector.shape_cast %52 : vector<2x8x128xf32> to vector<16x128xf32>
    %61 = arith.truncf %60 : vector<16x128xf32> to vector<16x128xbf16>
    %cst_45 = arith.constant dense<0.000000e+00> : vector<16x96xf32>
    %62 = tpu.matmul %61, %53, %cst_45 {dimension_numbers = #tpu.dot_dimension_numbers<[1], [0], [0], [1], [0, 0, 1, 1], [], []>} : vector<16x128xbf16>, vector<128x96xbf16>, vector<16x96xf32> -> vector<16x96xf32>
    %63 = vector.broadcast %54 : vector<1x96xf32> to vector<16x96xf32>
    %64 = arith.addf %62, %63 : vector<16x96xf32>
    %cst_46 = arith.constant 0.000000e+00 : f32
    %65 = vector.broadcast %cst_46 : f32 to vector<16x96xf32>
    %66 = arith.maximumf %64, %65 : vector<16x96xf32>
    %67 = arith.truncf %66 : vector<16x96xf32> to vector<16x96xbf16>
    %cst_47 = arith.constant dense<0.000000e+00> : vector<16x128xf32>
    %68 = tpu.matmul %67, %55, %cst_47 {dimension_numbers = #tpu.dot_dimension_numbers<[1], [0], [0], [1], [0, 0, 1, 1], [], []>} : vector<16x96xbf16>, vector<96x128xbf16>, vector<16x128xf32> -> vector<16x128xf32>
    %69 = vector.broadcast %56 : vector<1x128xf32> to vector<16x128xf32>
    %70 = arith.addf %68, %69 : vector<16x128xf32>
    %71 = arith.addf %70, %60 : vector<16x128xf32>
    %cst_48 = arith.constant 0.000000e+00 : f32
    %72 = vector.broadcast %cst_48 : f32 to vector<16x128xf32>
    %73 = arith.maximumf %71, %72 : vector<16x128xf32>
    %74 = arith.truncf %73 : vector<16x128xf32> to vector<16x128xbf16>
    %cst_49 = arith.constant dense<0.000000e+00> : vector<16x1152xf32>
    %75 = tpu.matmul %74, %57, %cst_49 {dimension_numbers = #tpu.dot_dimension_numbers<[1], [0], [0], [1], [0, 0, 1, 1], [], []>} : vector<16x128xbf16>, vector<128x1152xbf16>, vector<16x1152xf32> -> vector<16x1152xf32>
    %76 = vector.extract_strided_slice %75 {offsets = [0, 0], sizes = [16, 128], strides = [1, 1]} : vector<16x1152xf32> to vector<16x128xf32>
    %77 = vector.extract_strided_slice %75 {offsets = [0, 128], sizes = [16, 128], strides = [1, 1]} : vector<16x1152xf32> to vector<16x128xf32>
    %78 = vector.extract_strided_slice %75 {offsets = [0, 256], sizes = [16, 128], strides = [1, 1]} : vector<16x1152xf32> to vector<16x128xf32>
    %79 = vector.extract_strided_slice %75 {offsets = [0, 384], sizes = [16, 128], strides = [1, 1]} : vector<16x1152xf32> to vector<16x128xf32>
    %80 = vector.extract_strided_slice %75 {offsets = [0, 512], sizes = [16, 128], strides = [1, 1]} : vector<16x1152xf32> to vector<16x128xf32>
    %81 = vector.extract_strided_slice %75 {offsets = [0, 640], sizes = [16, 128], strides = [1, 1]} : vector<16x1152xf32> to vector<16x128xf32>
    %82 = vector.extract_strided_slice %75 {offsets = [0, 768], sizes = [16, 128], strides = [1, 1]} : vector<16x1152xf32> to vector<16x128xf32>
    %83 = vector.extract_strided_slice %75 {offsets = [0, 896], sizes = [16, 128], strides = [1, 1]} : vector<16x1152xf32> to vector<16x128xf32>
    %84 = vector.extract_strided_slice %75 {offsets = [0, 1024], sizes = [16, 128], strides = [1, 1]} : vector<16x1152xf32> to vector<16x128xf32>
    %85 = tpu.concatenate %76, %77, %78, %79, %80, %81, %82, %83, %84 in 0 : vector<16x128xf32>, vector<16x128xf32>, vector<16x128xf32>, vector<16x128xf32>, vector<16x128xf32>, vector<16x128xf32>, vector<16x128xf32>, vector<16x128xf32>, vector<16x128xf32> -> vector<144x128xf32>
    %cst_50 = arith.constant dense<0.000000e+00> : vector<16x128xf32>
    %86 = tpu.matmul %59, %85, %cst_50 {dimension_numbers = #tpu.dot_dimension_numbers<[1], [0], [0], [1], [0, 0, 1, 1], [], []>} : vector<16x144xf32>, vector<144x128xf32>, vector<16x128xf32> -> vector<16x128xf32>
    %87 = vector.broadcast %58 : vector<1x128xf32> to vector<16x128xf32>
    %88 = arith.addf %86, %87 : vector<16x128xf32>
    %89 = arith.addf %88, %60 : vector<16x128xf32>
    %cst_51 = arith.constant 0.000000e+00 : f32
    %90 = vector.broadcast %cst_51 : f32 to vector<16x128xf32>
    %91 = arith.maximumf %89, %90 : vector<16x128xf32>
    %92 = vector.shape_cast %91 : vector<16x128xf32> to vector<2x8x128xf32>
    %c0_52 = arith.constant 0 : index
    %c0_53 = arith.constant 0 : index
    %93 = vector.load %arg20[%c0_52, %c0_53] : memref<128x192xbf16, #tpu.memory_space<vmem>>, vector<128x192xbf16>
    %c0_54 = arith.constant 0 : index
    %c0_55 = arith.constant 0 : index
    %94 = vector.load %arg21[%c0_54, %c0_55] : memref<1x192xf32, #tpu.memory_space<vmem>>, vector<1x192xf32>
    %c0_56 = arith.constant 0 : index
    %c0_57 = arith.constant 0 : index
    %95 = vector.load %arg22[%c0_56, %c0_57] : memref<192x256xbf16, #tpu.memory_space<vmem>>, vector<192x256xbf16>
    %c0_58 = arith.constant 0 : index
    %c0_59 = arith.constant 0 : index
    %96 = vector.load %arg23[%c0_58, %c0_59] : memref<1x256xf32, #tpu.memory_space<vmem>>, vector<1x256xf32>
    %c0_60 = arith.constant 0 : index
    %c0_61 = arith.constant 0 : index
    %97 = vector.load %arg24[%c0_60, %c0_61] : memref<128x256xbf16, #tpu.memory_space<vmem>>, vector<128x256xbf16>
    %c0_62 = arith.constant 0 : index
    %c0_63 = arith.constant 0 : index
    %98 = vector.load %arg25[%c0_62, %c0_63] : memref<1x256xf32, #tpu.memory_space<vmem>>, vector<1x256xf32>
    %c0_64 = arith.constant 0 : index
    %c0_65 = arith.constant 0 : index
    %99 = vector.load %arg26[%c0_64, %c0_65] : memref<256x2304xbf16, #tpu.memory_space<vmem>>, vector<256x2304xbf16>
    %c0_66 = arith.constant 0 : index
    %c0_67 = arith.constant 0 : index
    %100 = vector.load %arg27[%c0_66, %c0_67] : memref<1x256xf32, #tpu.memory_space<vmem>>, vector<1x256xf32>
    %c0_68 = arith.constant 0 : index
    %c0_69 = arith.constant 0 : index
    %101 = vector.load %arg28[%c0_68, %c0_69] : memref<128x256xbf16, #tpu.memory_space<vmem>>, vector<128x256xbf16>
    %c0_70 = arith.constant 0 : index
    %c0_71 = arith.constant 0 : index
    %102 = vector.load %arg29[%c0_70, %c0_71] : memref<1x256xf32, #tpu.memory_space<vmem>>, vector<1x256xf32>
    %c0_72 = arith.constant 0 : index
    %c0_73 = arith.constant 0 : index
    %103 = vector.load %arg30[%c0_72, %c0_73] : memref<8x144xf32, #tpu.memory_space<vmem>>, vector<8x144xf32>
    %c0_74 = arith.constant 0 : index
    %c0_75 = arith.constant 0 : index
    %104 = vector.load %arg31[%c0_74, %c0_75] : memref<8x16xf32, #tpu.memory_space<vmem>>, vector<8x16xf32>
    %105 = vector.shape_cast %92 : vector<2x8x128xf32> to vector<16x128xf32>
    %106 = arith.truncf %105 : vector<16x128xf32> to vector<16x128xbf16>
    %cst_76 = arith.constant dense<0.000000e+00> : vector<16x192xf32>
    %107 = tpu.matmul %106, %93, %cst_76 {dimension_numbers = #tpu.dot_dimension_numbers<[1], [0], [0], [1], [0, 0, 1, 1], [], []>} : vector<16x128xbf16>, vector<128x192xbf16>, vector<16x192xf32> -> vector<16x192xf32>
    %108 = vector.broadcast %94 : vector<1x192xf32> to vector<16x192xf32>
    %109 = arith.addf %107, %108 : vector<16x192xf32>
    %cst_77 = arith.constant 0.000000e+00 : f32
    %110 = vector.broadcast %cst_77 : f32 to vector<16x192xf32>
    %111 = arith.maximumf %109, %110 : vector<16x192xf32>
    %112 = arith.truncf %111 : vector<16x192xf32> to vector<16x192xbf16>
    %cst_78 = arith.constant dense<0.000000e+00> : vector<16x256xf32>
    %113 = tpu.matmul %112, %95, %cst_78 {dimension_numbers = #tpu.dot_dimension_numbers<[1], [0], [0], [1], [0, 0, 1, 1], [], []>} : vector<16x192xbf16>, vector<192x256xbf16>, vector<16x256xf32> -> vector<16x256xf32>
    %114 = vector.broadcast %96 : vector<1x256xf32> to vector<16x256xf32>
    %115 = arith.addf %113, %114 : vector<16x256xf32>
    %cst_79 = arith.constant dense<0.000000e+00> : vector<16x256xf32>
    %116 = tpu.matmul %106, %97, %cst_79 {dimension_numbers = #tpu.dot_dimension_numbers<[1], [0], [0], [1], [0, 0, 1, 1], [], []>} : vector<16x128xbf16>, vector<128x256xbf16>, vector<16x256xf32> -> vector<16x256xf32>
    %117 = vector.broadcast %98 : vector<1x256xf32> to vector<16x256xf32>
    %118 = arith.addf %116, %117 : vector<16x256xf32>
    %119 = arith.addf %115, %118 : vector<16x256xf32>
    %cst_80 = arith.constant 0.000000e+00 : f32
    %120 = vector.broadcast %cst_80 : f32 to vector<16x256xf32>
    %121 = arith.maximumf %119, %120 : vector<16x256xf32>
    %122 = arith.truncf %121 : vector<16x256xf32> to vector<16x256xbf16>
    %cst_81 = arith.constant dense<0.000000e+00> : vector<16x2304xf32>
    %123 = tpu.matmul %122, %99, %cst_81 {dimension_numbers = #tpu.dot_dimension_numbers<[1], [0], [0], [1], [0, 0, 1, 1], [], []>} : vector<16x256xbf16>, vector<256x2304xbf16>, vector<16x2304xf32> -> vector<16x2304xf32>
    %124 = vector.extract_strided_slice %123 {offsets = [0, 0], sizes = [16, 256], strides = [1, 1]} : vector<16x2304xf32> to vector<16x256xf32>
    %125 = vector.extract_strided_slice %123 {offsets = [0, 256], sizes = [16, 256], strides = [1, 1]} : vector<16x2304xf32> to vector<16x256xf32>
    %126 = vector.extract_strided_slice %123 {offsets = [0, 512], sizes = [16, 256], strides = [1, 1]} : vector<16x2304xf32> to vector<16x256xf32>
    %127 = vector.extract_strided_slice %123 {offsets = [0, 768], sizes = [16, 256], strides = [1, 1]} : vector<16x2304xf32> to vector<16x256xf32>
    %128 = vector.extract_strided_slice %123 {offsets = [0, 1024], sizes = [16, 256], strides = [1, 1]} : vector<16x2304xf32> to vector<16x256xf32>
    %129 = vector.extract_strided_slice %123 {offsets = [0, 1280], sizes = [16, 256], strides = [1, 1]} : vector<16x2304xf32> to vector<16x256xf32>
    %130 = vector.extract_strided_slice %123 {offsets = [0, 1536], sizes = [16, 256], strides = [1, 1]} : vector<16x2304xf32> to vector<16x256xf32>
    %131 = vector.extract_strided_slice %123 {offsets = [0, 1792], sizes = [16, 256], strides = [1, 1]} : vector<16x2304xf32> to vector<16x256xf32>
    %132 = vector.extract_strided_slice %123 {offsets = [0, 2048], sizes = [16, 256], strides = [1, 1]} : vector<16x2304xf32> to vector<16x256xf32>
    %133 = tpu.concatenate %124, %125, %126, %127, %128, %129, %130, %131, %132 in 0 : vector<16x256xf32>, vector<16x256xf32>, vector<16x256xf32>, vector<16x256xf32>, vector<16x256xf32>, vector<16x256xf32>, vector<16x256xf32>, vector<16x256xf32>, vector<16x256xf32> -> vector<144x256xf32>
    %cst_82 = arith.constant dense<0.000000e+00> : vector<8x256xf32>
    %134 = tpu.matmul %103, %133, %cst_82 {dimension_numbers = #tpu.dot_dimension_numbers<[1], [0], [0], [1], [0, 0, 1, 1], [], []>} : vector<8x144xf32>, vector<144x256xf32>, vector<8x256xf32> -> vector<8x256xf32>
    %135 = vector.broadcast %100 : vector<1x256xf32> to vector<8x256xf32>
    %136 = arith.addf %134, %135 : vector<8x256xf32>
    %cst_83 = arith.constant dense<0.000000e+00> : vector<8x128xf32>
    %137 = tpu.matmul %104, %105, %cst_83 {dimension_numbers = #tpu.dot_dimension_numbers<[1], [0], [0], [1], [0, 0, 1, 1], [], []>} : vector<8x16xf32>, vector<16x128xf32>, vector<8x128xf32> -> vector<8x128xf32>
    %138 = arith.truncf %137 : vector<8x128xf32> to vector<8x128xbf16>
    %cst_84 = arith.constant dense<0.000000e+00> : vector<8x256xf32>
    %139 = tpu.matmul %138, %101, %cst_84 {dimension_numbers = #tpu.dot_dimension_numbers<[1], [0], [0], [1], [0, 0, 1, 1], [], []>} : vector<8x128xbf16>, vector<128x256xbf16>, vector<8x256xf32> -> vector<8x256xf32>
    %140 = arith.addf %136, %139 : vector<8x256xf32>
    %141 = vector.broadcast %102 : vector<1x256xf32> to vector<8x256xf32>
    %142 = arith.addf %140, %141 : vector<8x256xf32>
    %cst_85 = arith.constant 0.000000e+00 : f32
    %143 = vector.broadcast %cst_85 : f32 to vector<8x256xf32>
    %144 = arith.maximumf %142, %143 : vector<8x256xf32>
    %145 = vector.shape_cast %144 : vector<8x256xf32> to vector<2x4x256xf32>
    %c0_86 = arith.constant 0 : index
    %c0_87 = arith.constant 0 : index
    %146 = vector.load %arg32[%c0_86, %c0_87] : memref<256x192xbf16, #tpu.memory_space<vmem>>, vector<256x192xbf16>
    %c0_88 = arith.constant 0 : index
    %c0_89 = arith.constant 0 : index
    %147 = vector.load %arg33[%c0_88, %c0_89] : memref<1x192xf32, #tpu.memory_space<vmem>>, vector<1x192xf32>
    %c0_90 = arith.constant 0 : index
    %c0_91 = arith.constant 0 : index
    %148 = vector.load %arg34[%c0_90, %c0_91] : memref<192x256xbf16, #tpu.memory_space<vmem>>, vector<192x256xbf16>
    %c0_92 = arith.constant 0 : index
    %c0_93 = arith.constant 0 : index
    %149 = vector.load %arg35[%c0_92, %c0_93] : memref<1x256xf32, #tpu.memory_space<vmem>>, vector<1x256xf32>
    %c0_94 = arith.constant 0 : index
    %c0_95 = arith.constant 0 : index
    %150 = vector.load %arg36[%c0_94, %c0_95] : memref<256x2304xbf16, #tpu.memory_space<vmem>>, vector<256x2304xbf16>
    %c0_96 = arith.constant 0 : index
    %c0_97 = arith.constant 0 : index
    %151 = vector.load %arg37[%c0_96, %c0_97] : memref<1x256xf32, #tpu.memory_space<vmem>>, vector<1x256xf32>
    %c0_98 = arith.constant 0 : index
    %c0_99 = arith.constant 0 : index
    %152 = vector.load %arg38[%c0_98, %c0_99] : memref<8x72xf32, #tpu.memory_space<vmem>>, vector<8x72xf32>
    %153 = vector.shape_cast %145 : vector<2x4x256xf32> to vector<8x256xf32>
    %154 = arith.truncf %153 : vector<8x256xf32> to vector<8x256xbf16>
    %cst_100 = arith.constant dense<0.000000e+00> : vector<8x192xf32>
    %155 = tpu.matmul %154, %146, %cst_100 {dimension_numbers = #tpu.dot_dimension_numbers<[1], [0], [0], [1], [0, 0, 1, 1], [], []>} : vector<8x256xbf16>, vector<256x192xbf16>, vector<8x192xf32> -> vector<8x192xf32>
    %156 = vector.broadcast %147 : vector<1x192xf32> to vector<8x192xf32>
    %157 = arith.addf %155, %156 : vector<8x192xf32>
    %cst_101 = arith.constant 0.000000e+00 : f32
    %158 = vector.broadcast %cst_101 : f32 to vector<8x192xf32>
    %159 = arith.maximumf %157, %158 : vector<8x192xf32>
    %160 = arith.truncf %159 : vector<8x192xf32> to vector<8x192xbf16>
    %cst_102 = arith.constant dense<0.000000e+00> : vector<8x256xf32>
    %161 = tpu.matmul %160, %148, %cst_102 {dimension_numbers = #tpu.dot_dimension_numbers<[1], [0], [0], [1], [0, 0, 1, 1], [], []>} : vector<8x192xbf16>, vector<192x256xbf16>, vector<8x256xf32> -> vector<8x256xf32>
    %162 = vector.broadcast %149 : vector<1x256xf32> to vector<8x256xf32>
    %163 = arith.addf %161, %162 : vector<8x256xf32>
    %164 = arith.addf %163, %153 : vector<8x256xf32>
    %cst_103 = arith.constant 0.000000e+00 : f32
    %165 = vector.broadcast %cst_103 : f32 to vector<8x256xf32>
    %166 = arith.maximumf %164, %165 : vector<8x256xf32>
    %167 = arith.truncf %166 : vector<8x256xf32> to vector<8x256xbf16>
    %cst_104 = arith.constant dense<0.000000e+00> : vector<8x2304xf32>
    %168 = tpu.matmul %167, %150, %cst_104 {dimension_numbers = #tpu.dot_dimension_numbers<[1], [0], [0], [1], [0, 0, 1, 1], [], []>} : vector<8x256xbf16>, vector<256x2304xbf16>, vector<8x2304xf32> -> vector<8x2304xf32>
    %169 = vector.extract_strided_slice %168 {offsets = [0, 0], sizes = [8, 256], strides = [1, 1]} : vector<8x2304xf32> to vector<8x256xf32>
    %170 = vector.extract_strided_slice %168 {offsets = [0, 256], sizes = [8, 256], strides = [1, 1]} : vector<8x2304xf32> to vector<8x256xf32>
    %171 = vector.extract_strided_slice %168 {offsets = [0, 512], sizes = [8, 256], strides = [1, 1]} : vector<8x2304xf32> to vector<8x256xf32>
    %172 = vector.extract_strided_slice %168 {offsets = [0, 768], sizes = [8, 256], strides = [1, 1]} : vector<8x2304xf32> to vector<8x256xf32>
    %173 = vector.extract_strided_slice %168 {offsets = [0, 1024], sizes = [8, 256], strides = [1, 1]} : vector<8x2304xf32> to vector<8x256xf32>
    %174 = vector.extract_strided_slice %168 {offsets = [0, 1280], sizes = [8, 256], strides = [1, 1]} : vector<8x2304xf32> to vector<8x256xf32>
    %175 = vector.extract_strided_slice %168 {offsets = [0, 1536], sizes = [8, 256], strides = [1, 1]} : vector<8x2304xf32> to vector<8x256xf32>
    %176 = vector.extract_strided_slice %168 {offsets = [0, 1792], sizes = [8, 256], strides = [1, 1]} : vector<8x2304xf32> to vector<8x256xf32>
    %177 = vector.extract_strided_slice %168 {offsets = [0, 2048], sizes = [8, 256], strides = [1, 1]} : vector<8x2304xf32> to vector<8x256xf32>
    %178 = tpu.concatenate %169, %170, %171, %172, %173, %174, %175, %176, %177 in 0 : vector<8x256xf32>, vector<8x256xf32>, vector<8x256xf32>, vector<8x256xf32>, vector<8x256xf32>, vector<8x256xf32>, vector<8x256xf32>, vector<8x256xf32>, vector<8x256xf32> -> vector<72x256xf32>
    %cst_105 = arith.constant dense<0.000000e+00> : vector<8x256xf32>
    %179 = tpu.matmul %152, %178, %cst_105 {dimension_numbers = #tpu.dot_dimension_numbers<[1], [0], [0], [1], [0, 0, 1, 1], [], []>} : vector<8x72xf32>, vector<72x256xf32>, vector<8x256xf32> -> vector<8x256xf32>
    %180 = vector.broadcast %151 : vector<1x256xf32> to vector<8x256xf32>
    %181 = arith.addf %179, %180 : vector<8x256xf32>
    %182 = arith.addf %181, %153 : vector<8x256xf32>
    %cst_106 = arith.constant 0.000000e+00 : f32
    %183 = vector.broadcast %cst_106 : f32 to vector<8x256xf32>
    %184 = arith.maximumf %182, %183 : vector<8x256xf32>
    %185 = vector.shape_cast %184 : vector<8x256xf32> to vector<2x4x256xf32>
    %c0_107 = arith.constant 0 : index
    %c0_108 = arith.constant 0 : index
    %c0_109 = arith.constant 0 : index
    %186 = vector.load %arg39[%c0_107, %c0_108, %c0_109] : memref<2x4x256xf32, #tpu.memory_space<vmem>>, vector<2x4x256xf32>
    tpu.vector_store %arg39[%c0_107, %c0_108, %c0_109], %185 {strides = array<i32>} : memref<2x4x256xf32, #tpu.memory_space<vmem>>, vector<2x4x256xf32>,
    return
  }
  func.func @transform_0(%arg0: i32) -> (i32, i32, i32) {
    %c0_i32 = arith.constant 0 : i32
    %c0_i32_0 = arith.constant 0 : i32
    %c0_i32_1 = arith.constant 0 : i32
    return %arg0, %c0_i32, %c0_i32_0 : i32, i32, i32
  }
  func.func @transform_1(%arg0: i32) -> (i32, i32) {
    %c0_i32 = arith.constant 0 : i32
    %c0_i32_0 = arith.constant 0 : i32
    %c0_i32_1 = arith.constant 0 : i32
    return %c0_i32, %c0_i32_0 : i32, i32
  }
  func.func @transform_2(%arg0: i32) -> (i32, i32) {
    %c0_i32 = arith.constant 0 : i32
    %c0_i32_0 = arith.constant 0 : i32
    %c0_i32_1 = arith.constant 0 : i32
    return %c0_i32, %c0_i32_0 : i32, i32
  }
  func.func @transform_3(%arg0: i32) -> (i32, i32) {
    %c0_i32 = arith.constant 0 : i32
    %c0_i32_0 = arith.constant 0 : i32
    %c0_i32_1 = arith.constant 0 : i32
    return %c0_i32, %c0_i32_0 : i32, i32
  }
  func.func @transform_4(%arg0: i32) -> (i32, i32) {
    %c0_i32 = arith.constant 0 : i32
    %c0_i32_0 = arith.constant 0 : i32
    %c0_i32_1 = arith.constant 0 : i32
    return %c0_i32, %c0_i32_0 : i32, i32
  }
  func.func @transform_5(%arg0: i32) -> (i32, i32) {
    %c0_i32 = arith.constant 0 : i32
    %c0_i32_0 = arith.constant 0 : i32
    %c0_i32_1 = arith.constant 0 : i32
    return %c0_i32, %c0_i32_0 : i32, i32
  }
  func.func @transform_6(%arg0: i32) -> (i32, i32) {
    %c0_i32 = arith.constant 0 : i32
    %c0_i32_0 = arith.constant 0 : i32
    %c0_i32_1 = arith.constant 0 : i32
    return %c0_i32, %c0_i32_0 : i32, i32
  }
  func.func @transform_7(%arg0: i32) -> (i32, i32) {
    %c0_i32 = arith.constant 0 : i32
    %c0_i32_0 = arith.constant 0 : i32
    %c0_i32_1 = arith.constant 0 : i32
    return %c0_i32, %c0_i32_0 : i32, i32
  }
  func.func @transform_8(%arg0: i32) -> (i32, i32) {
    %c0_i32 = arith.constant 0 : i32
    %c0_i32_0 = arith.constant 0 : i32
    %c0_i32_1 = arith.constant 0 : i32
    return %c0_i32, %c0_i32_0 : i32, i32
  }
  func.func @transform_9(%arg0: i32) -> (i32, i32) {
    %c0_i32 = arith.constant 0 : i32
    %c0_i32_0 = arith.constant 0 : i32
    %c0_i32_1 = arith.constant 0 : i32
    return %c0_i32, %c0_i32_0 : i32, i32
  }
  func.func @transform_10(%arg0: i32) -> (i32, i32) {
    %c0_i32 = arith.constant 0 : i32
    %c0_i32_0 = arith.constant 0 : i32
    %c0_i32_1 = arith.constant 0 : i32
    return %c0_i32, %c0_i32_0 : i32, i32
  }
  func.func @transform_11(%arg0: i32) -> (i32, i32) {
    %c0_i32 = arith.constant 0 : i32
    %c0_i32_0 = arith.constant 0 : i32
    %c0_i32_1 = arith.constant 0 : i32
    return %c0_i32, %c0_i32_0 : i32, i32
  }
  func.func @transform_12(%arg0: i32) -> (i32, i32) {
    %c0_i32 = arith.constant 0 : i32
    %c0_i32_0 = arith.constant 0 : i32
    %c0_i32_1 = arith.constant 0 : i32
    return %c0_i32, %c0_i32_0 : i32, i32
  }
  func.func @transform_13(%arg0: i32) -> (i32, i32) {
    %c0_i32 = arith.constant 0 : i32
    %c0_i32_0 = arith.constant 0 : i32
    %c0_i32_1 = arith.constant 0 : i32
    return %c0_i32, %c0_i32_0 : i32, i32
  }
  func.func @transform_14(%arg0: i32) -> (i32, i32) {
    %c0_i32 = arith.constant 0 : i32
    %c0_i32_0 = arith.constant 0 : i32
    %c0_i32_1 = arith.constant 0 : i32
    return %c0_i32, %c0_i32_0 : i32, i32
  }
  func.func @transform_15(%arg0: i32) -> (i32, i32) {
    %c0_i32 = arith.constant 0 : i32
    %c0_i32_0 = arith.constant 0 : i32
    %c0_i32_1 = arith.constant 0 : i32
    return %c0_i32, %c0_i32_0 : i32, i32
  }
  func.func @transform_16(%arg0: i32) -> (i32, i32) {
    %c0_i32 = arith.constant 0 : i32
    %c0_i32_0 = arith.constant 0 : i32
    %c0_i32_1 = arith.constant 0 : i32
    return %c0_i32, %c0_i32_0 : i32, i32
  }
  func.func @transform_17(%arg0: i32) -> (i32, i32) {
    %c0_i32 = arith.constant 0 : i32
    %c0_i32_0 = arith.constant 0 : i32
    %c0_i32_1 = arith.constant 0 : i32
    return %c0_i32, %c0_i32_0 : i32, i32
  }
  func.func @transform_18(%arg0: i32) -> (i32, i32) {
    %c0_i32 = arith.constant 0 : i32
    %c0_i32_0 = arith.constant 0 : i32
    %c0_i32_1 = arith.constant 0 : i32
    return %c0_i32, %c0_i32_0 : i32, i32
  }
  func.func @transform_19(%arg0: i32) -> (i32, i32) {
    %c0_i32 = arith.constant 0 : i32
    %c0_i32_0 = arith.constant 0 : i32
    %c0_i32_1 = arith.constant 0 : i32
    return %c0_i32, %c0_i32_0 : i32, i32
  }
  func.func @transform_20(%arg0: i32) -> (i32, i32) {
    %c0_i32 = arith.constant 0 : i32
    %c0_i32_0 = arith.constant 0 : i32
    %c0_i32_1 = arith.constant 0 : i32
    return %c0_i32, %c0_i32_0 : i32, i32
  }
  func.func @transform_21(%arg0: i32) -> (i32, i32) {
    %c0_i32 = arith.constant 0 : i32
    %c0_i32_0 = arith.constant 0 : i32
    %c0_i32_1 = arith.constant 0 : i32
    return %c0_i32, %c0_i32_0 : i32, i32
  }
  func.func @transform_22(%arg0: i32) -> (i32, i32) {
    %c0_i32 = arith.constant 0 : i32
    %c0_i32_0 = arith.constant 0 : i32
    %c0_i32_1 = arith.constant 0 : i32
    return %c0_i32, %c0_i32_0 : i32, i32
  }
  func.func @transform_23(%arg0: i32) -> (i32, i32) {
    %c0_i32 = arith.constant 0 : i32
    %c0_i32_0 = arith.constant 0 : i32
    %c0_i32_1 = arith.constant 0 : i32
    return %c0_i32, %c0_i32_0 : i32, i32
  }
  func.func @transform_24(%arg0: i32) -> (i32, i32) {
    %c0_i32 = arith.constant 0 : i32
    %c0_i32_0 = arith.constant 0 : i32
    %c0_i32_1 = arith.constant 0 : i32
    return %c0_i32, %c0_i32_0 : i32, i32
  }
  func.func @transform_25(%arg0: i32) -> (i32, i32) {
    %c0_i32 = arith.constant 0 : i32
    %c0_i32_0 = arith.constant 0 : i32
    %c0_i32_1 = arith.constant 0 : i32
    return %c0_i32, %c0_i32_0 : i32, i32
  }
  func.func @transform_26(%arg0: i32) -> (i32, i32) {
    %c0_i32 = arith.constant 0 : i32
    %c0_i32_0 = arith.constant 0 : i32
    %c0_i32_1 = arith.constant 0 : i32
    return %c0_i32, %c0_i32_0 : i32, i32
  }
  func.func @transform_27(%arg0: i32) -> (i32, i32) {
    %c0_i32 = arith.constant 0 : i32
    %c0_i32_0 = arith.constant 0 : i32
    %c0_i32_1 = arith.constant 0 : i32
    return %c0_i32, %c0_i32_0 : i32, i32
  }
  func.func @transform_28(%arg0: i32) -> (i32, i32) {
    %c0_i32 = arith.constant 0 : i32
    %c0_i32_0 = arith.constant 0 : i32
    %c0_i32_1 = arith.constant 0 : i32
    return %c0_i32, %c0_i32_0 : i32, i32
  }
  func.func @transform_29(%arg0: i32) -> (i32, i32) {
    %c0_i32 = arith.constant 0 : i32
    %c0_i32_0 = arith.constant 0 : i32
    %c0_i32_1 = arith.constant 0 : i32
    return %c0_i32, %c0_i32_0 : i32, i32
  }
  func.func @transform_30(%arg0: i32) -> (i32, i32) {
    %c0_i32 = arith.constant 0 : i32
    %c0_i32_0 = arith.constant 0 : i32
    %c0_i32_1 = arith.constant 0 : i32
    return %c0_i32, %c0_i32_0 : i32, i32
  }
  func.func @transform_31(%arg0: i32) -> (i32, i32) {
    %c0_i32 = arith.constant 0 : i32
    %c0_i32_0 = arith.constant 0 : i32
    %c0_i32_1 = arith.constant 0 : i32
    return %c0_i32, %c0_i32_0 : i32, i32
  }
  func.func @transform_32(%arg0: i32) -> (i32, i32) {
    %c0_i32 = arith.constant 0 : i32
    %c0_i32_0 = arith.constant 0 : i32
    %c0_i32_1 = arith.constant 0 : i32
    return %c0_i32, %c0_i32_0 : i32, i32
  }
  func.func @transform_33(%arg0: i32) -> (i32, i32) {
    %c0_i32 = arith.constant 0 : i32
    %c0_i32_0 = arith.constant 0 : i32
    %c0_i32_1 = arith.constant 0 : i32
    return %c0_i32, %c0_i32_0 : i32, i32
  }
  func.func @transform_34(%arg0: i32) -> (i32, i32) {
    %c0_i32 = arith.constant 0 : i32
    %c0_i32_0 = arith.constant 0 : i32
    %c0_i32_1 = arith.constant 0 : i32
    return %c0_i32, %c0_i32_0 : i32, i32
  }
  func.func @transform_35(%arg0: i32) -> (i32, i32) {
    %c0_i32 = arith.constant 0 : i32
    %c0_i32_0 = arith.constant 0 : i32
    %c0_i32_1 = arith.constant 0 : i32
    return %c0_i32, %c0_i32_0 : i32, i32
  }
  func.func @transform_36(%arg0: i32) -> (i32, i32) {
    %c0_i32 = arith.constant 0 : i32
    %c0_i32_0 = arith.constant 0 : i32
    %c0_i32_1 = arith.constant 0 : i32
    return %c0_i32, %c0_i32_0 : i32, i32
  }
  func.func @transform_37(%arg0: i32) -> (i32, i32) {
    %c0_i32 = arith.constant 0 : i32
    %c0_i32_0 = arith.constant 0 : i32
    %c0_i32_1 = arith.constant 0 : i32
    return %c0_i32, %c0_i32_0 : i32, i32
  }
  func.func @transform_38(%arg0: i32) -> (i32, i32, i32) {
    %c0_i32 = arith.constant 0 : i32
    %c0_i32_0 = arith.constant 0 : i32
    %c0_i32_1 = arith.constant 0 : i32
    return %arg0, %c0_i32, %c0_i32_0 : i32, i32, i32
  }
}

</mosaic_0001>

<bundles_post_ra>
// kernel: tpu_custom_call.1
= control target key start
LH: loop header
LB: loop body
LE: loop exit
PB: predicated region body
PF: predicated region fallthrough
CT: control target
= control target key end

     0   :  { %s13630_s6 = smov 1   ;;  %s13631_s10 = smov 2   ;;  %s14811_s0 = inlined_call_operand.smem [shape: u32[39], index: -1, kind: input, shape index: {}] }
   0x1   :  { %s13730_s5 = sld [smem:[%s14811_s0]]   ;;  %s13632_s14 = smov 3  }
   0x2   :  { %s13735_s9 = sld [smem:[%s14811_s0 + %s13630_s6]]   ;;  %s13633_s18 = smov 4  }
   0x3   :  { %s13740_s13 = sld [smem:[%s14811_s0 + %s13631_s10]]   ;;  %s13634_s22 = smov 5  }
   0x4   :  { %s13745_s17 = sld [smem:[%s14811_s0 + %s13632_s14]]   ;;  %s13635_s26 = smov 6  }
   0x5   :  { %s13750_s21 = sld [smem:[%s14811_s0 + %s13633_s18]]   ;;  %s13636_s30 = smov 7  }
   0x6   :  { %s13755_s25 = sld [smem:[%s14811_s0 + %s13634_s22]]   ;;  %s13637_s4 = smov 8  }
   0x7   :  { %14882 = sst [smem:[#allocation76_spill]] %s13730_s5  ;;  %s13638_s10 = smov 9  }
   0x8   :  { %14883 = sst [smem:[#allocation77_spill]] %s13735_s9  ;;  %s13639_s15 = smov 10  }
   0x9   :  { %14884 = sst [smem:[#allocation78_spill]] %s13740_s13  ;;  %s13640_s20 = smov 11  }
   0xa   :  { %s13760_s29 = sld [smem:[%s14811_s0 + %s13635_s26]]   ;;  %s13641_s26 = smov 12  }
   0xb   :  { %14885 = sst [smem:[#allocation79_spill]] %s13750_s21  ;;  %s13642_s1 = smov 13  }
   0xc   :  { %s13765_s3 = sld [smem:[%s14811_s0 + %s13636_s30]]   ;;  %s13643_s7 = smov 14  }
   0xd   :  { %s13770_s8 = sld [smem:[%s14811_s0 + %s13637_s4]]   ;;  %s13645_s22 = smov 16  }
   0xe   :  { %s13775_s14 = sld [smem:[%s14811_s0 + %s13638_s10]]   ;;  %s13646_s28 = smov 17  }
   0xf   :  { %s13780_s19 = sld [smem:[%s14811_s0 + %s13639_s15]]   ;;  %s13644_s15 = smov 15  }
  0x10   :  { %14886 = sst [smem:[#allocation80_spill]] %s13760_s29 }
  0x11   :  { %s13785_s24 = sld [smem:[%s14811_s0 + %s13640_s20]]  }
  0x12   :  { %14887 = sst [smem:[#allocation81_spill]] %s13765_s3 }
  0x13   :  { %14888 = sst [smem:[#allocation82_spill]] %s13770_s8 }
  0x14   :  { %s13790_s30 = sld [smem:[%s14811_s0 + %s13641_s26]]  }
  0x15   :  { %14889 = sst [smem:[#allocation83_spill]] %s13780_s19 }
  0x16   :  { %s13795_s6 = sld [smem:[%s14811_s0 + %s13642_s1]]  }
  0x17   :  { %s13800_s12 = sld [smem:[%s14811_s0 + %s13643_s7]]   ;;  %s13647_s7 = smov 18  }
  0x18   :  { %s13805_s20 = sld [smem:[%s14811_s0 + %s13644_s15]]   ;;  %s13648_s15 = smov 19  }
  0x19   :  { %s13810_s27 = sld [smem:[%s14811_s0 + %s13645_s22]]   ;;  %s13649_s22 = smov 20  }
  0x1a   :  { %14890 = sst [smem:[#allocation84_spill]] %s13790_s30 }
  0x1b   :  { %s13815_s4 = sld [smem:[%s14811_s0 + %s13646_s28]]   ;;  %s13650_s28 = smov 21  }
  0x1c   :  { %14891 = sst [smem:[#allocation85_spill]] %s13795_s6 }
  0x1d   :  { %14892 = sst [smem:[#allocation86_spill]] %s13800_s12 }
  0x1e   :  { %14893 = sst [smem:[#allocation87_spill]] %s13805_s20 }
  0x1f   :  { %s13820_s30 = sld [smem:[%s14811_s0 + %s13647_s7]]   ;;  %s13651_s7 = smov 22  }
  0x20   :  { %s13825_s5 = sld [smem:[%s14811_s0 + %s13648_s15]]   ;;  %s13652_s15 = smov 23  }
  0x21   :  { %14894 = sst [smem:[#allocation88_spill]] %s13815_s4 }
  0x22   :  { %s13830_s20 = sld [smem:[%s14811_s0 + %s13649_s22]]   ;;  %s13653_s22 = smov 24  }
  0x23   :  { %s13835_s4 = sld [smem:[%s14811_s0 + %s13650_s28]]   ;;  %s13654_s28 = smov 25  }
  0x24   :  { %s13840_s6 = sld [smem:[%s14811_s0 + %s13651_s7]]   ;;  %s13655_s7 = smov 26  }
  0x25   :  { %s13855_s19 = sld [smem:[%s14811_s0 + %s13654_s28]]   ;;  %s13658_s28 = smov 29  }
  0x26   :  { %14895 = sst [smem:[#allocation89_spill]] %s13825_s5 }
  0x27   :  { %s13845_s5 = sld [smem:[%s14811_s0 + %s13652_s15]]   ;;  %s13656_s15 = smov 27  }
  0x28   :  { %14896 = sst [smem:[#allocation90_spill]] %s13830_s20 }
  0x29   :  { %14897 = sst [smem:[#allocation91_spill]] %s13835_s4 }
  0x2a   :  { %14898 = sst [smem:[#allocation92_spill]] %s13840_s6 }
  0x2b   :  { %s13850_s20 = sld [smem:[%s14811_s0 + %s13653_s22]]   ;;  %s13657_s22 = smov 28  }
  0x2c   :  { %s13860_s6 = sld [smem:[%s14811_s0 + %s13655_s7]]   ;;  %s13659_s7 = smov 30  }
  0x2d   :  { %14899 = sst [smem:[#allocation93_spill]] %s13845_s5 }
  0x2e   :  { %s13865_s8 = sld [smem:[%s14811_s0 + %s13656_s15]]   ;;  %s13660_s15 = smov 31  }
  0x2f   :  { %s13875_s29 = sld [smem:[%s14811_s0 + %s13658_s28]]   ;;  %s13662_s28 = smov 33  }
  0x30   :  { %s13885_s21 = sld [smem:[%s14811_s0 + %s13660_s15]]   ;;  %s13664_s15 = smov 35  }
  0x31   :  { %14900 = sst [smem:[#allocation94_spill]] %s13850_s20 }
  0x32   :  { %14901 = sst [smem:[#allocation95_spill]] %s13860_s6 }
  0x33   :  { %s13870_s20 = sld [smem:[%s14811_s0 + %s13657_s22]]   ;;  %s13661_s22 = smov 32  }
  0x34   :  { %14902 = sst [smem:[#allocation96_spill]] %s13865_s8 }
  0x35   :  { %s13880_s6 = sld [smem:[%s14811_s0 + %s13659_s7]]   ;;  %s13663_s7 = smov 34  }
  0x36   :  { %14905 = sst [smem:[#allocation99_spill]] %s13885_s21 }
  0x37   :  { %s13895_s13 = sld [smem:[%s14811_s0 + %s13662_s28]]   ;;  %s13666_s28 = smov 37  }
  0x38   :  { %s13905_s21 = sld [smem:[%s14811_s0 + %s13664_s15]]  }
  0x39   :  { %14903 = sst [smem:[#allocation97_spill]] %s13870_s20 }
  0x3a   :  { %s13890_s20 = sld [smem:[%s14811_s0 + %s13661_s22]]   ;;  %s13665_s22 = smov 36  }
  0x3b   :  { %14904 = sst [smem:[#allocation98_spill]] %s13880_s6 }
  0x3c   :  { %s13900_s6 = sld [smem:[%s14811_s0 + %s13663_s7]]   ;;  %s13667_s7 = smov 38  }
  0x3d   :  { %14907 = sst [smem:[#allocation101_spill]] %s13895_s13 }
  0x3e   :  { %s13915_s13 = sld [smem:[%s14811_s0 + %s13666_s28]]  }
  0x40   :  { %14906 = sst [smem:[#allocation100_spill]] %s13890_s20 }
  0x41   :  { %s13910_s20 = sld [smem:[%s14811_s0 + %s13665_s22]]  }
  0x42   :  { %14908 = sst [smem:[#allocation102_spill]] %s13900_s6 }
  0x43   :  { %s13920_s6 = sld [smem:[%s14811_s0 + %s13667_s7]]  }
  0x49   :  { %14909 = sst [smem:[#allocation103_spill]] %s13920_s6 }
  0x4a   :  { %82 = vsyncpa [#allocation3], 0 }
  0x4b   :  { %84 = vsyncpa [#allocation3 + $0x1], 0 }
  0x4c   :  { %85 = vsyncpa [#allocation6], 0 }
  0x4d   :  { %86 = vsyncpa [#allocation9], 0 }
  0x4e   :  { %87 = vsyncpa [#allocation12], 0 }
  0x4f   :  { %88 = vsyncpa [#allocation15], 0 }
  0x50   :  { %89 = vsyncpa [#allocation18], 0 }
  0x51   :  { %90 = vsyncpa [#allocation21], 0 }
  0x52   :  { %91 = vsyncpa [#allocation24], 0 }
  0x53   :  { %92 = vsyncpa [#allocation27], 0 }
  0x54   :  { %93 = vsyncpa [#allocation30], 0 }
  0x55   :  { %94 = vsyncpa [#allocation33], 0 }
  0x56   :  { %95 = vsyncpa [#allocation36], 0 }
  0x57   :  { %96 = vsyncpa [#allocation39], 0 }
  0x58   :  { %97 = vsyncpa [#allocation42], 0 }
  0x59   :  { %98 = vsyncpa [#allocation45], 0 }
  0x5a   :  { %99 = vsyncpa [#allocation48], 0 }
  0x5b   :  { %100 = vsyncpa [#allocation51], 0 }
  0x5c   :  { %101 = vsyncpa [#allocation54], 0 }
  0x5d   :  { %102 = vsyncpa [#allocation4], 0 }
  0x5e   :  { %104 = vsyncpa [#allocation4 + $0x1], 0  ;;  %s13922_s0 = smov 0   ;;  %s13924_s15 = smov 0  }
  0x5f   :  { %s13926_s16 = smov 0   ;;  %s13928_s18 = smov 0  }
  0x60 LB: > { %s14910_s12 = sld [smem:[#allocation86_spill]]  ;;  %s14911_s8 = sld [smem:[#allocation96_spill]]  ;;  %s13620_s15 = sphi %s13924_s15, %s15010_s15   ;;  %s13616_s0 = sphi %s13922_s0, %s15009_s0   ;;  %s13628_s18 = sphi %s13928_s18, %s15007_s18   ;;  %s13624_s16 = sphi %s13926_s16, %s15011_s16  }
  0x61   : > { %s14912_s5 = sld [smem:[#allocation93_spill]]  ;;  %s14913_s4 = sld [smem:[#allocation91_spill]] }
  0x62   : > { %s14914_s3 = sld [smem:[#allocation81_spill]]  ;;  %s14915_s9 = sld [smem:[#allocation77_spill]] }
  0x63   : > { %14916 = sst [smem:[#allocation104_spill]] %s13616_s0  ;;  %s13943_s22 = sadd.s32 4294967295, %s13628_s18  }
  0x64   : > { %s9680_s23 = sadd.s32 4294967294, %s13628_s18   ;;  %s13947_s26 = sadd.s32 1, %s13628_s18  }
  0x65   : > { %14917 = sst [smem:[#allocation105_spill]] %s13947_s26  ;;  %s117_s28 = sadd.s32 1, %s13624_s16 }
  0x66   : > { %s114_s1 = ssub.s32 %s13628_s18, %s13947_s26  ;;  %p124_p0 = scmp.ne.s32.totalorder %s13624_s16, %s13620_s15 }
  0x67   : > { %p115_p1 = scmp.eq.s32.totalorder %s114_s1, 0  ;;  %p125_p2 = scmp.eq.s32.totalorder %s13628_s18, 0 }
  0x68   : > { %p130_p3 = scmp.ne.s32.totalorder %s13620_s15, %s13616_s0  ;;  %p14877_p4 = scmp.eq.s32.totalorder %s13943_s22, 0 }
  0x69   : > { %s13959_s2 = scalar_select %p115_p1, %s13624_s16, %s117_s28  }
  0x6a   : > { %p13961_p5 = por %p125_p2, %p124_p0  ;;  %p13967_p6 = por %p14877_p4, %p130_p3 }
  0x6b   : > { %14918 = sst [smem:[#allocation106_spill]] %s13959_s2  ;;  %p931_p7 = scmp.eq.s32.totalorder %s13943_s22, 1 }
  0x6c   : > { %s14920_s10 = scalar_select %p13967_p6, 1, 0 }
  0x6d   : > { %p937_p8 = scmp.eq.s32.totalorder %s9680_s23, 1  ;;  %p9681_p9 = scmp.ge.s32.totalorder %s13628_s18, 1 }
  0x6e   : > { %14921 = sst [smem:[#allocation107_spill]] %s14920_s10  ;;  %p944_p10 = scmp.lt.s32.totalorder %s13628_s18, 3 }
  0x6f   : > { %p13974_p11 = por %p931_p7, %p124_p0  ;;  %p13978_p12 = por %p937_p8, %p130_p3 }
  0x70   : > { %p13982_p13 = pnand %p9681_p9, %p944_p10 }
  0x71   : > { %s14922_s11 = scalar_select %p13974_p11, 1, 0 }
  0x72   : > { %s14924_s28 = scalar_select %p13978_p12, 1, 0 }
  0x73   : > { %14923 = sst [smem:[#allocation108_spill]] %s14922_s11  ;;  %948 = sbr.rel (%p13982_p13) target bundleno = 942 (0x3ae), region = 12 }
  0x74   : > { %14925 = sst [smem:[#allocation109_spill]] %s14924_s28  ;;  %s13668_s2 = smov (!%p13982_p13), [#allocation5]  }
  0x75   : > { %s14926_s1 = scalar_select %p13982_p13, 1, 0 }
  0x76   : > { %s957_s23 = sshll.u32 (!%p13982_p13), %s13668_s2, 4  ;;  %s13669_s26 = smov (!%p13982_p13), [#allocation8]   ;;  %s958_s23 = int_to_ptr.vmem [resolvable:$true] %s957_s23 }
  0x77   : > { %s978_s0 = sshll.u32 (!%p13982_p13), %s13669_s26, 4  ;;  %s12580_s11 = scalar_lea.hbm (!%p13982_p13), %s14915_s9, 16  ;;  %s979_s0 = int_to_ptr.vmem [resolvable:$true] %s978_s0 }
  0x78   : > { %p12581_p0 = scmp.ne.s32.totalorder (!%p13982_p13), %s14915_s9, %s12580_s11  ;;  %p12586_p3 = scmp.lt.u32.totalorder (!%p13982_p13), %s12580_s11, %s14915_s9 }
  0x7a   : > { %p12582_p1 = pnand %p12581_p0, %p14877_p4 }
  0x7c   : > { %p12583_p2 = pneg %p12582_p1 }
  0x7e   : > { %p12588_p7 = pnand %p12586_p3, %p12583_p2 }
  0x80   : > { %12591 = shalt.err (!%p12588_p7)
}
  0x81   : > { %s12592_s28 = scalar_lea.vmem %s958_s23, 16  ;;  %s12598_s6 = scalar_lea.vmem %s958_s23, 32 }
  0x82   : > { %p12593_p8 = scmp.ne.s32.totalorder %s958_s23, %s12592_s28  ;;  %p12599_p12 = scmp.lt.s32.totalorder %s958_s23, %s958_s23 }
  0x83   : > { %p12600_p11 = scmp.lt.s32.totalorder %s12598_s6, %s12592_s28 }
  0x84   : > { %p12594_p9 = pnand %p12593_p8, %p14877_p4 }
  0x85   : > { %p12601_p6 = por %p12600_p11, %p12599_p12 }
  0x86   : > { %p12595_p10 = pneg %p12594_p9 }
  0x88   : > { %p12602_p13 = pnand %p12601_p6, %p12595_p10 }
  0x8a   : > { %12605 = shalt.err (!%p12602_p13)
}
  0x8b   : > { %10953 = dma.hbm_to_vmem [thread:$0]  (%p14877_p4), %s14915_s9, 16, %s958_s23, [#allocation6]  }
  0x8c   : > { %s12606_s26 = scalar_lea.hbm %s13745_s17, 192 }
  0x8d   : > { %p12607_p0 = scmp.ne.s32.totalorder %s13745_s17, %s12606_s26  ;;  %p12612_p3 = scmp.lt.u32.totalorder %s12606_s26, %s13745_s17 }
  0x8f   : > { %p12608_p1 = pnand %p12607_p0, %p14877_p4 }
  0x91   : > { %p12609_p2 = pneg %p12608_p1 }
  0x93   : > { %p12614_p7 = pnand %p12612_p3, %p12609_p2 }
  0x95   : > { %12617 = shalt.err (!%p12614_p7)
}
  0x96   : > { %s12618_s6 = scalar_lea.vmem %s979_s0, 192  ;;  %p12625_p13 = scmp.lt.s32.totalorder %s979_s0, %s979_s0 }
  0x97   : > { %p12619_p6 = scmp.ne.s32.totalorder %s979_s0, %s12618_s6  ;;  %p12626_p8 = scmp.lt.s32.totalorder %s12618_s6, %s12618_s6 }
  0x99   : > { %p12620_p11 = pnand %p12619_p6, %p14877_p4  ;;  %p12627_p9 = por %p12626_p8, %p12625_p13 }
  0x9b   : > { %p12621_p12 = pneg %p12620_p11 }
  0x9d   : > { %p12628_p10 = pnand %p12627_p9, %p12621_p12 }
  0x9f   : > { %12631 = shalt.err (!%p12628_p10)
}
  0xa0   : > { %s14848_s2 = smov 64   ;;  %s14849_s11 = smov 4  }
  0xa1   : > { %10957 = dma.hbm_to_vmem [thread:$0]  (%p14877_p4), %s13745_s17, 192, %s979_s0, [#allocation9], %s14848_s2, %s14848_s2, %s14849_s11  }
  0xa2   : > { %s13672_s28 = smov [#allocation11]   ;;  %s13673_s26 = smov [#allocation14]  }
  0xa3   : > { %s1002_s23 = sshll.u32 %s13672_s28, 4  ;;  %s1026_s6 = sshll.u32 %s13673_s26, 4  ;;  %s1003_s23 = int_to_ptr.vmem [resolvable:$true] %s1002_s23  ;;  %s1027_s6 = int_to_ptr.vmem [resolvable:$true] %s1026_s6 }
  0xa4   : > { %s12632_s9 = scalar_lea.hbm %s13755_s25, 768 }
  0xa5   : > { %p12633_p0 = scmp.ne.s32.totalorder %s13755_s25, %s12632_s9  ;;  %p12638_p3 = scmp.lt.u32.totalorder %s12632_s9, %s13755_s25 }
  0xa7   : > { %p12634_p1 = pnand %p12633_p0, %p14877_p4 }
  0xa9   : > { %p12635_p2 = pneg %p12634_p1 }
  0xab   : > { %p12640_p7 = pnand %p12638_p3, %p12635_p2 }
  0xad   : > { %12643 = shalt.err (!%p12640_p7)
}
  0xae   : > { %s12644_s10 = scalar_lea.vmem %s1003_s23, 768  ;;  %p12651_p13 = scmp.lt.s32.totalorder %s1003_s23, %s1003_s23 }
  0xaf   : > { %p12645_p6 = scmp.ne.s32.totalorder %s1003_s23, %s12644_s10  ;;  %p12652_p8 = scmp.lt.s32.totalorder %s12644_s10, %s12644_s10 }
  0xb1   : > { %p12646_p11 = pnand %p12645_p6, %p14877_p4  ;;  %p12653_p9 = por %p12652_p8, %p12651_p13 }
  0xb3   : > { %p12647_p12 = pneg %p12646_p11 }
  0xb5   : > { %p12654_p10 = pnand %p12653_p9, %p12647_p12 }
  0xb7   : > { %12657 = shalt.err (!%p12654_p10)
}
  0xb8   : > { %10961 = dma.hbm_to_vmem [thread:$0]  (%p14877_p4), %s13755_s25, 768, %s1003_s23, [#allocation12], %s14848_s2, %s14848_s2, %s14849_s11  }
  0xb9   : > { %s12658_s9 = scalar_lea.hbm %s14914_s3, 192 }
  0xba   : > { %p12659_p0 = scmp.ne.s32.totalorder %s14914_s3, %s12658_s9  ;;  %p12664_p3 = scmp.lt.u32.totalorder %s12658_s9, %s14914_s3 }
  0xbc   : > { %p12660_p1 = pnand %p12659_p0, %p14877_p4 }
  0xbe   : > { %p12661_p2 = pneg %p12660_p1 }
  0xc0   : > { %p12666_p7 = pnand %p12664_p3, %p12661_p2 }
  0xc2   : > { %12669 = shalt.err (!%p12666_p7)
}
  0xc3   : > { %s12670_s0 = scalar_lea.vmem %s1027_s6, 192  ;;  %p12677_p13 = scmp.lt.s32.totalorder %s1027_s6, %s1027_s6 }
  0xc4   : > { %p12671_p6 = scmp.ne.s32.totalorder %s1027_s6, %s12670_s0  ;;  %p12678_p8 = scmp.lt.s32.totalorder %s12670_s0, %s12670_s0 }
  0xc6   : > { %p12672_p11 = pnand %p12671_p6, %p14877_p4  ;;  %p12679_p9 = por %p12678_p8, %p12677_p13 }
  0xc8   : > { %p12673_p12 = pneg %p12672_p11 }
  0xca   : > { %p12680_p10 = pnand %p12679_p9, %p12673_p12 }
  0xcc   : > { %12683 = shalt.err (!%p12680_p10)
}
  0xcd   : > { %10965 = dma.hbm_to_vmem [thread:$0]  (%p14877_p4), %s14914_s3, 192, %s1027_s6, [#allocation15], %s14848_s2, %s14848_s2, %s14849_s11  }
  0xce   : > { %s13674_s10 = smov [#allocation17]   ;;  %s12684_s23 = scalar_lea.hbm %s13775_s14, 9216 }
  0xcf   : > { %s1050_s28 = sshll.u32 %s13674_s10, 4  ;;  %p12685_p0 = scmp.ne.s32.totalorder %s13775_s14, %s12684_s23  ;;  %s1051_s28 = int_to_ptr.vmem [resolvable:$true] %s1050_s28 }
  0xd0   : > { %p12690_p3 = scmp.lt.u32.totalorder %s12684_s23, %s13775_s14 }
  0xd1   : > { %p12686_p1 = pnand %p12685_p0, %p14877_p4 }
  0xd3   : > { %p12687_p2 = pneg %p12686_p1 }
  0xd5   : > { %p12692_p7 = pnand %p12690_p3, %p12687_p2 }
  0xd7   : > { %12695 = shalt.err (!%p12692_p7)
}
  0xd8   : > { %s12696_s26 = scalar_lea.vmem %s1051_s28, 9216  ;;  %p12703_p13 = scmp.lt.s32.totalorder %s1051_s28, %s1051_s28 }
  0xd9   : > { %p12697_p6 = scmp.ne.s32.totalorder %s1051_s28, %s12696_s26  ;;  %p12704_p8 = scmp.lt.s32.totalorder %s12696_s26, %s12696_s26 }
  0xdb   : > { %p12698_p11 = pnand %p12697_p6, %p14877_p4  ;;  %p12705_p9 = por %p12704_p8, %p12703_p13 }
  0xdd   : > { %p12699_p12 = pneg %p12698_p11 }
  0xdf   : > { %p12706_p10 = pnand %p12705_p9, %p12699_p12 }
  0xe1   : > { %12709 = shalt.err (!%p12706_p10)
}
  0xe2   : > { %s14846_s6 = smov 576   ;;  %s14847_s9 = smov 36  }
  0xe3   : > { %10969 = dma.hbm_to_vmem [thread:$0]  (%p14877_p4), %s13775_s14, 9216, %s1051_s28, [#allocation18], %s14846_s6, %s14846_s6, %s14847_s9  }
  0xe4   : > { %s13677_s0 = smov [#allocation20]   ;;  %s12710_s23 = scalar_lea.hbm %s13785_s24, 512 }
  0xe5   : > { %s1074_s10 = sshll.u32 %s13677_s0, 4  ;;  %p12711_p0 = scmp.ne.s32.totalorder %s13785_s24, %s12710_s23  ;;  %s1075_s10 = int_to_ptr.vmem [resolvable:$true] %s1074_s10 }
  0xe6   : > { %p12716_p3 = scmp.lt.u32.totalorder %s12710_s23, %s13785_s24 }
  0xe7   : > { %p12712_p1 = pnand %p12711_p0, %p14877_p4 }
  0xe9   : > { %p12713_p2 = pneg %p12712_p1 }
  0xeb   : > { %p12718_p7 = pnand %p12716_p3, %p12713_p2 }
  0xed   : > { %12721 = shalt.err (!%p12718_p7)
}
  0xee   : > { %s12722_s26 = scalar_lea.vmem %s1075_s10, 512  ;;  %p12729_p13 = scmp.lt.s32.totalorder %s1075_s10, %s1075_s10 }
  0xef   : > { %p12723_p6 = scmp.ne.s32.totalorder %s1075_s10, %s12722_s26  ;;  %p12730_p8 = scmp.lt.s32.totalorder %s12722_s26, %s12722_s26 }
  0xf1   : > { %p12724_p11 = pnand %p12723_p6, %p14877_p4  ;;  %p12731_p9 = por %p12730_p8, %p12729_p13 }
  0xf3   : > { %p12725_p12 = pneg %p12724_p11 }
  0xf5   : > { %p12732_p10 = pnand %p12731_p9, %p12725_p12 }
  0xf7   : > { %12735 = shalt.err (!%p12732_p10)
}
  0xf8   : > { %s14850_s28 = smov 256   ;;  %s14851_s0 = smov 16  }
  0xf9   : > { %10973 = dma.hbm_to_vmem [thread:$0]  (%p14877_p4), %s13785_s24, 512, %s1075_s10, [#allocation21], %s14850_s28, %s14850_s28, %s14851_s0  }
  0xfa   : > { %s13680_s23 = smov [#allocation23]   ;;  %s13681_s26 = smov [#allocation26]  }
  0xfb   : > { %s1101_s6 = sshll.u32 %s13680_s23, 4  ;;  %s1125_s9 = sshll.u32 %s13681_s26, 4  ;;  %s1102_s6 = int_to_ptr.vmem [resolvable:$true] %s1101_s6  ;;  %s1126_s9 = int_to_ptr.vmem [resolvable:$true] %s1125_s9 }
  0xfc   : > { %s12736_s2 = scalar_lea.hbm %s14910_s12, 768 }
  0xfd   : > { %p12737_p0 = scmp.ne.s32.totalorder %s14910_s12, %s12736_s2  ;;  %p12742_p3 = scmp.lt.u32.totalorder %s12736_s2, %s14910_s12 }
  0xff   : > { %p12738_p1 = pnand %p12737_p0, %p14877_p4 }
 0x101   : > { %p12739_p2 = pneg %p12738_p1 }
 0x103   : > { %p12744_p7 = pnand %p12742_p3, %p12739_p2 }
 0x105   : > { %12747 = shalt.err (!%p12744_p7)
}
 0x106   : > { %s12748_s11 = scalar_lea.vmem %s1102_s6, 768  ;;  %p12755_p13 = scmp.lt.s32.totalorder %s1102_s6, %s1102_s6 }
 0x107   : > { %p12749_p6 = scmp.ne.s32.totalorder %s1102_s6, %s12748_s11  ;;  %p12756_p8 = scmp.lt.s32.totalorder %s12748_s11, %s12748_s11 }
 0x109   : > { %p12750_p11 = pnand %p12749_p6, %p14877_p4  ;;  %p12757_p9 = por %p12756_p8, %p12755_p13 }
 0x10b   : > { %p12751_p12 = pneg %p12750_p11 }
 0x10d   : > { %p12758_p10 = pnand %p12757_p9, %p12751_p12 }
 0x10f   : > { %12761 = shalt.err (!%p12758_p10)
}
 0x110   : > { %s14927_s10 = smov 4   ;;  %s14928_s23 = smov 64  }
 0x111   : > { %10977 = dma.hbm_to_vmem [thread:$0]  (%p14877_p4), %s14910_s12, 768, %s1102_s6, [#allocation24], %s14928_s23, %s14928_s23, %s14927_s10  }
 0x112   : > { %s12762_s2 = scalar_lea.hbm %s13810_s27, 9216 }
 0x113   : > { %p12763_p0 = scmp.ne.s32.totalorder %s13810_s27, %s12762_s2  ;;  %p12768_p3 = scmp.lt.u32.totalorder %s12762_s2, %s13810_s27 }
 0x115   : > { %p12764_p1 = pnand %p12763_p0, %p14877_p4 }
 0x117   : > { %p12765_p2 = pneg %p12764_p1 }
 0x119   : > { %p12770_p7 = pnand %p12768_p3, %p12765_p2 }
 0x11b   : > { %12773 = shalt.err (!%p12770_p7)
}
 0x11c   : > { %s12774_s11 = scalar_lea.vmem %s1126_s9, 9216  ;;  %p12781_p13 = scmp.lt.s32.totalorder %s1126_s9, %s1126_s9 }
 0x11d   : > { %p12775_p6 = scmp.ne.s32.totalorder %s1126_s9, %s12774_s11  ;;  %p12782_p8 = scmp.lt.s32.totalorder %s12774_s11, %s12774_s11 }
 0x11f   : > { %p12776_p11 = pnand %p12775_p6, %p14877_p4  ;;  %p12783_p9 = por %p12782_p8, %p12781_p13 }
 0x121   : > { %p12777_p12 = pneg %p12776_p11 }
 0x123   : > { %p12784_p10 = pnand %p12783_p9, %p12777_p12 }
 0x125   : > { %12787 = shalt.err (!%p12784_p10)
}
 0x126   : > { %s14929_s6 = smov 36   ;;  %s14930_s26 = smov 576  }
 0x127   : > { %10981 = dma.hbm_to_vmem [thread:$0]  (%p14877_p4), %s13810_s27, 9216, %s1126_s9, [#allocation27], %s14930_s26, %s14930_s26, %s14929_s6  }
 0x128   : > { %s13682_s10 = smov [#allocation29]   ;;  %s13683_s2 = smov [#allocation32]  }
 0x129   : > { %s1149_s23 = sshll.u32 %s13682_s10, 4  ;;  %s1176_s28 = sshll.u32 %s13683_s2, 4  ;;  %s1150_s23 = int_to_ptr.vmem [resolvable:$true] %s1149_s23  ;;  %s1177_s28 = int_to_ptr.vmem [resolvable:$true] %s1176_s28 }
 0x12a   : > { %s12788_s11 = scalar_lea.hbm %s13820_s30, 512 }
 0x12b   : > { %p12789_p0 = scmp.ne.s32.totalorder %s13820_s30, %s12788_s11  ;;  %p12794_p3 = scmp.lt.u32.totalorder %s12788_s11, %s13820_s30 }
 0x12d   : > { %p12790_p1 = pnand %p12789_p0, %p14877_p4 }
 0x12f   : > { %p12791_p2 = pneg %p12790_p1 }
 0x131   : > { %p12796_p7 = pnand %p12794_p3, %p12791_p2 }
 0x133   : > { %12799 = shalt.err (!%p12796_p7)
}
 0x134   : > { %s12800_s0 = scalar_lea.vmem %s1150_s23, 512  ;;  %p12807_p13 = scmp.lt.s32.totalorder %s1150_s23, %s1150_s23 }
 0x135   : > { %p12801_p6 = scmp.ne.s32.totalorder %s1150_s23, %s12800_s0  ;;  %p12808_p8 = scmp.lt.s32.totalorder %s12800_s0, %s12800_s0 }
 0x137   : > { %p12802_p11 = pnand %p12801_p6, %p14877_p4  ;;  %p12809_p9 = por %p12808_p8, %p12807_p13 }
 0x139   : > { %p12803_p12 = pneg %p12802_p11 }
 0x13b   : > { %p12810_p10 = pnand %p12809_p9, %p12803_p12 }
 0x13d   : > { %12813 = shalt.err (!%p12810_p10)
}
 0x13e   : > { %s14931_s9 = smov 16   ;;  %s14932_s6 = smov 256  }
 0x13f   : > { %10985 = dma.hbm_to_vmem [thread:$0]  (%p14877_p4), %s13820_s30, 512, %s1150_s23, [#allocation30], %s14932_s6, %s14932_s6, %s14931_s9  }
 0x140   : > { %s12814_s26 = scalar_lea.hbm %s14913_s4, 3072 }
 0x141   : > { %p12815_p0 = scmp.ne.s32.totalorder %s14913_s4, %s12814_s26  ;;  %p12820_p3 = scmp.lt.u32.totalorder %s12814_s26, %s14913_s4 }
 0x143   : > { %p12816_p1 = pnand %p12815_p0, %p14877_p4 }
 0x145   : > { %p12817_p2 = pneg %p12816_p1 }
 0x147   : > { %p12822_p7 = pnand %p12820_p3, %p12817_p2 }
 0x149   : > { %12825 = shalt.err (!%p12822_p7)
}
 0x14a   : > { %s12826_s0 = scalar_lea.vmem %s1177_s28, 3072  ;;  %p12833_p13 = scmp.lt.s32.totalorder %s1177_s28, %s1177_s28 }
 0x14b   : > { %p12827_p6 = scmp.ne.s32.totalorder %s1177_s28, %s12826_s0  ;;  %p12834_p8 = scmp.lt.s32.totalorder %s12826_s0, %s12826_s0 }
 0x14d   : > { %p12828_p11 = pnand %p12827_p6, %p14877_p4  ;;  %p12835_p9 = por %p12834_p8, %p12833_p13 }
 0x14f   : > { %p12829_p12 = pneg %p12828_p11 }
 0x151   : > { %p12836_p10 = pnand %p12835_p9, %p12829_p12 }
 0x153   : > { %12839 = shalt.err (!%p12836_p10)
}
 0x154   : > { %s14852_s10 = smov 128   ;;  %s14854_s23 = smov 8  }
 0x155   : > { %10989 = dma.hbm_to_vmem [thread:$0]  (%p14877_p4), %s14913_s4, 3072, %s1177_s28, [#allocation33], %s14852_s10, %s14852_s10, %s14854_s23  }
 0x156   : > { %s13686_s2 = smov [#allocation35]   ;;  %s13687_s9 = smov [#allocation38]  }
 0x157   : > { %s1200_s11 = sshll.u32 %s13686_s2, 4  ;;  %s1224_s6 = sshll.u32 %s13687_s9, 4  ;;  %s1201_s11 = int_to_ptr.vmem [resolvable:$true] %s1200_s11  ;;  %s1225_s6 = int_to_ptr.vmem [resolvable:$true] %s1224_s6 }
 0x158   : > { %s12840_s26 = scalar_lea.hbm %s14912_s5, 2048 }
 0x159   : > { %p12841_p0 = scmp.ne.s32.totalorder %s14912_s5, %s12840_s26  ;;  %p12846_p3 = scmp.lt.u32.totalorder %s12840_s26, %s14912_s5 }
 0x15b   : > { %p12842_p1 = pnand %p12841_p0, %p14877_p4 }
 0x15d   : > { %p12843_p2 = pneg %p12842_p1 }
 0x15f   : > { %p12848_p7 = pnand %p12846_p3, %p12843_p2 }
 0x161   : > { %12851 = shalt.err (!%p12848_p7)
}
 0x162   : > { %s12852_s0 = scalar_lea.vmem %s1201_s11, 2048  ;;  %p12859_p13 = scmp.lt.s32.totalorder %s1201_s11, %s1201_s11 }
 0x163   : > { %p12853_p6 = scmp.ne.s32.totalorder %s1201_s11, %s12852_s0  ;;  %p12860_p8 = scmp.lt.s32.totalorder %s12852_s0, %s12852_s0 }
 0x165   : > { %p12854_p11 = pnand %p12853_p6, %p14877_p4  ;;  %p12861_p9 = por %p12860_p8, %p12859_p13 }
 0x167   : > { %p12855_p12 = pneg %p12854_p11 }
 0x169   : > { %p12862_p10 = pnand %p12861_p9, %p12855_p12 }
 0x16b   : > { %12865 = shalt.err (!%p12862_p10)
}
 0x16c   : > { %10993 = dma.hbm_to_vmem [thread:$0]  (%p14877_p4), %s14912_s5, 2048, %s1201_s11, [#allocation36], %s14852_s10, %s14852_s10, %s14854_s23  }
 0x16d   : > { %s12866_s28 = scalar_lea.hbm %s13855_s19, 36864 }
 0x16e   : > { %p12867_p0 = scmp.ne.s32.totalorder %s13855_s19, %s12866_s28  ;;  %p12872_p3 = scmp.lt.u32.totalorder %s12866_s28, %s13855_s19 }
 0x170   : > { %p12868_p1 = pnand %p12867_p0, %p14877_p4 }
 0x172   : > { %p12869_p2 = pneg %p12868_p1 }
 0x174   : > { %p12874_p7 = pnand %p12872_p3, %p12869_p2 }
 0x176   : > { %12877 = shalt.err (!%p12874_p7)
}
 0x177   : > { %s12878_s2 = scalar_lea.vmem %s1225_s6, 36864  ;;  %p12885_p13 = scmp.lt.s32.totalorder %s1225_s6, %s1225_s6 }
 0x178   : > { %p12879_p6 = scmp.ne.s32.totalorder %s1225_s6, %s12878_s2  ;;  %p12886_p8 = scmp.lt.s32.totalorder %s12878_s2, %s12878_s2 }
 0x17a   : > { %p12880_p11 = pnand %p12879_p6, %p14877_p4  ;;  %p12887_p9 = por %p12886_p8, %p12885_p13 }
 0x17c   : > { %p12881_p12 = pneg %p12880_p11 }
 0x17e   : > { %p12888_p10 = pnand %p12887_p9, %p12881_p12 }
 0x180   : > { %12891 = shalt.err (!%p12888_p10)
}
 0x181   : > { %s14856_s11 = smov 1152   ;;  %s14857_s9 = smov 72  }
 0x182   : > { %10997 = dma.hbm_to_vmem [thread:$0]  (%p14877_p4), %s13855_s19, 36864, %s1225_s6, [#allocation39], %s14856_s11, %s14856_s11, %s14857_s9  }
 0x183   : > { %s13690_s26 = smov [#allocation41]   ;;  %s13691_s28 = smov [#allocation44]  }
 0x184   : > { %s1248_s0 = sshll.u32 %s13690_s26, 4  ;;  %s1273_s2 = sshll.u32 %s13691_s28, 4  ;;  %s1249_s0 = int_to_ptr.vmem [resolvable:$true] %s1248_s0  ;;  %s1274_s2 = int_to_ptr.vmem [resolvable:$true] %s1273_s2 }
 0x185   : > { %s12892_s10 = scalar_lea.hbm %s14911_s8, 2048 }
 0x186   : > { %p12893_p0 = scmp.ne.s32.totalorder %s14911_s8, %s12892_s10  ;;  %p12898_p3 = scmp.lt.u32.totalorder %s12892_s10, %s14911_s8 }
 0x188   : > { %p12894_p1 = pnand %p12893_p0, %p14877_p4 }
 0x18a   : > { %p12895_p2 = pneg %p12894_p1 }
 0x18c   : > { %p12900_p7 = pnand %p12898_p3, %p12895_p2 }
 0x18e   : > { %12903 = shalt.err (!%p12900_p7)
}
 0x18f   : > { %s12904_s23 = scalar_lea.vmem %s1249_s0, 2048  ;;  %p12911_p13 = scmp.lt.s32.totalorder %s1249_s0, %s1249_s0 }
 0x190   : > { %p12905_p6 = scmp.ne.s32.totalorder %s1249_s0, %s12904_s23  ;;  %p12912_p8 = scmp.lt.s32.totalorder %s12904_s23, %s12904_s23 }
 0x192   : > { %p12906_p11 = pnand %p12905_p6, %p14877_p4  ;;  %p12913_p9 = por %p12912_p8, %p12911_p13 }
 0x194   : > { %p12907_p12 = pneg %p12906_p11 }
 0x196   : > { %p12914_p10 = pnand %p12913_p9, %p12907_p12 }
 0x198   : > { %12917 = shalt.err (!%p12914_p10)
}
 0x199   : > { %s14933_s6 = smov 8   ;;  %s14934_s26 = smov 128  }
 0x19a   : > { %11001 = dma.hbm_to_vmem [thread:$0]  (%p14877_p4), %s14911_s8, 2048, %s1249_s0, [#allocation42], %s14934_s26, %s14934_s26, %s14933_s6  }
 0x19b   : > { %s12918_s10 = scalar_lea.hbm %s13875_s29, 256 }
 0x19c   : > { %p12919_p0 = scmp.ne.s32.totalorder %s13875_s29, %s12918_s10  ;;  %p12924_p3 = scmp.lt.u32.totalorder %s12918_s10, %s13875_s29 }
 0x19e   : > { %p12920_p1 = pnand %p12919_p0, %p14877_p4 }
 0x1a0   : > { %p12921_p2 = pneg %p12920_p1 }
 0x1a2   : > { %p12926_p7 = pnand %p12924_p3, %p12921_p2 }
 0x1a4   : > { %12929 = shalt.err (!%p12926_p7)
}
 0x1a5   : > { %s12930_s23 = scalar_lea.vmem %s1274_s2, 256  ;;  %p12937_p13 = scmp.lt.s32.totalorder %s1274_s2, %s1274_s2 }
 0x1a6   : > { %p12931_p6 = scmp.ne.s32.totalorder %s1274_s2, %s12930_s23  ;;  %p12938_p8 = scmp.lt.s32.totalorder %s12930_s23, %s12930_s23 }
 0x1a8   : > { %p12932_p11 = pnand %p12931_p6, %p14877_p4  ;;  %p12939_p9 = por %p12938_p8, %p12937_p13 }
 0x1aa   : > { %p12933_p12 = pneg %p12932_p11 }
 0x1ac   : > { %p12940_p10 = pnand %p12939_p9, %p12933_p12 }
 0x1ae   : > { %12943 = shalt.err (!%p12940_p10)
}
 0x1af   : > { %s14935_s0 = sld [smem:[#allocation100_spill]]  ;;  %s13692_s10 = smov [#allocation47]  }
 0x1b0   : > { %11005 = dma.hbm_to_vmem [thread:$0]  (%p14877_p4), %s13875_s29, 256, %s1274_s2, [#allocation45]  }
 0x1b1   : > { %s1298_s11 = sshll.u32 %s13692_s10, 4  ;;  %s13693_s9 = smov [#allocation50]   ;;  %s1299_s11 = int_to_ptr.vmem [resolvable:$true] %s1298_s11 }
 0x1b2   : > { %s1322_s3 = sshll.u32 %s13693_s9, 4  ;;  %s1323_s3 = int_to_ptr.vmem [resolvable:$true] %s1322_s3 }
 0x1b5   : > { %s14936_s28 = smov %s14935_s0  ;;  %s12944_s4 = scalar_lea.hbm %s14935_s0, 32 }
 0x1b6   : > { %p12945_p0 = scmp.ne.s32.totalorder %s14936_s28, %s12944_s4  ;;  %p12950_p3 = scmp.lt.u32.totalorder %s12944_s4, %s14936_s28 }
 0x1b8   : > { %p12946_p1 = pnand %p12945_p0, %p14877_p4 }
 0x1ba   : > { %p12947_p2 = pneg %p12946_p1 }
 0x1bc   : > { %p12952_p7 = pnand %p12950_p3, %p12947_p2 }
 0x1be   : > { %12955 = shalt.err (!%p12952_p7)
}
 0x1bf   : > { %s12956_s23 = scalar_lea.vmem %s1299_s11, 32  ;;  %p12963_p13 = scmp.lt.s32.totalorder %s1299_s11, %s1299_s11 }
 0x1c0   : > { %p12957_p6 = scmp.ne.s32.totalorder %s1299_s11, %s12956_s23  ;;  %p12964_p8 = scmp.lt.s32.totalorder %s12956_s23, %s12956_s23 }
 0x1c2   : > { %p12958_p11 = pnand %p12957_p6, %p14877_p4  ;;  %p12965_p9 = por %p12964_p8, %p12963_p13 }
 0x1c4   : > { %p12959_p12 = pneg %p12958_p11 }
 0x1c6   : > { %p12966_p10 = pnand %p12965_p9, %p12959_p12 }
 0x1c8   : > { %12969 = shalt.err (!%p12966_p10)
}
 0x1c9   : > { %s14937_s9 = sld [smem:[#allocation102_spill]] }
 0x1ca   : > { %11009 = dma.hbm_to_vmem [thread:$0]  (%p14877_p4), %s14936_s28, 32, %s1299_s11, [#allocation48]  }
 0x1cf   : > { %s12970_s4 = scalar_lea.hbm %s14937_s9, 32 }
 0x1d0   : > { %p12971_p0 = scmp.ne.s32.totalorder %s14937_s9, %s12970_s4  ;;  %p12976_p3 = scmp.lt.u32.totalorder %s12970_s4, %s14937_s9 }
 0x1d2   : > { %p12972_p1 = pnand %p12971_p0, %p14877_p4 }
 0x1d4   : > { %p12973_p2 = pneg %p12972_p1 }
 0x1d6   : > { %p12978_p7 = pnand %p12976_p3, %p12973_p2 }
 0x1d8   : > { %12981 = shalt.err (!%p12978_p7)
}
 0x1d9   : > { %s12982_s2 = scalar_lea.vmem %s1323_s3, 32  ;;  %p12989_p13 = scmp.lt.s32.totalorder %s1323_s3, %s1323_s3 }
 0x1da   : > { %p12983_p6 = scmp.ne.s32.totalorder %s1323_s3, %s12982_s2  ;;  %p12990_p8 = scmp.lt.s32.totalorder %s12982_s2, %s12982_s2 }
 0x1dc   : > { %p12984_p11 = pnand %p12983_p6, %p14877_p4  ;;  %p12991_p9 = por %p12990_p8, %p12989_p13 }
 0x1de   : > { %p12985_p12 = pneg %p12984_p11 }
 0x1e0   : > { %p12992_p10 = pnand %p12991_p9, %p12985_p12 }
 0x1e2   : > { %12995 = shalt.err (!%p12992_p10)
}
 0x1e3   : > { %11013 = dma.hbm_to_vmem [thread:$0]  (%p14877_p4), %s14937_s9, 32, %s1323_s3, [#allocation51]  }
 0x1e4   : > { %s13694_s11 = smov [#allocation53]   ;;  %s13695_s10 = smov [#allocation7]  }
 0x1e5   : > { %s1346_s0 = sshll.u32 %s13694_s11, 4  ;;  %s968_s23 = sshll.u32 %s13695_s10, 4  ;;  %s1347_s0 = int_to_ptr.vmem [resolvable:$true] %s1346_s0  ;;  %s969_s23 = int_to_ptr.vmem [resolvable:$true] %s968_s23 }
 0x1e6   : > { %s12996_s4 = scalar_lea.hbm %s13910_s20, 32 }
 0x1e7   : > { %p12997_p0 = scmp.ne.s32.totalorder %s13910_s20, %s12996_s4  ;;  %p13002_p3 = scmp.lt.u32.totalorder %s12996_s4, %s13910_s20 }
 0x1e9   : > { %p12998_p1 = pnand %p12997_p0, %p14877_p4 }
 0x1eb   : > { %p12999_p2 = pneg %p12998_p1 }
 0x1ed   : > { %p13004_p7 = pnand %p13002_p3, %p12999_p2 }
 0x1ef   : > { %13007 = shalt.err (!%p13004_p7)
}
 0x1f0   : > { %s13008_s2 = scalar_lea.vmem %s1347_s0, 32  ;;  %p13015_p13 = scmp.lt.s32.totalorder %s1347_s0, %s1347_s0 }
 0x1f1   : > { %p13009_p6 = scmp.ne.s32.totalorder %s1347_s0, %s13008_s2  ;;  %p13016_p8 = scmp.lt.s32.totalorder %s13008_s2, %s13008_s2 }
 0x1f3   : > { %p13010_p11 = pnand %p13009_p6, %p14877_p4  ;;  %p13017_p9 = por %p13016_p8, %p13015_p13 }
 0x1f5   : > { %p13011_p12 = pneg %p13010_p11 }
 0x1f7   : > { %p13018_p10 = pnand %p13017_p9, %p13011_p12 }
 0x1f9   : > { %13021 = shalt.err (!%p13018_p10)
}
 0x1fa   : > { %s14938_s3 = sld [smem:[#allocation78_spill]] }
 0x1fb   : > { %11017 = dma.hbm_to_vmem [thread:$0]  (%p14877_p4), %s13910_s20, 32, %s1347_s0, [#allocation54]  }
 0x200   : > { %s13022_s11 = scalar_lea.hbm %s14938_s3, 16 }
 0x201   : > { %p13023_p0 = scmp.ne.s32.totalorder %s14938_s3, %s13022_s11  ;;  %p13028_p3 = scmp.lt.u32.totalorder %s13022_s11, %s14938_s3 }
 0x203   : > { %p13024_p1 = pnand %p13023_p0, %p14877_p4 }
 0x205   : > { %p13025_p2 = pneg %p13024_p1 }
 0x207   : > { %p13030_p7 = pnand %p13028_p3, %p13025_p2 }
 0x209   : > { %13033 = shalt.err (!%p13030_p7)
}
 0x20a   : > { %s13034_s10 = scalar_lea.vmem %s969_s23, 16  ;;  %s13040_s4 = scalar_lea.vmem %s969_s23, 32 }
 0x20b   : > { %p13035_p6 = scmp.ne.s32.totalorder %s969_s23, %s13034_s10  ;;  %p13041_p13 = scmp.lt.s32.totalorder %s969_s23, %s969_s23 }
 0x20c   : > { %p13042_p8 = scmp.lt.s32.totalorder %s13040_s4, %s13034_s10 }
 0x20d   : > { %p13036_p11 = pnand %p13035_p6, %p14877_p4 }
 0x20e   : > { %p13043_p9 = por %p13042_p8, %p13041_p13 }
 0x20f   : > { %p13037_p12 = pneg %p13036_p11 }
 0x211   : > { %p13044_p10 = pnand %p13043_p9, %p13037_p12 }
 0x213   : > { %13047 = shalt.err (!%p13044_p10)
}
 0x214   : > { %s14939_s0 = sld [smem:[#allocation79_spill]]  ;;  %s13696_s11 = smov [#allocation10]  }
 0x215   : > { %10955 = dma.hbm_to_vmem [thread:$0]  (%p14877_p4), %s14938_s3, 16, %s969_s23, [#allocation6]  }
 0x216   : > { %s992_s5 = sshll.u32 %s13696_s11, 4  ;;  %s13697_s8 = smov [#allocation13]   ;;  %s993_s5 = int_to_ptr.vmem [resolvable:$true] %s992_s5 }
 0x217   : > { %s1016_s9 = sshll.u32 %s13697_s8, 4  ;;  %s1017_s9 = int_to_ptr.vmem [resolvable:$true] %s1016_s9 }
 0x21a   : > { %s14940_s2 = smov %s14939_s0  ;;  %s13048_s12 = scalar_lea.hbm %s14939_s0, 16 }
 0x21b   : > { %p13049_p0 = scmp.ne.s32.totalorder %s14940_s2, %s13048_s12  ;;  %p13054_p3 = scmp.lt.u32.totalorder %s13048_s12, %s14940_s2 }
 0x21d   : > { %p13050_p1 = pnand %p13049_p0, %p14877_p4 }
 0x21f   : > { %p13051_p2 = pneg %p13050_p1 }
 0x221   : > { %p13056_p7 = pnand %p13054_p3, %p13051_p2 }
 0x223   : > { %13059 = shalt.err (!%p13056_p7)
}
 0x224   : > { %s13060_s10 = scalar_lea.vmem %s993_s5, 16  ;;  %s13066_s23 = scalar_lea.vmem %s993_s5, 32 }
 0x225   : > { %p13061_p6 = scmp.ne.s32.totalorder %s993_s5, %s13060_s10  ;;  %p13067_p13 = scmp.lt.s32.totalorder %s993_s5, %s993_s5 }
 0x226   : > { %p13068_p8 = scmp.lt.s32.totalorder %s13066_s23, %s13060_s10 }
 0x227   : > { %p13062_p11 = pnand %p13061_p6, %p14877_p4 }
 0x228   : > { %p13069_p9 = por %p13068_p8, %p13067_p13 }
 0x229   : > { %p13063_p12 = pneg %p13062_p11 }
 0x22b   : > { %p13070_p10 = pnand %p13069_p9, %p13063_p12 }
 0x22d   : > { %13073 = shalt.err (!%p13070_p10)
}
 0x22e   : > { %s14941_s8 = sld [smem:[#allocation80_spill]] }
 0x22f   : > { %10959 = dma.hbm_to_vmem [thread:$0]  (%p14877_p4), %s14940_s2, 16, %s993_s5, [#allocation9]  }
 0x234   : > { %s13074_s12 = scalar_lea.hbm %s14941_s8, 16 }
 0x235   : > { %p13075_p0 = scmp.ne.s32.totalorder %s14941_s8, %s13074_s12  ;;  %p13080_p3 = scmp.lt.u32.totalorder %s13074_s12, %s14941_s8 }
 0x237   : > { %p13076_p1 = pnand %p13075_p0, %p14877_p4 }
 0x239   : > { %p13077_p2 = pneg %p13076_p1 }
 0x23b   : > { %p13082_p7 = pnand %p13080_p3, %p13077_p2 }
 0x23d   : > { %13085 = shalt.err (!%p13082_p7)
}
 0x23e   : > { %s13086_s4 = scalar_lea.vmem %s1017_s9, 16  ;;  %s13092_s0 = scalar_lea.vmem %s1017_s9, 32 }
 0x23f   : > { %p13087_p6 = scmp.ne.s32.totalorder %s1017_s9, %s13086_s4  ;;  %p13093_p13 = scmp.lt.s32.totalorder %s1017_s9, %s1017_s9 }
 0x240   : > { %p13094_p8 = scmp.lt.s32.totalorder %s13092_s0, %s13086_s4 }
 0x241   : > { %p13088_p11 = pnand %p13087_p6, %p14877_p4 }
 0x242   : > { %p13095_p9 = por %p13094_p8, %p13093_p13 }
 0x243   : > { %p13089_p12 = pneg %p13088_p11 }
 0x245   : > { %p13096_p10 = pnand %p13095_p9, %p13089_p12 }
 0x247   : > { %13099 = shalt.err (!%p13096_p10)
}
 0x248   : > { %s14942_s5 = sld [smem:[#allocation82_spill]]  ;;  %s13698_s11 = smov [#allocation16]  }
 0x249   : > { %10963 = dma.hbm_to_vmem [thread:$0]  (%p14877_p4), %s14941_s8, 16, %s1017_s9, [#allocation12]  }
 0x24a   : > { %s1040_s10 = sshll.u32 %s13698_s11, 4  ;;  %s13699_s23 = smov [#allocation19]   ;;  %s1041_s10 = int_to_ptr.vmem [resolvable:$true] %s1040_s10 }
 0x24b   : > { %s1064_s12 = sshll.u32 %s13699_s23, 4  ;;  %s1065_s12 = int_to_ptr.vmem [resolvable:$true] %s1064_s12 }
 0x24e   : > { %s13100_s2 = scalar_lea.hbm %s14942_s5, 16 }
 0x24f   : > { %p13101_p0 = scmp.ne.s32.totalorder %s14942_s5, %s13100_s2  ;;  %p13106_p3 = scmp.lt.u32.totalorder %s13100_s2, %s14942_s5 }
 0x251   : > { %p13102_p1 = pnand %p13101_p0, %p14877_p4 }
 0x253   : > { %p13103_p2 = pneg %p13102_p1 }
 0x255   : > { %p13108_p7 = pnand %p13106_p3, %p13103_p2 }
 0x257   : > { %13111 = shalt.err (!%p13108_p7)
}
 0x258   : > { %s13112_s4 = scalar_lea.vmem %s1041_s10, 16  ;;  %s13118_s9 = scalar_lea.vmem %s1041_s10, 32 }
 0x259   : > { %p13113_p6 = scmp.ne.s32.totalorder %s1041_s10, %s13112_s4  ;;  %p13119_p13 = scmp.lt.s32.totalorder %s1041_s10, %s1041_s10 }
 0x25a   : > { %p13120_p8 = scmp.lt.s32.totalorder %s13118_s9, %s13112_s4 }
 0x25b   : > { %p13114_p11 = pnand %p13113_p6, %p14877_p4 }
 0x25c   : > { %p13121_p9 = por %p13120_p8, %p13119_p13 }
 0x25d   : > { %p13115_p12 = pneg %p13114_p11 }
 0x25f   : > { %p13122_p10 = pnand %p13121_p9, %p13115_p12 }
 0x261   : > { %13125 = shalt.err (!%p13122_p10)
}
 0x262   : > { %s14943_s0 = sld [smem:[#allocation83_spill]] }
 0x263   : > { %10967 = dma.hbm_to_vmem [thread:$0]  (%p14877_p4), %s14942_s5, 16, %s1041_s10, [#allocation15]  }
 0x268   : > { %s14944_s11 = smov %s14943_s0  ;;  %s13126_s2 = scalar_lea.hbm %s14943_s0, 16 }
 0x269   : > { %p13127_p0 = scmp.ne.s32.totalorder %s14944_s11, %s13126_s2  ;;  %p13132_p3 = scmp.lt.u32.totalorder %s13126_s2, %s14944_s11 }
 0x26b   : > { %p13128_p1 = pnand %p13127_p0, %p14877_p4 }
 0x26d   : > { %p13129_p2 = pneg %p13128_p1 }
 0x26f   : > { %p13134_p7 = pnand %p13132_p3, %p13129_p2 }
 0x271   : > { %13137 = shalt.err (!%p13134_p7)
}
 0x272   : > { %s13138_s23 = scalar_lea.vmem %s1065_s12, 16  ;;  %s13144_s4 = scalar_lea.vmem %s1065_s12, 32 }
 0x273   : > { %p13139_p6 = scmp.ne.s32.totalorder %s1065_s12, %s13138_s23  ;;  %p13145_p13 = scmp.lt.s32.totalorder %s1065_s12, %s1065_s12 }
 0x274   : > { %p13146_p8 = scmp.lt.s32.totalorder %s13144_s4, %s13138_s23 }
 0x275   : > { %p13140_p11 = pnand %p13139_p6, %p14877_p4 }
 0x276   : > { %p13147_p9 = por %p13146_p8, %p13145_p13 }
 0x277   : > { %p13141_p12 = pneg %p13140_p11 }
 0x279   : > { %p13148_p10 = pnand %p13147_p9, %p13141_p12 }
 0x27b   : > { %13151 = shalt.err (!%p13148_p10)
}
 0x27c   : > { %s14945_s10 = sld [smem:[#allocation85_spill]]  ;;  %s13700_s9 = smov [#allocation22]  }
 0x27d   : > { %10971 = dma.hbm_to_vmem [thread:$0]  (%p14877_p4), %s14944_s11, 16, %s1065_s12, [#allocation18]  }
 0x27e   : > { %s1091_s0 = sshll.u32 %s13700_s9, 4  ;;  %s13701_s2 = smov [#allocation25]   ;;  %s1092_s0 = int_to_ptr.vmem [resolvable:$true] %s1091_s0 }
 0x27f   : > { %s1115_s3 = sshll.u32 %s13701_s2, 4  ;;  %s1116_s3 = int_to_ptr.vmem [resolvable:$true] %s1115_s3 }
 0x282   : > { %s13152_s5 = scalar_lea.hbm %s14945_s10, 16 }
 0x283   : > { %p13153_p0 = scmp.ne.s32.totalorder %s14945_s10, %s13152_s5  ;;  %p13158_p3 = scmp.lt.u32.totalorder %s13152_s5, %s14945_s10 }
 0x285   : > { %p13154_p1 = pnand %p13153_p0, %p14877_p4 }
 0x287   : > { %p13155_p2 = pneg %p13154_p1 }
 0x289   : > { %p13160_p7 = pnand %p13158_p3, %p13155_p2 }
 0x28b   : > { %13163 = shalt.err (!%p13160_p7)
}
 0x28c   : > { %s13164_s23 = scalar_lea.vmem %s1092_s0, 16  ;;  %s13170_s12 = scalar_lea.vmem %s1092_s0, 32 }
 0x28d   : > { %p13165_p6 = scmp.ne.s32.totalorder %s1092_s0, %s13164_s23  ;;  %p13171_p13 = scmp.lt.s32.totalorder %s1092_s0, %s1092_s0 }
 0x28e   : > { %p13172_p8 = scmp.lt.s32.totalorder %s13170_s12, %s13164_s23 }
 0x28f   : > { %p13166_p11 = pnand %p13165_p6, %p14877_p4 }
 0x290   : > { %p13173_p9 = por %p13172_p8, %p13171_p13 }
 0x291   : > { %p13167_p12 = pneg %p13166_p11 }
 0x293   : > { %p13174_p10 = pnand %p13173_p9, %p13167_p12 }
 0x295   : > { %13177 = shalt.err (!%p13174_p10)
}
 0x296   : > { %s14946_s4 = sld [smem:[#allocation87_spill]] }
 0x297   : > { %10975 = dma.hbm_to_vmem [thread:$0]  (%p14877_p4), %s14945_s10, 16, %s1092_s0, [#allocation21]  }
 0x29c   : > { %s13178_s5 = scalar_lea.hbm %s14946_s4, 16 }
 0x29d   : > { %p13179_p0 = scmp.ne.s32.totalorder %s14946_s4, %s13178_s5  ;;  %p13184_p3 = scmp.lt.u32.totalorder %s13178_s5, %s14946_s4 }
 0x29f   : > { %p13180_p1 = pnand %p13179_p0, %p14877_p4 }
 0x2a1   : > { %p13181_p2 = pneg %p13180_p1 }
 0x2a3   : > { %p13186_p7 = pnand %p13184_p3, %p13181_p2 }
 0x2a5   : > { %13189 = shalt.err (!%p13186_p7)
}
 0x2a6   : > { %s13190_s9 = scalar_lea.vmem %s1116_s3, 16  ;;  %s13196_s2 = scalar_lea.vmem %s1116_s3, 32 }
 0x2a7   : > { %p13191_p6 = scmp.ne.s32.totalorder %s1116_s3, %s13190_s9  ;;  %p13197_p13 = scmp.lt.s32.totalorder %s1116_s3, %s1116_s3 }
 0x2a8   : > { %p13198_p8 = scmp.lt.s32.totalorder %s13196_s2, %s13190_s9 }
 0x2a9   : > { %p13192_p11 = pnand %p13191_p6, %p14877_p4 }
 0x2aa   : > { %p13199_p9 = por %p13198_p8, %p13197_p13 }
 0x2ab   : > { %p13193_p12 = pneg %p13192_p11 }
 0x2ad   : > { %p13200_p10 = pnand %p13199_p9, %p13193_p12 }
 0x2af   : > { %13203 = shalt.err (!%p13200_p10)
}
 0x2b0   : > { %s14947_s0 = sld [smem:[#allocation88_spill]]  ;;  %s13702_s12 = smov [#allocation28]  }
 0x2b1   : > { %10979 = dma.hbm_to_vmem [thread:$0]  (%p14877_p4), %s14946_s4, 16, %s1116_s3, [#allocation24]  }
 0x2b2   : > { %s1139_s5 = sshll.u32 %s13702_s12, 4  ;;  %s13703_s8 = smov [#allocation31]   ;;  %s1140_s5 = int_to_ptr.vmem [resolvable:$true] %s1139_s5 }
 0x2b3   : > { %s1166_s10 = sshll.u32 %s13703_s8, 4  ;;  %s1167_s10 = int_to_ptr.vmem [resolvable:$true] %s1166_s10 }
 0x2b6   : > { %s14948_s23 = smov %s14947_s0  ;;  %s13204_s11 = scalar_lea.hbm %s14947_s0, 16 }
 0x2b7   : > { %p13205_p0 = scmp.ne.s32.totalorder %s14948_s23, %s13204_s11  ;;  %p13210_p3 = scmp.lt.u32.totalorder %s13204_s11, %s14948_s23 }
 0x2b9   : > { %p13206_p1 = pnand %p13205_p0, %p14877_p4 }
 0x2bb   : > { %p13207_p2 = pneg %p13206_p1 }
 0x2bd   : > { %p13212_p7 = pnand %p13210_p3, %p13207_p2 }
 0x2bf   : > { %13215 = shalt.err (!%p13212_p7)
}
 0x2c0   : > { %s13216_s9 = scalar_lea.vmem %s1140_s5, 16  ;;  %s13222_s3 = scalar_lea.vmem %s1140_s5, 32 }
 0x2c1   : > { %p13217_p6 = scmp.ne.s32.totalorder %s1140_s5, %s13216_s9  ;;  %p13223_p13 = scmp.lt.s32.totalorder %s1140_s5, %s1140_s5 }
 0x2c2   : > { %p13224_p8 = scmp.lt.s32.totalorder %s13222_s3, %s13216_s9 }
 0x2c3   : > { %p13218_p11 = pnand %p13217_p6, %p14877_p4 }
 0x2c4   : > { %p13225_p9 = por %p13224_p8, %p13223_p13 }
 0x2c5   : > { %p13219_p12 = pneg %p13218_p11 }
 0x2c7   : > { %p13226_p10 = pnand %p13225_p9, %p13219_p12 }
 0x2c9   : > { %13229 = shalt.err (!%p13226_p10)
}
 0x2ca   : > { %s14949_s8 = sld [smem:[#allocation90_spill]] }
 0x2cb   : > { %10983 = dma.hbm_to_vmem [thread:$0]  (%p14877_p4), %s14948_s23, 16, %s1140_s5, [#allocation27]  }
 0x2d0   : > { %s13230_s11 = scalar_lea.hbm %s14949_s8, 32 }
 0x2d1   : > { %p13231_p0 = scmp.ne.s32.totalorder %s14949_s8, %s13230_s11  ;;  %p13236_p3 = scmp.lt.u32.totalorder %s13230_s11, %s14949_s8 }
 0x2d3   : > { %p13232_p1 = pnand %p13231_p0, %p14877_p4 }
 0x2d5   : > { %p13233_p2 = pneg %p13232_p1 }
 0x2d7   : > { %p13238_p7 = pnand %p13236_p3, %p13233_p2 }
 0x2d9   : > { %13241 = shalt.err (!%p13238_p7)
}
 0x2da   : > { %s13242_s2 = scalar_lea.vmem %s1167_s10, 32  ;;  %p13249_p13 = scmp.lt.s32.totalorder %s1167_s10, %s1167_s10 }
 0x2db   : > { %p13243_p6 = scmp.ne.s32.totalorder %s1167_s10, %s13242_s2  ;;  %p13250_p8 = scmp.lt.s32.totalorder %s13242_s2, %s13242_s2 }
 0x2dd   : > { %p13244_p11 = pnand %p13243_p6, %p14877_p4  ;;  %p13251_p9 = por %p13250_p8, %p13249_p13 }
 0x2df   : > { %p13245_p12 = pneg %p13244_p11 }
 0x2e1   : > { %p13252_p10 = pnand %p13251_p9, %p13245_p12 }
 0x2e3   : > { %13255 = shalt.err (!%p13252_p10)
}
 0x2e4   : > { %s14950_s0 = sld [smem:[#allocation92_spill]]  ;;  %s13704_s5 = smov [#allocation34]  }
 0x2e5   : > { %10987 = dma.hbm_to_vmem [thread:$0]  (%p14877_p4), %s14949_s8, 32, %s1167_s10, [#allocation30]  }
 0x2e6   : > { %s1190_s9 = sshll.u32 %s13704_s5, 4  ;;  %s13705_s3 = smov [#allocation37]   ;;  %s1191_s9 = int_to_ptr.vmem [resolvable:$true] %s1190_s9 }
 0x2e7   : > { %s1214_s11 = sshll.u32 %s13705_s3, 4  ;;  %s1215_s11 = int_to_ptr.vmem [resolvable:$true] %s1214_s11 }
 0x2ea   : > { %s14951_s12 = smov %s14950_s0  ;;  %s13256_s4 = scalar_lea.hbm %s14950_s0, 32 }
 0x2eb   : > { %p13257_p0 = scmp.ne.s32.totalorder %s14951_s12, %s13256_s4  ;;  %p13262_p3 = scmp.lt.u32.totalorder %s13256_s4, %s14951_s12 }
 0x2ed   : > { %p13258_p1 = pnand %p13257_p0, %p14877_p4 }
 0x2ef   : > { %p13259_p2 = pneg %p13258_p1 }
 0x2f1   : > { %p13264_p7 = pnand %p13262_p3, %p13259_p2 }
 0x2f3   : > { %13267 = shalt.err (!%p13264_p7)
}
 0x2f4   : > { %s13268_s2 = scalar_lea.vmem %s1191_s9, 32  ;;  %p13275_p13 = scmp.lt.s32.totalorder %s1191_s9, %s1191_s9 }
 0x2f5   : > { %p13269_p6 = scmp.ne.s32.totalorder %s1191_s9, %s13268_s2  ;;  %p13276_p8 = scmp.lt.s32.totalorder %s13268_s2, %s13268_s2 }
 0x2f7   : > { %p13270_p11 = pnand %p13269_p6, %p14877_p4  ;;  %p13277_p9 = por %p13276_p8, %p13275_p13 }
 0x2f9   : > { %p13271_p12 = pneg %p13270_p11 }
 0x2fb   : > { %p13278_p10 = pnand %p13277_p9, %p13271_p12 }
 0x2fd   : > { %13281 = shalt.err (!%p13278_p10)
}
 0x2fe   : > { %s14952_s10 = sld [smem:[#allocation94_spill]] }
 0x2ff   : > { %10991 = dma.hbm_to_vmem [thread:$0]  (%p14877_p4), %s14951_s12, 32, %s1191_s9, [#allocation33]  }
 0x304   : > { %s13282_s4 = scalar_lea.hbm %s14952_s10, 32 }
 0x305   : > { %p13283_p0 = scmp.ne.s32.totalorder %s14952_s10, %s13282_s4  ;;  %p13288_p3 = scmp.lt.u32.totalorder %s13282_s4, %s14952_s10 }
 0x307   : > { %p13284_p1 = pnand %p13283_p0, %p14877_p4 }
 0x309   : > { %p13285_p2 = pneg %p13284_p1 }
 0x30b   : > { %p13290_p7 = pnand %p13288_p3, %p13285_p2 }
 0x30d   : > { %13293 = shalt.err (!%p13290_p7)
}
 0x30e   : > { %s13294_s0 = scalar_lea.vmem %s1215_s11, 32  ;;  %p13301_p13 = scmp.lt.s32.totalorder %s1215_s11, %s1215_s11 }
 0x30f   : > { %p13295_p6 = scmp.ne.s32.totalorder %s1215_s11, %s13294_s0  ;;  %p13302_p8 = scmp.lt.s32.totalorder %s13294_s0, %s13294_s0 }
 0x311   : > { %p13296_p11 = pnand %p13295_p6, %p14877_p4  ;;  %p13303_p9 = por %p13302_p8, %p13301_p13 }
 0x313   : > { %p13297_p12 = pneg %p13296_p11 }
 0x315   : > { %p13304_p10 = pnand %p13303_p9, %p13297_p12 }
 0x317   : > { %13307 = shalt.err (!%p13304_p10)
}
 0x318   : > { %s14953_s5 = sld [smem:[#allocation95_spill]]  ;;  %s13706_s9 = smov [#allocation40]  }
 0x319   : > { %10995 = dma.hbm_to_vmem [thread:$0]  (%p14877_p4), %s14952_s10, 32, %s1215_s11, [#allocation36]  }
 0x31a   : > { %s1238_s3 = sshll.u32 %s13706_s9, 4  ;;  %s13707_s2 = smov [#allocation43]   ;;  %s1239_s3 = int_to_ptr.vmem [resolvable:$true] %s1238_s3 }
 0x31b   : > { %s1262_s4 = sshll.u32 %s13707_s2, 4  ;;  %s1263_s4 = int_to_ptr.vmem [resolvable:$true] %s1262_s4 }
 0x31e   : > { %s13308_s8 = scalar_lea.hbm %s14953_s5, 32 }
 0x31f   : > { %p13309_p0 = scmp.ne.s32.totalorder %s14953_s5, %s13308_s8  ;;  %p13314_p3 = scmp.lt.u32.totalorder %s13308_s8, %s14953_s5 }
 0x321   : > { %p13310_p1 = pnand %p13309_p0, %p14877_p4 }
 0x323   : > { %p13311_p2 = pneg %p13310_p1 }
 0x325   : > { %p13316_p7 = pnand %p13314_p3, %p13311_p2 }
 0x327   : > { %13319 = shalt.err (!%p13316_p7)
}
 0x328   : > { %s13320_s0 = scalar_lea.vmem %s1239_s3, 32  ;;  %p13327_p13 = scmp.lt.s32.totalorder %s1239_s3, %s1239_s3 }
 0x329   : > { %p13321_p6 = scmp.ne.s32.totalorder %s1239_s3, %s13320_s0  ;;  %p13328_p8 = scmp.lt.s32.totalorder %s13320_s0, %s13320_s0 }
 0x32b   : > { %p13322_p11 = pnand %p13321_p6, %p14877_p4  ;;  %p13329_p9 = por %p13328_p8, %p13327_p13 }
 0x32d   : > { %p13323_p12 = pneg %p13322_p11 }
 0x32f   : > { %p13330_p10 = pnand %p13329_p9, %p13323_p12 }
 0x331   : > { %13333 = shalt.err (!%p13330_p10)
}
 0x332   : > { %s14954_s11 = sld [smem:[#allocation97_spill]] }
 0x333   : > { %10999 = dma.hbm_to_vmem [thread:$0]  (%p14877_p4), %s14953_s5, 32, %s1239_s3, [#allocation39]  }
 0x338   : > { %s13334_s8 = scalar_lea.hbm %s14954_s11, 32 }
 0x339   : > { %p13335_p0 = scmp.ne.s32.totalorder %s14954_s11, %s13334_s8  ;;  %p13340_p3 = scmp.lt.u32.totalorder %s13334_s8, %s14954_s11 }
 0x33b   : > { %p13336_p1 = pnand %p13335_p0, %p14877_p4 }
 0x33d   : > { %p13337_p2 = pneg %p13336_p1 }
 0x33f   : > { %p13342_p7 = pnand %p13340_p3, %p13337_p2 }
 0x341   : > { %13345 = shalt.err (!%p13342_p7)
}
 0x342   : > { %s13346_s9 = scalar_lea.vmem %s1263_s4, 32  ;;  %p13353_p13 = scmp.lt.s32.totalorder %s1263_s4, %s1263_s4 }
 0x343   : > { %p13347_p6 = scmp.ne.s32.totalorder %s1263_s4, %s13346_s9  ;;  %p13354_p8 = scmp.lt.s32.totalorder %s13346_s9, %s13346_s9 }
 0x345   : > { %p13348_p11 = pnand %p13347_p6, %p14877_p4  ;;  %p13355_p9 = por %p13354_p8, %p13353_p13 }
 0x347   : > { %p13349_p12 = pneg %p13348_p11 }
 0x349   : > { %p13356_p10 = pnand %p13355_p9, %p13349_p12 }
 0x34b   : > { %13359 = shalt.err (!%p13356_p10)
}
 0x34c   : > { %s14955_s3 = sld [smem:[#allocation98_spill]]  ;;  %s13708_s2 = smov [#allocation46]  }
 0x34d   : > { %11003 = dma.hbm_to_vmem [thread:$0]  (%p14877_p4), %s14954_s11, 32, %s1263_s4, [#allocation42]  }
 0x34e   : > { %s1284_s0 = sshll.u32 %s13708_s2, 4  ;;  %s13709_s8 = smov [#allocation49]   ;;  %s1285_s0 = int_to_ptr.vmem [resolvable:$true] %s1284_s0 }
 0x34f   : > { %s1308_s5 = sshll.u32 %s13709_s8, 4  ;;  %s1309_s5 = int_to_ptr.vmem [resolvable:$true] %s1308_s5 }
 0x352   : > { %s13360_s10 = scalar_lea.hbm %s14955_s3, 128 }
 0x353   : > { %p13361_p0 = scmp.ne.s32.totalorder %s14955_s3, %s13360_s10  ;;  %p13366_p3 = scmp.lt.u32.totalorder %s13360_s10, %s14955_s3 }
 0x355   : > { %p13362_p1 = pnand %p13361_p0, %p14877_p4 }
 0x357   : > { %p13363_p2 = pneg %p13362_p1 }
 0x359   : > { %p13368_p7 = pnand %p13366_p3, %p13363_p2 }
 0x35b   : > { %13371 = shalt.err (!%p13368_p7)
}
 0x35c   : > { %s13372_s9 = scalar_lea.vmem %s1285_s0, 128  ;;  %p13379_p13 = scmp.lt.s32.totalorder %s1285_s0, %s1285_s0 }
 0x35d   : > { %p13373_p6 = scmp.ne.s32.totalorder %s1285_s0, %s13372_s9  ;;  %p13380_p8 = scmp.lt.s32.totalorder %s13372_s9, %s13372_s9 }
 0x35f   : > { %p13374_p11 = pnand %p13373_p6, %p14877_p4  ;;  %p13381_p9 = por %p13380_p8, %p13379_p13 }
 0x361   : > { %p13375_p12 = pneg %p13374_p11 }
 0x363   : > { %p13382_p10 = pnand %p13381_p9, %p13375_p12 }
 0x365   : > { %13385 = shalt.err (!%p13382_p10)
}
 0x366   : > { %s14956_s4 = sld [smem:[#allocation101_spill]] }
 0x367   : > { %11007 = dma.hbm_to_vmem [thread:$0]  (%p14877_p4), %s14955_s3, 128, %s1285_s0, [#allocation45]  }
 0x36c   : > { %s13386_s10 = scalar_lea.hbm %s14956_s4, 3072 }
 0x36d   : > { %p13387_p0 = scmp.ne.s32.totalorder %s14956_s4, %s13386_s10  ;;  %p13392_p3 = scmp.lt.u32.totalorder %s13386_s10, %s14956_s4 }
 0x36f   : > { %p13388_p1 = pnand %p13387_p0, %p14877_p4 }
 0x371   : > { %p13389_p2 = pneg %p13388_p1 }
 0x373   : > { %p13394_p7 = pnand %p13392_p3, %p13389_p2 }
 0x375   : > { %13397 = shalt.err (!%p13394_p7)
}
 0x376   : > { %s13398_s2 = scalar_lea.vmem %s1309_s5, 3072  ;;  %p13405_p13 = scmp.lt.s32.totalorder %s1309_s5, %s1309_s5 }
 0x377   : > { %p13399_p6 = scmp.ne.s32.totalorder %s1309_s5, %s13398_s2  ;;  %p13406_p8 = scmp.lt.s32.totalorder %s13398_s2, %s13398_s2 }
 0x379   : > { %p13400_p11 = pnand %p13399_p6, %p14877_p4  ;;  %p13407_p9 = por %p13406_p8, %p13405_p13 }
 0x37b   : > { %p13401_p12 = pneg %p13400_p11 }
 0x37d   : > { %p13408_p10 = pnand %p13407_p9, %p13401_p12 }
 0x37f   : > { %13411 = shalt.err (!%p13408_p10)
}
 0x380   : > { %11011 = dma.hbm_to_vmem [thread:$0]  (%p14877_p4), %s14956_s4, 3072, %s1309_s5, [#allocation48], %s14934_s26, %s14934_s26, %s14933_s6  }
 0x381   : > { %s13710_s0 = smov [#allocation52]   ;;  %s13711_s9 = smov [#allocation55]  }
 0x382   : > { %s1332_s8 = sshll.u32 %s13710_s0, 4  ;;  %s1357_s10 = sshll.u32 %s13711_s9, 4  ;;  %s1333_s8 = int_to_ptr.vmem [resolvable:$true] %s1332_s8  ;;  %s1358_s10 = int_to_ptr.vmem [resolvable:$true] %s1357_s10 }
 0x383   : > { %s13412_s2 = scalar_lea.hbm %s13905_s21, 36864 }
 0x384   : > { %p13413_p0 = scmp.ne.s32.totalorder %s13905_s21, %s13412_s2  ;;  %p13418_p3 = scmp.lt.u32.totalorder %s13412_s2, %s13905_s21 }
 0x386   : > { %p13414_p1 = pnand %p13413_p0, %p14877_p4 }
 0x388   : > { %p13415_p2 = pneg %p13414_p1 }
 0x38a   : > { %p13420_p7 = pnand %p13418_p3, %p13415_p2 }
 0x38c   : > { %13423 = shalt.err (!%p13420_p7)
}
 0x38d   : > { %s13424_s3 = scalar_lea.vmem %s1333_s8, 36864  ;;  %p13431_p13 = scmp.lt.s32.totalorder %s1333_s8, %s1333_s8 }
 0x38e   : > { %p13425_p6 = scmp.ne.s32.totalorder %s1333_s8, %s13424_s3  ;;  %p13432_p8 = scmp.lt.s32.totalorder %s13424_s3, %s13424_s3 }
 0x390   : > { %p13426_p11 = pnand %p13425_p6, %p14877_p4  ;;  %p13433_p9 = por %p13432_p8, %p13431_p13 }
 0x392   : > { %p13427_p12 = pneg %p13426_p11 }
 0x394   : > { %p13434_p10 = pnand %p13433_p9, %p13427_p12 }
 0x396   : > { %13437 = shalt.err (!%p13434_p10)
}
 0x397   : > { %s14957_s6 = smov 72   ;;  %s14958_s26 = smov 1152  }
 0x398   : > { %11015 = dma.hbm_to_vmem [thread:$0]  (%p14877_p4), %s13905_s21, 36864, %s1333_s8, [#allocation51], %s14958_s26, %s14958_s26, %s14957_s6  }
 0x399   : > { %s13438_s5 = scalar_lea.hbm %s13915_s13, 128 }
 0x39a   : > { %p13439_p0 = scmp.ne.s32.totalorder %s13915_s13, %s13438_s5  ;;  %p13444_p3 = scmp.lt.u32.totalorder %s13438_s5, %s13915_s13 }
 0x39c   : > { %p13440_p1 = pnand %p13439_p0, %p14877_p4 }
 0x39e   : > { %p13441_p2 = pneg %p13440_p1 }
 0x3a0   : > { %p13446_p7 = pnand %p13444_p3, %p13441_p2 }
 0x3a2   : > { %13449 = shalt.err (!%p13446_p7)
}
 0x3a3   : > { %s13450_s3 = scalar_lea.vmem %s1358_s10, 128  ;;  %p13457_p13 = scmp.lt.s32.totalorder %s1358_s10, %s1358_s10 }
 0x3a4   : > { %p13451_p6 = scmp.ne.s32.totalorder %s1358_s10, %s13450_s3  ;;  %p13458_p8 = scmp.lt.s32.totalorder %s13450_s3, %s13450_s3 }
 0x3a6   : > { %p13452_p11 = pnand %p13451_p6, %p14877_p4  ;;  %p13459_p9 = por %p13458_p8, %p13457_p13 }
 0x3a8   : > { %p13453_p12 = pneg %p13452_p11 }
 0x3aa   : > { %p13460_p10 = pnand %p13459_p9, %p13453_p12 }
 0x3ac   : > { %13463 = shalt.err (!%p13460_p10)
}
 0x3ad   : > { %11019 = dma.hbm_to_vmem [thread:$0]  (%p14877_p4), %s13915_s13, 128, %s1358_s10, [#allocation54]  }
 0x3ae PF: > { %s14959_s0 = sld [smem:[#allocation76_spill]]  ;;  %p11134_p1 = scmp.lt.s32.totalorder %s13628_s18, 2 }
 0x3af   : > { %s1368_s9 = sand.u32 1, %s13624_s16   ;;  %s10657_s2 = sshll.u32 %s13628_s18, 8 }
 0x3b0   : > { %s9717_s6 = sshll.u32 %s1368_s9, 4  ;;  %p14379_p2 = pnand %p11134_p1, %p13961_p5 }
 0x3b1   : > { %s1372_s10 = scalar_lea.vmem [#allocation2], %s9717_s6  ;;  %s14385_s4 = scalar_lea.sflag [#allocation3], %s1368_s9 }
 0x3b2   : > { %s1379_s5 = sshll.u32 %s1372_s10, 4  ;;  %p13466_p7 = pneg %p14379_p2  ;;  %s14383_s5 = int_to_ptr.vmem [resolvable:$true] %s1379_s5 }
 0x3b4   : > { %s14960_s8 = smov %s14959_s0  ;;  %s14375_s26 = scalar_lea.hbm %s14959_s0, %s10657_s2 }
 0x3b5   : > { %s13464_s11 = scalar_lea.hbm %s14375_s26, 256  ;;  %s13469_s0 = scalar_lea.hbm %s14960_s8, 512 }
 0x3b6   : > { %p13465_p3 = scmp.ne.s32.totalorder %s14375_s26, %s13464_s11  ;;  %p13470_p12 = scmp.lt.u32.totalorder %s14375_s26, %s14960_s8 }
 0x3b7   : > { %p13471_p5 = scmp.lt.u32.totalorder %s13469_s0, %s13464_s11  ;;  %p13473_p8 = scmp.lt.u32.totalorder %s13464_s11, %s14375_s26 }
 0x3b8   : > { %p13467_p6 = pnand %p13466_p7, %p13465_p3 }
 0x3b9   : > { %p13472_p13 = por %p13471_p5, %p13470_p12 }
 0x3ba   : > { %p13468_p11 = pneg %p13467_p6 }
 0x3bb   : > { %p13474_p9 = por %p13473_p8, %p13472_p13 }
 0x3bd   : > { %p13475_p10 = pnand %p13474_p9, %p13468_p11 }
 0x3bf   : > { %13478 = shalt.err (!%p13475_p10)
}
 0x3c0   : > { %s13479_s7 = scalar_lea.vmem %s14383_s5, 256  ;;  %s13712_s9 = smov [#allocation2]  }
 0x3c1   : > { %p13480_p1 = scmp.ne.s32.totalorder %s14383_s5, %s13479_s7  ;;  %s13484_s2 = sshll.u32 %s13712_s9, 4  ;;  %s13485_s2 = int_to_ptr.vmem [resolvable:$false] %s13484_s2 }
 0x3c2   : > { %s13486_s6 = scalar_lea.vmem %s13485_s2, 512  ;;  %p13487_p3 = scmp.lt.s32.totalorder %s14383_s5, %s13485_s2 }
 0x3c3   : > { %p13482_p0 = pnand %p13480_p1, %p13466_p7  ;;  %p13488_p6 = scmp.lt.s32.totalorder %s13486_s6, %s13479_s7 }
 0x3c5   : > { %p13483_p4 = pneg %p13482_p0  ;;  %p13489_p12 = por %p13488_p6, %p13487_p3 }
 0x3c7   : > { %p13490_p5 = pnand %p13489_p12, %p13483_p4 }
 0x3c9   : > { %13493 = shalt.err (!%p13490_p5)
}
 0x3ca   : > { %s13713_s11 = smov 128   ;;  %s13714_s10 = smov 8  }
 0x3cb   : > { %11095 = dma.hbm_to_vmem [thread:$0]  (!%p14379_p2), %s14375_s26, 256, %s14383_s5, %s14385_s4, %s13713_s11, %s13713_s11, %s13714_s10  }
 0x3cc   : > { %p14962_p7 = scmp.ne.s32.totalorder %s14926_s1, 0 }
 0x3cd   : > { %s14963_s0 = sld [smem:[#allocation107_spill]] (!%p14962_p7)  ;;  %s14412_s9 = sand.u32 (!%p14962_p7), 1, %s13620_s15  }
 0x3ce   : > { %1391 = sbr.rel (%p14962_p7) target bundleno = 5269 (0x1495), region = 172  ;;  %s9721_s7 = sshll.u32 (!%p14962_p7), %s14412_s9, 4 }
 0x3cf   : > { %s1394_s2 = scalar_lea.sflag (!%p14962_p7), [#allocation3], %s14412_s9  ;;  %s14418_s6 = scalar_lea.vmem (!%p14962_p7), [#allocation2], %s9721_s7 }
 0x3d3   : > { %p14964_p4 = scmp.ne.s32.totalorder (!%p14962_p7), %s14963_s0, 0 }
 0x3d5   : > { %13539 = dma.done.wait (%p14964_p4), %s1394_s2, 256  }
 0x3d6   : > { %13541 = vsyncadd (%p14964_p4), %s1394_s2, 4294967040  ;;  %p14965_p0 = scmp.eq.s32.totalorder %s13943_s22, 0 }
 0x3d8   : > { %13543 = dma.done.wait (%p14965_p0), [#allocation6], 32   ;;  %p14966_p2 = pmov %p14965_p0 }
 0x3d9   : > { %p14967_p11 = pmov %p14965_p0 }
 0x3da   : > { %13545 = vsyncadd (%p14966_p2), [#allocation6], 4294967264 }
 0x3db   : > { %13547 = dma.done.wait (%p14967_p11), [#allocation9], 208   ;;  %p14968_p13 = pmov %p14965_p0 }
 0x3dc   : > { %p14969_p8 = pmov %p14965_p0 }
 0x3dd   : > { %13549 = vsyncadd (%p14968_p13), [#allocation9], 4294967088 }
 0x3de   : > { %13551 = dma.done.wait (%p14969_p8), [#allocation12], 784   ;;  %p14970_p9 = pmov %p14965_p0 }
 0x3df   : > { %p14971_p10 = pmov %p14965_p0 }
 0x3e0   : > { %13553 = vsyncadd (%p14970_p9), [#allocation12], 4294966512 }
 0x3e1   : > { %13555 = dma.done.wait (%p14971_p10), [#allocation15], 208   ;;  %p14972_p1 = pmov %p14965_p0 }
 0x3e2   : > { %p14973_p3 = pmov %p14965_p0 }
 0x3e3   : > { %13557 = vsyncadd (%p14972_p1), [#allocation15], 4294967088 }
 0x3e4   : > { %13559 = dma.done.wait (%p14973_p3), [#allocation18], 9232   ;;  %p14974_p6 = pmov %p14965_p0 }
 0x3e5   : > { %p14975_p12 = pmov %p14965_p0 }
 0x3e6   : > { %13561 = vsyncadd (%p14974_p6), [#allocation18], 4294958064 }
 0x3e7   : > { %13563 = dma.done.wait (%p14975_p12), [#allocation21], 528   ;;  %p14976_p5 = pmov %p14965_p0 }
 0x3e8   : > { %p14977_p7 = pmov %p14965_p0 }
 0x3e9   : > { %13565 = vsyncadd (%p14976_p5), [#allocation21], 4294966768 }
 0x3ea   : > { %13567 = dma.done.wait (%p14977_p7), [#allocation24], 784   ;;  %p14978_p4 = pmov %p14965_p0 }
 0x3ec   : > { %13569 = vsyncadd (%p14978_p4), [#allocation24], 4294966512 }
 0x3ed   : > { %13571 = dma.done.wait (%p14965_p0), [#allocation27], 9232   ;;  %p14979_p2 = pmov %p14965_p0 }
 0x3ee   : > { %p14980_p11 = pmov %p14965_p0 }
 0x3ef   : > { %13573 = vsyncadd (%p14979_p2), [#allocation27], 4294958064 }
 0x3f0   : > { %13575 = dma.done.wait (%p14980_p11), [#allocation30], 544   ;;  %p14981_p13 = pmov %p14965_p0 }
 0x3f1   : > { %p14982_p8 = pmov %p14965_p0 }
 0x3f2   : > { %13577 = vsyncadd (%p14981_p13), [#allocation30], 4294966752 }
 0x3f3   : > { %13579 = dma.done.wait (%p14982_p8), [#allocation33], 3104   ;;  %p14983_p9 = pmov %p14965_p0 }
 0x3f4   : > { %p14984_p10 = pmov %p14965_p0 }
 0x3f5   : > { %13581 = vsyncadd (%p14983_p9), [#allocation33], 4294964192 }
 0x3f6   : > { %13583 = dma.done.wait (%p14984_p10), [#allocation36], 2080   ;;  %p14985_p1 = pmov %p14965_p0 }
 0x3f7   : > { %p14986_p3 = pmov %p14965_p0 }
 0x3f8   : > { %13585 = vsyncadd (%p14985_p1), [#allocation36], 4294965216 }
 0x3f9   : > { %13587 = dma.done.wait (%p14986_p3), [#allocation39], 36896   ;;  %p14987_p6 = pmov %p14965_p0 }
 0x3fa   : > { %p14988_p12 = pmov %p14965_p0 }
 0x3fb   : > { %13589 = vsyncadd (%p14987_p6), [#allocation39], 4294930400 }
 0x3fc   : > { %13591 = dma.done.wait (%p14988_p12), [#allocation42], 2080   ;;  %p14989_p5 = pmov %p14965_p0 }
 0x3fd   : > { %p14990_p7 = pmov %p14965_p0 }
 0x3fe   : > { %13593 = vsyncadd (%p14989_p5), [#allocation42], 4294965216 }
 0x3ff   : > { %13595 = dma.done.wait (%p14990_p7), [#allocation45], 384   ;;  %p14991_p4 = pmov %p14965_p0 }
 0x401   : > { %13597 = vsyncadd (%p14991_p4), [#allocation45], 4294966912 }
 0x402   : > { %13599 = dma.done.wait (%p14965_p0), [#allocation48], 3104   ;;  %p14992_p2 = pmov %p14965_p0 }
 0x403   : > { %p14993_p11 = pmov %p14965_p0 }
 0x404   : > { %13601 = vsyncadd (%p14992_p2), [#allocation48], 4294964192 }
 0x405   : > { %13603 = dma.done.wait (%p14993_p11), [#allocation51], 36896   ;;  %p14994_p13 = pmov %p14965_p0 }
 0x406   : > { %p14995_p8 = pmov %p14965_p0 }
 0x407   : > { %13605 = vsyncadd (%p14994_p13), [#allocation51], 4294930400 }
 0x408   : > { %13607 = dma.done.wait (%p14995_p8), [#allocation54], 160   ;;  %p14996_p9 = pmov %p14965_p0 }
 0x409   : > { %v13715_v0 = vmov 0.0   ;;  %vm13716_vm0 = vmmov 0   ;;  %v11292_v1 = vld [vmem:[#allocation8] sm:$0xff]   ;;  %vm1775_vm1 = vcmask 1043456   ;;  %v11293_v2 = vld [vmem:[#allocation8 + $0x8] ss:$0 sps:$4 sm:$0xff]  }
 0x40a   : > { %13609 = vsyncadd (%p14996_p9), [#allocation54], 4294967136  ;;  %10710 = vmatprep.subr.bf16.mxu0 %v13715_v0  ;;  %10714 = vmatprep.mubr.msk.bf16.mxu0 %vm13716_vm0, %v13715_v0  ;;  %v1629_v3 = vld [vmem:[%s14418_s6] sm:$0xff]  ;;  %v1630_v4 = vld [vmem:[%s14418_s6 + $0x8] sm:$0xff]  ;;  %v1777_v7 = vsel %vm1775_vm1, %v11293_v2, 0  ;;  %vm1771_vm2 = vcmask 195584  }
 0x40b   : > { %10734 = vmatprep.subr.bf16.mxu1 %v13715_v0  ;;  %10738 = vmatprep.mubr.msk.bf16.mxu1 %vm13716_vm0, %v13715_v0  ;;  %v9757_v5 = vld [vmem:[#allocation5] ss:$0 sm:$0xff]  ;;  %v9758_v6 = vld [vmem:[#allocation7] ss:$0 sm:$0xff]  ;;  %v11294_v12 = vld [vmem:[#allocation11] sm:$0xff]   ;;  %vm1865_vm3 = vcmask 785408  }
 0x40c   : > { %10711 = vmatpush3.bf16.msra.mxu0 %v11292_v1  ;;  %v1638_v8 = vmul.f32 %v9757_v5, %v1629_v3  ;;  %v1639_v9 = vmul.f32 %v9757_v5, %v1630_v4  ;;  %v11295_v14 = vld [vmem:[#allocation11 + $0x8] sm:$0xff]   ;;  %v11296_v15 = vld [vmem:[#allocation11 + $0x10] sm:$0xff]   ;;  %v11297_v16 = vld [vmem:[#allocation11 + $0x18] sm:$0xff]   ;;  %s14997_s1 = sld [smem:[#allocation84_spill]]  ;;  %vm2561_vm4 = vcmask 130048   ;;  %s14998_s4 = sld [smem:[#allocation89_spill]] }
 0x40d   : > { %10712 = vmatprep.subr.bf16.mxu0 %v13715_v0  ;;  %v11298_v17 = vld [vmem:[#allocation14] sm:$0xff]   ;;  %v11299_v18 = vld [vmem:[#allocation11 + $0x20] sm:$0xff]   ;;  %v11300_v19 = vld [vmem:[#allocation14 + $0x8] ss:$0 sps:$4 sm:$0xff]   ;;  %vm4262_vm5 = vcmask 523264   ;;  %s14999_s26 = sld [smem:[#allocation99_spill]] }
 0x40e   : > { %v1647_v10 = vadd.f32 %v9758_v6, %v1638_v8  ;;  %v1648_v11 = vadd.f32 %v9758_v6, %v1639_v9  ;;  %10735 = vmatpush3.bf16.msra.mxu1 %v11298_v17  ;;  %v1926_v20 = vsel %vm1775_vm1, %v11300_v19, 0  ;;  %v11301_v21 = vld [vmem:[#allocation11 + $0x28] sm:$0xff]   ;;  %v11311_v25 = vld [vmem:[#allocation17 + $0x50] ss:$36 sps:$4 sm:$0xff]   ;;  %v11317_v27 = vld [vmem:[#allocation17 + $0x98] ss:$36 sps:$4 sm:$0xff]  }
 0x40f   : > { %10736 = vmatprep.subr.bf16.mxu1 %v13715_v0  ;;  %v11304_v22 = vld [vmem:[#allocation17 + $0x4] ss:$36 sps:$4 sm:$0xff]   ;;  %v11307_v24 = vld [vmem:[#allocation17 + $0xc] ss:$36 sps:$4 sm:$0xff]   ;;  %v11313_v26 = vld [vmem:[#allocation17 + $0x54] ss:$36 sps:$4 sm:$0xff]  }
 0x410   : > { %10713 = vmatpush3.bf16.msra.mxu0 %v1777_v7  ;;  %v1755_v13 = vpack.c.bf16 %v1648_v11, %v1647_v10  ;;  %v11305_v23 = vld [vmem:[#allocation17 + $0x8] ss:$36 sps:$4 sm:$0xff]   ;;  %v11319_v28 = vld [vmem:[#allocation17 + $0x9c] ss:$36 sps:$4 sm:$0xff]   ;;  %v11335_v33 = vld [vmem:[#allocation17 + $0x170] ss:$36 sps:$4 sm:$0xff]  }
 0x411   : > { %10718 = vmatprep.subr.bf16.mxu0 %v13715_v0  ;;  %v11323_v29 = vld [vmem:[#allocation17 + $0xe0] ss:$36 sps:$4 sm:$0xff]   ;;  %v11329_v31 = vld [vmem:[#allocation17 + $0x128] ss:$36 sps:$4 sm:$0xff]   ;;  %v11337_v34 = vld [vmem:[#allocation17 + $0x174] ss:$36 sps:$4 sm:$0xff]  }
 0x412   : > { %10737 = vmatpush3.bf16.msra.mxu1 %v1926_v20  ;;  %v11325_v30 = vld [vmem:[#allocation17 + $0xe4] ss:$36 sps:$4 sm:$0xff]   ;;  %v11331_v32 = vld [vmem:[#allocation17 + $0x12c] ss:$36 sps:$4 sm:$0xff]   ;;  %v9759_v35 = vld [vmem:[#allocation10] ss:$0 sm:$0xff] }
 0x413   : > { %10715 = vmatmul.mubr.msk.bf16.vlgmr.msra.gmra.mrb[0].mxu0 %vm1771_vm2, %v1755_v13  ;;  %2385 = vmatprep.subr.bf16.mxu1 %v11307_v24  ;;  %v11302_v42 = vld [vmem:[#allocation17] ss:$36 sps:$4 sm:$0xff]   ;;  %v11310_v45 = vld [vmem:[#allocation17 + $0x4c] ss:$36 sps:$4 sm:$0xff]   ;;  %v11316_v48 = vld [vmem:[#allocation17 + $0x94] ss:$36 sps:$4 sm:$0xff]  }
 0x414   : > { %10719 = vmatpush3.bf16.msra.mxu0 %v11294_v12  ;;  %10730 = vmatprep.mubr.msk.bf16.mxu0 %vm13716_vm0, %v13715_v0  ;;  %v11308_v47 = vld [vmem:[#allocation17 + $0x48] ss:$36 sps:$4 sm:$0xff]   ;;  %v11314_v49 = vld [vmem:[#allocation17 + $0x90] ss:$36 sps:$4 sm:$0xff]   ;;  %v11322_v50 = vld [vmem:[#allocation17 + $0xdc] ss:$36 sps:$4 sm:$0xff]  }
 0x415   : > { %10720 = vmatprep.subr.bf16.mxu0 %v13715_v0  ;;  %10739 = vmatmul.mubr.msk.bf16.vlgmr.msra.gmra.mrb[0].mxu1 %vm1771_vm2, %v1755_v13  ;;  %v11320_v51 = vld [vmem:[#allocation17 + $0xd8] ss:$36 sps:$4 sm:$0xff]   ;;  %v11328_v52 = vld [vmem:[#allocation17 + $0x124] ss:$36 sps:$4 sm:$0xff]   ;;  %v11334_v54 = vld [vmem:[#allocation17 + $0x16c] ss:$36 sps:$4 sm:$0xff]  }
 0x416   : > { %2386 = vmatpush1.bf16.msra.mxu1 %v11305_v23  ;;  %v11326_v53 = vld [vmem:[#allocation17 + $0x120] ss:$36 sps:$4 sm:$0xff]   ;;  %v11332_v55 = vld [vmem:[#allocation17 + $0x168] ss:$36 sps:$4 sm:$0xff]   ;;  %v11340_v58 = vld [vmem:[#allocation17 + $0x1b4] ss:$36 sps:$4 sm:$0xff]  }
 0x417   : > { %2387 = vmatprep.subr.bf16.mxu1 %v11313_v26  ;;  %v11343_v59 = vld [vmem:[#allocation17 + $0x1bc] ss:$36 sps:$4 sm:$0xff]   ;;  %v11338_v61 = vld [vmem:[#allocation17 + $0x1b0] ss:$36 sps:$4 sm:$0xff]   ;;  %v11349_v2 = vld [vmem:[#allocation17 + $0x204] ss:$36 sps:$4 sm:$0xff]  }
 0x418   : > { %10721 = vmatpush3.bf16.msra.mxu0 %v11295_v14  ;;  %v11341_v62 = vld [vmem:[#allocation17 + $0x1b8] ss:$36 sps:$4 sm:$0xff]   ;;  %v11347_v4 = vld [vmem:[#allocation17 + $0x200] ss:$36 sps:$4 sm:$0xff]   ;;  %v13717_v7 = vmov 0   ;;  %vm9144_vm6 = vcmask 588800  }
 0x419   : > { %10722 = vmatprep.subr.bf16.mxu0 %v13715_v0  ;;  %v11346_v1 = vld [vmem:[#allocation17 + $0x1fc] ss:$36 sps:$4 sm:$0xff]   ;;  %v11352_v5 = vld [vmem:[#allocation17 + $0x14] ss:$36 sps:$4 sm:$0xff]   ;;  %2417 = vmatprep.mubr.bf16.mxu1 %v13717_v7  ;;  %v9763_v8 = vld [vmem:[#allocation13] ss:$0 sm:$0xff] }
 0x41a   : > { %2388 = vmatpush1.bf16.msra.mxu1 %v11311_v25  ;;  %v11344_v3 = vld [vmem:[#allocation17 + $0x1f8] ss:$36 sps:$4 sm:$0xff]   ;;  %v11361_v25 = vld [vmem:[#allocation17 + $0x64] ss:$36 sps:$4 sm:$0xff]   ;;  %s15000_s5 = sld [smem:[#allocation103_spill]]  ;;  %s15001_s3 = sld [smem:[#allocation108_spill]] }
 0x41b   : > { %2389 = vmatprep.subr.bf16.mxu1 %v11319_v28  ;;  %v11355_v6 = vld [vmem:[#allocation17 + $0x1c] ss:$36 sps:$4 sm:$0xff]   ;;  %v11364_v28 = vld [vmem:[#allocation17 + $0xa4] ss:$36 sps:$4 sm:$0xff]   ;;  %s1625_s11 = scalar_lea.vmem [#allocation56], %s9721_s7  ;;  %s10659_s0 = sshll.u32 %s13943_s22, 8 }
 0x41c   : > { %10723 = vmatpush3.bf16.msra.mxu0 %v11296_v15  ;;  %v9771_v9 = vld [vmem:[#allocation16] ss:$0 sm:$0xff]  ;;  %s9246_s10 = sshll.u32 %s1625_s11, 4  ;;  %s9232_s6 = scalar_lea.sflag [#allocation4], %s14412_s9  ;;  %s14768_s10 = int_to_ptr.vmem [resolvable:$true] %s9246_s10 }
 0x41d   : > { %10724 = vmatprep.subr.bf16.mxu0 %v13715_v0  ;;  %v10934_v10 = vadd.f32 %v9771_v9, %v9763_v8  ;;  %v11358_v24 = vld [vmem:[#allocation17 + $0x5c] ss:$36 sps:$4 sm:$0xff]   ;;  %s13719_s22 = smov [#allocation56]  }
 0x41e   : > { %2390 = vmatpush1.bf16.msra.mxu1 %v11317_v27  ;;  %v11356_v26 = vld [vmem:[#allocation17 + $0x58] ss:$36 sps:$4 sm:$0xff]   ;;  %v11359_v27 = vld [vmem:[#allocation17 + $0x60] ss:$36 sps:$4 sm:$0xff]   ;;  %s13498_s7 = sshll.u32 %s13719_s22, 4  ;;  %s13499_s7 = int_to_ptr.vmem [resolvable:$false] %s13498_s7 }
 0x41f   : > { %2391 = vmatprep.subr.bf16.mxu1 %v11325_v30  ;;  %v11362_v30 = vld [vmem:[#allocation17 + $0xa0] ss:$36 sps:$4 sm:$0xff]   ;;  %p13501_p12 = scmp.lt.s32.totalorder %s14768_s10, %s13499_s7 }
 0x420   : > { %10725 = vmatpush3.bf16.msra.mxu0 %v11297_v16  ;;  %s14771_s2 = scalar_lea.hbm %s15000_s5, %s10659_s0  ;;  %p15002_p1 = scmp.ne.s32.totalorder %s15001_s3, 0 }
 0x421   : > { %10726 = vmatprep.subr.bf16.mxu0 %v13715_v0 }
 0x422   : > { %2392 = vmatpush1.bf16.msra.mxu1 %v11323_v29  ;;  %v11367_v29 = vld [vmem:[#allocation17 + $0xac] ss:$36 sps:$4 sm:$0xff]  }
 0x423   : > { %2393 = vmatprep.subr.bf16.mxu1 %v11331_v32  ;;  %v11370_v32 = vld [vmem:[#allocation17 + $0xec] ss:$36 sps:$4 sm:$0xff]  }
 0x424   : > { %10727 = vmatpush3.bf16.msra.mxu0 %v11299_v18 }
 0x425   : > { %10728 = vmatprep.subr.bf16.mxu0 %v13715_v0 }
 0x426   : > { %2394 = vmatpush1.bf16.msra.mxu1 %v11329_v31  ;;  %v11365_v31 = vld [vmem:[#allocation17 + $0xa8] ss:$36 sps:$4 sm:$0xff]  }
 0x427   : > { %2395 = vmatprep.subr.bf16.mxu1 %v11337_v34  ;;  %v11368_v34 = vld [vmem:[#allocation17 + $0xe8] ss:$36 sps:$4 sm:$0xff]  }
 0x428   : > { %10729 = vmatpush3.bf16.msra.mxu0 %v11301_v21  ;;  %v11350_v21 = vld [vmem:[#allocation17 + $0x10] ss:$36 sps:$4 sm:$0xff]  }
 0x429   : > { %2342 = vmatprep.subr.bf16.mxu0 %v11304_v22  ;;  %v11353_v22 = vld [vmem:[#allocation17 + $0x18] ss:$36 sps:$4 sm:$0xff]  }
 0x42a   : > { %2396 = vmatpush1.bf16.msra.mxu1 %v11335_v33  ;;  %v11373_v33 = vld [vmem:[#allocation17 + $0xf4] ss:$36 sps:$4 sm:$0xff]  }
 0x42b   : > { %2397 = vmatprep.subr.bf16.mxu1 %v11343_v59  ;;  %v11405_v59 = vld [vmem:[#allocation17 + $0x218] ss:$36 sps:$4 sm:$0xff]  }
 0x42e   : > { %2398 = vmatpush1.bf16.msra.mxu1 %v11341_v62  ;;  %v11406_v62 = vld [vmem:[%s14997_s1] sm:$0xff]  }
 0x42f   : > { %2399 = vmatprep.subr.bf16.mxu1 %v11349_v2  ;;  %v11409_v2 = vld [vmem:[%s14997_s1 + $0x18] sm:$0xff]  }
 0x432   : > { %2400 = vmatpush1.bf16.msra.mxu1 %v11347_v4 }
 0x433   : > { %2471 = vmatprep.subr.bf16.mxu1 %v11355_v6 }
 0x4e6   : > { %v1813_v36 = vpop.f32.mrb[0].mxu0 }
 0x4e7   : > { %v1814_v37 = vadd.f32 %v9759_v35, %v1813_v36  ;;  %v10716_v38 = vpop.f32.mrb[1].mxu0  ;;  %v11376_v36 = vld [vmem:[#allocation17 + $0x134] ss:$36 sps:$4 sm:$0xff]  }
 0x4e8   : > { %v1816_v39 = vpop.f32.mrb[2].mxu0  ;;  %v1962_v56 = vpop.f32.mrb[0].mxu1  ;;  %v11374_v38 = vld [vmem:[#allocation17 + $0x130] ss:$36 sps:$4 sm:$0xff]  }
 0x4e9   : > { %v1817_v40 = vadd.f32 %v9759_v35, %v1816_v39  ;;  %v10717_v41 = vpop.f32.mrb[3].mxu0  ;;  %v1820_v43 = vmax.f32 %v1814_v37, 0.0  ;;  %v10740_v57 = vpop.f32.mrb[1].mxu1  ;;  %v11371_v35 = vld [vmem:[#allocation17 + $0xf0] ss:$36 sps:$4 sm:$0xff]  }
 0x4ea   : > { %v1965_v60 = vpop.f32.mrb[2].mxu1  ;;  %v11379_v37 = vld [vmem:[#allocation17 + $0x13c] ss:$36 sps:$4 sm:$0xff]   ;;  %v11385_v41 = vld [vmem:[#allocation17 + $0x184] ss:$36 sps:$4 sm:$0xff]  }
 0x4eb   : > { %v1821_v44 = vmax.f32 %v1817_v40, 0.0  ;;  %v10741_v63 = vpop.f32.mrb[3].mxu1  ;;  %v11377_v39 = vld [vmem:[#allocation17 + $0x138] ss:$36 sps:$4 sm:$0xff]   ;;  %v11403_v57 = vld [vmem:[#allocation17 + $0x188] ss:$36 sps:$4 sm:$0xff]  }
 0x4ec   : > { %v11382_v40 = vld [vmem:[#allocation17 + $0x17c] ss:$36 sps:$4 sm:$0xff]  }
 0x4ed   : > { %v1822_v46 = vpack.c.bf16 %v1821_v44, %v1820_v43  ;;  %v11383_v43 = vld [vmem:[#allocation17 + $0x180] ss:$36 sps:$4 sm:$0xff]   ;;  %v11407_v63 = vld [vmem:[%s14997_s1 + $0x8] sm:$0xff]  }
 0x4ee   : > { %v11388_v44 = vld [vmem:[#allocation17 + $0x1c4] ss:$36 sps:$4 sm:$0xff]  }
 0x4ef   : > { %10731 = vmatmul.mubr.msk.bf16.vlgmr.msra.gmra.mrb[4].mxu0 %vm1865_vm3, %v1822_v46  ;;  %v11386_v46 = vld [vmem:[#allocation17 + $0x1c0] ss:$36 sps:$4 sm:$0xff]  }
 0x4f0   : > { %2343 = vmatpush1.bf16.msra.mxu0 %v11302_v42  ;;  %2374 = vmatprep.mubr.bf16.mxu0 %v13717_v7  ;;  %v11380_v42 = vld [vmem:[#allocation17 + $0x178] ss:$36 sps:$4 sm:$0xff]  }
 0x4f1   : > { %2344 = vmatprep.subr.bf16.mxu0 %v11310_v45  ;;  %v11391_v45 = vld [vmem:[#allocation17 + $0x1cc] ss:$36 sps:$4 sm:$0xff]  }
 0x4f4   : > { %2345 = vmatpush1.bf16.msra.mxu0 %v11308_v47  ;;  %v11389_v47 = vld [vmem:[#allocation17 + $0x1c8] ss:$36 sps:$4 sm:$0xff]  }
 0x4f5   : > { %2346 = vmatprep.subr.bf16.mxu0 %v11316_v48  ;;  %v11394_v48 = vld [vmem:[#allocation17 + $0x20c] ss:$36 sps:$4 sm:$0xff]  }
 0x4f8   : > { %2347 = vmatpush1.bf16.msra.mxu0 %v11314_v49  ;;  %v11397_v49 = vld [vmem:[#allocation17 + $0x214] ss:$36 sps:$4 sm:$0xff]  }
 0x4f9   : > { %2348 = vmatprep.subr.bf16.mxu0 %v11322_v50  ;;  %v11392_v50 = vld [vmem:[#allocation17 + $0x208] ss:$36 sps:$4 sm:$0xff]  }
 0x4fc   : > { %2349 = vmatpush1.bf16.msra.mxu0 %v11320_v51  ;;  %v11395_v51 = vld [vmem:[#allocation17 + $0x210] ss:$36 sps:$4 sm:$0xff]  }
 0x4fd   : > { %2350 = vmatprep.subr.bf16.mxu0 %v11328_v52  ;;  %v11398_v52 = vld [vmem:[#allocation17 + $0x20] ss:$36 sps:$4 sm:$0xff]  }
 0x500   : > { %2351 = vmatpush1.bf16.msra.mxu0 %v11326_v53  ;;  %v11399_v53 = vld [vmem:[#allocation17 + $0x68] ss:$36 sps:$4 sm:$0xff]  }
 0x501   : > { %2352 = vmatprep.subr.bf16.mxu0 %v11334_v54  ;;  %v11400_v54 = vld [vmem:[#allocation17 + $0xb0] ss:$36 sps:$4 sm:$0xff]  }
 0x504   : > { %2353 = vmatpush1.bf16.msra.mxu0 %v11332_v55  ;;  %v11401_v55 = vld [vmem:[#allocation17 + $0xf8] ss:$36 sps:$4 sm:$0xff]  }
 0x505   : > { %2354 = vmatprep.subr.bf16.mxu0 %v11340_v58  ;;  %v11404_v58 = vld [vmem:[#allocation17 + $0x1d0] ss:$36 sps:$4 sm:$0xff]  }
 0x508   : > { %2355 = vmatpush1.bf16.msra.mxu0 %v11338_v61  ;;  %v1752_v61 = vld [vmem:[#allocation20 + $0x8] sm:$0xff] }
 0x509   : > { %2356 = vmatprep.subr.bf16.mxu0 %v11346_v1  ;;  %v11408_v1 = vld [vmem:[%s14997_s1 + $0x10] sm:$0xff]  }
 0x50c   : > { %2357 = vmatpush1.bf16.msra.mxu0 %v11344_v3  ;;  %v11410_v3 = vld [vmem:[%s14997_s1 + $0x20] sm:$0xff]  }
 0x50d   : > { %2428 = vmatprep.subr.bf16.mxu0 %v11352_v5 }
 0x5c2   : > { %v1903_v11 = vpop.f32.mrb[4].mxu0 }
 0x5c3   : > { %v10935_v12 = vadd.f32 %v10934_v10, %v1903_v11  ;;  %v10732_v13 = vpop.f32.mrb[5].mxu0 }
 0x5c4   : > { %v1906_v14 = vpop.f32.mrb[6].mxu0 }
 0x5c5   : > { %v10936_v15 = vadd.f32 %v10935_v12, %v1962_v56  ;;  %v10938_v16 = vadd.f32 %v10934_v10, %v1906_v14  ;;  %v10733_v17 = vpop.f32.mrb[7].mxu0  ;;  %v11402_v56 = vld [vmem:[#allocation17 + $0x140] ss:$36 sps:$4 sm:$0xff]  }
 0x5c7   : > { %v10939_v18 = vadd.f32 %v10938_v16, %v1965_v60  ;;  %v1971_v19 = vmax.f32 %v10936_v15, 0.0  ;;  %v13718_v60 = vmov 0.0|0.0  }
 0x5c9   : > { %v1972_v20 = vmax.f32 %v10939_v18, 0.0 }
 0x5cb   : > { %v14517_v23 = vpack.c.bf16 %v1972_v20, %v1971_v19 }
 0x5cd   : > { %2375 = vmatmul.mubr.bf16.vlgmr.msra.gmra.mrb[8].mxu0 %v14517_v23  ;;  %2418 = vmatmul.mubr.bf16.vlgmr.msra.gmra.mrb[4].mxu1 %v14517_v23 }
 0x5ce   : > { %2429 = vmatpush1.bf16.msra.mxu0 %v11350_v21  ;;  %2472 = vmatpush1.bf16.msra.mxu1 %v11353_v22 }
 0x5cf   : > { %2430 = vmatprep.subr.bf16.mxu0 %v11358_v24  ;;  %2473 = vmatprep.subr.bf16.mxu1 %v11361_v25 }
 0x5d0   : > { %2460 = vmatprep.mubr.bf16.mxu0 %v13717_v7  ;;  %2503 = vmatprep.mubr.bf16.mxu1 %v13717_v7 }
 0x5d2   : > { %2431 = vmatpush1.bf16.msra.mxu0 %v11356_v26  ;;  %2474 = vmatpush1.bf16.msra.mxu1 %v11359_v27 }
 0x5d3   : > { %2432 = vmatprep.subr.bf16.mxu0 %v11364_v28  ;;  %2475 = vmatprep.subr.bf16.mxu1 %v11367_v29 }
 0x5d6   : > { %2433 = vmatpush1.bf16.msra.mxu0 %v11362_v30  ;;  %2476 = vmatpush1.bf16.msra.mxu1 %v11365_v31 }
 0x5d7   : > { %2434 = vmatprep.subr.bf16.mxu0 %v11370_v32  ;;  %2477 = vmatprep.subr.bf16.mxu1 %v11373_v33 }
 0x5da   : > { %2435 = vmatpush1.bf16.msra.mxu0 %v11368_v34  ;;  %2478 = vmatpush1.bf16.msra.mxu1 %v11371_v35  ;;  %v1751_v34 = vld [vmem:[#allocation20] sm:$0xff]  ;;  %v1754_v35 = vld [vmem:[#allocation20 + $0x18] sm:$0xff] }
 0x5db   : > { %2436 = vmatprep.subr.bf16.mxu0 %v11376_v36  ;;  %2479 = vmatprep.subr.bf16.mxu1 %v11379_v37  ;;  %v1753_v36 = vld [vmem:[#allocation20 + $0x10] sm:$0xff] }
 0x5dc   : > { %v11411_v37 = vld [vmem:[%s14997_s1 + $0x28] sm:$0xff]  }
 0x5de   : > { %2437 = vmatpush1.bf16.msra.mxu0 %v11374_v38  ;;  %2480 = vmatpush1.bf16.msra.mxu1 %v11377_v39  ;;  %v11412_v38 = vld [vmem:[%s14997_s1 + $0x30] sm:$0xff]   ;;  %v11413_v39 = vld [vmem:[%s14997_s1 + $0x38] sm:$0xff]   ;;  %s13494_s1 = scalar_lea.vmem %s14768_s10, 256 }
 0x5df   : > { %2438 = vmatprep.subr.bf16.mxu0 %v11382_v40  ;;  %2481 = vmatprep.subr.bf16.mxu1 %v11385_v41  ;;  %v11414_v40 = vld [vmem:[#allocation23] sm:$0xff]   ;;  %v11415_v41 = vld [vmem:[#allocation23 + $0x8] sm:$0xff]   ;;  %p13495_p10 = scmp.ne.s32.totalorder %s14768_s10, %s13494_s1 }
 0x5e1   : > { %p13496_p3 = pnand %p13495_p10, %p15002_p1 }
 0x5e2   : > { %2439 = vmatpush1.bf16.msra.mxu0 %v11380_v42  ;;  %2482 = vmatpush1.bf16.msra.mxu1 %v11383_v43  ;;  %v11416_v42 = vld [vmem:[#allocation23 + $0x10] sm:$0xff]   ;;  %v11417_v43 = vld [vmem:[#allocation23 + $0x18] sm:$0xff]  }
 0x5e3   : > { %2440 = vmatprep.subr.bf16.mxu0 %v11388_v44  ;;  %2483 = vmatprep.subr.bf16.mxu1 %v11391_v45  ;;  %v9847_v44 = vld [vmem:[#allocation19] ss:$0 sm:$0xff]  ;;  %p13497_p6 = pneg %p13496_p3 }
 0x5e6   : > { %2441 = vmatpush1.bf16.msra.mxu0 %v11386_v46  ;;  %2484 = vmatpush1.bf16.msra.mxu1 %v11389_v47 }
 0x5e7   : > { %2442 = vmatprep.subr.bf16.mxu0 %v11394_v48  ;;  %2485 = vmatprep.subr.bf16.mxu1 %v11397_v49 }
 0x5ea   : > { %2443 = vmatpush1.bf16.msra.mxu0 %v11392_v50  ;;  %2486 = vmatpush1.bf16.msra.mxu1 %v11395_v51 }
 0x5eb   : > { %10742 = vmatprep.subr.bf16.mxu0 %v13715_v0  ;;  %10825 = vmatprep.subr.bf16.mxu1 %v13718_v60 }
 0x5ed   : > { %2461 = vmatmul.mubr.bf16.vlgmr.msra.gmra.mrb[12].mxu0 %v14517_v23  ;;  %2504 = vmatmul.mubr.bf16.vlgmr.msra.gmra.mrb[8].mxu1 %v14517_v23 }
 0x5ee   : > { %10743 = vmatpush3.bf16.msra.mxu0 %v11398_v52  ;;  %10758 = vmatprep.mubr.msk.bf16.mxu0 %vm13716_vm0, %v13715_v0 }
 0x5ef   : > { %10744 = vmatprep.subr.bf16.mxu0 %v13715_v0  ;;  %9848 = vmatprep.mubr.msk.f32.mxu1 %vm2561_vm4, %v1752_v61  ;;  %v11426_v61 = vld [vmem:[#allocation26 + $0x48] ss:$36 sps:$4 sm:$0xff]  }
 0x5f2   : > { %10745 = vmatpush3.bf16.msra.mxu0 %v11399_v53 }
 0x5f3   : > { %10746 = vmatprep.subr.bf16.mxu0 %v13715_v0 }
 0x5f6   : > { %10747 = vmatpush3.bf16.msra.mxu0 %v11400_v54  ;;  %v11418_v54 = vld [vmem:[#allocation23 + $0x20] sm:$0xff]  }
 0x5f7   : > { %10748 = vmatprep.subr.bf16.mxu0 %v13715_v0 }
 0x5fa   : > { %10749 = vmatpush3.bf16.msra.mxu0 %v11401_v55  ;;  %v11419_v55 = vld [vmem:[#allocation23 + $0x28] sm:$0xff]  }
 0x5fb   : > { %10750 = vmatprep.subr.bf16.mxu0 %v13715_v0 }
 0x5fe   : > { %10751 = vmatpush3.bf16.msra.mxu0 %v11402_v56  ;;  %v11420_v56 = vld [vmem:[#allocation26] ss:$36 sps:$4 sm:$0xff]  }
 0x5ff   : > { %10752 = vmatprep.subr.bf16.mxu0 %v13715_v0 }
 0x602   : > { %10753 = vmatpush3.bf16.msra.mxu0 %v11403_v57  ;;  %v11422_v57 = vld [vmem:[#allocation26 + $0x4] ss:$36 sps:$4 sm:$0xff]  }
 0x603   : > { %10754 = vmatprep.subr.bf16.mxu0 %v13715_v0 }
 0x606   : > { %10755 = vmatpush3.bf16.msra.mxu0 %v11404_v58  ;;  %v11425_v58 = vld [vmem:[#allocation26 + $0xc] ss:$36 sps:$4 sm:$0xff]  }
 0x607   : > { %10756 = vmatprep.subr.bf16.mxu0 %v13715_v0 }
 0x60a   : > { %10757 = vmatpush3.bf16.msra.mxu0 %v11405_v59  ;;  %v11428_v59 = vld [vmem:[#allocation26 + $0x4c] ss:$36 sps:$4 sm:$0xff]  }
 0x60b   : > { %10762 = vmatprep.subr.bf16.mxu0 %v13715_v0 }
 0x60d   : > { %10759 = vmatmul.mubr.bf16.vlgmr.msra.gmra.mrb[16].mxu0 %v14517_v23 }
 0x60e   : > { %10778 = vmatprep.mubr.msk.bf16.mxu0 %vm13716_vm0, %v13715_v0  ;;  %10763 = vmatpush3.bf16.msra.mxu0 %v11406_v62  ;;  %v11434_v62 = vld [vmem:[#allocation26 + $0x94] ss:$36 sps:$4 sm:$0xff]  }
 0x60f   : > { %10764 = vmatprep.subr.bf16.mxu0 %v13715_v0 }
 0x612   : > { %10765 = vmatpush3.bf16.msra.mxu0 %v11407_v63  ;;  %v11432_v63 = vld [vmem:[#allocation26 + $0x90] ss:$36 sps:$4 sm:$0xff]  }
 0x613   : > { %10766 = vmatprep.subr.bf16.mxu0 %v13715_v0 }
 0x616   : > { %10767 = vmatpush3.bf16.msra.mxu0 %v11408_v1  ;;  %v11440_v1 = vld [vmem:[#allocation26 + $0xdc] ss:$36 sps:$4 sm:$0xff]  }
 0x617   : > { %10768 = vmatprep.subr.bf16.mxu0 %v13715_v0 }
 0x61a   : > { %10769 = vmatpush3.bf16.msra.mxu0 %v11409_v2  ;;  %v11438_v2 = vld [vmem:[#allocation26 + $0xd8] ss:$36 sps:$4 sm:$0xff]  }
 0x61b   : > { %10770 = vmatprep.subr.bf16.mxu0 %v13715_v0 }
 0x61e   : > { %10771 = vmatpush3.bf16.msra.mxu0 %v11410_v3  ;;  %v11446_v3 = vld [vmem:[#allocation26 + $0x124] ss:$36 sps:$4 sm:$0xff]  }
 0x61f   : > { %10772 = vmatprep.subr.bf16.mxu0 %v13715_v0 }
 0x622   : > { %10773 = vmatpush3.bf16.msra.mxu0 %v11411_v37  ;;  %v11470_v37 = vld [vmem:[#allocation26 + $0x14] ss:$36 sps:$4 sm:$0xff]  }
 0x623   : > { %10774 = vmatprep.subr.bf16.mxu0 %v13715_v0 }
 0x626   : > { %10775 = vmatpush3.bf16.msra.mxu0 %v11412_v38  ;;  %v11473_v38 = vld [vmem:[#allocation26 + $0x1c] ss:$36 sps:$4 sm:$0xff]  }
 0x627   : > { %10776 = vmatprep.subr.bf16.mxu0 %v13715_v0 }
 0x62a   : > { %10777 = vmatpush3.bf16.msra.mxu0 %v11413_v39  ;;  %v9859_v39 = vld [vmem:[#allocation25] ss:$0 sm:$0xff] }
 0x62b   : > { %3318 = vmatprep.subr.bf16.mxu0 %v11422_v57  ;;  %v11474_v57 = vld [vmem:[#allocation26 + $0x58] ss:$36 sps:$4 sm:$0xff]  }
 0x6a0   : > { %v2376_v4 = vpop.f32.mrb[8].mxu0  ;;  %v2419_v5 = vpop.f32.mrb[4].mxu1 }
 0x6a1   : > { %v2378_v6 = vpop.f32.mrb[9].mxu0  ;;  %v2421_v8 = vpop.f32.mrb[5].mxu1 }
 0x6a2   : > { %v2380_v9 = vpop.f32.mrb[10].mxu0  ;;  %v2423_v10 = vpop.f32.mrb[6].mxu1 }
 0x6a3   : > { %v10826_v11 = vpack.c.bf16 %v2380_v9, %v2376_v4  ;;  %v10832_v12 = vpack.c.bf16 %v2423_v10, %v2419_v5  ;;  %v2382_v13 = vpop.f32.mrb[11].mxu0  ;;  %v2425_v14 = vpop.f32.mrb[7].mxu1  ;;  %v11444_v4 = vld [vmem:[#allocation26 + $0x120] ss:$36 sps:$4 sm:$0xff]   ;;  %v11452_v5 = vld [vmem:[#allocation26 + $0x16c] ss:$36 sps:$4 sm:$0xff]  }
 0x6a4   : > { %v10829_v15 = vpack.c.bf16 %v2382_v13, %v2378_v6  ;;  %v10835_v16 = vpack.c.bf16 %v2425_v14, %v2421_v8  ;;  %v11450_v6 = vld [vmem:[#allocation26 + $0x168] ss:$36 sps:$4 sm:$0xff]  }
 0x6a5   : > { %10827 = vmatpush1.bf16.msra.mxu1 %v10826_v11  ;;  %v9850_v8 = vld [vmem:[#allocation22] ss:$0 sm:$0xff] }
 0x6a6   : > { %10828 = vmatprep.subr.bf16.mxu1 %v13718_v60 }
 0x6a9   : > { %10830 = vmatpush1.bf16.msra.mxu1 %v10829_v15 }
 0x6aa   : > { %10831 = vmatprep.subr.bf16.mxu1 %v13718_v60 }
 0x6ad   : > { %10833 = vmatpush1.bf16.msra.mxu1 %v10832_v12 }
 0x6ae   : > { %10834 = vmatprep.subr.bf16.mxu1 %v13718_v60 }
 0x6b1   : > { %10836 = vmatpush1.bf16.msra.mxu1 %v10835_v16 }
 0x6b2   : > { %10837 = vmatprep.subr.bf16.mxu1 %v13718_v60 }
 0x6c0   : > { %v2462_v17 = vpop.f32.mrb[12].mxu0  ;;  %v2505_v18 = vpop.f32.mrb[8].mxu1 }
 0x6c1   : > { %v2464_v19 = vpop.f32.mrb[13].mxu0  ;;  %v2507_v20 = vpop.f32.mrb[9].mxu1 }
 0x6c2   : > { %v2466_v21 = vpop.f32.mrb[14].mxu0  ;;  %v2509_v22 = vpop.f32.mrb[10].mxu1 }
 0x6c3   : > { %v10838_v23 = vpack.c.bf16 %v2466_v21, %v2462_v17  ;;  %v10844_v24 = vpack.c.bf16 %v2509_v22, %v2505_v18  ;;  %v2468_v25 = vpop.f32.mrb[15].mxu0  ;;  %v2511_v26 = vpop.f32.mrb[11].mxu1  ;;  %v11423_v17 = vld [vmem:[#allocation26 + $0x8] ss:$36 sps:$4 sm:$0xff]   ;;  %v11437_v21 = vld [vmem:[#allocation26 + $0x9c] ss:$36 sps:$4 sm:$0xff]  }
 0x6c4   : > { %v10841_v27 = vpack.c.bf16 %v2468_v25, %v2464_v19  ;;  %v10847_v28 = vpack.c.bf16 %v2511_v26, %v2507_v20  ;;  %v11431_v19 = vld [vmem:[#allocation26 + $0x54] ss:$36 sps:$4 sm:$0xff]   ;;  %v11449_v25 = vld [vmem:[#allocation26 + $0x12c] ss:$36 sps:$4 sm:$0xff]  }
 0x6c5   : > { %10839 = vmatpush1.bf16.msra.mxu1 %v10838_v23  ;;  %v11429_v20 = vld [vmem:[#allocation26 + $0x50] ss:$36 sps:$4 sm:$0xff]   ;;  %v11435_v22 = vld [vmem:[#allocation26 + $0x98] ss:$36 sps:$4 sm:$0xff]   ;;  %v11443_v23 = vld [vmem:[#allocation26 + $0xe4] ss:$36 sps:$4 sm:$0xff]  }
 0x6c6   : > { %10840 = vmatprep.subr.bf16.mxu1 %v13718_v60  ;;  %v11447_v26 = vld [vmem:[#allocation26 + $0x128] ss:$36 sps:$4 sm:$0xff]  }
 0x6c9   : > { %10842 = vmatpush1.bf16.msra.mxu1 %v10841_v27  ;;  %v11455_v27 = vld [vmem:[#allocation26 + $0x174] ss:$36 sps:$4 sm:$0xff]  }
 0x6ca   : > { %10843 = vmatprep.subr.bf16.mxu1 %v13718_v60 }
 0x6cd   : > { %10845 = vmatpush1.bf16.msra.mxu1 %v10844_v24  ;;  %v11441_v24 = vld [vmem:[#allocation26 + $0xe0] ss:$36 sps:$4 sm:$0xff]  }
 0x6ce   : > { %10846 = vmatprep.subr.bf16.mxu1 %v13718_v60 }
 0x6d1   : > { %10848 = vmatpush1.bf16.msra.mxu1 %v10847_v28  ;;  %v11453_v28 = vld [vmem:[#allocation26 + $0x170] ss:$36 sps:$4 sm:$0xff]  }
 0x6d2   : > { %10849 = vmatprep.subr.bf16.mxu1 %v13718_v60 }
 0x6e0   : > { %v2548_v29 = vpop.f32.mrb[16].mxu0 }
 0x6e1   : > { %v10760_v30 = vpop.f32.mrb[17].mxu0 }
 0x6e2   : > { %v2551_v31 = vpop.f32.mrb[18].mxu0  ;;  %v11461_v30 = vld [vmem:[#allocation26 + $0x1bc] ss:$36 sps:$4 sm:$0xff]  }
 0x6e3   : > { %v10850_v32 = vpack.c.bf16 %v2551_v31, %v2548_v29  ;;  %v10761_v33 = vpop.f32.mrb[19].mxu0  ;;  %v11458_v29 = vld [vmem:[#allocation26 + $0x1b4] ss:$36 sps:$4 sm:$0xff]  }
 0x6e4   : > { %v11456_v31 = vld [vmem:[#allocation26 + $0x1b0] ss:$36 sps:$4 sm:$0xff]   ;;  %v11464_v33 = vld [vmem:[#allocation26 + $0x1fc] ss:$36 sps:$4 sm:$0xff]  }
 0x6e5   : > { %10851 = vmatpush1.bf16.msra.mxu1 %v10850_v32  ;;  %v11459_v32 = vld [vmem:[#allocation26 + $0x1b8] ss:$36 sps:$4 sm:$0xff]  }
 0x6e6   : > { %10782 = vmatprep.subr.bf16.mxu1 %v13715_v0 }
 0x6e8   : > { %2633 = vmatmul.mubr.f32.vlgmr.msra.gmra.mrb[12].mxu1 %v1751_v34  ;;  %v11467_v34 = vld [vmem:[#allocation26 + $0x204] ss:$36 sps:$4 sm:$0xff]  }
 0x6e9   : > { %9849 = vmatprep.mubr.msk.f32.mxu1 %vm2561_vm4, %v1754_v35  ;;  %10783 = vmatpush3.bf16.msra.mxu1 %v11414_v40  ;;  %v11462_v35 = vld [vmem:[#allocation26 + $0x1f8] ss:$36 sps:$4 sm:$0xff]  }
 0x6ea   : > { %10784 = vmatprep.subr.bf16.mxu1 %v13715_v0 }
 0x6ec   : > { %2638 = vmatmul.mubr.f32.gmra.mrb[14].mxu1 %v1753_v36  ;;  %v11465_v36 = vld [vmem:[#allocation26 + $0x200] ss:$36 sps:$4 sm:$0xff]  }
 0x6ed   : > { %10794 = vmatprep.mubr.msk.bf16.mxu1 %vm13716_vm0, %v13715_v0  ;;  %10785 = vmatpush3.bf16.msra.mxu1 %v11415_v41 }
 0x6ee   : > { %10786 = vmatprep.subr.bf16.mxu1 %v13715_v0 }
 0x6f1   : > { %10787 = vmatpush3.bf16.msra.mxu1 %v11416_v42 }
 0x6f2   : > { %10788 = vmatprep.subr.bf16.mxu1 %v13715_v0 }
 0x6f5   : > { %10789 = vmatpush3.bf16.msra.mxu1 %v11417_v43 }
 0x6f6   : > { %10790 = vmatprep.subr.bf16.mxu1 %v13715_v0 }
 0x6f9   : > { %10791 = vmatpush3.bf16.msra.mxu1 %v11418_v54 }
 0x6fa   : > { %10792 = vmatprep.subr.bf16.mxu1 %v13715_v0 }
 0x6fd   : > { %10793 = vmatpush3.bf16.msra.mxu1 %v11419_v55  ;;  %v11476_v55 = vld [vmem:[#allocation26 + $0x5c] ss:$36 sps:$4 sm:$0xff]  }
 0x6fe   : > { %3361 = vmatprep.subr.bf16.mxu1 %v11425_v58  ;;  %v11477_v58 = vld [vmem:[#allocation26 + $0x60] ss:$36 sps:$4 sm:$0xff]  }
 0x7bb   : > { %v2634_v45 = vpop.f32.mrb[12].mxu1 }
 0x7bc   : > { %v2636_v46 = vpop.f32.mrb[13].mxu1  ;;  %v2635_v47 = vadd.f32 %v9847_v44, %v2634_v45 }
 0x7be   : > { %v14572_v51 = vmax.f32 %v2635_v47, 0.0 }
 0x7bf   : > { %v2639_v48 = vpop.f32.mrb[14].mxu1 }
 0x7c0   : > { %v2640_v49 = vadd.f32 %v9847_v44, %v2639_v48  ;;  %v2641_v50 = vpop.f32.mrb[15].mxu1 }
 0x7c1   : > { %v11468_v50 = vld [vmem:[#allocation26 + $0x10] ss:$36 sps:$4 sm:$0xff]  }
 0x7c2   : > { %v14574_v52 = vmax.f32 %v2640_v49, 0.0 }
 0x7c4   : > { %v2760_v53 = vpack.c.bf16 %v14574_v52, %v14572_v51 }
 0x7c6   : > { %10779 = vmatmul.mubr.bf16.vlgmr.msra.gmra.mrb[20].mxu0 %v2760_v53  ;;  %v11471_v53 = vld [vmem:[#allocation26 + $0x18] ss:$36 sps:$4 sm:$0xff]  }
 0x7c7   : > { %3350 = vmatprep.mubr.bf16.mxu0 %v13717_v7  ;;  %3319 = vmatpush1.bf16.msra.mxu0 %v11420_v56  ;;  %v11479_v56 = vld [vmem:[#allocation26 + $0x64] ss:$36 sps:$4 sm:$0xff]  }
 0x7c8   : > { %3320 = vmatprep.subr.bf16.mxu0 %v11428_v59  ;;  %v11482_v59 = vld [vmem:[#allocation26 + $0xa4] ss:$36 sps:$4 sm:$0xff]  }
 0x7cb   : > { %3321 = vmatpush1.bf16.msra.mxu0 %v11426_v61  ;;  %v11485_v61 = vld [vmem:[#allocation26 + $0xac] ss:$36 sps:$4 sm:$0xff]  }
 0x7cc   : > { %3322 = vmatprep.subr.bf16.mxu0 %v11434_v62  ;;  %v11480_v62 = vld [vmem:[#allocation26 + $0xa0] ss:$36 sps:$4 sm:$0xff]  }
 0x7cf   : > { %3323 = vmatpush1.bf16.msra.mxu0 %v11432_v63  ;;  %v11483_v63 = vld [vmem:[#allocation26 + $0xa8] ss:$36 sps:$4 sm:$0xff]  }
 0x7d0   : > { %3324 = vmatprep.subr.bf16.mxu0 %v11440_v1  ;;  %v11488_v1 = vld [vmem:[#allocation26 + $0xec] ss:$36 sps:$4 sm:$0xff]  }
 0x7d3   : > { %3325 = vmatpush1.bf16.msra.mxu0 %v11438_v2  ;;  %v11491_v2 = vld [vmem:[#allocation26 + $0xf4] ss:$36 sps:$4 sm:$0xff]  }
 0x7d4   : > { %3326 = vmatprep.subr.bf16.mxu0 %v11446_v3  ;;  %v11486_v3 = vld [vmem:[#allocation26 + $0xe8] ss:$36 sps:$4 sm:$0xff]  }
 0x7d7   : > { %3327 = vmatpush1.bf16.msra.mxu0 %v11444_v4  ;;  %v11489_v4 = vld [vmem:[#allocation26 + $0xf0] ss:$36 sps:$4 sm:$0xff]  }
 0x7d8   : > { %3328 = vmatprep.subr.bf16.mxu0 %v11452_v5  ;;  %v11494_v5 = vld [vmem:[#allocation26 + $0x134] ss:$36 sps:$4 sm:$0xff]  }
 0x7db   : > { %3329 = vmatpush1.bf16.msra.mxu0 %v11450_v6  ;;  %v11497_v6 = vld [vmem:[#allocation26 + $0x13c] ss:$36 sps:$4 sm:$0xff]  }
 0x7dc   : > { %3330 = vmatprep.subr.bf16.mxu0 %v11458_v29  ;;  %v11523_v29 = vld [vmem:[#allocation26 + $0x218] ss:$36 sps:$4 sm:$0xff]  }
 0x7df   : > { %3331 = vmatpush1.bf16.msra.mxu0 %v11456_v31  ;;  %v11524_v31 = vld [vmem:[%s14998_s4] ss:$8 sps:$4 sm:$0xff]  }
 0x7e0   : > { %3332 = vmatprep.subr.bf16.mxu0 %v11464_v33  ;;  %v11529_v33 = vld [vmem:[%s14998_s4 + $0x14] ss:$8 sps:$4 sm:$0xff]  }
 0x7e3   : > { %3333 = vmatpush1.bf16.msra.mxu0 %v11462_v35  ;;  %v11532_v35 = vld [vmem:[%s14998_s4 + $0x24] ss:$8 sps:$4 sm:$0xff]  }
 0x7e4   : > { %3404 = vmatprep.subr.bf16.mxu0 %v11470_v37  ;;  %v11535_v37 = vld [vmem:[%s14998_s4 + $0x34] ss:$8 sps:$4 sm:$0xff]  }
 0x899   : > { %v2849_v9 = vpop.f32.mrb[20].mxu0 }
 0x89a   : > { %v2850_v10 = vadd.f32 %v9850_v8, %v2849_v9  ;;  %v10780_v11 = vpop.f32.mrb[21].mxu0  ;;  %v11495_v9 = vld [vmem:[#allocation26 + $0x138] ss:$36 sps:$4 sm:$0xff]  }
 0x89b   : > { %v2852_v12 = vpop.f32.mrb[22].mxu0  ;;  %v11503_v11 = vld [vmem:[#allocation26 + $0x184] ss:$36 sps:$4 sm:$0xff]  }
 0x89c   : > { %v2853_v13 = vadd.f32 %v9850_v8, %v2852_v12  ;;  %v10781_v14 = vpop.f32.mrb[23].mxu0  ;;  %v2856_v15 = vmax.f32 %v2850_v10, 0.0  ;;  %v11492_v8 = vld [vmem:[#allocation26 + $0x130] ss:$36 sps:$4 sm:$0xff]   ;;  %v11500_v10 = vld [vmem:[#allocation26 + $0x17c] ss:$36 sps:$4 sm:$0xff]  }
 0x89d   : > { %v11498_v12 = vld [vmem:[#allocation26 + $0x178] ss:$36 sps:$4 sm:$0xff]   ;;  %v11506_v14 = vld [vmem:[#allocation26 + $0x1c4] ss:$36 sps:$4 sm:$0xff]  }
 0x89e   : > { %v2857_v16 = vmax.f32 %v2853_v13, 0.0  ;;  %v11501_v13 = vld [vmem:[#allocation26 + $0x180] ss:$36 sps:$4 sm:$0xff]  }
 0x8a0   : > { %v2858_v18 = vpack.c.bf16 %v2857_v16, %v2856_v15  ;;  %v11509_v15 = vld [vmem:[#allocation26 + $0x1cc] ss:$36 sps:$4 sm:$0xff]   ;;  %v11504_v16 = vld [vmem:[#allocation26 + $0x1c0] ss:$36 sps:$4 sm:$0xff]  }
 0x8a2   : > { %10795 = vmatmul.mubr.msk.bf16.vlgmr.msra.gmra.mrb[16].mxu1 %vm1865_vm3, %v2858_v18  ;;  %v11512_v18 = vld [vmem:[#allocation26 + $0x20c] ss:$36 sps:$4 sm:$0xff]  }
 0x8a3   : > { %3362 = vmatpush1.bf16.msra.mxu1 %v11423_v17  ;;  %3393 = vmatprep.mubr.bf16.mxu1 %v13717_v7  ;;  %v11507_v17 = vld [vmem:[#allocation26 + $0x1c8] ss:$36 sps:$4 sm:$0xff]  }
 0x8a4   : > { %3363 = vmatprep.subr.bf16.mxu1 %v11431_v19  ;;  %v11515_v19 = vld [vmem:[#allocation26 + $0x214] ss:$36 sps:$4 sm:$0xff]  }
 0x8a7   : > { %3364 = vmatpush1.bf16.msra.mxu1 %v11429_v20  ;;  %v11510_v20 = vld [vmem:[#allocation26 + $0x208] ss:$36 sps:$4 sm:$0xff]  }
 0x8a8   : > { %3365 = vmatprep.subr.bf16.mxu1 %v11437_v21  ;;  %v11513_v21 = vld [vmem:[#allocation26 + $0x210] ss:$36 sps:$4 sm:$0xff]  }
 0x8ab   : > { %3366 = vmatpush1.bf16.msra.mxu1 %v11435_v22  ;;  %v11516_v22 = vld [vmem:[#allocation26 + $0x20] ss:$36 sps:$4 sm:$0xff]  }
 0x8ac   : > { %3367 = vmatprep.subr.bf16.mxu1 %v11443_v23  ;;  %v11517_v23 = vld [vmem:[#allocation26 + $0x68] ss:$36 sps:$4 sm:$0xff]  }
 0x8af   : > { %3368 = vmatpush1.bf16.msra.mxu1 %v11441_v24  ;;  %v11518_v24 = vld [vmem:[#allocation26 + $0xb0] ss:$36 sps:$4 sm:$0xff]  }
 0x8b0   : > { %3369 = vmatprep.subr.bf16.mxu1 %v11449_v25  ;;  %v11519_v25 = vld [vmem:[#allocation26 + $0xf8] ss:$36 sps:$4 sm:$0xff]  }
 0x8b3   : > { %3370 = vmatpush1.bf16.msra.mxu1 %v11447_v26  ;;  %v11520_v26 = vld [vmem:[#allocation26 + $0x140] ss:$36 sps:$4 sm:$0xff]  }
 0x8b4   : > { %3371 = vmatprep.subr.bf16.mxu1 %v11455_v27  ;;  %v11521_v27 = vld [vmem:[#allocation26 + $0x188] ss:$36 sps:$4 sm:$0xff]  }
 0x8b7   : > { %3372 = vmatpush1.bf16.msra.mxu1 %v11453_v28  ;;  %v11522_v28 = vld [vmem:[#allocation26 + $0x1d0] ss:$36 sps:$4 sm:$0xff]  }
 0x8b8   : > { %3373 = vmatprep.subr.bf16.mxu1 %v11461_v30  ;;  %v2757_v30 = vld [vmem:[#allocation29 + $0x8] sm:$0xff] }
 0x8bb   : > { %3374 = vmatpush1.bf16.msra.mxu1 %v11459_v32  ;;  %v11526_v32 = vld [vmem:[%s14998_s4 + $0x4] ss:$8 sps:$4 sm:$0xff]  }
 0x8bc   : > { %3375 = vmatprep.subr.bf16.mxu1 %v11467_v34  ;;  %v11527_v34 = vld [vmem:[%s14998_s4 + $0x10] ss:$8 sps:$4 sm:$0xff]  }
 0x8bf   : > { %3376 = vmatpush1.bf16.msra.mxu1 %v11465_v36  ;;  %v11530_v36 = vld [vmem:[%s14998_s4 + $0x20] ss:$8 sps:$4 sm:$0xff]  }
 0x8c0   : > { %3447 = vmatprep.subr.bf16.mxu1 %v11473_v38  ;;  %v11533_v38 = vld [vmem:[%s14998_s4 + $0x30] ss:$8 sps:$4 sm:$0xff]  }
 0x975   : > { %v2938_v40 = vpop.f32.mrb[16].mxu1 }
 0x976   : > { %v2939_v41 = vadd.f32 %v9859_v39, %v2938_v40  ;;  %v10796_v42 = vpop.f32.mrb[17].mxu1  ;;  %v11536_v40 = vld [vmem:[%s14998_s4 + $0x40] ss:$8 sps:$4 sm:$0xff]  }
 0x977   : > { %v2941_v43 = vpop.f32.mrb[18].mxu1 }
 0x978   : > { %v2945_v44 = vadd.f32 %v2939_v41, %v14572_v51  ;;  %v2942_v45 = vadd.f32 %v9859_v39, %v2941_v43  ;;  %v10797_v46 = vpop.f32.mrb[19].mxu1  ;;  %v11538_v39 = vld [vmem:[%s14998_s4 + $0x44] ss:$8 sps:$4 sm:$0xff]  }
 0x97a   : > { %v2946_v47 = vadd.f32 %v2942_v45, %v14574_v52  ;;  %v2947_v48 = vmax.f32 %v2945_v44, 0.0 }
 0x97c   : > { %v2948_v49 = vmax.f32 %v2946_v47, 0.0 }
 0x97e   : > { %v14584_v54 = vpack.c.bf16 %v2948_v49, %v2947_v48 }
 0x980   : > { %3351 = vmatmul.mubr.bf16.vlgmr.msra.gmra.mrb[24].mxu0 %v14584_v54  ;;  %3394 = vmatmul.mubr.bf16.vlgmr.msra.gmra.mrb[20].mxu1 %v14584_v54 }
 0x981   : > { %3405 = vmatpush1.bf16.msra.mxu0 %v11468_v50  ;;  %3448 = vmatpush1.bf16.msra.mxu1 %v11471_v53 }
 0x982   : > { %3406 = vmatprep.subr.bf16.mxu0 %v11476_v55  ;;  %3449 = vmatprep.subr.bf16.mxu1 %v11479_v56 }
 0x983   : > { %3436 = vmatprep.mubr.bf16.mxu0 %v13717_v7  ;;  %3479 = vmatprep.mubr.bf16.mxu1 %v13717_v7 }
 0x985   : > { %3407 = vmatpush1.bf16.msra.mxu0 %v11474_v57  ;;  %3450 = vmatpush1.bf16.msra.mxu1 %v11477_v58 }
 0x986   : > { %3408 = vmatprep.subr.bf16.mxu0 %v11482_v59  ;;  %3451 = vmatprep.subr.bf16.mxu1 %v11485_v61 }
 0x989   : > { %3409 = vmatpush1.bf16.msra.mxu0 %v11480_v62  ;;  %3452 = vmatpush1.bf16.msra.mxu1 %v11483_v63 }
 0x98a   : > { %3410 = vmatprep.subr.bf16.mxu0 %v11488_v1  ;;  %3453 = vmatprep.subr.bf16.mxu1 %v11491_v2 }
 0x98d   : > { %3411 = vmatpush1.bf16.msra.mxu0 %v11486_v3  ;;  %3454 = vmatpush1.bf16.msra.mxu1 %v11489_v4 }
 0x98e   : > { %3412 = vmatprep.subr.bf16.mxu0 %v11494_v5  ;;  %3455 = vmatprep.subr.bf16.mxu1 %v11497_v6 }
 0x991   : > { %3413 = vmatpush1.bf16.msra.mxu0 %v11492_v8  ;;  %3456 = vmatpush1.bf16.msra.mxu1 %v11495_v9 }
 0x992   : > { %3414 = vmatprep.subr.bf16.mxu0 %v11500_v10  ;;  %3457 = vmatprep.subr.bf16.mxu1 %v11503_v11  ;;  %v2756_v11 = vld [vmem:[#allocation29] sm:$0xff] }
 0x995   : > { %3415 = vmatpush1.bf16.msra.mxu0 %v11498_v12  ;;  %3458 = vmatpush1.bf16.msra.mxu1 %v11501_v13  ;;  %v2759_v12 = vld [vmem:[#allocation29 + $0x18] sm:$0xff]  ;;  %v2758_v13 = vld [vmem:[#allocation29 + $0x10] sm:$0xff] }
 0x996   : > { %3416 = vmatprep.subr.bf16.mxu0 %v11506_v14  ;;  %3459 = vmatprep.subr.bf16.mxu1 %v11509_v15  ;;  %v11541_v14 = vld [vmem:[%s14998_s4 + $0x54] ss:$8 sps:$4 sm:$0xff]   ;;  %v11539_v15 = vld [vmem:[%s14998_s4 + $0x50] ss:$8 sps:$4 sm:$0xff]  }
 0x999   : > { %3417 = vmatpush1.bf16.msra.mxu0 %v11504_v16  ;;  %3460 = vmatpush1.bf16.msra.mxu1 %v11507_v17  ;;  %v11544_v16 = vld [vmem:[%s14998_s4 + $0x64] ss:$8 sps:$4 sm:$0xff]   ;;  %v11542_v17 = vld [vmem:[%s14998_s4 + $0x60] ss:$8 sps:$4 sm:$0xff]  }
 0x99a   : > { %3418 = vmatprep.subr.bf16.mxu0 %v11512_v18  ;;  %3461 = vmatprep.subr.bf16.mxu1 %v11515_v19  ;;  %v11547_v18 = vld [vmem:[%s14998_s4 + $0x74] ss:$8 sps:$4 sm:$0xff]   ;;  %v11545_v19 = vld [vmem:[%s14998_s4 + $0x70] ss:$8 sps:$4 sm:$0xff]   ;;  %s13500_s4 = scalar_lea.vmem %s13499_s7, 512 }
 0x99b   : > { %p13502_p5 = scmp.lt.s32.totalorder %s13500_s4, %s13494_s1 }
 0x99d   : > { %3419 = vmatpush1.bf16.msra.mxu0 %v11510_v20  ;;  %3462 = vmatpush1.bf16.msra.mxu1 %v11513_v21  ;;  %v11548_v20 = vld [vmem:[#allocation32] ss:$8 sps:$4 sm:$0xff]   ;;  %v11550_v21 = vld [vmem:[#allocation32 + $0x4] ss:$8 sps:$4 sm:$0xff]   ;;  %p13503_p7 = por %p13502_p5, %p13501_p12 }
 0x99e   : > { %10798 = vmatprep.subr.bf16.mxu0 %v13715_v0  ;;  %10852 = vmatprep.subr.bf16.mxu1 %v13718_v60 }
 0x99f   : > { %p13504_p4 = pnand %p13503_p7, %p13497_p6 }
 0x9a0   : > { %3437 = vmatmul.mubr.bf16.vlgmr.msra.gmra.mrb[28].mxu0 %v14584_v54  ;;  %3480 = vmatmul.mubr.bf16.vlgmr.msra.gmra.mrb[24].mxu1 %v14584_v54 }
 0x9a1   : > { %10799 = vmatpush3.bf16.msra.mxu0 %v11516_v22  ;;  %10814 = vmatprep.mubr.msk.bf16.mxu0 %vm13716_vm0, %v13715_v0  ;;  %v11553_v22 = vld [vmem:[#allocation32 + $0x14] ss:$8 sps:$4 sm:$0xff]  }
 0x9a2   : > { %10800 = vmatprep.subr.bf16.mxu0 %v13715_v0  ;;  %9940 = vmatprep.mubr.msk.f32.mxu1 %vm2561_vm4, %v2757_v30  ;;  %v11565_v30 = vld [vmem:[#allocation32 + $0x54] ss:$8 sps:$4 sm:$0xff]  }
 0x9a5   : > { %10801 = vmatpush3.bf16.msra.mxu0 %v11517_v23  ;;  %v11551_v23 = vld [vmem:[#allocation32 + $0x10] ss:$8 sps:$4 sm:$0xff]  }
 0x9a6   : > { %10802 = vmatprep.subr.bf16.mxu0 %v13715_v0 }
 0x9a9   : > { %10803 = vmatpush3.bf16.msra.mxu0 %v11518_v24  ;;  %v11556_v24 = vld [vmem:[#allocation32 + $0x24] ss:$8 sps:$4 sm:$0xff]  }
 0x9aa   : > { %10804 = vmatprep.subr.bf16.mxu0 %v13715_v0 }
 0x9ad   : > { %10805 = vmatpush3.bf16.msra.mxu0 %v11519_v25  ;;  %v11554_v25 = vld [vmem:[#allocation32 + $0x20] ss:$8 sps:$4 sm:$0xff]  }
 0x9ae   : > { %10806 = vmatprep.subr.bf16.mxu0 %v13715_v0 }
 0x9b1   : > { %10807 = vmatpush3.bf16.msra.mxu0 %v11520_v26  ;;  %v11559_v26 = vld [vmem:[#allocation32 + $0x34] ss:$8 sps:$4 sm:$0xff]  }
 0x9b2   : > { %10808 = vmatprep.subr.bf16.mxu0 %v13715_v0 }
 0x9b5   : > { %10809 = vmatpush3.bf16.msra.mxu0 %v11521_v27  ;;  %v11557_v27 = vld [vmem:[#allocation32 + $0x30] ss:$8 sps:$4 sm:$0xff]  }
 0x9b6   : > { %10810 = vmatprep.subr.bf16.mxu0 %v13715_v0 }
 0x9b9   : > { %10811 = vmatpush3.bf16.msra.mxu0 %v11522_v28  ;;  %v11562_v28 = vld [vmem:[#allocation32 + $0x44] ss:$8 sps:$4 sm:$0xff]  }
 0x9ba   : > { %10812 = vmatprep.subr.bf16.mxu0 %v13715_v0 }
 0x9bd   : > { %10813 = vmatpush3.bf16.msra.mxu0 %v11523_v29  ;;  %v11560_v29 = vld [vmem:[#allocation32 + $0x40] ss:$8 sps:$4 sm:$0xff]  }
 0x9be   : > { %4082 = vmatprep.subr.bf16.mxu0 %v11526_v32  ;;  %v11568_v32 = vld [vmem:[#allocation32 + $0x64] ss:$8 sps:$4 sm:$0xff]  }
 0x9c0   : > { %10815 = vmatmul.mubr.bf16.vlgmr.msra.gmra.mrb[32].mxu0 %v14584_v54 }
 0x9c1   : > { %4114 = vmatprep.mubr.bf16.mxu0 %v13717_v7  ;;  %4083 = vmatpush1.bf16.msra.mxu0 %v11524_v31  ;;  %v11563_v31 = vld [vmem:[#allocation32 + $0x50] ss:$8 sps:$4 sm:$0xff]  }
 0x9c2   : > { %4084 = vmatprep.subr.bf16.mxu0 %v11529_v33  ;;  %v11566_v33 = vld [vmem:[#allocation32 + $0x60] ss:$8 sps:$4 sm:$0xff]  }
 0x9c5   : > { %4085 = vmatpush1.bf16.msra.mxu0 %v11527_v34  ;;  %v11571_v34 = vld [vmem:[#allocation32 + $0x74] ss:$8 sps:$4 sm:$0xff]  }
 0x9c6   : > { %4086 = vmatprep.subr.bf16.mxu0 %v11532_v35  ;;  %v11569_v35 = vld [vmem:[#allocation32 + $0x70] ss:$8 sps:$4 sm:$0xff]  }
 0x9c9   : > { %4087 = vmatpush1.bf16.msra.mxu0 %v11530_v36  ;;  %v11574_v36 = vld [vmem:[#allocation32 + $0x84] ss:$8 sps:$4 sm:$0xff]  }
 0x9ca   : > { %4088 = vmatprep.subr.bf16.mxu0 %v11535_v37  ;;  %v11572_v37 = vld [vmem:[#allocation32 + $0x80] ss:$8 sps:$4 sm:$0xff]  }
 0x9cd   : > { %4089 = vmatpush1.bf16.msra.mxu0 %v11533_v38  ;;  %v11577_v38 = vld [vmem:[#allocation32 + $0x94] ss:$8 sps:$4 sm:$0xff]  }
 0x9ce   : > { %4090 = vmatprep.subr.bf16.mxu0 %v11538_v39  ;;  %v11575_v39 = vld [vmem:[#allocation32 + $0x90] ss:$8 sps:$4 sm:$0xff]  }
 0x9d1   : > { %4091 = vmatpush1.bf16.msra.mxu0 %v11536_v40  ;;  %v9939_v40 = vld [vmem:[#allocation28] ss:$0 sm:$0xff] }
 0x9d2   : > { %4092 = vmatprep.subr.bf16.mxu0 %v11541_v14  ;;  %v11664_v14 = vld [vmem:[#allocation38 + $0x514] ss:$72 sps:$4 sm:$0xff]  }
 0x9d5   : > { %4093 = vmatpush1.bf16.msra.mxu0 %v11539_v15  ;;  %v11662_v15 = vld [vmem:[#allocation38 + $0x510] ss:$72 sps:$4 sm:$0xff]  }
 0x9d6   : > { %4094 = vmatprep.subr.bf16.mxu0 %v11544_v16  ;;  %v11670_v16 = vld [vmem:[#allocation38 + $0x5a4] ss:$72 sps:$4 sm:$0xff]  }
 0x9d9   : > { %4095 = vmatpush1.bf16.msra.mxu0 %v11542_v17  ;;  %v11668_v17 = vld [vmem:[#allocation38 + $0x5a0] ss:$72 sps:$4 sm:$0xff]  }
 0x9da   : > { %4096 = vmatprep.subr.bf16.mxu0 %v11547_v18  ;;  %v11676_v18 = vld [vmem:[#allocation38 + $0x634] ss:$72 sps:$4 sm:$0xff]  }
 0x9dd   : > { %4097 = vmatpush1.bf16.msra.mxu0 %v11545_v19  ;;  %v11674_v19 = vld [vmem:[#allocation38 + $0x630] ss:$72 sps:$4 sm:$0xff]  }
 0xa53   : > { %v3352_v41 = vpop.f32.mrb[24].mxu0  ;;  %v3395_v42 = vpop.f32.mrb[20].mxu1 }
 0xa54   : > { %v3354_v43 = vpop.f32.mrb[25].mxu0  ;;  %v3397_v44 = vpop.f32.mrb[21].mxu1 }
 0xa55   : > { %v3356_v45 = vpop.f32.mrb[26].mxu0  ;;  %v3399_v46 = vpop.f32.mrb[22].mxu1 }
 0xa56   : > { %v10853_v47 = vpack.c.bf16 %v3356_v45, %v3352_v41  ;;  %v10859_v48 = vpack.c.bf16 %v3399_v46, %v3395_v42  ;;  %v3358_v49 = vpop.f32.mrb[27].mxu0  ;;  %v3401_v50 = vpop.f32.mrb[23].mxu1 }
 0xa57   : > { %v10856_v53 = vpack.c.bf16 %v3358_v49, %v3354_v43  ;;  %v10862_v54 = vpack.c.bf16 %v3401_v50, %v3397_v44 }
 0xa58   : > { %10854 = vmatpush1.bf16.msra.mxu1 %v10853_v47 }
 0xa59   : > { %10855 = vmatprep.subr.bf16.mxu1 %v13718_v60 }
 0xa5c   : > { %10857 = vmatpush1.bf16.msra.mxu1 %v10856_v53 }
 0xa5d   : > { %10858 = vmatprep.subr.bf16.mxu1 %v13718_v60 }
 0xa60   : > { %10860 = vmatpush1.bf16.msra.mxu1 %v10859_v48 }
 0xa61   : > { %10861 = vmatprep.subr.bf16.mxu1 %v13718_v60 }
 0xa64   : > { %10863 = vmatpush1.bf16.msra.mxu1 %v10862_v54  ;;  %v11580_v54 = vld [vmem:[#allocation32 + $0xa4] ss:$8 sps:$4 sm:$0xff]  }
 0xa65   : > { %10864 = vmatprep.subr.bf16.mxu1 %v13718_v60 }
 0xa73   : > { %v3438_v55 = vpop.f32.mrb[28].mxu0  ;;  %v3481_v56 = vpop.f32.mrb[24].mxu1 }
 0xa74   : > { %v3440_v57 = vpop.f32.mrb[29].mxu0  ;;  %v3483_v58 = vpop.f32.mrb[25].mxu1 }
 0xa75   : > { %v3442_v59 = vpop.f32.mrb[30].mxu0  ;;  %v3485_v61 = vpop.f32.mrb[26].mxu1 }
 0xa76   : > { %v10865_v62 = vpack.c.bf16 %v3442_v59, %v3438_v55  ;;  %v10871_v63 = vpack.c.bf16 %v3485_v61, %v3481_v56  ;;  %v3444_v1 = vpop.f32.mrb[31].mxu0  ;;  %v3487_v2 = vpop.f32.mrb[27].mxu1  ;;  %v11578_v55 = vld [vmem:[#allocation32 + $0xa0] ss:$8 sps:$4 sm:$0xff]   ;;  %v11583_v56 = vld [vmem:[#allocation32 + $0xb4] ss:$8 sps:$4 sm:$0xff]  }
 0xa77   : > { %v10868_v3 = vpack.c.bf16 %v3444_v1, %v3440_v57  ;;  %v10874_v4 = vpack.c.bf16 %v3487_v2, %v3483_v58  ;;  %v11581_v57 = vld [vmem:[#allocation32 + $0xb0] ss:$8 sps:$4 sm:$0xff]   ;;  %v11626_v2 = vld [vmem:[#allocation38 + $0x1b0] ss:$72 sps:$4 sm:$0xff]  }
 0xa78   : > { %10866 = vmatpush1.bf16.msra.mxu1 %v10865_v62  ;;  %v11586_v58 = vld [vmem:[#allocation35 + $0x4] ss:$8 sps:$4 sm:$0xff]   ;;  %v11616_v61 = vld [vmem:[#allocation38 + $0x94] ss:$72 sps:$4 sm:$0xff]  }
 0xa79   : > { %10867 = vmatprep.subr.bf16.mxu1 %v13718_v60  ;;  %v11610_v59 = vld [vmem:[#allocation38 + $0x4] ss:$72 sps:$4 sm:$0xff]   ;;  %v11628_v1 = vld [vmem:[#allocation38 + $0x1b4] ss:$72 sps:$4 sm:$0xff]  }
 0xa7a   : > { %5893 = vmatprep.subr.bf16.mxu0 %v11610_v59  ;;  %v11622_v62 = vld [vmem:[#allocation38 + $0x124] ss:$72 sps:$4 sm:$0xff]  }
 0xa7b   : > { %v11602_v59 = vld [vmem:[#allocation35 + $0x60] ss:$8 sps:$4 sm:$0xff]  }
 0xa7c   : > { %10869 = vmatpush1.bf16.msra.mxu1 %v10868_v3  ;;  %v11634_v3 = vld [vmem:[#allocation38 + $0x244] ss:$72 sps:$4 sm:$0xff]  }
 0xa7d   : > { %10870 = vmatprep.subr.bf16.mxu1 %v13718_v60 }
 0xa80   : > { %10872 = vmatpush1.bf16.msra.mxu1 %v10871_v63  ;;  %v11620_v63 = vld [vmem:[#allocation38 + $0x120] ss:$72 sps:$4 sm:$0xff]  }
 0xa81   : > { %10873 = vmatprep.subr.bf16.mxu1 %v13718_v60 }
 0xa84   : > { %10875 = vmatpush1.bf16.msra.mxu1 %v10874_v4  ;;  %v11632_v4 = vld [vmem:[#allocation38 + $0x240] ss:$72 sps:$4 sm:$0xff]  }
 0xa85   : > { %10876 = vmatprep.subr.bf16.mxu1 %v13718_v60 }
 0xa93   : > { %v3524_v5 = vpop.f32.mrb[32].mxu0 }
 0xa94   : > { %v10816_v6 = vpop.f32.mrb[33].mxu0 }
 0xa95   : > { %v3527_v8 = vpop.f32.mrb[34].mxu0  ;;  %v11638_v6 = vld [vmem:[#allocation38 + $0x2d0] ss:$72 sps:$4 sm:$0xff]  }
 0xa96   : > { %v10877_v9 = vpack.c.bf16 %v3527_v8, %v3524_v5  ;;  %v10817_v10 = vpop.f32.mrb[35].mxu0  ;;  %v11640_v5 = vld [vmem:[#allocation38 + $0x2d4] ss:$72 sps:$4 sm:$0xff]   ;;  %v11646_v8 = vld [vmem:[#allocation38 + $0x364] ss:$72 sps:$4 sm:$0xff]  }
 0xa97   : > { %v11652_v10 = vld [vmem:[#allocation38 + $0x3f4] ss:$72 sps:$4 sm:$0xff]  }
 0xa98   : > { %10878 = vmatpush1.bf16.msra.mxu1 %v10877_v9  ;;  %v11644_v9 = vld [vmem:[#allocation38 + $0x360] ss:$72 sps:$4 sm:$0xff]  }
 0xa99   : > { %4266 = vmatprep.subr.bf16.mxu1 %v11550_v21  ;;  %v11680_v21 = vld [vmem:[#allocation38 + $0x6c0] ss:$72 sps:$4 sm:$0xff]  }
 0xa9b   : > { %3608 = vmatmul.mubr.f32.vlgmr.msra.gmra.mrb[28].mxu1 %v2756_v11  ;;  %v11650_v11 = vld [vmem:[#allocation38 + $0x3f0] ss:$72 sps:$4 sm:$0xff]  }
 0xa9c   : > { %9941 = vmatprep.mubr.msk.f32.mxu1 %vm2561_vm4, %v2759_v12  ;;  %4267 = vmatpush1.bf16.msra.mxu1 %v11548_v20  ;;  %v11658_v12 = vld [vmem:[#allocation38 + $0x484] ss:$72 sps:$4 sm:$0xff]  }
 0xa9d   : > { %4268 = vmatprep.subr.bf16.mxu1 %v11553_v22  ;;  %v11682_v20 = vld [vmem:[#allocation38 + $0x6c4] ss:$72 sps:$4 sm:$0xff]   ;;  %v11688_v22 = vld [vmem:[#allocation38 + $0x754] ss:$72 sps:$4 sm:$0xff]  }
 0xa9f   : > { %3613 = vmatmul.mubr.f32.gmra.mrb[30].mxu1 %v2758_v13  ;;  %v11656_v13 = vld [vmem:[#allocation38 + $0x480] ss:$72 sps:$4 sm:$0xff]  }
 0xaa0   : > { %4269 = vmatpush1.bf16.msra.mxu1 %v11551_v23  ;;  %v11686_v23 = vld [vmem:[#allocation38 + $0x750] ss:$72 sps:$4 sm:$0xff]  }
 0xaa1   : > { %4270 = vmatprep.subr.bf16.mxu1 %v11556_v24  ;;  %v3992_v24 = vlaneseq }
 0xaa4   : > { %4271 = vmatpush1.bf16.msra.mxu1 %v11554_v25  ;;  %v3993_v25 = vshrl.u32 %v3992_v24, 7  ;;  %v11685_v24 = vld [vmem:[#allocation38 + $0x6d4] ss:$72 sps:$4 sm:$0xff]  }
 0xaa5   : > { %4272 = vmatprep.subr.bf16.mxu1 %v11559_v26 }
 0xaa6   : > { %v14636_v26 = vsub.s32 0, %v3993_v25 }
 0xaa8   : > { %4273 = vmatpush1.bf16.msra.mxu1 %v11557_v27  ;;  %v3638_v27 = vld [vmem:[#allocation31] sm:$0x3] }
 0xaa9   : > { %4274 = vmatprep.subr.bf16.mxu1 %v11562_v28  ;;  %v14638_v28 = vsub.s32 1, %v3993_v25  ;;  %v11683_v25 = vld [vmem:[#allocation38 + $0x6d0] ss:$72 sps:$4 sm:$0xff]  }
 0xaac   : > { %4275 = vmatpush1.bf16.msra.mxu1 %v11560_v29  ;;  %v3995_v29 = vrot.slane %v3638_v27, %v14636_v26 }
 0xaad   : > { %4276 = vmatprep.subr.bf16.mxu1 %v11565_v30  ;;  %v3999_v30 = vrot.slane %v3638_v27, %v14638_v28  ;;  %v11691_v27 = vld [vmem:[#allocation38 + $0x764] ss:$72 sps:$4 sm:$0xff]  }
 0xab0   : > { %4277 = vmatpush1.bf16.msra.mxu1 %v11563_v31 }
 0xab1   : > { %4278 = vmatprep.subr.bf16.mxu1 %v11568_v32 }
 0xab4   : > { %4279 = vmatpush1.bf16.msra.mxu1 %v11566_v33 }
 0xab5   : > { %4280 = vmatprep.subr.bf16.mxu1 %v11571_v34 }
 0xab8   : > { %4281 = vmatpush1.bf16.msra.mxu1 %v11569_v35 }
 0xab9   : > { %4282 = vmatprep.subr.bf16.mxu1 %v11574_v36 }
 0xabc   : > { %4283 = vmatpush1.bf16.msra.mxu1 %v11572_v37 }
 0xabd   : > { %4284 = vmatprep.subr.bf16.mxu1 %v11577_v38 }
 0xac0   : > { %4285 = vmatpush1.bf16.msra.mxu1 %v11575_v39 }
 0xac1   : > { %4286 = vmatprep.subr.bf16.mxu1 %v11580_v54  ;;  %v11593_v54 = vld [vmem:[#allocation35 + $0x30] ss:$8 sps:$4 sm:$0xff]  }
 0xac4   : > { %4287 = vmatpush1.bf16.msra.mxu1 %v11578_v55  ;;  %v11598_v55 = vld [vmem:[#allocation35 + $0x44] ss:$8 sps:$4 sm:$0xff]  }
 0xac5   : > { %4288 = vmatprep.subr.bf16.mxu1 %v11583_v56  ;;  %v11596_v56 = vld [vmem:[#allocation35 + $0x40] ss:$8 sps:$4 sm:$0xff]  }
 0xac8   : > { %4289 = vmatpush1.bf16.msra.mxu1 %v11581_v57  ;;  %v11601_v57 = vld [vmem:[#allocation35 + $0x54] ss:$8 sps:$4 sm:$0xff]  }
 0xac9   : > { %4400 = vmatprep.subr.bf16.mxu1 %v11586_v58  ;;  %v11599_v58 = vld [vmem:[#allocation35 + $0x50] ss:$8 sps:$4 sm:$0xff]  }
 0xb6e   : > { %v3609_v41 = vpop.f32.mrb[28].mxu1 }
 0xb6f   : > { %v3610_v42 = vadd.f32 %v9939_v40, %v3609_v41  ;;  %v3611_v43 = vpop.f32.mrb[29].mxu1 }
 0xb71   : > { %v3618_v45 = vadd.f32 %v3610_v42, %v14572_v51  ;;  %v11608_v51 = vld [vmem:[#allocation38] ss:$72 sps:$4 sm:$0xff]  }
 0xb72   : > { %v3614_v44 = vpop.f32.mrb[30].mxu1 }
 0xb73   : > { %v3615_v46 = vadd.f32 %v9939_v40, %v3614_v44  ;;  %v3616_v47 = vpop.f32.mrb[31].mxu1  ;;  %v3620_v49 = vmax.f32 %v3618_v45, 0.0  ;;  %v11584_v45 = vld [vmem:[#allocation35] ss:$8 sps:$4 sm:$0xff]  }
 0xb74   : > { %v11587_v47 = vld [vmem:[#allocation35 + $0x10] ss:$8 sps:$4 sm:$0xff]  }
 0xb75   : > { %v3619_v48 = vadd.f32 %v3615_v46, %v14574_v52  ;;  %v11614_v52 = vld [vmem:[#allocation38 + $0x90] ss:$72 sps:$4 sm:$0xff]  }
 0xb76   : > { %v11589_v46 = vld [vmem:[#allocation35 + $0x14] ss:$8 sps:$4 sm:$0xff]  }
 0xb77   : > { %v3621_v50 = vmax.f32 %v3619_v48, 0.0  ;;  %v11592_v48 = vld [vmem:[#allocation35 + $0x24] ss:$8 sps:$4 sm:$0xff]  }
 0xb79   : > { %v14633_v53 = vpack.c.bf16 %v3621_v50, %v3620_v49  ;;  %v11590_v49 = vld [vmem:[#allocation35 + $0x20] ss:$8 sps:$4 sm:$0xff]   ;;  %v11595_v50 = vld [vmem:[#allocation35 + $0x34] ss:$8 sps:$4 sm:$0xff]  }
 0xb7b   : > { %4115 = vmatmul.mubr.bf16.vlgmr.msra.gmra.mrb[36].mxu0 %v14633_v53 }
 0xb7c   : > { %5894 = vmatpush1.bf16.msra.mxu0 %v11608_v51  ;;  %v11604_v51 = vld [vmem:[#allocation35 + $0x64] ss:$8 sps:$4 sm:$0xff]  }
 0xb7d   : > { %5895 = vmatprep.subr.bf16.mxu0 %v11616_v61  ;;  %v11607_v61 = vld [vmem:[#allocation35 + $0x74] ss:$8 sps:$4 sm:$0xff]  }
 0xb80   : > { %5896 = vmatpush1.bf16.msra.mxu0 %v11614_v52  ;;  %v11605_v52 = vld [vmem:[#allocation35 + $0x70] ss:$8 sps:$4 sm:$0xff]  }
 0xb81   : > { %5897 = vmatprep.subr.bf16.mxu0 %v11622_v62  ;;  %v11613_v62 = vld [vmem:[#allocation38 + $0x14] ss:$72 sps:$4 sm:$0xff]  }
 0xb84   : > { %5898 = vmatpush1.bf16.msra.mxu0 %v11620_v63  ;;  %v11611_v63 = vld [vmem:[#allocation38 + $0x10] ss:$72 sps:$4 sm:$0xff]  }
 0xb85   : > { %5899 = vmatprep.subr.bf16.mxu0 %v11628_v1  ;;  %v11619_v1 = vld [vmem:[#allocation38 + $0xa4] ss:$72 sps:$4 sm:$0xff]  }
 0xb88   : > { %5900 = vmatpush1.bf16.msra.mxu0 %v11626_v2  ;;  %v11617_v2 = vld [vmem:[#allocation38 + $0xa0] ss:$72 sps:$4 sm:$0xff]  }
 0xb89   : > { %5901 = vmatprep.subr.bf16.mxu0 %v11634_v3  ;;  %v11625_v3 = vld [vmem:[#allocation38 + $0x134] ss:$72 sps:$4 sm:$0xff]  }
 0xb8c   : > { %5902 = vmatpush1.bf16.msra.mxu0 %v11632_v4  ;;  %v11623_v4 = vld [vmem:[#allocation38 + $0x130] ss:$72 sps:$4 sm:$0xff]  }
 0xb8d   : > { %5903 = vmatprep.subr.bf16.mxu0 %v11640_v5  ;;  %v11631_v5 = vld [vmem:[#allocation38 + $0x1c4] ss:$72 sps:$4 sm:$0xff]  }
 0xb90   : > { %5904 = vmatpush1.bf16.msra.mxu0 %v11638_v6  ;;  %v11629_v6 = vld [vmem:[#allocation38 + $0x1c0] ss:$72 sps:$4 sm:$0xff]  }
 0xb91   : > { %5905 = vmatprep.subr.bf16.mxu0 %v11646_v8  ;;  %v11637_v8 = vld [vmem:[#allocation38 + $0x254] ss:$72 sps:$4 sm:$0xff]  }
 0xb94   : > { %5906 = vmatpush1.bf16.msra.mxu0 %v11644_v9  ;;  %v11635_v9 = vld [vmem:[#allocation38 + $0x250] ss:$72 sps:$4 sm:$0xff]  }
 0xb95   : > { %5907 = vmatprep.subr.bf16.mxu0 %v11652_v10  ;;  %v11643_v10 = vld [vmem:[#allocation38 + $0x2e4] ss:$72 sps:$4 sm:$0xff]  }
 0xb98   : > { %5908 = vmatpush1.bf16.msra.mxu0 %v11650_v11  ;;  %v11641_v11 = vld [vmem:[#allocation38 + $0x2e0] ss:$72 sps:$4 sm:$0xff]  }
 0xb99   : > { %5909 = vmatprep.subr.bf16.mxu0 %v11658_v12  ;;  %v11649_v12 = vld [vmem:[#allocation38 + $0x374] ss:$72 sps:$4 sm:$0xff]  }
 0xb9c   : > { %5910 = vmatpush1.bf16.msra.mxu0 %v11656_v13  ;;  %v11647_v13 = vld [vmem:[#allocation38 + $0x370] ss:$72 sps:$4 sm:$0xff]  }
 0xb9d   : > { %5911 = vmatprep.subr.bf16.mxu0 %v11664_v14  ;;  %v11655_v14 = vld [vmem:[#allocation38 + $0x404] ss:$72 sps:$4 sm:$0xff]  }
 0xba0   : > { %5912 = vmatpush1.bf16.msra.mxu0 %v11662_v15  ;;  %v11653_v15 = vld [vmem:[#allocation38 + $0x400] ss:$72 sps:$4 sm:$0xff]  }
 0xba1   : > { %5913 = vmatprep.subr.bf16.mxu0 %v11670_v16  ;;  %v11661_v16 = vld [vmem:[#allocation38 + $0x494] ss:$72 sps:$4 sm:$0xff]  }
 0xba4   : > { %5914 = vmatpush1.bf16.msra.mxu0 %v11668_v17  ;;  %v11659_v17 = vld [vmem:[#allocation38 + $0x490] ss:$72 sps:$4 sm:$0xff]  }
 0xba5   : > { %5915 = vmatprep.subr.bf16.mxu0 %v11676_v18  ;;  %v11667_v18 = vld [vmem:[#allocation38 + $0x524] ss:$72 sps:$4 sm:$0xff]  }
 0xba8   : > { %5916 = vmatpush1.bf16.msra.mxu0 %v11674_v19  ;;  %v11665_v19 = vld [vmem:[#allocation38 + $0x520] ss:$72 sps:$4 sm:$0xff]  }
 0xba9   : > { %5917 = vmatprep.subr.bf16.mxu0 %v11682_v20  ;;  %v11673_v20 = vld [vmem:[#allocation38 + $0x5b4] ss:$72 sps:$4 sm:$0xff]  }
 0xbac   : > { %5918 = vmatpush1.bf16.msra.mxu0 %v11680_v21  ;;  %v11671_v21 = vld [vmem:[#allocation38 + $0x5b0] ss:$72 sps:$4 sm:$0xff]  }
 0xbad   : > { %5919 = vmatprep.subr.bf16.mxu0 %v11688_v22  ;;  %v11679_v22 = vld [vmem:[#allocation38 + $0x644] ss:$72 sps:$4 sm:$0xff]  }
 0xbb0   : > { %5920 = vmatpush1.bf16.msra.mxu0 %v11686_v23  ;;  %v11677_v23 = vld [vmem:[#allocation38 + $0x640] ss:$72 sps:$4 sm:$0xff]  }
 0xc4e   : > { %v4116_v31 = vpop.f32.mrb[36].mxu0 }
 0xc4f   : > { %v4117_v32 = vadd.f32 %v4116_v31, %v3995_v29  ;;  %v4118_v33 = vpop.f32.mrb[37].mxu0  ;;  %v11697_v31 = vld [vmem:[#allocation38 + $0x7f4] ss:$72 sps:$4 sm:$0xff]  }
 0xc50   : > { %v4119_v34 = vadd.f32 %v4118_v33, %v3999_v30  ;;  %v4120_v35 = vpop.f32.mrb[38].mxu0  ;;  %v11695_v33 = vld [vmem:[#allocation38 + $0x7f0] ss:$72 sps:$4 sm:$0xff]  }
 0xc51   : > { %v4121_v36 = vadd.f32 %v4120_v35, %v3995_v29  ;;  %v4122_v37 = vpop.f32.mrb[39].mxu0  ;;  %v4125_v39 = vmax.f32 %v4117_v32, 0.0  ;;  %v11689_v29 = vld [vmem:[#allocation38 + $0x760] ss:$72 sps:$4 sm:$0xff]   ;;  %v11703_v35 = vld [vmem:[#allocation38 + $0x884] ss:$72 sps:$4 sm:$0xff]  }
 0xc52   : > { %v4123_v38 = vadd.f32 %v4122_v37, %v3999_v30  ;;  %v4126_v41 = vmax.f32 %v4119_v34, 0.0  ;;  %v11694_v30 = vld [vmem:[#allocation38 + $0x7e4] ss:$72 sps:$4 sm:$0xff]   ;;  %v11692_v32 = vld [vmem:[#allocation38 + $0x7e0] ss:$72 sps:$4 sm:$0xff]  }
 0xc53   : > { %v4127_v40 = vmax.f32 %v4121_v36, 0.0  ;;  %5921 = vmatprep.subr.bf16.mxu0 %v11694_v30  ;;  %v11700_v34 = vld [vmem:[#allocation38 + $0x874] ss:$72 sps:$4 sm:$0xff]   ;;  %v11698_v36 = vld [vmem:[#allocation38 + $0x870] ss:$72 sps:$4 sm:$0xff]  }
 0xc54   : > { %v4128_v42 = vmax.f32 %v4123_v38, 0.0  ;;  %5922 = vmatpush1.bf16.msra.mxu0 %v11692_v32  ;;  %v11701_v37 = vld [vmem:[#allocation38 + $0x880] ss:$72 sps:$4 sm:$0xff]   ;;  %v11706_v38 = vld [vmem:[#allocation38 + $0xc] ss:$72 sps:$4 sm:$0xff]  }
 0xc55   : > { %v4129_v43 = vpack.c.bf16 %v4127_v40, %v4125_v39  ;;  %5923 = vmatprep.subr.bf16.mxu0 %v11700_v34  ;;  %v11709_v39 = vld [vmem:[#allocation38 + $0x24] ss:$72 sps:$4 sm:$0xff]   ;;  %v3663_v40 = vld [vmem:[#allocation34] sm:$0x3]  ;;  %v11746_v32 = vld [vmem:[#allocation38 + $0x3f8] ss:$72 sps:$4 sm:$0xff]  }
 0xc56   : > { %v4130_v44 = vpack.c.bf16 %v4128_v42, %v4126_v41  ;;  %v3680_v41 = vld [vmem:[#allocation37] sm:$0x3]  ;;  %v4135_v42 = vrot.slane %v3663_v40, %v14636_v26  ;;  %v11754_v34 = vld [vmem:[#allocation38 + $0x48c] ss:$72 sps:$4 sm:$0xff]  }
 0xc57   : > { %v11748_v30 = vld [vmem:[#allocation38 + $0x3fc] ss:$72 sps:$4 sm:$0xff]  }
 0xc58   : > { %9982 = vmatprep.mubr.msk.bf16.mxu1 %vm4262_vm5, %v4130_v44  ;;  %5924 = vmatpush1.bf16.msra.mxu0 %v11698_v36  ;;  %v4139_v44 = vrot.slane %v3663_v40, %v14638_v28  ;;  %v11752_v36 = vld [vmem:[#allocation38 + $0x488] ss:$72 sps:$4 sm:$0xff]   ;;  %v11758_v40 = vld [vmem:[#allocation38 + $0x518] ss:$72 sps:$4 sm:$0xff]  }
 0xc59   : > { %4299 = vmatmul.mubr.bf16.vlgmr.msra.gmra.mrb[32].mxu1 %v4129_v43  ;;  %5936 = vmatprep.subr.bf16.mxu0 %v11706_v38  ;;  %v4313_v43 = vrot.slane %v3680_v41, %v14636_v26  ;;  %v11760_v38 = vld [vmem:[#allocation38 + $0x51c] ss:$72 sps:$4 sm:$0xff]  }
 0xc5a   : > { %4401 = vmatpush1.bf16.msra.mxu1 %v11584_v45  ;;  %4432 = vmatprep.mubr.bf16.mxu1 %v13717_v7  ;;  %v4317_v45 = vrot.slane %v3680_v41, %v14638_v28  ;;  %v11761_v41 = vld [vmem:[#allocation38 + $0x530] ss:$72 sps:$4 sm:$0xff]  }
 0xc5b   : > { %4402 = vmatprep.subr.bf16.mxu1 %v11589_v46  ;;  %v10940_v46 = vadd.f32 %v4313_v43, %v4135_v42  ;;  %v11766_v42 = vld [vmem:[#allocation38 + $0x5ac] ss:$72 sps:$4 sm:$0xff]  }
 0xc5c   : > { %v11769_v43 = vld [vmem:[#allocation38 + $0x5c4] ss:$72 sps:$4 sm:$0xff]  }
 0xc5e   : > { %4403 = vmatpush1.bf16.msra.mxu1 %v11587_v47  ;;  %v10942_v47 = vadd.f32 %v4317_v45, %v4139_v44  ;;  %v11764_v44 = vld [vmem:[#allocation38 + $0x5a8] ss:$72 sps:$4 sm:$0xff]  }
 0xc5f   : > { %4404 = vmatprep.subr.bf16.mxu1 %v11592_v48  ;;  %v11767_v45 = vld [vmem:[#allocation38 + $0x5c0] ss:$72 sps:$4 sm:$0xff]  }
 0xc62   : > { %4405 = vmatpush1.bf16.msra.mxu1 %v11590_v49 }
 0xc63   : > { %4406 = vmatprep.subr.bf16.mxu1 %v11595_v50 }
 0xc66   : > { %4407 = vmatpush1.bf16.msra.mxu1 %v11593_v54 }
 0xc67   : > { %4408 = vmatprep.subr.bf16.mxu1 %v11598_v55 }
 0xc6a   : > { %4409 = vmatpush1.bf16.msra.mxu1 %v11596_v56 }
 0xc6b   : > { %4410 = vmatprep.subr.bf16.mxu1 %v11601_v57 }
 0xc6e   : > { %4411 = vmatpush1.bf16.msra.mxu1 %v11599_v58 }
 0xc6f   : > { %4412 = vmatprep.subr.bf16.mxu1 %v11604_v51 }
 0xc72   : > { %4413 = vmatpush1.bf16.msra.mxu1 %v11602_v59 }
 0xc73   : > { %4414 = vmatprep.subr.bf16.mxu1 %v11607_v61 }
 0xc76   : > { %4415 = vmatpush1.bf16.msra.mxu1 %v11605_v52 }
 0xc77   : > { %5979 = vmatprep.subr.bf16.mxu1 %v11613_v62 }
 0xc79   : > { %4433 = vmatmul.mubr.bf16.vlgmr.msra.gmra.mrb[32].mxu1 %v14633_v53 }
 0xc7a   : > { %5980 = vmatpush1.bf16.msra.mxu1 %v11611_v63 }
 0xc7b   : > { %5981 = vmatprep.subr.bf16.mxu1 %v11619_v1  ;;  %v11704_v1 = vld [vmem:[#allocation38 + $0x8] ss:$72 sps:$4 sm:$0xff]  }
 0xc7e   : > { %5982 = vmatpush1.bf16.msra.mxu1 %v11617_v2  ;;  %v11707_v2 = vld [vmem:[#allocation38 + $0x20] ss:$72 sps:$4 sm:$0xff]  }
 0xc7f   : > { %5983 = vmatprep.subr.bf16.mxu1 %v11625_v3  ;;  %v11712_v3 = vld [vmem:[#allocation38 + $0x9c] ss:$72 sps:$4 sm:$0xff]  }
 0xc82   : > { %5984 = vmatpush1.bf16.msra.mxu1 %v11623_v4  ;;  %v11715_v4 = vld [vmem:[#allocation38 + $0xb4] ss:$72 sps:$4 sm:$0xff]  }
 0xc83   : > { %5985 = vmatprep.subr.bf16.mxu1 %v11631_v5  ;;  %v11710_v5 = vld [vmem:[#allocation38 + $0x98] ss:$72 sps:$4 sm:$0xff]  }
 0xc86   : > { %5986 = vmatpush1.bf16.msra.mxu1 %v11629_v6  ;;  %v11713_v6 = vld [vmem:[#allocation38 + $0xb0] ss:$72 sps:$4 sm:$0xff]  }
 0xc87   : > { %5987 = vmatprep.subr.bf16.mxu1 %v11637_v8  ;;  %v11718_v8 = vld [vmem:[#allocation38 + $0x12c] ss:$72 sps:$4 sm:$0xff]  }
 0xc8a   : > { %5988 = vmatpush1.bf16.msra.mxu1 %v11635_v9  ;;  %v11721_v9 = vld [vmem:[#allocation38 + $0x144] ss:$72 sps:$4 sm:$0xff]  }
 0xc8b   : > { %5989 = vmatprep.subr.bf16.mxu1 %v11643_v10  ;;  %v11716_v10 = vld [vmem:[#allocation38 + $0x128] ss:$72 sps:$4 sm:$0xff]  }
 0xc8e   : > { %5990 = vmatpush1.bf16.msra.mxu1 %v11641_v11  ;;  %v11719_v11 = vld [vmem:[#allocation38 + $0x140] ss:$72 sps:$4 sm:$0xff]  }
 0xc8f   : > { %5991 = vmatprep.subr.bf16.mxu1 %v11649_v12  ;;  %v11724_v12 = vld [vmem:[#allocation38 + $0x1bc] ss:$72 sps:$4 sm:$0xff]  }
 0xc92   : > { %5992 = vmatpush1.bf16.msra.mxu1 %v11647_v13  ;;  %v11727_v13 = vld [vmem:[#allocation38 + $0x1d4] ss:$72 sps:$4 sm:$0xff]  }
 0xc93   : > { %5993 = vmatprep.subr.bf16.mxu1 %v11655_v14  ;;  %v11722_v14 = vld [vmem:[#allocation38 + $0x1b8] ss:$72 sps:$4 sm:$0xff]  }
 0xc96   : > { %5994 = vmatpush1.bf16.msra.mxu1 %v11653_v15  ;;  %v11725_v15 = vld [vmem:[#allocation38 + $0x1d0] ss:$72 sps:$4 sm:$0xff]  }
 0xc97   : > { %5995 = vmatprep.subr.bf16.mxu1 %v11661_v16  ;;  %v11730_v16 = vld [vmem:[#allocation38 + $0x24c] ss:$72 sps:$4 sm:$0xff]  }
 0xc9a   : > { %5996 = vmatpush1.bf16.msra.mxu1 %v11659_v17  ;;  %v11733_v17 = vld [vmem:[#allocation38 + $0x264] ss:$72 sps:$4 sm:$0xff]  }
 0xc9b   : > { %5997 = vmatprep.subr.bf16.mxu1 %v11667_v18  ;;  %v11728_v18 = vld [vmem:[#allocation38 + $0x248] ss:$72 sps:$4 sm:$0xff]  }
 0xc9e   : > { %5998 = vmatpush1.bf16.msra.mxu1 %v11665_v19  ;;  %v11731_v19 = vld [vmem:[#allocation38 + $0x260] ss:$72 sps:$4 sm:$0xff]  }
 0xc9f   : > { %5999 = vmatprep.subr.bf16.mxu1 %v11673_v20  ;;  %v11736_v20 = vld [vmem:[#allocation38 + $0x2dc] ss:$72 sps:$4 sm:$0xff]  }
 0xca2   : > { %6000 = vmatpush1.bf16.msra.mxu1 %v11671_v21  ;;  %v11739_v21 = vld [vmem:[#allocation38 + $0x2f4] ss:$72 sps:$4 sm:$0xff]  }
 0xca3   : > { %6001 = vmatprep.subr.bf16.mxu1 %v11679_v22  ;;  %v11734_v22 = vld [vmem:[#allocation38 + $0x2d8] ss:$72 sps:$4 sm:$0xff]  }
 0xca6   : > { %6002 = vmatpush1.bf16.msra.mxu1 %v11677_v23  ;;  %v11737_v23 = vld [vmem:[#allocation38 + $0x2f0] ss:$72 sps:$4 sm:$0xff]  }
 0xca7   : > { %6003 = vmatprep.subr.bf16.mxu1 %v11685_v24  ;;  %v11742_v24 = vld [vmem:[#allocation38 + $0x36c] ss:$72 sps:$4 sm:$0xff]  }
 0xcaa   : > { %6004 = vmatpush1.bf16.msra.mxu1 %v11683_v25  ;;  %v11745_v25 = vld [vmem:[#allocation38 + $0x384] ss:$72 sps:$4 sm:$0xff]  }
 0xcab   : > { %6005 = vmatprep.subr.bf16.mxu1 %v11691_v27  ;;  %v11740_v27 = vld [vmem:[#allocation38 + $0x368] ss:$72 sps:$4 sm:$0xff]  }
 0xcae   : > { %6006 = vmatpush1.bf16.msra.mxu1 %v11689_v29  ;;  %v11743_v29 = vld [vmem:[#allocation38 + $0x380] ss:$72 sps:$4 sm:$0xff]  }
 0xcaf   : > { %6007 = vmatprep.subr.bf16.mxu1 %v11697_v31  ;;  %v11751_v31 = vld [vmem:[#allocation38 + $0x414] ss:$72 sps:$4 sm:$0xff]  }
 0xcb2   : > { %6008 = vmatpush1.bf16.msra.mxu1 %v11695_v33  ;;  %v11749_v33 = vld [vmem:[#allocation38 + $0x410] ss:$72 sps:$4 sm:$0xff]  }
 0xcb3   : > { %6009 = vmatprep.subr.bf16.mxu1 %v11703_v35  ;;  %v11757_v35 = vld [vmem:[#allocation38 + $0x4a4] ss:$72 sps:$4 sm:$0xff]  }
 0xcb6   : > { %6010 = vmatpush1.bf16.msra.mxu1 %v11701_v37  ;;  %v11755_v37 = vld [vmem:[#allocation38 + $0x4a0] ss:$72 sps:$4 sm:$0xff]  }
 0xcb7   : > { %6065 = vmatprep.subr.bf16.mxu1 %v11709_v39  ;;  %v11763_v39 = vld [vmem:[#allocation38 + $0x534] ss:$72 sps:$4 sm:$0xff]  }
 0xd4c   : > { %v4434_v48 = vpop.f32.mrb[32].mxu1 }
 0xd4d   : > { %v10941_v49 = vadd.f32 %v10940_v46, %v4434_v48  ;;  %v4436_v50 = vpop.f32.mrb[33].mxu1  ;;  %v11770_v48 = vld [vmem:[#allocation38 + $0x638] ss:$72 sps:$4 sm:$0xff]  }
 0xd4e   : > { %v10943_v54 = vadd.f32 %v10942_v47, %v4436_v50  ;;  %v4438_v55 = vpop.f32.mrb[34].mxu1  ;;  %v11778_v50 = vld [vmem:[#allocation38 + $0x6cc] ss:$72 sps:$4 sm:$0xff]  }
 0xd4f   : > { %v10945_v56 = vadd.f32 %v10940_v46, %v4438_v55  ;;  %v4440_v57 = vpop.f32.mrb[35].mxu1  ;;  %v4447_v51 = vmax.f32 %v10941_v49, 0.0  ;;  %v11772_v46 = vld [vmem:[#allocation38 + $0x63c] ss:$72 sps:$4 sm:$0xff]   ;;  %v11773_v49 = vld [vmem:[#allocation38 + $0x650] ss:$72 sps:$4 sm:$0xff]  }
 0xd50   : > { %v10947_v58 = vadd.f32 %v10942_v47, %v4440_v57  ;;  %v4448_v61 = vmax.f32 %v10943_v54, 0.0  ;;  %v11775_v47 = vld [vmem:[#allocation38 + $0x654] ss:$72 sps:$4 sm:$0xff]   ;;  %v11781_v54 = vld [vmem:[#allocation38 + $0x6e4] ss:$72 sps:$4 sm:$0xff]  }
 0xd51   : > { %v4449_v59 = vmax.f32 %v10945_v56, 0.0  ;;  %v11776_v55 = vld [vmem:[#allocation38 + $0x6c8] ss:$72 sps:$4 sm:$0xff]   ;;  %v11784_v57 = vld [vmem:[#allocation38 + $0x75c] ss:$72 sps:$4 sm:$0xff]  }
 0xd52   : > { %v4450_v52 = vmax.f32 %v10947_v58, 0.0  ;;  %v11779_v56 = vld [vmem:[#allocation38 + $0x6e0] ss:$72 sps:$4 sm:$0xff]   ;;  %v11787_v58 = vld [vmem:[#allocation38 + $0x774] ss:$72 sps:$4 sm:$0xff]  }
 0xd53   : > { %v14649_v62 = vpack.c.bf16 %v4449_v59, %v4447_v51  ;;  %v11782_v51 = vld [vmem:[#allocation38 + $0x758] ss:$72 sps:$4 sm:$0xff]  }
 0xd54   : > { %v14651_v63 = vpack.c.bf16 %v4450_v52, %v4448_v61  ;;  %v11785_v59 = vld [vmem:[#allocation38 + $0x770] ss:$72 sps:$4 sm:$0xff]   ;;  %v11790_v61 = vld [vmem:[#allocation38 + $0x7ec] ss:$72 sps:$4 sm:$0xff]  }
 0xd55   : > { %v11793_v52 = vld [vmem:[#allocation38 + $0x804] ss:$72 sps:$4 sm:$0xff]  }
 0xd56   : > { %5925 = vmatprep.mubr.bf16.mxu0 %v14651_v63  ;;  %6011 = vmatprep.mubr.bf16.mxu1 %v14651_v63 }
 0xd57   : > { %5926 = vmatmul.mubr.bf16.vlgmr.msra.gmra.mrb[40].mxu0 %v14649_v62  ;;  %6012 = vmatmul.mubr.bf16.vlgmr.msra.gmra.mrb[36].mxu1 %v14649_v62 }
 0xd58   : > { %5937 = vmatpush1.bf16.msra.mxu0 %v11704_v1  ;;  %6066 = vmatpush1.bf16.msra.mxu1 %v11707_v2  ;;  %v11788_v1 = vld [vmem:[#allocation38 + $0x7e8] ss:$72 sps:$4 sm:$0xff]  }
 0xd59   : > { %5968 = vmatprep.mubr.bf16.mxu0 %v14651_v63  ;;  %6097 = vmatprep.mubr.bf16.mxu1 %v14651_v63  ;;  %v11791_v2 = vld [vmem:[#allocation38 + $0x800] ss:$72 sps:$4 sm:$0xff]  }
 0xd5a   : > { %5938 = vmatprep.subr.bf16.mxu0 %v11712_v3  ;;  %6067 = vmatprep.subr.bf16.mxu1 %v11715_v4  ;;  %v11796_v3 = vld [vmem:[#allocation38 + $0x87c] ss:$72 sps:$4 sm:$0xff]  }
 0xd5b   : > { %v11799_v4 = vld [vmem:[#allocation38 + $0x894] ss:$72 sps:$4 sm:$0xff]  }
 0xd5c   : > { %5939 = vmatpush1.bf16.msra.mxu0 %v11710_v5  ;;  %6068 = vmatpush1.bf16.msra.mxu1 %v11713_v6  ;;  %v11794_v5 = vld [vmem:[#allocation38 + $0x878] ss:$72 sps:$4 sm:$0xff]  }
 0xd5d   : > { %5940 = vmatprep.subr.bf16.mxu0 %v11718_v8  ;;  %6069 = vmatprep.subr.bf16.mxu1 %v11721_v9  ;;  %v11797_v6 = vld [vmem:[#allocation38 + $0x890] ss:$72 sps:$4 sm:$0xff]   ;;  %v11802_v8 = vld [vmem:[#allocation38 + $0x1c] ss:$72 sps:$4 sm:$0xff]  }
 0xd5e   : > { %v11805_v9 = vld [vmem:[#allocation38 + $0x34] ss:$72 sps:$4 sm:$0xff]  }
 0xd60   : > { %5941 = vmatpush1.bf16.msra.mxu0 %v11716_v10  ;;  %6070 = vmatpush1.bf16.msra.mxu1 %v11719_v11  ;;  %v11800_v10 = vld [vmem:[#allocation38 + $0x18] ss:$72 sps:$4 sm:$0xff]  }
 0xd61   : > { %5942 = vmatprep.subr.bf16.mxu0 %v11724_v12  ;;  %6071 = vmatprep.subr.bf16.mxu1 %v11727_v13  ;;  %v11803_v11 = vld [vmem:[#allocation38 + $0x30] ss:$72 sps:$4 sm:$0xff]   ;;  %v11808_v12 = vld [vmem:[#allocation38 + $0xac] ss:$72 sps:$4 sm:$0xff]  }
 0xd62   : > { %v11811_v13 = vld [vmem:[#allocation38 + $0xc4] ss:$72 sps:$4 sm:$0xff]  }
 0xd64   : > { %5943 = vmatpush1.bf16.msra.mxu0 %v11722_v14  ;;  %6072 = vmatpush1.bf16.msra.mxu1 %v11725_v15  ;;  %v11806_v14 = vld [vmem:[#allocation38 + $0xa8] ss:$72 sps:$4 sm:$0xff]  }
 0xd65   : > { %5944 = vmatprep.subr.bf16.mxu0 %v11730_v16  ;;  %6073 = vmatprep.subr.bf16.mxu1 %v11733_v17  ;;  %v11809_v15 = vld [vmem:[#allocation38 + $0xc0] ss:$72 sps:$4 sm:$0xff]   ;;  %v11814_v16 = vld [vmem:[#allocation38 + $0x13c] ss:$72 sps:$4 sm:$0xff]  }
 0xd66   : > { %v11817_v17 = vld [vmem:[#allocation38 + $0x154] ss:$72 sps:$4 sm:$0xff]  }
 0xd68   : > { %5945 = vmatpush1.bf16.msra.mxu0 %v11728_v18  ;;  %6074 = vmatpush1.bf16.msra.mxu1 %v11731_v19  ;;  %v11812_v18 = vld [vmem:[#allocation38 + $0x138] ss:$72 sps:$4 sm:$0xff]  }
 0xd69   : > { %5946 = vmatprep.subr.bf16.mxu0 %v11736_v20  ;;  %6075 = vmatprep.subr.bf16.mxu1 %v11739_v21  ;;  %v11815_v19 = vld [vmem:[#allocation38 + $0x150] ss:$72 sps:$4 sm:$0xff]   ;;  %v11820_v20 = vld [vmem:[#allocation38 + $0x1cc] ss:$72 sps:$4 sm:$0xff]  }
 0xd6a   : > { %v11823_v21 = vld [vmem:[#allocation38 + $0x1e4] ss:$72 sps:$4 sm:$0xff]  }
 0xd6c   : > { %5947 = vmatpush1.bf16.msra.mxu0 %v11734_v22  ;;  %6076 = vmatpush1.bf16.msra.mxu1 %v11737_v23  ;;  %v11818_v22 = vld [vmem:[#allocation38 + $0x1c8] ss:$72 sps:$4 sm:$0xff]  }
 0xd6d   : > { %5948 = vmatprep.subr.bf16.mxu0 %v11742_v24  ;;  %6077 = vmatprep.subr.bf16.mxu1 %v11745_v25  ;;  %v11821_v23 = vld [vmem:[#allocation38 + $0x1e0] ss:$72 sps:$4 sm:$0xff]   ;;  %v11826_v24 = vld [vmem:[#allocation38 + $0x25c] ss:$72 sps:$4 sm:$0xff]  }
 0xd6e   : > { %v11829_v25 = vld [vmem:[#allocation38 + $0x274] ss:$72 sps:$4 sm:$0xff]  }
 0xd70   : > { %5949 = vmatpush1.bf16.msra.mxu0 %v11740_v27  ;;  %6078 = vmatpush1.bf16.msra.mxu1 %v11743_v29  ;;  %v11824_v27 = vld [vmem:[#allocation38 + $0x258] ss:$72 sps:$4 sm:$0xff]  }
 0xd71   : > { %5950 = vmatprep.subr.bf16.mxu0 %v11748_v30  ;;  %6079 = vmatprep.subr.bf16.mxu1 %v11751_v31  ;;  %v11827_v29 = vld [vmem:[#allocation38 + $0x270] ss:$72 sps:$4 sm:$0xff]   ;;  %v11832_v30 = vld [vmem:[#allocation38 + $0x2ec] ss:$72 sps:$4 sm:$0xff]  }
 0xd72   : > { %v11835_v31 = vld [vmem:[#allocation38 + $0x304] ss:$72 sps:$4 sm:$0xff]  }
 0xd74   : > { %5951 = vmatpush1.bf16.msra.mxu0 %v11746_v32  ;;  %6080 = vmatpush1.bf16.msra.mxu1 %v11749_v33  ;;  %v11830_v32 = vld [vmem:[#allocation38 + $0x2e8] ss:$72 sps:$4 sm:$0xff]  }
 0xd75   : > { %5952 = vmatprep.subr.bf16.mxu0 %v11754_v34  ;;  %6081 = vmatprep.subr.bf16.mxu1 %v11757_v35  ;;  %v11833_v33 = vld [vmem:[#allocation38 + $0x300] ss:$72 sps:$4 sm:$0xff]   ;;  %v11838_v34 = vld [vmem:[#allocation38 + $0x37c] ss:$72 sps:$4 sm:$0xff]  }
 0xd76   : > { %v11841_v35 = vld [vmem:[#allocation38 + $0x394] ss:$72 sps:$4 sm:$0xff]  }
 0xd78   : > { %5953 = vmatpush1.bf16.msra.mxu0 %v11752_v36  ;;  %6082 = vmatpush1.bf16.msra.mxu1 %v11755_v37  ;;  %v11836_v36 = vld [vmem:[#allocation38 + $0x378] ss:$72 sps:$4 sm:$0xff]  }
 0xd79   : > { %5954 = vmatprep.subr.bf16.mxu0 %v11760_v38  ;;  %6083 = vmatprep.subr.bf16.mxu1 %v11763_v39  ;;  %v11839_v37 = vld [vmem:[#allocation38 + $0x390] ss:$72 sps:$4 sm:$0xff]   ;;  %v11844_v38 = vld [vmem:[#allocation38 + $0x40c] ss:$72 sps:$4 sm:$0xff]  }
 0xd7a   : > { %v11847_v39 = vld [vmem:[#allocation38 + $0x424] ss:$72 sps:$4 sm:$0xff]  }
 0xd7c   : > { %5955 = vmatpush1.bf16.msra.mxu0 %v11758_v40  ;;  %6084 = vmatpush1.bf16.msra.mxu1 %v11761_v41  ;;  %v11842_v40 = vld [vmem:[#allocation38 + $0x408] ss:$72 sps:$4 sm:$0xff]  }
 0xd7d   : > { %5956 = vmatprep.subr.bf16.mxu0 %v11766_v42  ;;  %6085 = vmatprep.subr.bf16.mxu1 %v11769_v43  ;;  %v11845_v41 = vld [vmem:[#allocation38 + $0x420] ss:$72 sps:$4 sm:$0xff]   ;;  %v11850_v42 = vld [vmem:[#allocation38 + $0x49c] ss:$72 sps:$4 sm:$0xff]  }
 0xd7e   : > { %v11853_v43 = vld [vmem:[#allocation38 + $0x4b4] ss:$72 sps:$4 sm:$0xff]  }
 0xd80   : > { %5957 = vmatpush1.bf16.msra.mxu0 %v11764_v44  ;;  %6086 = vmatpush1.bf16.msra.mxu1 %v11767_v45  ;;  %v11848_v44 = vld [vmem:[#allocation38 + $0x498] ss:$72 sps:$4 sm:$0xff]  }
 0xd81   : > { %5958 = vmatprep.subr.bf16.mxu0 %v11772_v46  ;;  %6087 = vmatprep.subr.bf16.mxu1 %v11775_v47  ;;  %v11851_v45 = vld [vmem:[#allocation38 + $0x4b0] ss:$72 sps:$4 sm:$0xff]   ;;  %v11856_v46 = vld [vmem:[#allocation38 + $0x52c] ss:$72 sps:$4 sm:$0xff]  }
 0xd82   : > { %v11859_v47 = vld [vmem:[#allocation38 + $0x544] ss:$72 sps:$4 sm:$0xff]  }
 0xd84   : > { %5959 = vmatpush1.bf16.msra.mxu0 %v11770_v48  ;;  %6088 = vmatpush1.bf16.msra.mxu1 %v11773_v49  ;;  %v11854_v48 = vld [vmem:[#allocation38 + $0x528] ss:$72 sps:$4 sm:$0xff]  }
 0xd85   : > { %5960 = vmatprep.subr.bf16.mxu0 %v11778_v50  ;;  %6089 = vmatprep.subr.bf16.mxu1 %v11781_v54  ;;  %v11857_v49 = vld [vmem:[#allocation38 + $0x540] ss:$72 sps:$4 sm:$0xff]   ;;  %v11862_v50 = vld [vmem:[#allocation38 + $0x5bc] ss:$72 sps:$4 sm:$0xff]  }
 0xd86   : > { %v11865_v54 = vld [vmem:[#allocation38 + $0x5d4] ss:$72 sps:$4 sm:$0xff]  }
 0xd88   : > { %5961 = vmatpush1.bf16.msra.mxu0 %v11776_v55  ;;  %6090 = vmatpush1.bf16.msra.mxu1 %v11779_v56  ;;  %v11860_v55 = vld [vmem:[#allocation38 + $0x5b8] ss:$72 sps:$4 sm:$0xff]  }
 0xd89   : > { %5962 = vmatprep.subr.bf16.mxu0 %v11784_v57  ;;  %6091 = vmatprep.subr.bf16.mxu1 %v11787_v58  ;;  %v11863_v56 = vld [vmem:[#allocation38 + $0x5d0] ss:$72 sps:$4 sm:$0xff]   ;;  %v11868_v57 = vld [vmem:[#allocation38 + $0x64c] ss:$72 sps:$4 sm:$0xff]  }
 0xd8a   : > { %v11871_v58 = vld [vmem:[#allocation38 + $0x664] ss:$72 sps:$4 sm:$0xff]  }
 0xd8c   : > { %5963 = vmatpush1.bf16.msra.mxu0 %v11782_v51  ;;  %6092 = vmatpush1.bf16.msra.mxu1 %v11785_v59  ;;  %v11866_v51 = vld [vmem:[#allocation38 + $0x648] ss:$72 sps:$4 sm:$0xff]  }
 0xd8d   : > { %5964 = vmatprep.subr.bf16.mxu0 %v11790_v61  ;;  %6093 = vmatprep.subr.bf16.mxu1 %v11793_v52  ;;  %v11869_v59 = vld [vmem:[#allocation38 + $0x660] ss:$72 sps:$4 sm:$0xff]   ;;  %v11874_v61 = vld [vmem:[#allocation38 + $0x6dc] ss:$72 sps:$4 sm:$0xff]  }
 0xd8e   : > { %v11877_v52 = vld [vmem:[#allocation38 + $0x6f4] ss:$72 sps:$4 sm:$0xff]  }
 0xd90   : > { %5965 = vmatpush1.bf16.msra.mxu0 %v11788_v1  ;;  %6094 = vmatpush1.bf16.msra.mxu1 %v11791_v2  ;;  %v11872_v1 = vld [vmem:[#allocation38 + $0x6d8] ss:$72 sps:$4 sm:$0xff]  }
 0xd91   : > { %5966 = vmatprep.subr.bf16.mxu0 %v11796_v3  ;;  %6095 = vmatprep.subr.bf16.mxu1 %v11799_v4  ;;  %v11875_v2 = vld [vmem:[#allocation38 + $0x6f0] ss:$72 sps:$4 sm:$0xff]   ;;  %v11880_v3 = vld [vmem:[#allocation38 + $0x76c] ss:$72 sps:$4 sm:$0xff]  }
 0xd92   : > { %v11883_v4 = vld [vmem:[#allocation38 + $0x784] ss:$72 sps:$4 sm:$0xff]  }
 0xd94   : > { %5967 = vmatpush1.bf16.msra.mxu0 %v11794_v5  ;;  %6096 = vmatpush1.bf16.msra.mxu1 %v11797_v6  ;;  %v11878_v5 = vld [vmem:[#allocation38 + $0x768] ss:$72 sps:$4 sm:$0xff]  }
 0xd95   : > { %6022 = vmatprep.subr.bf16.mxu0 %v11802_v8  ;;  %6151 = vmatprep.subr.bf16.mxu1 %v11805_v9  ;;  %v11881_v6 = vld [vmem:[#allocation38 + $0x780] ss:$72 sps:$4 sm:$0xff]   ;;  %v11886_v8 = vld [vmem:[#allocation38 + $0x7fc] ss:$72 sps:$4 sm:$0xff]  }
 0xd96   : > { %v11889_v9 = vld [vmem:[#allocation38 + $0x814] ss:$72 sps:$4 sm:$0xff]  }
 0xd97   : > { %5969 = vmatmul.mubr.bf16.vlgmr.msra.gmra.mrb[44].mxu0 %v14649_v62  ;;  %6098 = vmatmul.mubr.bf16.vlgmr.msra.gmra.mrb[40].mxu1 %v14649_v62 }
 0xd98   : > { %6023 = vmatpush1.bf16.msra.mxu0 %v11800_v10  ;;  %6054 = vmatprep.mubr.bf16.mxu0 %v14651_v63  ;;  %v11884_v10 = vld [vmem:[#allocation38 + $0x7f8] ss:$72 sps:$4 sm:$0xff]  }
 0xd99   : > { %6152 = vmatpush1.bf16.msra.mxu1 %v11803_v11  ;;  %6183 = vmatprep.mubr.bf16.mxu1 %v14651_v63  ;;  %v11887_v11 = vld [vmem:[#allocation38 + $0x810] ss:$72 sps:$4 sm:$0xff]  }
 0xd9a   : > { %6024 = vmatprep.subr.bf16.mxu0 %v11808_v12  ;;  %6153 = vmatprep.subr.bf16.mxu1 %v11811_v13  ;;  %v11892_v12 = vld [vmem:[#allocation38 + $0x88c] ss:$72 sps:$4 sm:$0xff]  }
 0xd9b   : > { %v11895_v13 = vld [vmem:[#allocation38 + $0x8a4] ss:$72 sps:$4 sm:$0xff]  }
 0xd9c   : > { %6025 = vmatpush1.bf16.msra.mxu0 %v11806_v14  ;;  %v11890_v14 = vld [vmem:[#allocation38 + $0x888] ss:$72 sps:$4 sm:$0xff]  }
 0xd9d   : > { %6154 = vmatpush1.bf16.msra.mxu1 %v11809_v15  ;;  %6026 = vmatprep.subr.bf16.mxu0 %v11814_v16  ;;  %v11893_v15 = vld [vmem:[#allocation38 + $0x8a0] ss:$72 sps:$4 sm:$0xff]   ;;  %v11898_v16 = vld [vmem:[#allocation38 + $0x2c] ss:$72 sps:$4 sm:$0xff]  }
 0xd9e   : > { %6155 = vmatprep.subr.bf16.mxu1 %v11817_v17  ;;  %v11901_v17 = vld [vmem:[#allocation38 + $0x44] ss:$72 sps:$4 sm:$0xff]  }
 0xda0   : > { %6027 = vmatpush1.bf16.msra.mxu0 %v11812_v18  ;;  %v11896_v18 = vld [vmem:[#allocation38 + $0x28] ss:$72 sps:$4 sm:$0xff]  }
 0xda1   : > { %6156 = vmatpush1.bf16.msra.mxu1 %v11815_v19  ;;  %6028 = vmatprep.subr.bf16.mxu0 %v11820_v20  ;;  %v11899_v19 = vld [vmem:[#allocation38 + $0x40] ss:$72 sps:$4 sm:$0xff]   ;;  %v11904_v20 = vld [vmem:[#allocation38 + $0xbc] ss:$72 sps:$4 sm:$0xff]  }
 0xda2   : > { %6157 = vmatprep.subr.bf16.mxu1 %v11823_v21  ;;  %v11907_v21 = vld [vmem:[#allocation38 + $0xd4] ss:$72 sps:$4 sm:$0xff]  }
 0xda4   : > { %6029 = vmatpush1.bf16.msra.mxu0 %v11818_v22  ;;  %v11902_v22 = vld [vmem:[#allocation38 + $0xb8] ss:$72 sps:$4 sm:$0xff]  }
 0xda5   : > { %6158 = vmatpush1.bf16.msra.mxu1 %v11821_v23  ;;  %6030 = vmatprep.subr.bf16.mxu0 %v11826_v24  ;;  %v11905_v23 = vld [vmem:[#allocation38 + $0xd0] ss:$72 sps:$4 sm:$0xff]   ;;  %v11910_v24 = vld [vmem:[#allocation38 + $0x14c] ss:$72 sps:$4 sm:$0xff]  }
 0xda6   : > { %6159 = vmatprep.subr.bf16.mxu1 %v11829_v25  ;;  %v11913_v25 = vld [vmem:[#allocation38 + $0x164] ss:$72 sps:$4 sm:$0xff]  }
 0xda8   : > { %6031 = vmatpush1.bf16.msra.mxu0 %v11824_v27  ;;  %v11908_v27 = vld [vmem:[#allocation38 + $0x148] ss:$72 sps:$4 sm:$0xff]  }
 0xda9   : > { %6160 = vmatpush1.bf16.msra.mxu1 %v11827_v29  ;;  %6032 = vmatprep.subr.bf16.mxu0 %v11832_v30  ;;  %v11911_v29 = vld [vmem:[#allocation38 + $0x160] ss:$72 sps:$4 sm:$0xff]   ;;  %v11916_v30 = vld [vmem:[#allocation38 + $0x1dc] ss:$72 sps:$4 sm:$0xff]  }
 0xdaa   : > { %6161 = vmatprep.subr.bf16.mxu1 %v11835_v31  ;;  %v11919_v31 = vld [vmem:[#allocation38 + $0x1f4] ss:$72 sps:$4 sm:$0xff]  }
 0xdac   : > { %6033 = vmatpush1.bf16.msra.mxu0 %v11830_v32  ;;  %v11914_v32 = vld [vmem:[#allocation38 + $0x1d8] ss:$72 sps:$4 sm:$0xff]  }
 0xdad   : > { %6162 = vmatpush1.bf16.msra.mxu1 %v11833_v33  ;;  %6034 = vmatprep.subr.bf16.mxu0 %v11838_v34  ;;  %v11917_v33 = vld [vmem:[#allocation38 + $0x1f0] ss:$72 sps:$4 sm:$0xff]   ;;  %v11922_v34 = vld [vmem:[#allocation38 + $0x26c] ss:$72 sps:$4 sm:$0xff]  }
 0xdae   : > { %6163 = vmatprep.subr.bf16.mxu1 %v11841_v35  ;;  %v11925_v35 = vld [vmem:[#allocation38 + $0x284] ss:$72 sps:$4 sm:$0xff]  }
 0xdb0   : > { %6035 = vmatpush1.bf16.msra.mxu0 %v11836_v36  ;;  %v11920_v36 = vld [vmem:[#allocation38 + $0x268] ss:$72 sps:$4 sm:$0xff]  }
 0xdb1   : > { %6164 = vmatpush1.bf16.msra.mxu1 %v11839_v37  ;;  %6036 = vmatprep.subr.bf16.mxu0 %v11844_v38  ;;  %v11923_v37 = vld [vmem:[#allocation38 + $0x280] ss:$72 sps:$4 sm:$0xff]   ;;  %v11928_v38 = vld [vmem:[#allocation38 + $0x2fc] ss:$72 sps:$4 sm:$0xff]  }
 0xdb2   : > { %6165 = vmatprep.subr.bf16.mxu1 %v11847_v39  ;;  %v11931_v39 = vld [vmem:[#allocation38 + $0x314] ss:$72 sps:$4 sm:$0xff]  }
 0xdb4   : > { %6037 = vmatpush1.bf16.msra.mxu0 %v11842_v40  ;;  %v11926_v40 = vld [vmem:[#allocation38 + $0x2f8] ss:$72 sps:$4 sm:$0xff]  }
 0xdb5   : > { %6166 = vmatpush1.bf16.msra.mxu1 %v11845_v41  ;;  %6038 = vmatprep.subr.bf16.mxu0 %v11850_v42  ;;  %v11929_v41 = vld [vmem:[#allocation38 + $0x310] ss:$72 sps:$4 sm:$0xff]   ;;  %v11934_v42 = vld [vmem:[#allocation38 + $0x38c] ss:$72 sps:$4 sm:$0xff]  }
 0xdb6   : > { %6167 = vmatprep.subr.bf16.mxu1 %v11853_v43  ;;  %v11937_v43 = vld [vmem:[#allocation38 + $0x3a4] ss:$72 sps:$4 sm:$0xff]  }
 0xdb8   : > { %6039 = vmatpush1.bf16.msra.mxu0 %v11848_v44  ;;  %v11932_v44 = vld [vmem:[#allocation38 + $0x388] ss:$72 sps:$4 sm:$0xff]  }
 0xdb9   : > { %6168 = vmatpush1.bf16.msra.mxu1 %v11851_v45  ;;  %6040 = vmatprep.subr.bf16.mxu0 %v11856_v46  ;;  %v11935_v45 = vld [vmem:[#allocation38 + $0x3a0] ss:$72 sps:$4 sm:$0xff]   ;;  %v11940_v46 = vld [vmem:[#allocation38 + $0x41c] ss:$72 sps:$4 sm:$0xff]  }
 0xdba   : > { %6169 = vmatprep.subr.bf16.mxu1 %v11859_v47  ;;  %v11943_v47 = vld [vmem:[#allocation38 + $0x434] ss:$72 sps:$4 sm:$0xff]  }
 0xdbc   : > { %6041 = vmatpush1.bf16.msra.mxu0 %v11854_v48  ;;  %v11938_v48 = vld [vmem:[#allocation38 + $0x418] ss:$72 sps:$4 sm:$0xff]  }
 0xdbd   : > { %6170 = vmatpush1.bf16.msra.mxu1 %v11857_v49  ;;  %6042 = vmatprep.subr.bf16.mxu0 %v11862_v50  ;;  %v11941_v49 = vld [vmem:[#allocation38 + $0x430] ss:$72 sps:$4 sm:$0xff]   ;;  %v11946_v50 = vld [vmem:[#allocation38 + $0x4ac] ss:$72 sps:$4 sm:$0xff]  }
 0xdbe   : > { %6171 = vmatprep.subr.bf16.mxu1 %v11865_v54  ;;  %v11949_v54 = vld [vmem:[#allocation38 + $0x4c4] ss:$72 sps:$4 sm:$0xff]  }
 0xdc0   : > { %6043 = vmatpush1.bf16.msra.mxu0 %v11860_v55  ;;  %v11944_v55 = vld [vmem:[#allocation38 + $0x4a8] ss:$72 sps:$4 sm:$0xff]  }
 0xdc1   : > { %6172 = vmatpush1.bf16.msra.mxu1 %v11863_v56  ;;  %6044 = vmatprep.subr.bf16.mxu0 %v11868_v57  ;;  %v11947_v56 = vld [vmem:[#allocation38 + $0x4c0] ss:$72 sps:$4 sm:$0xff]   ;;  %v11952_v57 = vld [vmem:[#allocation38 + $0x53c] ss:$72 sps:$4 sm:$0xff]  }
 0xdc2   : > { %6173 = vmatprep.subr.bf16.mxu1 %v11871_v58  ;;  %v11955_v58 = vld [vmem:[#allocation38 + $0x554] ss:$72 sps:$4 sm:$0xff]  }
 0xdc4   : > { %6045 = vmatpush1.bf16.msra.mxu0 %v11866_v51  ;;  %v11950_v51 = vld [vmem:[#allocation38 + $0x538] ss:$72 sps:$4 sm:$0xff]  }
 0xdc5   : > { %6174 = vmatpush1.bf16.msra.mxu1 %v11869_v59  ;;  %6046 = vmatprep.subr.bf16.mxu0 %v11874_v61  ;;  %v11953_v59 = vld [vmem:[#allocation38 + $0x550] ss:$72 sps:$4 sm:$0xff]   ;;  %v11958_v61 = vld [vmem:[#allocation38 + $0x5cc] ss:$72 sps:$4 sm:$0xff]  }
 0xdc6   : > { %6175 = vmatprep.subr.bf16.mxu1 %v11877_v52  ;;  %v11961_v52 = vld [vmem:[#allocation38 + $0x5e4] ss:$72 sps:$4 sm:$0xff]  }
 0xdc8   : > { %6047 = vmatpush1.bf16.msra.mxu0 %v11872_v1  ;;  %v11956_v1 = vld [vmem:[#allocation38 + $0x5c8] ss:$72 sps:$4 sm:$0xff]  }
 0xdc9   : > { %6176 = vmatpush1.bf16.msra.mxu1 %v11875_v2  ;;  %6048 = vmatprep.subr.bf16.mxu0 %v11880_v3  ;;  %v11959_v2 = vld [vmem:[#allocation38 + $0x5e0] ss:$72 sps:$4 sm:$0xff]   ;;  %v11964_v3 = vld [vmem:[#allocation38 + $0x65c] ss:$72 sps:$4 sm:$0xff]  }
 0xdca   : > { %6177 = vmatprep.subr.bf16.mxu1 %v11883_v4  ;;  %v11967_v4 = vld [vmem:[#allocation38 + $0x674] ss:$72 sps:$4 sm:$0xff]  }
 0xdcc   : > { %6049 = vmatpush1.bf16.msra.mxu0 %v11878_v5  ;;  %v11962_v5 = vld [vmem:[#allocation38 + $0x658] ss:$72 sps:$4 sm:$0xff]  }
 0xdcd   : > { %6178 = vmatpush1.bf16.msra.mxu1 %v11881_v6  ;;  %6050 = vmatprep.subr.bf16.mxu0 %v11886_v8  ;;  %v11965_v6 = vld [vmem:[#allocation38 + $0x670] ss:$72 sps:$4 sm:$0xff]   ;;  %v11970_v8 = vld [vmem:[#allocation38 + $0x6ec] ss:$72 sps:$4 sm:$0xff]  }
 0xdce   : > { %6179 = vmatprep.subr.bf16.mxu1 %v11889_v9  ;;  %v11973_v9 = vld [vmem:[#allocation38 + $0x704] ss:$72 sps:$4 sm:$0xff]  }
 0xdd0   : > { %6051 = vmatpush1.bf16.msra.mxu0 %v11884_v10  ;;  %v11968_v10 = vld [vmem:[#allocation38 + $0x6e8] ss:$72 sps:$4 sm:$0xff]  }
 0xdd1   : > { %6180 = vmatpush1.bf16.msra.mxu1 %v11887_v11  ;;  %6052 = vmatprep.subr.bf16.mxu0 %v11892_v12  ;;  %v11971_v11 = vld [vmem:[#allocation38 + $0x700] ss:$72 sps:$4 sm:$0xff]   ;;  %v11976_v12 = vld [vmem:[#allocation38 + $0x77c] ss:$72 sps:$4 sm:$0xff]  }
 0xdd2   : > { %6181 = vmatprep.subr.bf16.mxu1 %v11895_v13  ;;  %v11979_v13 = vld [vmem:[#allocation38 + $0x794] ss:$72 sps:$4 sm:$0xff]  }
 0xdd4   : > { %6053 = vmatpush1.bf16.msra.mxu0 %v11890_v14  ;;  %v11974_v14 = vld [vmem:[#allocation38 + $0x778] ss:$72 sps:$4 sm:$0xff]  }
 0xdd5   : > { %6182 = vmatpush1.bf16.msra.mxu1 %v11893_v15  ;;  %6108 = vmatprep.subr.bf16.mxu0 %v11898_v16  ;;  %v11977_v15 = vld [vmem:[#allocation38 + $0x790] ss:$72 sps:$4 sm:$0xff]   ;;  %v11982_v16 = vld [vmem:[#allocation38 + $0x80c] ss:$72 sps:$4 sm:$0xff]  }
 0xdd6   : > { %6237 = vmatprep.subr.bf16.mxu1 %v11901_v17  ;;  %v11985_v17 = vld [vmem:[#allocation38 + $0x824] ss:$72 sps:$4 sm:$0xff]  }
 0xdd7   : > { %6055 = vmatmul.mubr.bf16.vlgmr.msra.gmra.mrb[48].mxu0 %v14649_v62 }
 0xdd8   : > { %6184 = vmatmul.mubr.bf16.vlgmr.msra.gmra.mrb[44].mxu1 %v14649_v62  ;;  %6109 = vmatpush1.bf16.msra.mxu0 %v11896_v18  ;;  %v11980_v18 = vld [vmem:[#allocation38 + $0x808] ss:$72 sps:$4 sm:$0xff]  }
 0xdd9   : > { %6140 = vmatprep.mubr.bf16.mxu0 %v14651_v63  ;;  %6238 = vmatpush1.bf16.msra.mxu1 %v11899_v19  ;;  %v11983_v19 = vld [vmem:[#allocation38 + $0x820] ss:$72 sps:$4 sm:$0xff]  }
 0xdda   : > { %6269 = vmatprep.mubr.bf16.mxu1 %v14651_v63  ;;  %6110 = vmatprep.subr.bf16.mxu0 %v11904_v20  ;;  %v11988_v20 = vld [vmem:[#allocation38 + $0x89c] ss:$72 sps:$4 sm:$0xff]  }
 0xddb   : > { %6239 = vmatprep.subr.bf16.mxu1 %v11907_v21  ;;  %v11991_v21 = vld [vmem:[#allocation38 + $0x8b4] ss:$72 sps:$4 sm:$0xff]  }
 0xddc   : > { %6111 = vmatpush1.bf16.msra.mxu0 %v11902_v22  ;;  %v11986_v22 = vld [vmem:[#allocation38 + $0x898] ss:$72 sps:$4 sm:$0xff]  }
 0xddd   : > { %6240 = vmatpush1.bf16.msra.mxu1 %v11905_v23  ;;  %6112 = vmatprep.subr.bf16.mxu0 %v11910_v24  ;;  %v11989_v23 = vld [vmem:[#allocation38 + $0x8b0] ss:$72 sps:$4 sm:$0xff]   ;;  %v11994_v24 = vld [vmem:[#allocation38 + $0x3c] ss:$72 sps:$4 sm:$0xff]  }
 0xdde   : > { %6241 = vmatprep.subr.bf16.mxu1 %v11913_v25  ;;  %v11992_v25 = vld [vmem:[#allocation38 + $0x38] ss:$72 sps:$4 sm:$0xff]  }
 0xde0   : > { %6113 = vmatpush1.bf16.msra.mxu0 %v11908_v27  ;;  %v11997_v27 = vld [vmem:[#allocation38 + $0xcc] ss:$72 sps:$4 sm:$0xff]  }
 0xde1   : > { %6242 = vmatpush1.bf16.msra.mxu1 %v11911_v29  ;;  %6114 = vmatprep.subr.bf16.mxu0 %v11916_v30  ;;  %v11995_v29 = vld [vmem:[#allocation38 + $0xc8] ss:$72 sps:$4 sm:$0xff]   ;;  %v12000_v30 = vld [vmem:[#allocation38 + $0x15c] ss:$72 sps:$4 sm:$0xff]  }
 0xde2   : > { %6243 = vmatprep.subr.bf16.mxu1 %v11919_v31  ;;  %v11998_v31 = vld [vmem:[#allocation38 + $0x158] ss:$72 sps:$4 sm:$0xff]  }
 0xde4   : > { %6115 = vmatpush1.bf16.msra.mxu0 %v11914_v32  ;;  %v3989_v32 = vld [vmem:[#allocation46] sm:$0xff] }
 0xde5   : > { %6244 = vmatpush1.bf16.msra.mxu1 %v11917_v33  ;;  %6116 = vmatprep.subr.bf16.mxu0 %v11922_v34  ;;  %v12001_v33 = vld [vmem:[#allocation38 + $0x1e8] ss:$72 sps:$4 sm:$0xff]   ;;  %v12006_v34 = vld [vmem:[#allocation38 + $0x27c] ss:$72 sps:$4 sm:$0xff]  }
 0xde6   : > { %6245 = vmatprep.subr.bf16.mxu1 %v11925_v35  ;;  %v12007_v35 = vld [vmem:[#allocation38 + $0x308] ss:$72 sps:$4 sm:$0xff]  }
 0xde8   : > { %6117 = vmatpush1.bf16.msra.mxu0 %v11920_v36  ;;  %v12012_v36 = vld [vmem:[#allocation38 + $0x39c] ss:$72 sps:$4 sm:$0xff]  }
 0xde9   : > { %6246 = vmatpush1.bf16.msra.mxu1 %v11923_v37  ;;  %6118 = vmatprep.subr.bf16.mxu0 %v11928_v38 }
 0xdea   : > { %6247 = vmatprep.subr.bf16.mxu1 %v11931_v39 }
 0xdec   : > { %6119 = vmatpush1.bf16.msra.mxu0 %v11926_v40 }
 0xded   : > { %6248 = vmatpush1.bf16.msra.mxu1 %v11929_v41  ;;  %6120 = vmatprep.subr.bf16.mxu0 %v11934_v42 }
 0xdee   : > { %6249 = vmatprep.subr.bf16.mxu1 %v11937_v43  ;;  %v12010_v43 = vld [vmem:[#allocation38 + $0x398] ss:$72 sps:$4 sm:$0xff]  }
 0xdf0   : > { %6121 = vmatpush1.bf16.msra.mxu0 %v11932_v44 }
 0xdf1   : > { %6250 = vmatpush1.bf16.msra.mxu1 %v11935_v45  ;;  %6122 = vmatprep.subr.bf16.mxu0 %v11940_v46 }
 0xdf2   : > { %6251 = vmatprep.subr.bf16.mxu1 %v11943_v47  ;;  %v12015_v47 = vld [vmem:[#allocation38 + $0x42c] ss:$72 sps:$4 sm:$0xff]  }
 0xdf4   : > { %6123 = vmatpush1.bf16.msra.mxu0 %v11938_v48 }
 0xdf5   : > { %6252 = vmatpush1.bf16.msra.mxu1 %v11941_v49  ;;  %6124 = vmatprep.subr.bf16.mxu0 %v11946_v50  ;;  %v12013_v50 = vld [vmem:[#allocation38 + $0x428] ss:$72 sps:$4 sm:$0xff]  }
 0xdf6   : > { %6253 = vmatprep.subr.bf16.mxu1 %v11949_v54  ;;  %v12018_v54 = vld [vmem:[#allocation38 + $0x4bc] ss:$72 sps:$4 sm:$0xff]  }
 0xdf8   : > { %6125 = vmatpush1.bf16.msra.mxu0 %v11944_v55  ;;  %v12016_v55 = vld [vmem:[#allocation38 + $0x4b8] ss:$72 sps:$4 sm:$0xff]  }
 0xdf9   : > { %6254 = vmatpush1.bf16.msra.mxu1 %v11947_v56  ;;  %6126 = vmatprep.subr.bf16.mxu0 %v11952_v57  ;;  %v12021_v56 = vld [vmem:[#allocation38 + $0x54c] ss:$72 sps:$4 sm:$0xff]   ;;  %v12019_v57 = vld [vmem:[#allocation38 + $0x548] ss:$72 sps:$4 sm:$0xff]  }
 0xdfa   : > { %6255 = vmatprep.subr.bf16.mxu1 %v11955_v58  ;;  %v12024_v58 = vld [vmem:[#allocation38 + $0x5dc] ss:$72 sps:$4 sm:$0xff]  }
 0xdfc   : > { %6127 = vmatpush1.bf16.msra.mxu0 %v11950_v51  ;;  %v12022_v51 = vld [vmem:[#allocation38 + $0x5d8] ss:$72 sps:$4 sm:$0xff]  }
 0xdfd   : > { %6256 = vmatpush1.bf16.msra.mxu1 %v11953_v59  ;;  %6128 = vmatprep.subr.bf16.mxu0 %v11958_v61  ;;  %v12027_v59 = vld [vmem:[#allocation38 + $0x66c] ss:$72 sps:$4 sm:$0xff]   ;;  %v12025_v61 = vld [vmem:[#allocation38 + $0x668] ss:$72 sps:$4 sm:$0xff]  }
 0xdfe   : > { %6257 = vmatprep.subr.bf16.mxu1 %v11961_v52  ;;  %v12030_v52 = vld [vmem:[#allocation38 + $0x6fc] ss:$72 sps:$4 sm:$0xff]  }
 0xe00   : > { %6129 = vmatpush1.bf16.msra.mxu0 %v11956_v1  ;;  %v12028_v1 = vld [vmem:[#allocation38 + $0x6f8] ss:$72 sps:$4 sm:$0xff]  }
 0xe01   : > { %6258 = vmatpush1.bf16.msra.mxu1 %v11959_v2  ;;  %6130 = vmatprep.subr.bf16.mxu0 %v11964_v3  ;;  %v12033_v2 = vld [vmem:[#allocation38 + $0x78c] ss:$72 sps:$4 sm:$0xff]   ;;  %v12031_v3 = vld [vmem:[#allocation38 + $0x788] ss:$72 sps:$4 sm:$0xff]  }
 0xe02   : > { %6259 = vmatprep.subr.bf16.mxu1 %v11967_v4  ;;  %v12036_v4 = vld [vmem:[#allocation38 + $0x81c] ss:$72 sps:$4 sm:$0xff]  }
 0xe04   : > { %6131 = vmatpush1.bf16.msra.mxu0 %v11962_v5  ;;  %v12034_v5 = vld [vmem:[#allocation38 + $0x818] ss:$72 sps:$4 sm:$0xff]  }
 0xe05   : > { %6260 = vmatpush1.bf16.msra.mxu1 %v11965_v6  ;;  %6132 = vmatprep.subr.bf16.mxu0 %v11970_v8  ;;  %v12039_v6 = vld [vmem:[#allocation38 + $0x8ac] ss:$72 sps:$4 sm:$0xff]   ;;  %v12037_v8 = vld [vmem:[#allocation38 + $0x8a8] ss:$72 sps:$4 sm:$0xff]  }
 0xe06   : > { %6261 = vmatprep.subr.bf16.mxu1 %v11973_v9 }
 0xe08   : > { %6133 = vmatpush1.bf16.msra.mxu0 %v11968_v10 }
 0xe09   : > { %6262 = vmatpush1.bf16.msra.mxu1 %v11971_v11  ;;  %6134 = vmatprep.subr.bf16.mxu0 %v11976_v12 }
 0xe0a   : > { %6263 = vmatprep.subr.bf16.mxu1 %v11979_v13 }
 0xe0c   : > { %6135 = vmatpush1.bf16.msra.mxu0 %v11974_v14 }
 0xe0d   : > { %6264 = vmatpush1.bf16.msra.mxu1 %v11977_v15  ;;  %6136 = vmatprep.subr.bf16.mxu0 %v11982_v16 }
 0xe0e   : > { %6265 = vmatprep.subr.bf16.mxu1 %v11985_v17 }
 0xe10   : > { %6137 = vmatpush1.bf16.msra.mxu0 %v11980_v18 }
 0xe11   : > { %6266 = vmatpush1.bf16.msra.mxu1 %v11983_v19  ;;  %6138 = vmatprep.subr.bf16.mxu0 %v11988_v20 }
 0xe12   : > { %6267 = vmatprep.subr.bf16.mxu1 %v11991_v21  ;;  %v12040_v21 = vld [vmem:[#allocation41] ss:$8 sps:$4 sm:$0xff]  }
 0xe14   : > { %6139 = vmatpush1.bf16.msra.mxu0 %v11986_v22  ;;  %v12042_v22 = vld [vmem:[#allocation41 + $0x4] ss:$8 sps:$4 sm:$0xff]  }
 0xe15   : > { %6268 = vmatpush1.bf16.msra.mxu1 %v11989_v23  ;;  %6194 = vmatprep.subr.bf16.mxu0 %v11994_v24  ;;  %v12043_v23 = vld [vmem:[#allocation41 + $0x10] ss:$8 sps:$4 sm:$0xff]   ;;  %v12048_v24 = vld [vmem:[#allocation41 + $0x24] ss:$8 sps:$4 sm:$0xff]  }
 0xe16   : > { %10915 = vmatprep.subr.bf16.mxu1 %v13718_v60  ;;  %v12003_v60 = vld [vmem:[#allocation38 + $0x1ec] ss:$72 sps:$4 sm:$0xff]  }
 0xe17   : > { %6141 = vmatmul.mubr.bf16.vlgmr.msra.gmra.mrb[52].mxu0 %v14649_v62 }
 0xe18   : > { %6270 = vmatmul.mubr.bf16.vlgmr.msra.gmra.mrb[48].mxu1 %v14649_v62  ;;  %6195 = vmatpush1.bf16.msra.mxu0 %v11992_v25  ;;  %v12046_v25 = vld [vmem:[#allocation41 + $0x20] ss:$8 sps:$4 sm:$0xff]  }
 0xe19   : > { %6226 = vmatprep.mubr.bf16.mxu0 %v14651_v63  ;;  %10917 = vmatpush3.bf16.msra.mxu1 %v14633_v53  ;;  %v12004_v53 = vld [vmem:[#allocation38 + $0x278] ss:$72 sps:$4 sm:$0xff]   ;;  %v12009_v63 = vld [vmem:[#allocation38 + $0x30c] ss:$72 sps:$4 sm:$0xff]  }
 0xe1a   : > { %6196 = vmatprep.subr.bf16.mxu0 %v11997_v27  ;;  %10822 = vmatprep.mubr.msk.f32.mxu1 %vm13716_vm0, %v13715_v0  ;;  %v12051_v27 = vld [vmem:[#allocation41 + $0x34] ss:$8 sps:$4 sm:$0xff]  }
 0xe1b   : > { %6519 = vmatprep.subr.bf16.mxu1 %v12042_v22  ;;  %v12079_v22 = vld [vmem:[%s14999_s26 + $0x50] ss:$8 sps:$4 sm:$0xff]  }
 0xe1c   : > { %6197 = vmatpush1.bf16.msra.mxu0 %v11995_v29  ;;  %v12049_v29 = vld [vmem:[#allocation41 + $0x30] ss:$8 sps:$4 sm:$0xff]  }
 0xe1d   : > { %6198 = vmatprep.subr.bf16.mxu0 %v12000_v30  ;;  %v12054_v30 = vld [vmem:[#allocation41 + $0x44] ss:$8 sps:$4 sm:$0xff]  }
 0xe20   : > { %6199 = vmatpush1.bf16.msra.mxu0 %v11998_v31  ;;  %10823 = vmatmul.mubr.msk.f32.vlgmr.msra.gmra.mrb[52].mxu1 %vm2561_vm4, %v3989_v32  ;;  %v12052_v31 = vld [vmem:[#allocation41 + $0x40] ss:$8 sps:$4 sm:$0xff]  }
 0xe21   : > { %6200 = vmatprep.subr.bf16.mxu0 %v12003_v60  ;;  %6551 = vmatprep.mubr.bf16.mxu1 %v13717_v7 }
 0xe22   : > { %6520 = vmatpush1.bf16.msra.mxu1 %v12040_v21  ;;  %v12081_v21 = vld [vmem:[%s14999_s26 + $0x54] ss:$8 sps:$4 sm:$0xff]  }
 0xe24   : > { %6201 = vmatpush1.bf16.msra.mxu0 %v12001_v33 }
 0xe25   : > { %6202 = vmatprep.subr.bf16.mxu0 %v12006_v34  ;;  %v12055_v34 = vld [vmem:[#allocation41 + $0x50] ss:$8 sps:$4 sm:$0xff]  }
 0xe28   : > { %6203 = vmatpush1.bf16.msra.mxu0 %v12004_v53  ;;  %v12057_v53 = vld [vmem:[#allocation41 + $0x54] ss:$8 sps:$4 sm:$0xff]  }
 0xe29   : > { %6204 = vmatprep.subr.bf16.mxu0 %v12009_v63 }
 0xe2a   : > { %v5927_v37 = vpop.f32.mrb[40].mxu0  ;;  %v14676_v38 = vpop.f32.mrb[36].mxu1 }
 0xe2b   : > { %v5929_v39 = vpop.f32.mrb[41].mxu0  ;;  %v14678_v40 = vpop.f32.mrb[37].mxu1 }
 0xe2c   : > { %6205 = vmatpush1.bf16.msra.mxu0 %v12007_v35  ;;  %v5931_v41 = vpop.f32.mrb[42].mxu0  ;;  %v14680_v42 = vpop.f32.mrb[38].mxu1 }
 0xe2d   : > { %v10881_v7 = vpack.c.bf16 %v5931_v41, %v5927_v37  ;;  %v10889_v44 = vpack.c.bf16 %v14680_v42, %v14676_v38  ;;  %v5933_v45 = vpop.f32.mrb[43].mxu0  ;;  %v6019_v46 = vpop.f32.mrb[39].mxu1  ;;  %6206 = vmatprep.subr.bf16.mxu0 %v12012_v36  ;;  %v12058_v42 = vld [vmem:[#allocation41 + $0x60] ss:$8 sps:$4 sm:$0xff]  }
 0xe2e   : > { %v10879_v48 = vpack.c.bf16 %v5933_v45, %v5929_v39  ;;  %v10887_v49 = vpack.c.bf16 %v6019_v46, %v14678_v40  ;;  %v12063_v45 = vld [vmem:[#allocation41 + $0x74] ss:$8 sps:$4 sm:$0xff]   ;;  %v3988_v46 = vld [vmem:[#allocation44 + $0x8] sm:$0xff] }
 0xe30   : > { %6207 = vmatpush1.bf16.msra.mxu0 %v12010_v43  ;;  %v12060_v43 = vld [vmem:[#allocation41 + $0x64] ss:$8 sps:$4 sm:$0xff]  }
 0xe31   : > { %6208 = vmatprep.subr.bf16.mxu0 %v12015_v47 }
 0xe34   : > { %6209 = vmatpush1.bf16.msra.mxu0 %v12013_v50 }
 0xe35   : > { %6210 = vmatprep.subr.bf16.mxu0 %v12018_v54 }
 0xe38   : > { %6211 = vmatpush1.bf16.msra.mxu0 %v12016_v55 }
 0xe39   : > { %6212 = vmatprep.subr.bf16.mxu0 %v12021_v56 }
 0xe3c   : > { %6213 = vmatpush1.bf16.msra.mxu0 %v12019_v57 }
 0xe3d   : > { %6214 = vmatprep.subr.bf16.mxu0 %v12024_v58 }
 0xe40   : > { %6215 = vmatpush1.bf16.msra.mxu0 %v12022_v51 }
 0xe41   : > { %6216 = vmatprep.subr.bf16.mxu0 %v12027_v59 }
 0xe44   : > { %6217 = vmatpush1.bf16.msra.mxu0 %v12025_v61 }
 0xe45   : > { %6218 = vmatprep.subr.bf16.mxu0 %v12030_v52 }
 0xe48   : > { %6219 = vmatpush1.bf16.msra.mxu0 %v12028_v1 }
 0xe49   : > { %6220 = vmatprep.subr.bf16.mxu0 %v12033_v2 }
 0xe4c   : > { %6221 = vmatpush1.bf16.msra.mxu0 %v12031_v3 }
 0xe4d   : > { %6222 = vmatprep.subr.bf16.mxu0 %v12036_v4 }
 0xe50   : > { %6223 = vmatpush1.bf16.msra.mxu0 %v12034_v5 }
 0xe51   : > { %6224 = vmatprep.subr.bf16.mxu0 %v12039_v6 }
 0xe54   : > { %6225 = vmatpush1.bf16.msra.mxu0 %v12037_v8 }
 0xe55   : > { %10880 = vmatprep.subr.bf16.mxu0 %v10879_v48 }
 0xe57   : > { %6227 = vmatmul.mubr.bf16.vlgmr.msra.gmra.mrb[56].mxu0 %v14649_v62  ;;  %v12045_v62 = vld [vmem:[#allocation41 + $0x14] ss:$8 sps:$4 sm:$0xff]  }
 0xe58   : > { %10882 = vmatpush1.bf16.msra.mxu0 %v10881_v7  ;;  %6521 = vmatprep.subr.bf16.mxu1 %v12045_v62  ;;  %v12084_v62 = vld [vmem:[%s14999_s26 + $0x64] ss:$8 sps:$4 sm:$0xff]  }
 0xe59   : > { %6522 = vmatpush1.bf16.msra.mxu1 %v12043_v23  ;;  %10287 = vmatprep.mubr.msk.f32.mxu0 %vm2561_vm4, %v3988_v46  ;;  %v12082_v23 = vld [vmem:[%s14999_s26 + $0x60] ss:$8 sps:$4 sm:$0xff]  }
 0xe5a   : > { %6523 = vmatprep.subr.bf16.mxu1 %v12048_v24  ;;  %v12087_v24 = vld [vmem:[%s14999_s26 + $0x74] ss:$8 sps:$4 sm:$0xff]   ;;  %v12123_v46 = vld [vmem:[#allocation49 + $0x34] ss:$8 sps:$4 sm:$0xff]  }
 0xe5d   : > { %6524 = vmatpush1.bf16.msra.mxu1 %v12046_v25  ;;  %v12085_v25 = vld [vmem:[%s14999_s26 + $0x70] ss:$8 sps:$4 sm:$0xff]  }
 0xe5e   : > { %6525 = vmatprep.subr.bf16.mxu1 %v12051_v27  ;;  %v12090_v27 = vld [vmem:[%s14999_s26 + $0x84] ss:$8 sps:$4 sm:$0xff]  }
 0xe61   : > { %6526 = vmatpush1.bf16.msra.mxu1 %v12049_v29  ;;  %v12088_v29 = vld [vmem:[%s14999_s26 + $0x80] ss:$8 sps:$4 sm:$0xff]  }
 0xe62   : > { %6527 = vmatprep.subr.bf16.mxu1 %v12054_v30  ;;  %v12093_v30 = vld [vmem:[%s14999_s26 + $0x94] ss:$8 sps:$4 sm:$0xff]  }
 0xe65   : > { %6528 = vmatpush1.bf16.msra.mxu1 %v12052_v31  ;;  %v12091_v31 = vld [vmem:[%s14999_s26 + $0x90] ss:$8 sps:$4 sm:$0xff]  }
 0xe66   : > { %6529 = vmatprep.subr.bf16.mxu1 %v12057_v53  ;;  %v12102_v53 = vld [vmem:[%s14999_s26 + $0xc4] ss:$8 sps:$4 sm:$0xff]  }
 0xe69   : > { %6530 = vmatpush1.bf16.msra.mxu1 %v12055_v34  ;;  %v12097_v34 = vld [vmem:[%s14999_s26 + $0xb0] ss:$8 sps:$4 sm:$0xff]  }
 0xe6a   : > { %v5970_v9 = vpop.f32.mrb[44].mxu0  ;;  %v6099_v10 = vpop.f32.mrb[40].mxu1  ;;  %6531 = vmatprep.subr.bf16.mxu1 %v12060_v43  ;;  %v12117_v43 = vld [vmem:[#allocation49 + $0x14] ss:$8 sps:$4 sm:$0xff]  }
 0xe6b   : > { %v5972_v11 = vpop.f32.mrb[45].mxu0  ;;  %v6101_v12 = vpop.f32.mrb[41].mxu1 }
 0xe6c   : > { %v5974_v13 = vpop.f32.mrb[46].mxu0  ;;  %v6103_v14 = vpop.f32.mrb[42].mxu1 }
 0xe6d   : > { %v10885_v15 = vpack.c.bf16 %v5974_v13, %v5970_v9  ;;  %v10897_v16 = vpack.c.bf16 %v6103_v14, %v6099_v10  ;;  %v5976_v17 = vpop.f32.mrb[47].mxu0  ;;  %v6105_v18 = vpop.f32.mrb[43].mxu1  ;;  %6532 = vmatpush1.bf16.msra.mxu1 %v12058_v42  ;;  %v12066_v10 = vld [vmem:[%s14999_s26 + $0x4] ss:$8 sps:$4 sm:$0xff]   ;;  %v12069_v13 = vld [vmem:[%s14999_s26 + $0x14] ss:$8 sps:$4 sm:$0xff]  }
 0xe6e   : > { %v10883_v19 = vpack.c.bf16 %v5976_v17, %v5972_v11  ;;  %v10895_v20 = vpack.c.bf16 %v6105_v18, %v6101_v12  ;;  %6533 = vmatprep.subr.bf16.mxu1 %v12063_v45  ;;  %v3987_v11 = vld [vmem:[#allocation44] sm:$0xff]  ;;  %v12064_v12 = vld [vmem:[%s14999_s26] ss:$8 sps:$4 sm:$0xff]  }
 0xe6f   : > { %v12067_v14 = vld [vmem:[%s14999_s26 + $0x10] ss:$8 sps:$4 sm:$0xff]   ;;  %v12075_v17 = vld [vmem:[%s14999_s26 + $0x34] ss:$8 sps:$4 sm:$0xff]  }
 0xe70   : > { %10884 = vmatprep.subr.bf16.mxu0 %v10883_v19  ;;  %v12073_v18 = vld [vmem:[%s14999_s26 + $0x30] ss:$8 sps:$4 sm:$0xff]   ;;  %v12078_v19 = vld [vmem:[%s14999_s26 + $0x44] ss:$8 sps:$4 sm:$0xff]  }
 0xe71   : > { %10886 = vmatpush1.bf16.msra.mxu0 %v10885_v15  ;;  %v12072_v15 = vld [vmem:[%s14999_s26 + $0x24] ss:$8 sps:$4 sm:$0xff]   ;;  %v12114_v42 = vld [vmem:[#allocation49 + $0x4] ss:$8 sps:$4 sm:$0xff]  }
 0xe72   : > { %10888 = vmatprep.subr.bf16.mxu0 %v10887_v49  ;;  %v12118_v45 = vld [vmem:[#allocation49 + $0x20] ss:$8 sps:$4 sm:$0xff]  }
 0xe75   : > { %10890 = vmatpush1.bf16.msra.mxu0 %v10889_v44  ;;  %v12061_v44 = vld [vmem:[#allocation41 + $0x70] ss:$8 sps:$4 sm:$0xff]  }
 0xe76   : > { %6534 = vmatpush1.bf16.msra.mxu1 %v12061_v44  ;;  %v12120_v44 = vld [vmem:[#allocation49 + $0x24] ss:$8 sps:$4 sm:$0xff]  }
 0xe77   : > { %7277 = vmatprep.subr.bf16.mxu1 %v12114_v42  ;;  %v12193_v42 = vld [vmem:[#allocation52 + $0x3f8] ss:$72 sps:$4 sm:$0xff]  }
 0xeaa   : > { %v6056_v60 = vpop.f32.mrb[48].mxu0 }
 0xeab   : > { %v6185_v32 = vpop.f32.mrb[44].mxu1  ;;  %v6058_v33 = vpop.f32.mrb[49].mxu0 }
 0xeac   : > { %v6187_v63 = vpop.f32.mrb[45].mxu1  ;;  %v6060_v35 = vpop.f32.mrb[50].mxu0 }
 0xead   : > { %v10893_v36 = vpack.c.bf16 %v6060_v35, %v6056_v60  ;;  %v6189_v37 = vpop.f32.mrb[46].mxu1  ;;  %v6062_v38 = vpop.f32.mrb[51].mxu0  ;;  %v12096_v60 = vld [vmem:[%s14999_s26 + $0xa4] ss:$8 sps:$4 sm:$0xff]   ;;  %v12105_v35 = vld [vmem:[%s14999_s26 + $0xd4] ss:$8 sps:$4 sm:$0xff]  }
 0xeae   : > { %v10905_v39 = vpack.c.bf16 %v6189_v37, %v6185_v32  ;;  %v10891_v40 = vpack.c.bf16 %v6062_v38, %v6058_v33  ;;  %v6191_v41 = vpop.f32.mrb[47].mxu1  ;;  %v12094_v32 = vld [vmem:[%s14999_s26 + $0xa0] ss:$8 sps:$4 sm:$0xff]   ;;  %v12099_v33 = vld [vmem:[%s14999_s26 + $0xb4] ss:$8 sps:$4 sm:$0xff]  }
 0xeaf   : > { %v10903_v7 = vpack.c.bf16 %v6191_v41, %v6187_v63  ;;  %v12100_v63 = vld [vmem:[%s14999_s26 + $0xc0] ss:$8 sps:$4 sm:$0xff]   ;;  %v12108_v37 = vld [vmem:[%s14999_s26 + $0xe4] ss:$8 sps:$4 sm:$0xff]  }
 0xeb0   : > { %10892 = vmatprep.subr.bf16.mxu0 %v10891_v40  ;;  %v12106_v38 = vld [vmem:[%s14999_s26 + $0xe0] ss:$8 sps:$4 sm:$0xff]   ;;  %v12111_v40 = vld [vmem:[%s14999_s26 + $0xf4] ss:$8 sps:$4 sm:$0xff]  }
 0xeb1   : > { %10894 = vmatpush1.bf16.msra.mxu0 %v10893_v36  ;;  %v12103_v36 = vld [vmem:[%s14999_s26 + $0xd0] ss:$8 sps:$4 sm:$0xff]  }
 0xeb2   : > { %10896 = vmatprep.subr.bf16.mxu0 %v10895_v20  ;;  %v12076_v20 = vld [vmem:[%s14999_s26 + $0x40] ss:$8 sps:$4 sm:$0xff]   ;;  %v12112_v41 = vld [vmem:[#allocation49] ss:$8 sps:$4 sm:$0xff]  }
 0xeb5   : > { %10898 = vmatpush1.bf16.msra.mxu0 %v10897_v16  ;;  %v12070_v16 = vld [vmem:[%s14999_s26 + $0x20] ss:$8 sps:$4 sm:$0xff]  }
 0xeea   : > { %v6142_v47 = vpop.f32.mrb[52].mxu0 }
 0xeeb   : > { %v6271_v48 = vpop.f32.mrb[48].mxu1  ;;  %v6144_v49 = vpop.f32.mrb[53].mxu0 }
 0xeec   : > { %v6273_v50 = vpop.f32.mrb[49].mxu1  ;;  %v6146_v54 = vpop.f32.mrb[54].mxu0 }
 0xeed   : > { %v10901_v55 = vpack.c.bf16 %v6146_v54, %v6142_v47  ;;  %v6275_v56 = vpop.f32.mrb[50].mxu1  ;;  %v6148_v57 = vpop.f32.mrb[55].mxu0  ;;  %v12121_v47 = vld [vmem:[#allocation49 + $0x30] ss:$8 sps:$4 sm:$0xff]  }
 0xeee   : > { %v10913_v58 = vpack.c.bf16 %v6275_v56, %v6271_v48  ;;  %v10899_v51 = vpack.c.bf16 %v6148_v57, %v6144_v49  ;;  %v6277_v59 = vpop.f32.mrb[51].mxu1  ;;  %v12126_v48 = vld [vmem:[#allocation49 + $0x44] ss:$8 sps:$4 sm:$0xff]   ;;  %v12124_v49 = vld [vmem:[#allocation49 + $0x40] ss:$8 sps:$4 sm:$0xff]  }
 0xeef   : > { %v10911_v61 = vpack.c.bf16 %v6277_v59, %v6273_v50  ;;  %v12129_v50 = vld [vmem:[#allocation49 + $0x54] ss:$8 sps:$4 sm:$0xff]   ;;  %v12127_v54 = vld [vmem:[#allocation49 + $0x50] ss:$8 sps:$4 sm:$0xff]   ;;  %v12130_v56 = vld [vmem:[#allocation49 + $0x60] ss:$8 sps:$4 sm:$0xff]  }
 0xef0   : > { %10900 = vmatprep.subr.bf16.mxu0 %v10899_v51  ;;  %v12135_v57 = vld [vmem:[#allocation49 + $0x74] ss:$8 sps:$4 sm:$0xff]   ;;  %v12138_v51 = vld [vmem:[#allocation49 + $0x84] ss:$8 sps:$4 sm:$0xff]   ;;  %v12136_v59 = vld [vmem:[#allocation49 + $0x80] ss:$8 sps:$4 sm:$0xff]  }
 0xef1   : > { %10902 = vmatpush1.bf16.msra.mxu0 %v10901_v55  ;;  %v12132_v55 = vld [vmem:[#allocation49 + $0x64] ss:$8 sps:$4 sm:$0xff]  }
 0xef2   : > { %10904 = vmatprep.subr.bf16.mxu0 %v10903_v7  ;;  %v12115_v7 = vld [vmem:[#allocation49 + $0x10] ss:$8 sps:$4 sm:$0xff]  }
 0xef3   : > { %v6434_v52 = vpop.f32.mrb[52].mxu1 }
 0xef4   : > { %v6438_v1 = vpack.c.bf16 %v6434_v52, %v6434_v52  ;;  %v10824_v2 = vpop.f32.mrb[53].mxu1  ;;  %v12139_v52 = vld [vmem:[#allocation49 + $0x90] ss:$8 sps:$4 sm:$0xff]  }
 0xef5   : > { %10906 = vmatpush1.bf16.msra.mxu0 %v10905_v39  ;;  %v12109_v39 = vld [vmem:[%s14999_s26 + $0xf0] ss:$8 sps:$4 sm:$0xff]  }
 0xef6   : > { %6552 = vmatmul.mubr.bf16.vlgmr.msra.gmra.mrb[56].mxu1 %v6438_v1 }
 0xef7   : > { %7278 = vmatpush1.bf16.msra.mxu1 %v12112_v41  ;;  %v12195_v41 = vld [vmem:[#allocation52 + $0x3fc] ss:$72 sps:$4 sm:$0xff]  }
 0xef8   : > { %7279 = vmatprep.subr.bf16.mxu1 %v12117_v43  ;;  %v12201_v43 = vld [vmem:[#allocation52 + $0x48c] ss:$72 sps:$4 sm:$0xff]  }
 0xefb   : > { %7280 = vmatpush1.bf16.msra.mxu1 %v12115_v7  ;;  %v12199_v7 = vld [vmem:[#allocation52 + $0x488] ss:$72 sps:$4 sm:$0xff]  }
 0xefc   : > { %7281 = vmatprep.subr.bf16.mxu1 %v12120_v44  ;;  %v12207_v44 = vld [vmem:[#allocation52 + $0x51c] ss:$72 sps:$4 sm:$0xff]  }
 0xeff   : > { %7282 = vmatpush1.bf16.msra.mxu1 %v12118_v45  ;;  %v12205_v45 = vld [vmem:[#allocation52 + $0x518] ss:$72 sps:$4 sm:$0xff]  }
 0xf00   : > { %7283 = vmatprep.subr.bf16.mxu1 %v12123_v46  ;;  %v12213_v46 = vld [vmem:[#allocation52 + $0x5ac] ss:$72 sps:$4 sm:$0xff]  }
 0xf03   : > { %7284 = vmatpush1.bf16.msra.mxu1 %v12121_v47  ;;  %v12211_v47 = vld [vmem:[#allocation52 + $0x5a8] ss:$72 sps:$4 sm:$0xff]  }
 0xf04   : > { %7285 = vmatprep.subr.bf16.mxu1 %v12126_v48  ;;  %v12219_v48 = vld [vmem:[#allocation52 + $0x63c] ss:$72 sps:$4 sm:$0xff]  }
 0xf07   : > { %7286 = vmatpush1.bf16.msra.mxu1 %v12124_v49  ;;  %v12217_v49 = vld [vmem:[#allocation52 + $0x638] ss:$72 sps:$4 sm:$0xff]  }
 0xf08   : > { %7287 = vmatprep.subr.bf16.mxu1 %v12129_v50  ;;  %v12225_v50 = vld [vmem:[#allocation52 + $0x6cc] ss:$72 sps:$4 sm:$0xff]  }
 0xf0b   : > { %7288 = vmatpush1.bf16.msra.mxu1 %v12127_v54  ;;  %v12223_v54 = vld [vmem:[#allocation52 + $0x6c8] ss:$72 sps:$4 sm:$0xff]  }
 0xf0c   : > { %7289 = vmatprep.subr.bf16.mxu1 %v12132_v55  ;;  %v12231_v55 = vld [vmem:[#allocation52 + $0x75c] ss:$72 sps:$4 sm:$0xff]  }
 0xf0f   : > { %7290 = vmatpush1.bf16.msra.mxu1 %v12130_v56  ;;  %v12229_v56 = vld [vmem:[#allocation52 + $0x758] ss:$72 sps:$4 sm:$0xff]  }
 0xf10   : > { %7291 = vmatprep.subr.bf16.mxu1 %v12135_v57  ;;  %v6609_v57 = vld [vmem:[#allocation47] sm:$0x3] }
 0xf2a   : > { %v6228_v3 = vpop.f32.mrb[56].mxu0 }
 0xf2b   : > { %v6230_v4 = vpop.f32.mrb[57].mxu0 }
 0xf2c   : > { %v6232_v5 = vpop.f32.mrb[58].mxu0 }
 0xf2d   : > { %v10909_v6 = vpack.c.bf16 %v6232_v5, %v6228_v3  ;;  %v6234_v8 = vpop.f32.mrb[59].mxu0  ;;  %v3969_v5 = vld [vmem:[#allocation40] sm:$0x3] }
 0xf2e   : > { %v10907_v9 = vpack.c.bf16 %v6234_v8, %v6230_v4  ;;  %v3986_v8 = vld [vmem:[#allocation43] sm:$0x3] }
 0xf30   : > { %10908 = vmatprep.subr.bf16.mxu0 %v10907_v9  ;;  %v6288_v9 = vrot.slane %v3969_v5, %v14638_v28 }
 0xf31   : > { %10910 = vmatpush1.bf16.msra.mxu0 %v10909_v6  ;;  %v6284_v6 = vrot.slane %v3969_v5, %v14636_v26 }
 0xf32   : > { %10912 = vmatprep.subr.bf16.mxu0 %v10911_v61  ;;  %v12141_v61 = vld [vmem:[#allocation49 + $0x94] ss:$8 sps:$4 sm:$0xff]  }
 0xf35   : > { %10914 = vmatpush1.bf16.msra.mxu0 %v10913_v58  ;;  %v12133_v58 = vld [vmem:[#allocation49 + $0x70] ss:$8 sps:$4 sm:$0xff]  }
 0xf36   : > { %7098 = vmatprep.subr.bf16.mxu0 %v12066_v10  ;;  %7292 = vmatpush1.bf16.msra.mxu1 %v12133_v58  ;;  %v6931_v58 = vrot.slane %v6609_v57, %v14636_v26 }
 0xf37   : > { %7293 = vmatprep.subr.bf16.mxu1 %v12138_v51  ;;  %v6935_v51 = vrot.slane %v6609_v57, %v14638_v28 }
 0xf38   : > { %6359 = vmatmul.mubr.f32.vlgmr.msra.gmra.mrb[60].mxu0 %v3987_v11 }
 0xf39   : > { %7099 = vmatpush1.bf16.msra.mxu0 %v12064_v12  ;;  %v6566_v12 = vrot.slane %v3986_v8, %v14636_v26 }
 0xf3a   : > { %7100 = vmatprep.subr.bf16.mxu0 %v12069_v13  ;;  %7294 = vmatpush1.bf16.msra.mxu1 %v12136_v59 }
 0xf3b   : > { %7295 = vmatprep.subr.bf16.mxu1 %v12141_v61 }
 0xf3d   : > { %7101 = vmatpush1.bf16.msra.mxu0 %v12067_v14 }
 0xf3e   : > { %7102 = vmatprep.subr.bf16.mxu0 %v12072_v15  ;;  %7296 = vmatpush1.bf16.msra.mxu1 %v12139_v52  ;;  %v6570_v15 = vrot.slane %v3986_v8, %v14638_v28  ;;  %v12148_v8 = vld [vmem:[#allocation52] ss:$72 sps:$4 sm:$0xff]  }
 0xf41   : > { %7103 = vmatpush1.bf16.msra.mxu0 %v12070_v16 }
 0xf42   : > { %7104 = vmatprep.subr.bf16.mxu0 %v12075_v17 }
 0xf45   : > { %7105 = vmatpush1.bf16.msra.mxu0 %v12073_v18 }
 0xf46   : > { %7106 = vmatprep.subr.bf16.mxu0 %v12078_v19 }
 0xf49   : > { %7107 = vmatpush1.bf16.msra.mxu0 %v12076_v20 }
 0xf4a   : > { %7108 = vmatprep.subr.bf16.mxu0 %v12081_v21 }
 0xf4d   : > { %7109 = vmatpush1.bf16.msra.mxu0 %v12079_v22 }
 0xf4e   : > { %7110 = vmatprep.subr.bf16.mxu0 %v12084_v62 }
 0xf51   : > { %7111 = vmatpush1.bf16.msra.mxu0 %v12082_v23  ;;  %v12144_v23 = vld [vmem:[#allocation49 + $0xa4] ss:$8 sps:$4 sm:$0xff]  }
 0xf52   : > { %7112 = vmatprep.subr.bf16.mxu0 %v12087_v24  ;;  %v12142_v24 = vld [vmem:[#allocation49 + $0xa0] ss:$8 sps:$4 sm:$0xff]   ;;  %7297 = vmatprep.subr.bf16.mxu1 %v12144_v23 }
 0xf53   : > { %7298 = vmatpush1.bf16.msra.mxu1 %v12142_v24  ;;  %v12192_v23 = vld [vmem:[#allocation52 + $0x3f4] ss:$72 sps:$4 sm:$0xff]   ;;  %v12190_v24 = vld [vmem:[#allocation52 + $0x3f0] ss:$72 sps:$4 sm:$0xff]  }
 0xf55   : > { %7113 = vmatpush1.bf16.msra.mxu0 %v12085_v25  ;;  %v12147_v25 = vld [vmem:[#allocation49 + $0xb4] ss:$8 sps:$4 sm:$0xff]  }
 0xf56   : > { %7114 = vmatprep.subr.bf16.mxu0 %v12090_v27  ;;  %v12145_v27 = vld [vmem:[#allocation49 + $0xb0] ss:$8 sps:$4 sm:$0xff]   ;;  %7299 = vmatprep.subr.bf16.mxu1 %v12147_v25 }
 0xf57   : > { %7300 = vmatpush1.bf16.msra.mxu1 %v12145_v27  ;;  %v12198_v25 = vld [vmem:[#allocation52 + $0x484] ss:$72 sps:$4 sm:$0xff]   ;;  %v12196_v27 = vld [vmem:[#allocation52 + $0x480] ss:$72 sps:$4 sm:$0xff]  }
 0xf59   : > { %7115 = vmatpush1.bf16.msra.mxu0 %v12088_v29  ;;  %v12150_v29 = vld [vmem:[#allocation52 + $0x4] ss:$72 sps:$4 sm:$0xff]  }
 0xf5a   : > { %7116 = vmatprep.subr.bf16.mxu0 %v12093_v30  ;;  %v12151_v30 = vld [vmem:[#allocation52 + $0x8] ss:$72 sps:$4 sm:$0xff]   ;;  %8764 = vmatprep.subr.bf16.mxu1 %v12150_v29  ;;  %v12204_v29 = vld [vmem:[#allocation52 + $0x514] ss:$72 sps:$4 sm:$0xff]  }
 0xf5d   : > { %7117 = vmatpush1.bf16.msra.mxu0 %v12091_v31  ;;  %v12153_v31 = vld [vmem:[#allocation52 + $0xc] ss:$72 sps:$4 sm:$0xff]  }
 0xf5e   : > { %7118 = vmatprep.subr.bf16.mxu0 %v12096_v60  ;;  %v12159_v60 = vld [vmem:[#allocation52 + $0x9c] ss:$72 sps:$4 sm:$0xff]  }
 0xf61   : > { %7119 = vmatpush1.bf16.msra.mxu0 %v12094_v32  ;;  %v12157_v32 = vld [vmem:[#allocation52 + $0x98] ss:$72 sps:$4 sm:$0xff]  }
 0xf62   : > { %7120 = vmatprep.subr.bf16.mxu0 %v12099_v33  ;;  %v12165_v33 = vld [vmem:[#allocation52 + $0x12c] ss:$72 sps:$4 sm:$0xff]  }
 0xf65   : > { %7121 = vmatpush1.bf16.msra.mxu0 %v12097_v34  ;;  %v12163_v34 = vld [vmem:[#allocation52 + $0x128] ss:$72 sps:$4 sm:$0xff]  }
 0xf66   : > { %7122 = vmatprep.subr.bf16.mxu0 %v12102_v53  ;;  %v12171_v53 = vld [vmem:[#allocation52 + $0x1bc] ss:$72 sps:$4 sm:$0xff]  }
 0xf69   : > { %7123 = vmatpush1.bf16.msra.mxu0 %v12100_v63  ;;  %v12169_v63 = vld [vmem:[#allocation52 + $0x1b8] ss:$72 sps:$4 sm:$0xff]  }
 0xf6a   : > { %7124 = vmatprep.subr.bf16.mxu0 %v12105_v35  ;;  %v12177_v35 = vld [vmem:[#allocation52 + $0x24c] ss:$72 sps:$4 sm:$0xff]  }
 0xf6d   : > { %7125 = vmatpush1.bf16.msra.mxu0 %v12103_v36  ;;  %v12175_v36 = vld [vmem:[#allocation52 + $0x248] ss:$72 sps:$4 sm:$0xff]  }
 0xf6e   : > { %7126 = vmatprep.subr.bf16.mxu0 %v12108_v37  ;;  %v12183_v37 = vld [vmem:[#allocation52 + $0x2dc] ss:$72 sps:$4 sm:$0xff]  }
 0xf71   : > { %7127 = vmatpush1.bf16.msra.mxu0 %v12106_v38  ;;  %v12181_v38 = vld [vmem:[#allocation52 + $0x2d8] ss:$72 sps:$4 sm:$0xff]  }
 0xf72   : > { %7128 = vmatprep.subr.bf16.mxu0 %v12111_v40  ;;  %v12187_v40 = vld [vmem:[#allocation52 + $0x368] ss:$72 sps:$4 sm:$0xff]  }
 0xf75   : > { %7129 = vmatpush1.bf16.msra.mxu0 %v12109_v39  ;;  %v12189_v39 = vld [vmem:[#allocation52 + $0x36c] ss:$72 sps:$4 sm:$0xff]  }
 0xf76   : > { %8805 = vmatprep.subr.bf16.mxu0 %v12153_v31  ;;  %v12210_v31 = vld [vmem:[#allocation52 + $0x5a4] ss:$72 sps:$4 sm:$0xff]  }
 0xfc9   : > { %v6553_v1 = vpop.f32.mrb[56].mxu1 }
 0xfca   : > { %v6555_v2 = vpop.f32.mrb[57].mxu1 }
 0xfcb   : > { %v6557_v3 = vpop.f32.mrb[58].mxu1 }
 0xfcc   : > { %v6558_v4 = vpop.f32.mrb[59].mxu1 }
0x100b   : > { %v6360_v10 = vpop.f32.mrb[60].mxu0 }
0x100c   : > { %v6361_v11 = vadd.f32 %v6360_v10, %v6284_v6  ;;  %v6362_v13 = vpop.f32.mrb[61].mxu0  ;;  %v12156_v10 = vld [vmem:[#allocation52 + $0x94] ss:$72 sps:$4 sm:$0xff]  }
0x100d   : > { %v6363_v14 = vadd.f32 %v6362_v13, %v6288_v9  ;;  %v12160_v13 = vld [vmem:[#allocation52 + $0x120] ss:$72 sps:$4 sm:$0xff]  }
0x100e   : > { %v6560_v16 = vadd.f32 %v6553_v1, %v6361_v11  ;;  %v12154_v11 = vld [vmem:[#allocation52 + $0x90] ss:$72 sps:$4 sm:$0xff]  }
0x100f   : > { %v6561_v17 = vadd.f32 %v6555_v2, %v6363_v14  ;;  %v12168_v14 = vld [vmem:[#allocation52 + $0x1b4] ss:$72 sps:$4 sm:$0xff]  }
0x1010   : > { %v6573_v18 = vadd.f32 %v6566_v12, %v6560_v16  ;;  %v12162_v12 = vld [vmem:[#allocation52 + $0x124] ss:$72 sps:$4 sm:$0xff]  }
0x1011   : > { %v6574_v19 = vadd.f32 %v6570_v15, %v6561_v17  ;;  %v12166_v15 = vld [vmem:[#allocation52 + $0x1b0] ss:$72 sps:$4 sm:$0xff]   ;;  %v12174_v16 = vld [vmem:[#allocation52 + $0x244] ss:$72 sps:$4 sm:$0xff]   ;;  %v12172_v17 = vld [vmem:[#allocation52 + $0x240] ss:$72 sps:$4 sm:$0xff]  }
0x1012   : > { %v14723_v20 = vmax.f32 %v6573_v18, 0.0  ;;  %v12180_v18 = vld [vmem:[#allocation52 + $0x2d4] ss:$72 sps:$4 sm:$0xff]  }
0x1013   : > { %v14725_v21 = vmax.f32 %v6574_v19, 0.0  ;;  %v12178_v19 = vld [vmem:[#allocation52 + $0x2d0] ss:$72 sps:$4 sm:$0xff]  }
0x1014   : > { %v6925_v62 = vpack.c.bf16 %v14723_v20, %v14723_v20 }
0x1015   : > { %v6926_v22 = vpack.c.bf16 %v14725_v21, %v14725_v21 }
0x1017   : > { %7130 = vmatprep.mubr.bf16.mxu0 %v6926_v22  ;;  %v12186_v22 = vld [vmem:[#allocation52 + $0x364] ss:$72 sps:$4 sm:$0xff]  }
0x1018   : > { %7131 = vmatmul.mubr.bf16.vlgmr.msra.gmra.mrb[64].mxu0 %v6925_v62  ;;  %v12184_v62 = vld [vmem:[#allocation52 + $0x360] ss:$72 sps:$4 sm:$0xff]  }
0x1019   : > { %8806 = vmatpush1.bf16.msra.mxu0 %v12151_v30  ;;  %v12202_v30 = vld [vmem:[#allocation52 + $0x510] ss:$72 sps:$4 sm:$0xff]  }
0x101a   : > { %8807 = vmatprep.subr.bf16.mxu0 %v12159_v60  ;;  %v12208_v60 = vld [vmem:[#allocation52 + $0x5a0] ss:$72 sps:$4 sm:$0xff]  }
0x101d   : > { %8808 = vmatpush1.bf16.msra.mxu0 %v12157_v32  ;;  %v12216_v32 = vld [vmem:[#allocation52 + $0x634] ss:$72 sps:$4 sm:$0xff]  }
0x101e   : > { %8809 = vmatprep.subr.bf16.mxu0 %v12165_v33  ;;  %v12214_v33 = vld [vmem:[#allocation52 + $0x630] ss:$72 sps:$4 sm:$0xff]  }
0x1021   : > { %8810 = vmatpush1.bf16.msra.mxu0 %v12163_v34  ;;  %v12222_v34 = vld [vmem:[#allocation52 + $0x6c4] ss:$72 sps:$4 sm:$0xff]  }
0x1022   : > { %8811 = vmatprep.subr.bf16.mxu0 %v12171_v53  ;;  %v12220_v53 = vld [vmem:[#allocation52 + $0x6c0] ss:$72 sps:$4 sm:$0xff]  }
0x1025   : > { %8812 = vmatpush1.bf16.msra.mxu0 %v12169_v63  ;;  %v12228_v63 = vld [vmem:[#allocation52 + $0x754] ss:$72 sps:$4 sm:$0xff]  }
0x1026   : > { %8813 = vmatprep.subr.bf16.mxu0 %v12177_v35  ;;  %v12226_v35 = vld [vmem:[#allocation52 + $0x750] ss:$72 sps:$4 sm:$0xff]  }
0x1029   : > { %8814 = vmatpush1.bf16.msra.mxu0 %v12175_v36  ;;  %v12234_v36 = vld [vmem:[#allocation52 + $0x7e4] ss:$72 sps:$4 sm:$0xff]  }
0x102a   : > { %8815 = vmatprep.subr.bf16.mxu0 %v12183_v37  ;;  %v12237_v37 = vld [vmem:[#allocation52 + $0x7ec] ss:$72 sps:$4 sm:$0xff]  }
0x102d   : > { %8816 = vmatpush1.bf16.msra.mxu0 %v12181_v38  ;;  %v12232_v38 = vld [vmem:[#allocation52 + $0x7e0] ss:$72 sps:$4 sm:$0xff]  }
0x102e   : > { %8817 = vmatprep.subr.bf16.mxu0 %v12189_v39  ;;  %v12235_v39 = vld [vmem:[#allocation52 + $0x7e8] ss:$72 sps:$4 sm:$0xff]  }
0x1031   : > { %8818 = vmatpush1.bf16.msra.mxu0 %v12187_v40  ;;  %v12240_v40 = vld [vmem:[#allocation52 + $0x874] ss:$72 sps:$4 sm:$0xff]  }
0x1032   : > { %8819 = vmatprep.subr.bf16.mxu0 %v12195_v41  ;;  %v12243_v41 = vld [vmem:[#allocation52 + $0x87c] ss:$72 sps:$4 sm:$0xff]  }
0x1035   : > { %8820 = vmatpush1.bf16.msra.mxu0 %v12193_v42  ;;  %v12238_v42 = vld [vmem:[#allocation52 + $0x870] ss:$72 sps:$4 sm:$0xff]  }
0x1036   : > { %8821 = vmatprep.subr.bf16.mxu0 %v12201_v43  ;;  %v12241_v43 = vld [vmem:[#allocation52 + $0x878] ss:$72 sps:$4 sm:$0xff]  }
0x1039   : > { %8822 = vmatpush1.bf16.msra.mxu0 %v12199_v7  ;;  %v12246_v7 = vld [vmem:[#allocation52 + $0x14] ss:$72 sps:$4 sm:$0xff]  }
0x103a   : > { %8823 = vmatprep.subr.bf16.mxu0 %v12207_v44  ;;  %v12249_v44 = vld [vmem:[#allocation52 + $0x1c] ss:$72 sps:$4 sm:$0xff]  }
0x103d   : > { %8824 = vmatpush1.bf16.msra.mxu0 %v12205_v45  ;;  %v6634_v45 = vld [vmem:[#allocation50] sm:$0x3] }
0x103e   : > { %8825 = vmatprep.subr.bf16.mxu0 %v12213_v46  ;;  %v7147_v46 = vrot.slane %v6634_v45, %v14636_v26 }
0x1041   : > { %8826 = vmatpush1.bf16.msra.mxu0 %v12211_v47  ;;  %v7151_v47 = vrot.slane %v6634_v45, %v14638_v28  ;;  %v12310_v45 = vld [vmem:[#allocation52 + $0x640] ss:$72 sps:$4 sm:$0xff]  }
0x1042   : > { %8827 = vmatprep.subr.bf16.mxu0 %v12219_v48 }
0x1045   : > { %8828 = vmatpush1.bf16.msra.mxu0 %v12217_v49 }
0x1046   : > { %8829 = vmatprep.subr.bf16.mxu0 %v12225_v50 }
0x1049   : > { %8830 = vmatpush1.bf16.msra.mxu0 %v12223_v54 }
0x104a   : > { %8831 = vmatprep.subr.bf16.mxu0 %v12231_v55 }
0x104d   : > { %8832 = vmatpush1.bf16.msra.mxu0 %v12229_v56 }
0x104e   : > { %8833 = vmatprep.subr.bf16.mxu0 %v12237_v37  ;;  %v12303_v37 = vld [vmem:[#allocation52 + $0x52c] ss:$72 sps:$4 sm:$0xff]  }
0x1051   : > { %8834 = vmatpush1.bf16.msra.mxu0 %v12235_v39  ;;  %v12301_v39 = vld [vmem:[#allocation52 + $0x528] ss:$72 sps:$4 sm:$0xff]  }
0x1052   : > { %8835 = vmatprep.subr.bf16.mxu0 %v12243_v41  ;;  %v12309_v41 = vld [vmem:[#allocation52 + $0x5bc] ss:$72 sps:$4 sm:$0xff]  }
0x1055   : > { %8836 = vmatpush1.bf16.msra.mxu0 %v12241_v43  ;;  %v12307_v43 = vld [vmem:[#allocation52 + $0x5b8] ss:$72 sps:$4 sm:$0xff]  }
0x1056   : > { %8887 = vmatprep.subr.bf16.mxu0 %v12249_v44  ;;  %v12315_v44 = vld [vmem:[#allocation52 + $0x64c] ss:$72 sps:$4 sm:$0xff]  }
0x10eb   : > { %v7132_v59 = vpop.f32.mrb[64].mxu0 }
0x10ec   : > { %v7133_v61 = vadd.f32 %v7132_v59, %v6931_v58  ;;  %v7134_v52 = vpop.f32.mrb[65].mxu0 }
0x10ed   : > { %v7135_v1 = vadd.f32 %v7134_v52, %v6935_v51  ;;  %v7136_v2 = vpop.f32.mrb[66].mxu0  ;;  %v12244_v52 = vld [vmem:[#allocation52 + $0x10] ss:$72 sps:$4 sm:$0xff]  }
0x10ee   : > { %v7139_v3 = vmax.f32 %v7133_v61, 0.0  ;;  %v7137_v4 = vpop.f32.mrb[67].mxu0 }
0x10ef   : > { %v7140_v5 = vmax.f32 %v7135_v1, 0.0  ;;  %v12247_v1 = vld [vmem:[#allocation52 + $0x18] ss:$72 sps:$4 sm:$0xff]   ;;  %v12255_v4 = vld [vmem:[#allocation52 + $0xac] ss:$72 sps:$4 sm:$0xff]  }
0x10f0   : > { %v7141_v9 = vpack.c.bf16 %v7139_v3, %v7139_v3  ;;  %v12252_v3 = vld [vmem:[#allocation52 + $0xa4] ss:$72 sps:$4 sm:$0xff]  }
0x10f1   : > { %v7142_v6 = vpack.c.bf16 %v7140_v5, %v7140_v5  ;;  %v12250_v5 = vld [vmem:[#allocation52 + $0xa0] ss:$72 sps:$4 sm:$0xff]  }
0x10f3   : > { %10361 = vmatprep.mubr.msk.bf16.mxu1 %vm4262_vm5, %v7142_v6  ;;  %v12253_v6 = vld [vmem:[#allocation52 + $0xa8] ss:$72 sps:$4 sm:$0xff]  }
0x10f4   : > { %7310 = vmatmul.mubr.bf16.vlgmr.msra.gmra.mrb[60].mxu1 %v7141_v9  ;;  %v12261_v9 = vld [vmem:[#allocation52 + $0x13c] ss:$72 sps:$4 sm:$0xff]  }
0x10f5   : > { %8765 = vmatpush1.bf16.msra.mxu1 %v12148_v8  ;;  %v12258_v8 = vld [vmem:[#allocation52 + $0x134] ss:$72 sps:$4 sm:$0xff]  }
0x10f6   : > { %8766 = vmatprep.subr.bf16.mxu1 %v12156_v10  ;;  %v12256_v10 = vld [vmem:[#allocation52 + $0x130] ss:$72 sps:$4 sm:$0xff]  }
0x10f9   : > { %8767 = vmatpush1.bf16.msra.mxu1 %v12154_v11  ;;  %v12259_v11 = vld [vmem:[#allocation52 + $0x138] ss:$72 sps:$4 sm:$0xff]  }
0x10fa   : > { %8768 = vmatprep.subr.bf16.mxu1 %v12162_v12  ;;  %v12264_v12 = vld [vmem:[#allocation52 + $0x1c4] ss:$72 sps:$4 sm:$0xff]  }
0x10fd   : > { %8769 = vmatpush1.bf16.msra.mxu1 %v12160_v13  ;;  %v12267_v13 = vld [vmem:[#allocation52 + $0x1cc] ss:$72 sps:$4 sm:$0xff]  }
0x10fe   : > { %8770 = vmatprep.subr.bf16.mxu1 %v12168_v14  ;;  %v12262_v14 = vld [vmem:[#allocation52 + $0x1c0] ss:$72 sps:$4 sm:$0xff]  }
0x1101   : > { %8771 = vmatpush1.bf16.msra.mxu1 %v12166_v15  ;;  %v12265_v15 = vld [vmem:[#allocation52 + $0x1c8] ss:$72 sps:$4 sm:$0xff]  }
0x1102   : > { %8772 = vmatprep.subr.bf16.mxu1 %v12174_v16  ;;  %v12270_v16 = vld [vmem:[#allocation52 + $0x254] ss:$72 sps:$4 sm:$0xff]  }
0x1105   : > { %8773 = vmatpush1.bf16.msra.mxu1 %v12172_v17  ;;  %v12273_v17 = vld [vmem:[#allocation52 + $0x25c] ss:$72 sps:$4 sm:$0xff]  }
0x1106   : > { %8774 = vmatprep.subr.bf16.mxu1 %v12180_v18  ;;  %v12268_v18 = vld [vmem:[#allocation52 + $0x250] ss:$72 sps:$4 sm:$0xff]  }
0x1109   : > { %8775 = vmatpush1.bf16.msra.mxu1 %v12178_v19  ;;  %v12271_v19 = vld [vmem:[#allocation52 + $0x258] ss:$72 sps:$4 sm:$0xff]  }
0x110a   : > { %8776 = vmatprep.subr.bf16.mxu1 %v12186_v22  ;;  %v12276_v22 = vld [vmem:[#allocation52 + $0x2e4] ss:$72 sps:$4 sm:$0xff]  }
0x110d   : > { %8777 = vmatpush1.bf16.msra.mxu1 %v12184_v62  ;;  %v12279_v62 = vld [vmem:[#allocation52 + $0x2ec] ss:$72 sps:$4 sm:$0xff]  }
0x110e   : > { %8778 = vmatprep.subr.bf16.mxu1 %v12192_v23  ;;  %v12274_v23 = vld [vmem:[#allocation52 + $0x2e0] ss:$72 sps:$4 sm:$0xff]  }
0x1111   : > { %8779 = vmatpush1.bf16.msra.mxu1 %v12190_v24  ;;  %v12277_v24 = vld [vmem:[#allocation52 + $0x2e8] ss:$72 sps:$4 sm:$0xff]  }
0x1112   : > { %8780 = vmatprep.subr.bf16.mxu1 %v12198_v25  ;;  %v12282_v25 = vld [vmem:[#allocation52 + $0x374] ss:$72 sps:$4 sm:$0xff]  }
0x1115   : > { %8781 = vmatpush1.bf16.msra.mxu1 %v12196_v27  ;;  %v12285_v27 = vld [vmem:[#allocation52 + $0x37c] ss:$72 sps:$4 sm:$0xff]  }
0x1116   : > { %8782 = vmatprep.subr.bf16.mxu1 %v12204_v29  ;;  %v12280_v29 = vld [vmem:[#allocation52 + $0x370] ss:$72 sps:$4 sm:$0xff]  }
0x1119   : > { %8783 = vmatpush1.bf16.msra.mxu1 %v12202_v30  ;;  %v12283_v30 = vld [vmem:[#allocation52 + $0x378] ss:$72 sps:$4 sm:$0xff]  }
0x111a   : > { %8784 = vmatprep.subr.bf16.mxu1 %v12210_v31  ;;  %v12288_v31 = vld [vmem:[#allocation52 + $0x404] ss:$72 sps:$4 sm:$0xff]  }
0x111d   : > { %8785 = vmatpush1.bf16.msra.mxu1 %v12208_v60  ;;  %v12291_v60 = vld [vmem:[#allocation52 + $0x40c] ss:$72 sps:$4 sm:$0xff]  }
0x111e   : > { %8786 = vmatprep.subr.bf16.mxu1 %v12216_v32  ;;  %v12286_v32 = vld [vmem:[#allocation52 + $0x400] ss:$72 sps:$4 sm:$0xff]  }
0x1121   : > { %8787 = vmatpush1.bf16.msra.mxu1 %v12214_v33  ;;  %v12289_v33 = vld [vmem:[#allocation52 + $0x408] ss:$72 sps:$4 sm:$0xff]  }
0x1122   : > { %8788 = vmatprep.subr.bf16.mxu1 %v12222_v34  ;;  %v12294_v34 = vld [vmem:[#allocation52 + $0x494] ss:$72 sps:$4 sm:$0xff]  }
0x1125   : > { %8789 = vmatpush1.bf16.msra.mxu1 %v12220_v53  ;;  %v12297_v53 = vld [vmem:[#allocation52 + $0x49c] ss:$72 sps:$4 sm:$0xff]  }
0x1126   : > { %8790 = vmatprep.subr.bf16.mxu1 %v12228_v63  ;;  %v12292_v63 = vld [vmem:[#allocation52 + $0x490] ss:$72 sps:$4 sm:$0xff]  }
0x1129   : > { %8791 = vmatpush1.bf16.msra.mxu1 %v12226_v35  ;;  %v12295_v35 = vld [vmem:[#allocation52 + $0x498] ss:$72 sps:$4 sm:$0xff]  }
0x112a   : > { %8792 = vmatprep.subr.bf16.mxu1 %v12234_v36  ;;  %v12300_v36 = vld [vmem:[#allocation52 + $0x524] ss:$72 sps:$4 sm:$0xff]  }
0x112d   : > { %8793 = vmatpush1.bf16.msra.mxu1 %v12232_v38  ;;  %v12298_v38 = vld [vmem:[#allocation52 + $0x520] ss:$72 sps:$4 sm:$0xff]  }
0x112e   : > { %8794 = vmatprep.subr.bf16.mxu1 %v12240_v40  ;;  %v12306_v40 = vld [vmem:[#allocation52 + $0x5b4] ss:$72 sps:$4 sm:$0xff]  }
0x1131   : > { %8795 = vmatpush1.bf16.msra.mxu1 %v12238_v42  ;;  %v12304_v42 = vld [vmem:[#allocation52 + $0x5b0] ss:$72 sps:$4 sm:$0xff]  }
0x1132   : > { %8846 = vmatprep.subr.bf16.mxu1 %v12246_v7  ;;  %v12312_v7 = vld [vmem:[#allocation52 + $0x644] ss:$72 sps:$4 sm:$0xff]  }
0x11c7   : > { %v7311_v48 = vpop.f32.mrb[60].mxu1 }
0x11c8   : > { %v7312_v49 = vadd.f32 %v7311_v48, %v7147_v46  ;;  %v7313_v50 = vpop.f32.mrb[61].mxu1  ;;  %v12313_v46 = vld [vmem:[#allocation52 + $0x648] ss:$72 sps:$4 sm:$0xff]   ;;  %v12321_v48 = vld [vmem:[#allocation52 + $0x6dc] ss:$72 sps:$4 sm:$0xff]  }
0x11c9   : > { %v7314_v54 = vadd.f32 %v7313_v50, %v7151_v47  ;;  %v7315_v55 = vpop.f32.mrb[62].mxu1  ;;  %v12318_v47 = vld [vmem:[#allocation52 + $0x6d4] ss:$72 sps:$4 sm:$0xff]   ;;  %v12319_v50 = vld [vmem:[#allocation52 + $0x6d8] ss:$72 sps:$4 sm:$0xff]  }
0x11ca   : > { %v7318_v56 = vadd.f32 %v7312_v49, %v14723_v20  ;;  %v7316_v57 = vpop.f32.mrb[63].mxu1  ;;  %v12316_v49 = vld [vmem:[#allocation52 + $0x6d0] ss:$72 sps:$4 sm:$0xff]   ;;  %v12327_v55 = vld [vmem:[#allocation52 + $0x76c] ss:$72 sps:$4 sm:$0xff]  }
0x11cb   : > { %v7319_v58 = vadd.f32 %v7314_v54, %v14725_v21  ;;  %v12324_v54 = vld [vmem:[#allocation52 + $0x764] ss:$72 sps:$4 sm:$0xff]   ;;  %v12325_v57 = vld [vmem:[#allocation52 + $0x768] ss:$72 sps:$4 sm:$0xff]  }
0x11cc   : > { %v7320_v51 = vmax.f32 %v7318_v56, 0.0  ;;  %v12322_v56 = vld [vmem:[#allocation52 + $0x760] ss:$72 sps:$4 sm:$0xff]  }
0x11cd   : > { %v7321_v59 = vmax.f32 %v7319_v58, 0.0  ;;  %v12330_v58 = vld [vmem:[#allocation52 + $0x7f4] ss:$72 sps:$4 sm:$0xff]  }
0x11ce   : > { %v14740_v2 = vpack.c.bf16 %v7320_v51, %v7320_v51  ;;  %v12333_v51 = vld [vmem:[#allocation52 + $0x7fc] ss:$72 sps:$4 sm:$0xff]  }
0x11cf   : > { %v14738_v61 = vpack.c.bf16 %v7321_v59, %v7321_v59  ;;  %v12328_v59 = vld [vmem:[#allocation52 + $0x7f0] ss:$72 sps:$4 sm:$0xff]  }
0x11d1   : > { %8796 = vmatprep.mubr.bf16.mxu1 %v14738_v61  ;;  %8837 = vmatprep.mubr.bf16.mxu0 %v14738_v61 }
0x11d2   : > { %8797 = vmatmul.mubr.bf16.vlgmr.msra.gmra.mrb[64].mxu1 %v14740_v2  ;;  %8838 = vmatmul.mubr.bf16.vlgmr.msra.gmra.mrb[68].mxu0 %v14740_v2 }
0x11d3   : > { %8847 = vmatpush1.bf16.msra.mxu1 %v12244_v52  ;;  %8888 = vmatpush1.bf16.msra.mxu0 %v12247_v1  ;;  %v12331_v52 = vld [vmem:[#allocation52 + $0x7f8] ss:$72 sps:$4 sm:$0xff]   ;;  %v12336_v1 = vld [vmem:[#allocation52 + $0x884] ss:$72 sps:$4 sm:$0xff]  }
0x11d4   : > { %8878 = vmatprep.mubr.bf16.mxu1 %v14738_v61  ;;  %8919 = vmatprep.mubr.bf16.mxu0 %v14738_v61 }
0x11d5   : > { %8848 = vmatprep.subr.bf16.mxu1 %v12252_v3  ;;  %8889 = vmatprep.subr.bf16.mxu0 %v12255_v4  ;;  %v12339_v3 = vld [vmem:[#allocation52 + $0x88c] ss:$72 sps:$4 sm:$0xff]   ;;  %v12334_v4 = vld [vmem:[#allocation52 + $0x880] ss:$72 sps:$4 sm:$0xff]  }
0x11d7   : > { %8849 = vmatpush1.bf16.msra.mxu1 %v12250_v5  ;;  %8890 = vmatpush1.bf16.msra.mxu0 %v12253_v6  ;;  %v12337_v5 = vld [vmem:[#allocation52 + $0x888] ss:$72 sps:$4 sm:$0xff]   ;;  %v12342_v6 = vld [vmem:[#allocation52 + $0x24] ss:$72 sps:$4 sm:$0xff]  }
0x11d8   : > { %8850 = vmatprep.subr.bf16.mxu1 %v12258_v8  ;;  %8891 = vmatprep.subr.bf16.mxu0 %v12261_v9  ;;  %v12345_v8 = vld [vmem:[#allocation52 + $0x2c] ss:$72 sps:$4 sm:$0xff]   ;;  %v12340_v9 = vld [vmem:[#allocation52 + $0x20] ss:$72 sps:$4 sm:$0xff]  }
0x11db   : > { %8851 = vmatpush1.bf16.msra.mxu1 %v12256_v10  ;;  %8892 = vmatpush1.bf16.msra.mxu0 %v12259_v11  ;;  %v12343_v10 = vld [vmem:[#allocation52 + $0x28] ss:$72 sps:$4 sm:$0xff]   ;;  %v12348_v11 = vld [vmem:[#allocation52 + $0xb4] ss:$72 sps:$4 sm:$0xff]  }
0x11dc   : > { %8852 = vmatprep.subr.bf16.mxu1 %v12264_v12  ;;  %8893 = vmatprep.subr.bf16.mxu0 %v12267_v13  ;;  %v12351_v12 = vld [vmem:[#allocation52 + $0xbc] ss:$72 sps:$4 sm:$0xff]   ;;  %v12346_v13 = vld [vmem:[#allocation52 + $0xb0] ss:$72 sps:$4 sm:$0xff]  }
0x11df   : > { %8853 = vmatpush1.bf16.msra.mxu1 %v12262_v14  ;;  %8894 = vmatpush1.bf16.msra.mxu0 %v12265_v15  ;;  %v12349_v14 = vld [vmem:[#allocation52 + $0xb8] ss:$72 sps:$4 sm:$0xff]   ;;  %v12354_v15 = vld [vmem:[#allocation52 + $0x144] ss:$72 sps:$4 sm:$0xff]  }
0x11e0   : > { %8854 = vmatprep.subr.bf16.mxu1 %v12270_v16  ;;  %8895 = vmatprep.subr.bf16.mxu0 %v12273_v17  ;;  %v12357_v16 = vld [vmem:[#allocation52 + $0x14c] ss:$72 sps:$4 sm:$0xff]   ;;  %v12352_v17 = vld [vmem:[#allocation52 + $0x140] ss:$72 sps:$4 sm:$0xff]  }
0x11e3   : > { %8855 = vmatpush1.bf16.msra.mxu1 %v12268_v18  ;;  %8896 = vmatpush1.bf16.msra.mxu0 %v12271_v19  ;;  %v12355_v18 = vld [vmem:[#allocation52 + $0x148] ss:$72 sps:$4 sm:$0xff]   ;;  %v12360_v19 = vld [vmem:[#allocation52 + $0x1d4] ss:$72 sps:$4 sm:$0xff]  }
0x11e4   : > { %8856 = vmatprep.subr.bf16.mxu1 %v12276_v22  ;;  %8897 = vmatprep.subr.bf16.mxu0 %v12279_v62  ;;  %v12363_v22 = vld [vmem:[#allocation52 + $0x1dc] ss:$72 sps:$4 sm:$0xff]   ;;  %v12358_v62 = vld [vmem:[#allocation52 + $0x1d0] ss:$72 sps:$4 sm:$0xff]  }
0x11e7   : > { %8857 = vmatpush1.bf16.msra.mxu1 %v12274_v23  ;;  %8898 = vmatpush1.bf16.msra.mxu0 %v12277_v24  ;;  %v12361_v23 = vld [vmem:[#allocation52 + $0x1d8] ss:$72 sps:$4 sm:$0xff]   ;;  %v12366_v24 = vld [vmem:[#allocation52 + $0x264] ss:$72 sps:$4 sm:$0xff]  }
0x11e8   : > { %8858 = vmatprep.subr.bf16.mxu1 %v12282_v25  ;;  %8899 = vmatprep.subr.bf16.mxu0 %v12285_v27  ;;  %v12369_v25 = vld [vmem:[#allocation52 + $0x26c] ss:$72 sps:$4 sm:$0xff]   ;;  %v12364_v27 = vld [vmem:[#allocation52 + $0x260] ss:$72 sps:$4 sm:$0xff]  }
0x11eb   : > { %8859 = vmatpush1.bf16.msra.mxu1 %v12280_v29  ;;  %8900 = vmatpush1.bf16.msra.mxu0 %v12283_v30  ;;  %v12367_v29 = vld [vmem:[#allocation52 + $0x268] ss:$72 sps:$4 sm:$0xff]   ;;  %v12372_v30 = vld [vmem:[#allocation52 + $0x2f4] ss:$72 sps:$4 sm:$0xff]  }
0x11ec   : > { %8860 = vmatprep.subr.bf16.mxu1 %v12288_v31  ;;  %8901 = vmatprep.subr.bf16.mxu0 %v12291_v60  ;;  %v12375_v31 = vld [vmem:[#allocation52 + $0x2fc] ss:$72 sps:$4 sm:$0xff]   ;;  %v12370_v60 = vld [vmem:[#allocation52 + $0x2f0] ss:$72 sps:$4 sm:$0xff]  }
0x11ef   : > { %8861 = vmatpush1.bf16.msra.mxu1 %v12286_v32  ;;  %8902 = vmatpush1.bf16.msra.mxu0 %v12289_v33  ;;  %v12373_v32 = vld [vmem:[#allocation52 + $0x2f8] ss:$72 sps:$4 sm:$0xff]   ;;  %v12378_v33 = vld [vmem:[#allocation52 + $0x384] ss:$72 sps:$4 sm:$0xff]  }
0x11f0   : > { %8862 = vmatprep.subr.bf16.mxu1 %v12294_v34  ;;  %8903 = vmatprep.subr.bf16.mxu0 %v12297_v53  ;;  %v12381_v34 = vld [vmem:[#allocation52 + $0x38c] ss:$72 sps:$4 sm:$0xff]   ;;  %v12376_v53 = vld [vmem:[#allocation52 + $0x380] ss:$72 sps:$4 sm:$0xff]  }
0x11f3   : > { %8863 = vmatpush1.bf16.msra.mxu1 %v12292_v63  ;;  %8904 = vmatpush1.bf16.msra.mxu0 %v12295_v35  ;;  %v12379_v63 = vld [vmem:[#allocation52 + $0x388] ss:$72 sps:$4 sm:$0xff]   ;;  %v12384_v35 = vld [vmem:[#allocation52 + $0x414] ss:$72 sps:$4 sm:$0xff]  }
0x11f4   : > { %8864 = vmatprep.subr.bf16.mxu1 %v12300_v36  ;;  %8905 = vmatprep.subr.bf16.mxu0 %v12303_v37  ;;  %v12387_v36 = vld [vmem:[#allocation52 + $0x41c] ss:$72 sps:$4 sm:$0xff]   ;;  %v12382_v37 = vld [vmem:[#allocation52 + $0x410] ss:$72 sps:$4 sm:$0xff]  }
0x11f7   : > { %8865 = vmatpush1.bf16.msra.mxu1 %v12298_v38  ;;  %8906 = vmatpush1.bf16.msra.mxu0 %v12301_v39  ;;  %v12385_v38 = vld [vmem:[#allocation52 + $0x418] ss:$72 sps:$4 sm:$0xff]   ;;  %v12390_v39 = vld [vmem:[#allocation52 + $0x4a4] ss:$72 sps:$4 sm:$0xff]  }
0x11f8   : > { %8866 = vmatprep.subr.bf16.mxu1 %v12306_v40  ;;  %8907 = vmatprep.subr.bf16.mxu0 %v12309_v41  ;;  %v12393_v40 = vld [vmem:[#allocation52 + $0x4ac] ss:$72 sps:$4 sm:$0xff]   ;;  %v12388_v41 = vld [vmem:[#allocation52 + $0x4a0] ss:$72 sps:$4 sm:$0xff]  }
0x11fb   : > { %8867 = vmatpush1.bf16.msra.mxu1 %v12304_v42  ;;  %8908 = vmatpush1.bf16.msra.mxu0 %v12307_v43  ;;  %v12391_v42 = vld [vmem:[#allocation52 + $0x4a8] ss:$72 sps:$4 sm:$0xff]   ;;  %v12396_v43 = vld [vmem:[#allocation52 + $0x534] ss:$72 sps:$4 sm:$0xff]  }
0x11fc   : > { %8868 = vmatprep.subr.bf16.mxu1 %v12312_v7  ;;  %8909 = vmatprep.subr.bf16.mxu0 %v12315_v44  ;;  %v12399_v7 = vld [vmem:[#allocation52 + $0x53c] ss:$72 sps:$4 sm:$0xff]   ;;  %v12394_v44 = vld [vmem:[#allocation52 + $0x530] ss:$72 sps:$4 sm:$0xff]  }
0x11ff   : > { %8869 = vmatpush1.bf16.msra.mxu1 %v12310_v45  ;;  %8910 = vmatpush1.bf16.msra.mxu0 %v12313_v46  ;;  %v12397_v45 = vld [vmem:[#allocation52 + $0x538] ss:$72 sps:$4 sm:$0xff]   ;;  %v12402_v46 = vld [vmem:[#allocation52 + $0x5c4] ss:$72 sps:$4 sm:$0xff]  }
0x1200   : > { %8870 = vmatprep.subr.bf16.mxu1 %v12318_v47  ;;  %8911 = vmatprep.subr.bf16.mxu0 %v12321_v48  ;;  %v12405_v47 = vld [vmem:[#allocation52 + $0x5cc] ss:$72 sps:$4 sm:$0xff]   ;;  %v12400_v48 = vld [vmem:[#allocation52 + $0x5c0] ss:$72 sps:$4 sm:$0xff]  }
0x1203   : > { %8871 = vmatpush1.bf16.msra.mxu1 %v12316_v49  ;;  %8912 = vmatpush1.bf16.msra.mxu0 %v12319_v50  ;;  %v12403_v49 = vld [vmem:[#allocation52 + $0x5c8] ss:$72 sps:$4 sm:$0xff]   ;;  %v12408_v50 = vld [vmem:[#allocation52 + $0x654] ss:$72 sps:$4 sm:$0xff]  }
0x1204   : > { %8872 = vmatprep.subr.bf16.mxu1 %v12324_v54  ;;  %8913 = vmatprep.subr.bf16.mxu0 %v12327_v55  ;;  %v12411_v54 = vld [vmem:[#allocation52 + $0x65c] ss:$72 sps:$4 sm:$0xff]   ;;  %v12406_v55 = vld [vmem:[#allocation52 + $0x650] ss:$72 sps:$4 sm:$0xff]  }
0x1207   : > { %8873 = vmatpush1.bf16.msra.mxu1 %v12322_v56  ;;  %8914 = vmatpush1.bf16.msra.mxu0 %v12325_v57  ;;  %v12409_v56 = vld [vmem:[#allocation52 + $0x658] ss:$72 sps:$4 sm:$0xff]   ;;  %v12414_v57 = vld [vmem:[#allocation52 + $0x6e4] ss:$72 sps:$4 sm:$0xff]  }
0x1208   : > { %8874 = vmatprep.subr.bf16.mxu1 %v12330_v58  ;;  %8915 = vmatprep.subr.bf16.mxu0 %v12333_v51  ;;  %v12417_v58 = vld [vmem:[#allocation52 + $0x6ec] ss:$72 sps:$4 sm:$0xff]   ;;  %v12412_v51 = vld [vmem:[#allocation52 + $0x6e0] ss:$72 sps:$4 sm:$0xff]  }
0x120b   : > { %8875 = vmatpush1.bf16.msra.mxu1 %v12328_v59  ;;  %8916 = vmatpush1.bf16.msra.mxu0 %v12331_v52  ;;  %v12415_v59 = vld [vmem:[#allocation52 + $0x6e8] ss:$72 sps:$4 sm:$0xff]   ;;  %v12420_v52 = vld [vmem:[#allocation52 + $0x774] ss:$72 sps:$4 sm:$0xff]  }
0x120c   : > { %8876 = vmatprep.subr.bf16.mxu1 %v12336_v1  ;;  %8917 = vmatprep.subr.bf16.mxu0 %v12339_v3  ;;  %v12423_v1 = vld [vmem:[#allocation52 + $0x77c] ss:$72 sps:$4 sm:$0xff]   ;;  %v12418_v3 = vld [vmem:[#allocation52 + $0x770] ss:$72 sps:$4 sm:$0xff]  }
0x120f   : > { %8877 = vmatpush1.bf16.msra.mxu1 %v12334_v4  ;;  %8918 = vmatpush1.bf16.msra.mxu0 %v12337_v5  ;;  %v12421_v4 = vld [vmem:[#allocation52 + $0x778] ss:$72 sps:$4 sm:$0xff]   ;;  %v12426_v5 = vld [vmem:[#allocation52 + $0x804] ss:$72 sps:$4 sm:$0xff]  }
0x1210   : > { %8928 = vmatprep.subr.bf16.mxu1 %v12342_v6  ;;  %8969 = vmatprep.subr.bf16.mxu0 %v12345_v8  ;;  %v12429_v6 = vld [vmem:[#allocation52 + $0x80c] ss:$72 sps:$4 sm:$0xff]   ;;  %v12424_v8 = vld [vmem:[#allocation52 + $0x800] ss:$72 sps:$4 sm:$0xff]  }
0x1212   : > { %8879 = vmatmul.mubr.bf16.vlgmr.msra.gmra.mrb[68].mxu1 %v14740_v2  ;;  %8920 = vmatmul.mubr.bf16.vlgmr.msra.gmra.mrb[72].mxu0 %v14740_v2 }
0x1213   : > { %8929 = vmatpush1.bf16.msra.mxu1 %v12340_v9  ;;  %8960 = vmatprep.mubr.bf16.mxu1 %v14738_v61  ;;  %v12427_v9 = vld [vmem:[#allocation52 + $0x808] ss:$72 sps:$4 sm:$0xff]  }
0x1214   : > { %8970 = vmatpush1.bf16.msra.mxu0 %v12343_v10  ;;  %9001 = vmatprep.mubr.bf16.mxu0 %v14738_v61  ;;  %v12432_v10 = vld [vmem:[#allocation52 + $0x894] ss:$72 sps:$4 sm:$0xff]  }
0x1215   : > { %8930 = vmatprep.subr.bf16.mxu1 %v12348_v11  ;;  %8971 = vmatprep.subr.bf16.mxu0 %v12351_v12  ;;  %v12435_v11 = vld [vmem:[#allocation52 + $0x89c] ss:$72 sps:$4 sm:$0xff]   ;;  %v12430_v12 = vld [vmem:[#allocation52 + $0x890] ss:$72 sps:$4 sm:$0xff]  }
0x1217   : > { %8931 = vmatpush1.bf16.msra.mxu1 %v12346_v13  ;;  %v12433_v13 = vld [vmem:[#allocation52 + $0x898] ss:$72 sps:$4 sm:$0xff]  }
0x1218   : > { %8972 = vmatpush1.bf16.msra.mxu0 %v12349_v14  ;;  %8932 = vmatprep.subr.bf16.mxu1 %v12354_v15  ;;  %v12438_v14 = vld [vmem:[#allocation52 + $0x34] ss:$72 sps:$4 sm:$0xff]  }
0x1219   : > { %8973 = vmatprep.subr.bf16.mxu0 %v12357_v16  ;;  %v12441_v15 = vld [vmem:[#allocation52 + $0x3c] ss:$72 sps:$4 sm:$0xff]   ;;  %v12436_v16 = vld [vmem:[#allocation52 + $0x30] ss:$72 sps:$4 sm:$0xff]  }
0x121b   : > { %8933 = vmatpush1.bf16.msra.mxu1 %v12352_v17  ;;  %v12439_v17 = vld [vmem:[#allocation52 + $0x38] ss:$72 sps:$4 sm:$0xff]  }
0x121c   : > { %8974 = vmatpush1.bf16.msra.mxu0 %v12355_v18  ;;  %8934 = vmatprep.subr.bf16.mxu1 %v12360_v19  ;;  %v12444_v18 = vld [vmem:[#allocation52 + $0xc4] ss:$72 sps:$4 sm:$0xff]  }
0x121d   : > { %8975 = vmatprep.subr.bf16.mxu0 %v12363_v22  ;;  %v12447_v19 = vld [vmem:[#allocation52 + $0xcc] ss:$72 sps:$4 sm:$0xff]   ;;  %v12442_v22 = vld [vmem:[#allocation52 + $0xc0] ss:$72 sps:$4 sm:$0xff]  }
0x121f   : > { %8935 = vmatpush1.bf16.msra.mxu1 %v12358_v62  ;;  %v12445_v62 = vld [vmem:[#allocation52 + $0xc8] ss:$72 sps:$4 sm:$0xff]  }
0x1220   : > { %8976 = vmatpush1.bf16.msra.mxu0 %v12361_v23  ;;  %8936 = vmatprep.subr.bf16.mxu1 %v12366_v24  ;;  %v12450_v23 = vld [vmem:[#allocation52 + $0x154] ss:$72 sps:$4 sm:$0xff]  }
0x1221   : > { %8977 = vmatprep.subr.bf16.mxu0 %v12369_v25  ;;  %v12453_v24 = vld [vmem:[#allocation52 + $0x15c] ss:$72 sps:$4 sm:$0xff]   ;;  %v12448_v25 = vld [vmem:[#allocation52 + $0x150] ss:$72 sps:$4 sm:$0xff]  }
0x1223   : > { %8937 = vmatpush1.bf16.msra.mxu1 %v12364_v27  ;;  %v12451_v27 = vld [vmem:[#allocation52 + $0x158] ss:$72 sps:$4 sm:$0xff]  }
0x1224   : > { %8978 = vmatpush1.bf16.msra.mxu0 %v12367_v29  ;;  %8938 = vmatprep.subr.bf16.mxu1 %v12372_v30  ;;  %v12456_v29 = vld [vmem:[#allocation52 + $0x1e4] ss:$72 sps:$4 sm:$0xff]  }
0x1225   : > { %8979 = vmatprep.subr.bf16.mxu0 %v12375_v31  ;;  %v12459_v30 = vld [vmem:[#allocation52 + $0x1ec] ss:$72 sps:$4 sm:$0xff]   ;;  %v12454_v31 = vld [vmem:[#allocation52 + $0x1e0] ss:$72 sps:$4 sm:$0xff]  }
0x1227   : > { %8939 = vmatpush1.bf16.msra.mxu1 %v12370_v60  ;;  %v12457_v60 = vld [vmem:[#allocation52 + $0x1e8] ss:$72 sps:$4 sm:$0xff]  }
0x1228   : > { %8980 = vmatpush1.bf16.msra.mxu0 %v12373_v32  ;;  %8940 = vmatprep.subr.bf16.mxu1 %v12378_v33  ;;  %v12462_v32 = vld [vmem:[#allocation52 + $0x274] ss:$72 sps:$4 sm:$0xff]  }
0x1229   : > { %8981 = vmatprep.subr.bf16.mxu0 %v12381_v34  ;;  %v12465_v33 = vld [vmem:[#allocation52 + $0x27c] ss:$72 sps:$4 sm:$0xff]   ;;  %v12460_v34 = vld [vmem:[#allocation52 + $0x270] ss:$72 sps:$4 sm:$0xff]  }
0x122b   : > { %8941 = vmatpush1.bf16.msra.mxu1 %v12376_v53  ;;  %v12463_v53 = vld [vmem:[#allocation52 + $0x278] ss:$72 sps:$4 sm:$0xff]  }
0x122c   : > { %8982 = vmatpush1.bf16.msra.mxu0 %v12379_v63  ;;  %8942 = vmatprep.subr.bf16.mxu1 %v12384_v35  ;;  %v12468_v63 = vld [vmem:[#allocation52 + $0x304] ss:$72 sps:$4 sm:$0xff]  }
0x122d   : > { %8983 = vmatprep.subr.bf16.mxu0 %v12387_v36  ;;  %v12471_v35 = vld [vmem:[#allocation52 + $0x30c] ss:$72 sps:$4 sm:$0xff]   ;;  %v12466_v36 = vld [vmem:[#allocation52 + $0x300] ss:$72 sps:$4 sm:$0xff]  }
0x122f   : > { %8943 = vmatpush1.bf16.msra.mxu1 %v12382_v37  ;;  %v12469_v37 = vld [vmem:[#allocation52 + $0x308] ss:$72 sps:$4 sm:$0xff]  }
0x1230   : > { %8984 = vmatpush1.bf16.msra.mxu0 %v12385_v38  ;;  %8944 = vmatprep.subr.bf16.mxu1 %v12390_v39  ;;  %v12474_v38 = vld [vmem:[#allocation52 + $0x394] ss:$72 sps:$4 sm:$0xff]  }
0x1231   : > { %8985 = vmatprep.subr.bf16.mxu0 %v12393_v40  ;;  %v12477_v39 = vld [vmem:[#allocation52 + $0x39c] ss:$72 sps:$4 sm:$0xff]   ;;  %v12472_v40 = vld [vmem:[#allocation52 + $0x390] ss:$72 sps:$4 sm:$0xff]  }
0x1233   : > { %8945 = vmatpush1.bf16.msra.mxu1 %v12388_v41  ;;  %v12475_v41 = vld [vmem:[#allocation52 + $0x398] ss:$72 sps:$4 sm:$0xff]  }
0x1234   : > { %8986 = vmatpush1.bf16.msra.mxu0 %v12391_v42  ;;  %8946 = vmatprep.subr.bf16.mxu1 %v12396_v43  ;;  %v12480_v42 = vld [vmem:[#allocation52 + $0x424] ss:$72 sps:$4 sm:$0xff]  }
0x1235   : > { %8987 = vmatprep.subr.bf16.mxu0 %v12399_v7  ;;  %v12483_v43 = vld [vmem:[#allocation52 + $0x42c] ss:$72 sps:$4 sm:$0xff]   ;;  %v12478_v7 = vld [vmem:[#allocation52 + $0x420] ss:$72 sps:$4 sm:$0xff]  }
0x1237   : > { %8947 = vmatpush1.bf16.msra.mxu1 %v12394_v44  ;;  %v12481_v44 = vld [vmem:[#allocation52 + $0x428] ss:$72 sps:$4 sm:$0xff]  }
0x1238   : > { %8988 = vmatpush1.bf16.msra.mxu0 %v12397_v45  ;;  %8948 = vmatprep.subr.bf16.mxu1 %v12402_v46  ;;  %v12486_v45 = vld [vmem:[#allocation52 + $0x4b4] ss:$72 sps:$4 sm:$0xff]  }
0x1239   : > { %8989 = vmatprep.subr.bf16.mxu0 %v12405_v47  ;;  %v12489_v46 = vld [vmem:[#allocation52 + $0x4bc] ss:$72 sps:$4 sm:$0xff]   ;;  %v12484_v47 = vld [vmem:[#allocation52 + $0x4b0] ss:$72 sps:$4 sm:$0xff]  }
0x123b   : > { %8949 = vmatpush1.bf16.msra.mxu1 %v12400_v48  ;;  %v12487_v48 = vld [vmem:[#allocation52 + $0x4b8] ss:$72 sps:$4 sm:$0xff]  }
0x123c   : > { %8990 = vmatpush1.bf16.msra.mxu0 %v12403_v49  ;;  %8950 = vmatprep.subr.bf16.mxu1 %v12408_v50  ;;  %v12492_v49 = vld [vmem:[#allocation52 + $0x544] ss:$72 sps:$4 sm:$0xff]  }
0x123d   : > { %8991 = vmatprep.subr.bf16.mxu0 %v12411_v54  ;;  %v12495_v50 = vld [vmem:[#allocation52 + $0x54c] ss:$72 sps:$4 sm:$0xff]   ;;  %v12490_v54 = vld [vmem:[#allocation52 + $0x540] ss:$72 sps:$4 sm:$0xff]  }
0x123f   : > { %8951 = vmatpush1.bf16.msra.mxu1 %v12406_v55  ;;  %v12493_v55 = vld [vmem:[#allocation52 + $0x548] ss:$72 sps:$4 sm:$0xff]  }
0x1240   : > { %8992 = vmatpush1.bf16.msra.mxu0 %v12409_v56  ;;  %8952 = vmatprep.subr.bf16.mxu1 %v12414_v57  ;;  %v12498_v56 = vld [vmem:[#allocation52 + $0x5d4] ss:$72 sps:$4 sm:$0xff]  }
0x1241   : > { %8993 = vmatprep.subr.bf16.mxu0 %v12417_v58  ;;  %v12501_v57 = vld [vmem:[#allocation52 + $0x5dc] ss:$72 sps:$4 sm:$0xff]   ;;  %v12496_v58 = vld [vmem:[#allocation52 + $0x5d0] ss:$72 sps:$4 sm:$0xff]  }
0x1243   : > { %8953 = vmatpush1.bf16.msra.mxu1 %v12412_v51  ;;  %v12499_v51 = vld [vmem:[#allocation52 + $0x5d8] ss:$72 sps:$4 sm:$0xff]  }
0x1244   : > { %8994 = vmatpush1.bf16.msra.mxu0 %v12415_v59  ;;  %8954 = vmatprep.subr.bf16.mxu1 %v12420_v52  ;;  %v12504_v59 = vld [vmem:[#allocation52 + $0x664] ss:$72 sps:$4 sm:$0xff]  }
0x1245   : > { %8995 = vmatprep.subr.bf16.mxu0 %v12423_v1  ;;  %v12507_v52 = vld [vmem:[#allocation52 + $0x66c] ss:$72 sps:$4 sm:$0xff]   ;;  %v12502_v1 = vld [vmem:[#allocation52 + $0x660] ss:$72 sps:$4 sm:$0xff]  }
0x1247   : > { %8955 = vmatpush1.bf16.msra.mxu1 %v12418_v3  ;;  %v12505_v3 = vld [vmem:[#allocation52 + $0x668] ss:$72 sps:$4 sm:$0xff]  }
0x1248   : > { %8996 = vmatpush1.bf16.msra.mxu0 %v12421_v4  ;;  %8956 = vmatprep.subr.bf16.mxu1 %v12426_v5  ;;  %v12510_v4 = vld [vmem:[#allocation52 + $0x6f4] ss:$72 sps:$4 sm:$0xff]  }
0x1249   : > { %8997 = vmatprep.subr.bf16.mxu0 %v12429_v6  ;;  %v12513_v5 = vld [vmem:[#allocation52 + $0x6fc] ss:$72 sps:$4 sm:$0xff]   ;;  %v12508_v6 = vld [vmem:[#allocation52 + $0x6f0] ss:$72 sps:$4 sm:$0xff]  }
0x124b   : > { %8957 = vmatpush1.bf16.msra.mxu1 %v12424_v8  ;;  %v12511_v8 = vld [vmem:[#allocation52 + $0x6f8] ss:$72 sps:$4 sm:$0xff]  }
0x124c   : > { %8998 = vmatpush1.bf16.msra.mxu0 %v12427_v9  ;;  %8958 = vmatprep.subr.bf16.mxu1 %v12432_v10  ;;  %v12516_v9 = vld [vmem:[#allocation52 + $0x784] ss:$72 sps:$4 sm:$0xff]  }
0x124d   : > { %8999 = vmatprep.subr.bf16.mxu0 %v12435_v11  ;;  %v12519_v10 = vld [vmem:[#allocation52 + $0x78c] ss:$72 sps:$4 sm:$0xff]   ;;  %v12514_v11 = vld [vmem:[#allocation52 + $0x780] ss:$72 sps:$4 sm:$0xff]  }
0x124f   : > { %8959 = vmatpush1.bf16.msra.mxu1 %v12430_v12  ;;  %v12517_v12 = vld [vmem:[#allocation52 + $0x788] ss:$72 sps:$4 sm:$0xff]  }
0x1250   : > { %9000 = vmatpush1.bf16.msra.mxu0 %v12433_v13  ;;  %9010 = vmatprep.subr.bf16.mxu1 %v12438_v14  ;;  %v12522_v13 = vld [vmem:[#allocation52 + $0x814] ss:$72 sps:$4 sm:$0xff]  }
0x1251   : > { %9051 = vmatprep.subr.bf16.mxu0 %v12441_v15  ;;  %v12525_v14 = vld [vmem:[#allocation52 + $0x81c] ss:$72 sps:$4 sm:$0xff]   ;;  %v12520_v15 = vld [vmem:[#allocation52 + $0x810] ss:$72 sps:$4 sm:$0xff]  }
0x1252   : > { %8961 = vmatmul.mubr.bf16.vlgmr.msra.gmra.mrb[72].mxu1 %v14740_v2 }
0x1253   : > { %9002 = vmatmul.mubr.bf16.vlgmr.msra.gmra.mrb[76].mxu0 %v14740_v2  ;;  %9011 = vmatpush1.bf16.msra.mxu1 %v12436_v16  ;;  %v12523_v16 = vld [vmem:[#allocation52 + $0x818] ss:$72 sps:$4 sm:$0xff]  }
0x1254   : > { %9042 = vmatprep.mubr.bf16.mxu1 %v14738_v61  ;;  %9052 = vmatpush1.bf16.msra.mxu0 %v12439_v17  ;;  %v12528_v17 = vld [vmem:[#allocation52 + $0x8a4] ss:$72 sps:$4 sm:$0xff]  }
0x1255   : > { %9083 = vmatprep.mubr.bf16.mxu0 %v14738_v61  ;;  %9012 = vmatprep.subr.bf16.mxu1 %v12444_v18  ;;  %v12531_v18 = vld [vmem:[#allocation52 + $0x8ac] ss:$72 sps:$4 sm:$0xff]  }
0x1256   : > { %9053 = vmatprep.subr.bf16.mxu0 %v12447_v19  ;;  %v12526_v19 = vld [vmem:[#allocation52 + $0x8a0] ss:$72 sps:$4 sm:$0xff]  }
0x1257   : > { %9013 = vmatpush1.bf16.msra.mxu1 %v12442_v22  ;;  %v12529_v22 = vld [vmem:[#allocation52 + $0x8a8] ss:$72 sps:$4 sm:$0xff]  }
0x1258   : > { %9054 = vmatpush1.bf16.msra.mxu0 %v12445_v62  ;;  %9014 = vmatprep.subr.bf16.mxu1 %v12450_v23  ;;  %v12534_v62 = vld [vmem:[#allocation52 + $0x44] ss:$72 sps:$4 sm:$0xff]   ;;  %v12532_v23 = vld [vmem:[#allocation52 + $0x40] ss:$72 sps:$4 sm:$0xff]  }
0x1259   : > { %9055 = vmatprep.subr.bf16.mxu0 %v12453_v24  ;;  %v12537_v24 = vld [vmem:[#allocation52 + $0xd4] ss:$72 sps:$4 sm:$0xff]  }
0x125b   : > { %9015 = vmatpush1.bf16.msra.mxu1 %v12448_v25  ;;  %v12535_v25 = vld [vmem:[#allocation52 + $0xd0] ss:$72 sps:$4 sm:$0xff]  }
0x125c   : > { %9056 = vmatpush1.bf16.msra.mxu0 %v12451_v27  ;;  %9016 = vmatprep.subr.bf16.mxu1 %v12456_v29  ;;  %v12540_v27 = vld [vmem:[#allocation52 + $0x164] ss:$72 sps:$4 sm:$0xff]   ;;  %v12538_v29 = vld [vmem:[#allocation52 + $0x160] ss:$72 sps:$4 sm:$0xff]  }
0x125d   : > { %9057 = vmatprep.subr.bf16.mxu0 %v12459_v30  ;;  %v12543_v30 = vld [vmem:[#allocation52 + $0x1f4] ss:$72 sps:$4 sm:$0xff]  }
0x125f   : > { %9017 = vmatpush1.bf16.msra.mxu1 %v12454_v31  ;;  %v12541_v31 = vld [vmem:[#allocation52 + $0x1f0] ss:$72 sps:$4 sm:$0xff]  }
0x1260   : > { %9058 = vmatpush1.bf16.msra.mxu0 %v12457_v60  ;;  %9018 = vmatprep.subr.bf16.mxu1 %v12462_v32  ;;  %v12546_v60 = vld [vmem:[#allocation52 + $0x284] ss:$72 sps:$4 sm:$0xff]   ;;  %v12544_v32 = vld [vmem:[#allocation52 + $0x280] ss:$72 sps:$4 sm:$0xff]  }
0x1261   : > { %9059 = vmatprep.subr.bf16.mxu0 %v12465_v33  ;;  %v12549_v33 = vld [vmem:[#allocation52 + $0x314] ss:$72 sps:$4 sm:$0xff]  }
0x1263   : > { %9019 = vmatpush1.bf16.msra.mxu1 %v12460_v34  ;;  %v12547_v34 = vld [vmem:[#allocation52 + $0x310] ss:$72 sps:$4 sm:$0xff]  }
0x1264   : > { %9060 = vmatpush1.bf16.msra.mxu0 %v12463_v53  ;;  %9020 = vmatprep.subr.bf16.mxu1 %v12468_v63 }
0x1265   : > { %9061 = vmatprep.subr.bf16.mxu0 %v12471_v35 }
0x1267   : > { %9021 = vmatpush1.bf16.msra.mxu1 %v12466_v36 }
0x1268   : > { %9062 = vmatpush1.bf16.msra.mxu0 %v12469_v37  ;;  %9022 = vmatprep.subr.bf16.mxu1 %v12474_v38 }
0x1269   : > { %9063 = vmatprep.subr.bf16.mxu0 %v12477_v39 }
0x126b   : > { %9023 = vmatpush1.bf16.msra.mxu1 %v12472_v40  ;;  %v12550_v40 = vld [vmem:[#allocation52 + $0x3a0] ss:$72 sps:$4 sm:$0xff]  }
0x126c   : > { %9064 = vmatpush1.bf16.msra.mxu0 %v12475_v41  ;;  %9024 = vmatprep.subr.bf16.mxu1 %v12480_v42 }
0x126d   : > { %9065 = vmatprep.subr.bf16.mxu0 %v12483_v43  ;;  %v12555_v43 = vld [vmem:[#allocation52 + $0x434] ss:$72 sps:$4 sm:$0xff]  }
0x126f   : > { %9025 = vmatpush1.bf16.msra.mxu1 %v12478_v7  ;;  %v12553_v7 = vld [vmem:[#allocation52 + $0x430] ss:$72 sps:$4 sm:$0xff]  }
0x1270   : > { %9066 = vmatpush1.bf16.msra.mxu0 %v12481_v44  ;;  %9026 = vmatprep.subr.bf16.mxu1 %v12486_v45  ;;  %v12558_v44 = vld [vmem:[#allocation52 + $0x4c4] ss:$72 sps:$4 sm:$0xff]   ;;  %v12556_v45 = vld [vmem:[#allocation52 + $0x4c0] ss:$72 sps:$4 sm:$0xff]  }
0x1271   : > { %9067 = vmatprep.subr.bf16.mxu0 %v12489_v46  ;;  %v12561_v46 = vld [vmem:[#allocation52 + $0x554] ss:$72 sps:$4 sm:$0xff]  }
0x1273   : > { %9027 = vmatpush1.bf16.msra.mxu1 %v12484_v47  ;;  %v12559_v47 = vld [vmem:[#allocation52 + $0x550] ss:$72 sps:$4 sm:$0xff]  }
0x1274   : > { %9068 = vmatpush1.bf16.msra.mxu0 %v12487_v48  ;;  %9028 = vmatprep.subr.bf16.mxu1 %v12492_v49  ;;  %v12564_v48 = vld [vmem:[#allocation52 + $0x5e4] ss:$72 sps:$4 sm:$0xff]   ;;  %v12562_v49 = vld [vmem:[#allocation52 + $0x5e0] ss:$72 sps:$4 sm:$0xff]  }
0x1275   : > { %9069 = vmatprep.subr.bf16.mxu0 %v12495_v50  ;;  %v12567_v50 = vld [vmem:[#allocation52 + $0x674] ss:$72 sps:$4 sm:$0xff]  }
0x1277   : > { %9029 = vmatpush1.bf16.msra.mxu1 %v12490_v54  ;;  %v12565_v54 = vld [vmem:[#allocation52 + $0x670] ss:$72 sps:$4 sm:$0xff]  }
0x1278   : > { %9070 = vmatpush1.bf16.msra.mxu0 %v12493_v55  ;;  %9030 = vmatprep.subr.bf16.mxu1 %v12498_v56  ;;  %v12570_v55 = vld [vmem:[#allocation52 + $0x704] ss:$72 sps:$4 sm:$0xff]   ;;  %v12568_v56 = vld [vmem:[#allocation52 + $0x700] ss:$72 sps:$4 sm:$0xff]  }
0x1279   : > { %9071 = vmatprep.subr.bf16.mxu0 %v12501_v57  ;;  %v12573_v57 = vld [vmem:[#allocation52 + $0x794] ss:$72 sps:$4 sm:$0xff]  }
0x127b   : > { %9031 = vmatpush1.bf16.msra.mxu1 %v12496_v58  ;;  %v12571_v58 = vld [vmem:[#allocation52 + $0x790] ss:$72 sps:$4 sm:$0xff]  }
0x127c   : > { %9072 = vmatpush1.bf16.msra.mxu0 %v12499_v51  ;;  %9032 = vmatprep.subr.bf16.mxu1 %v12504_v59  ;;  %v12576_v51 = vld [vmem:[#allocation52 + $0x824] ss:$72 sps:$4 sm:$0xff]   ;;  %v12574_v59 = vld [vmem:[#allocation52 + $0x820] ss:$72 sps:$4 sm:$0xff]  }
0x127d   : > { %9073 = vmatprep.subr.bf16.mxu0 %v12507_v52  ;;  %v12579_v52 = vld [vmem:[#allocation52 + $0x8b4] ss:$72 sps:$4 sm:$0xff]  }
0x127f   : > { %9033 = vmatpush1.bf16.msra.mxu1 %v12502_v1  ;;  %v12577_v1 = vld [vmem:[#allocation52 + $0x8b0] ss:$72 sps:$4 sm:$0xff]  }
0x1280   : > { %9074 = vmatpush1.bf16.msra.mxu0 %v12505_v3  ;;  %9034 = vmatprep.subr.bf16.mxu1 %v12510_v4 }
0x1281   : > { %9075 = vmatprep.subr.bf16.mxu0 %v12513_v5 }
0x1283   : > { %9035 = vmatpush1.bf16.msra.mxu1 %v12508_v6 }
0x1284   : > { %9076 = vmatpush1.bf16.msra.mxu0 %v12511_v8  ;;  %9036 = vmatprep.subr.bf16.mxu1 %v12516_v9 }
0x1285   : > { %9077 = vmatprep.subr.bf16.mxu0 %v12519_v10 }
0x1287   : > { %9037 = vmatpush1.bf16.msra.mxu1 %v12514_v11 }
0x1288   : > { %9078 = vmatpush1.bf16.msra.mxu0 %v12517_v12  ;;  %9038 = vmatprep.subr.bf16.mxu1 %v12522_v13 }
0x1289   : > { %9079 = vmatprep.subr.bf16.mxu0 %v12525_v14 }
0x128b   : > { %9039 = vmatpush1.bf16.msra.mxu1 %v12520_v15 }
0x128c   : > { %9080 = vmatpush1.bf16.msra.mxu0 %v12523_v16  ;;  %9040 = vmatprep.subr.bf16.mxu1 %v12528_v17 }
0x128d   : > { %9081 = vmatprep.subr.bf16.mxu0 %v12531_v18 }
0x128f   : > { %9041 = vmatpush1.bf16.msra.mxu1 %v12526_v19 }
0x1290   : > { %9082 = vmatpush1.bf16.msra.mxu0 %v12529_v22  ;;  %9092 = vmatprep.subr.bf16.mxu1 %v12534_v62 }
0x1292   : > { %9043 = vmatmul.mubr.bf16.vlgmr.msra.gmra.mrb[76].mxu1 %v14740_v2 }
0x1293   : > { %9084 = vmatmul.mubr.bf16.vlgmr.msra.gmra.mrb[80].mxu0 %v14740_v2  ;;  %9093 = vmatpush1.bf16.msra.mxu1 %v12532_v23 }
0x1294   : > { %9124 = vmatprep.mubr.bf16.mxu1 %v14738_v61  ;;  %9094 = vmatprep.subr.bf16.mxu1 %v12537_v24  ;;  %v12552_v61 = vld [vmem:[#allocation52 + $0x3a4] ss:$72 sps:$4 sm:$0xff]  }
0x1295   : > { %9212 = vmatprep.mubr.f32.mxu0 %v13715_v0 }
0x1297   : > { %9095 = vmatpush1.bf16.msra.mxu1 %v12535_v25 }
0x1298   : > { %9096 = vmatprep.subr.bf16.mxu1 %v12540_v27 }
0x129b   : > { %9097 = vmatpush1.bf16.msra.mxu1 %v12538_v29 }
0x129c   : > { %9098 = vmatprep.subr.bf16.mxu1 %v12543_v30 }
0x129f   : > { %9099 = vmatpush1.bf16.msra.mxu1 %v12541_v31 }
0x12a0   : > { %9100 = vmatprep.subr.bf16.mxu1 %v12546_v60 }
0x12a3   : > { %9101 = vmatpush1.bf16.msra.mxu1 %v12544_v32 }
0x12a4   : > { %9102 = vmatprep.subr.bf16.mxu1 %v12549_v33 }
0x12a5   : > { %v8798_v53 = vpop.f32.mrb[64].mxu1  ;;  %v8839_v63 = vpop.f32.mrb[68].mxu0 }
0x12a6   : > { %v10920_v35 = vpack.c.bf16 %v8839_v63, %v8798_v53  ;;  %v8800_v0 = vpop.f32.mrb[65].mxu1  ;;  %v8841_v36 = vpop.f32.mrb[69].mxu0  ;;  %v6924_v63 = vld [vmem:[#allocation55] sm:$0xff] }
0x12a7   : > { %v10918_v37 = vpack.c.bf16 %v8841_v36, %v8800_v0  ;;  %9103 = vmatpush1.bf16.msra.mxu1 %v12547_v34  ;;  %v8802_v38 = vpop.f32.mrb[66].mxu1  ;;  %v8843_v39 = vpop.f32.mrb[70].mxu0  ;;  %v6923_v36 = vld [vmem:[#allocation53] sm:$0x3] }
0x12a8   : > { %v8803_v41 = vpop.f32.mrb[67].mxu1  ;;  %v8844_v42 = vpop.f32.mrb[71].mxu0  ;;  %9104 = vmatprep.subr.bf16.mxu1 %v12552_v61  ;;  %v9141_v38 = vrot.slane %v6923_v36, %v14638_v28 }
0x12a9   : > { %10919 = vmatprep.subr.bf16.mxu0 %v10918_v37  ;;  %v9137_v37 = vrot.slane %v6923_v36, %v14636_v26 }
0x12aa   : > { %10921 = vmatpush1.bf16.msra.mxu0 %v10920_v35 }
0x12ab   : > { %9105 = vmatpush1.bf16.msra.mxu1 %v12550_v40 }
0x12ac   : > { %9106 = vmatprep.subr.bf16.mxu1 %v12555_v43 }
0x12af   : > { %9107 = vmatpush1.bf16.msra.mxu1 %v12553_v7 }
0x12b0   : > { %9108 = vmatprep.subr.bf16.mxu1 %v12558_v44 }
0x12b3   : > { %9109 = vmatpush1.bf16.msra.mxu1 %v12556_v45 }
0x12b4   : > { %9110 = vmatprep.subr.bf16.mxu1 %v12561_v46 }
0x12b7   : > { %9111 = vmatpush1.bf16.msra.mxu1 %v12559_v47 }
0x12b8   : > { %9112 = vmatprep.subr.bf16.mxu1 %v12564_v48 }
0x12bb   : > { %9113 = vmatpush1.bf16.msra.mxu1 %v12562_v49 }
0x12bc   : > { %9114 = vmatprep.subr.bf16.mxu1 %v12567_v50 }
0x12bf   : > { %9115 = vmatpush1.bf16.msra.mxu1 %v12565_v54 }
0x12c0   : > { %9116 = vmatprep.subr.bf16.mxu1 %v12570_v55 }
0x12c3   : > { %9117 = vmatpush1.bf16.msra.mxu1 %v12568_v56 }
0x12c4   : > { %9118 = vmatprep.subr.bf16.mxu1 %v12573_v57 }
0x12c7   : > { %9119 = vmatpush1.bf16.msra.mxu1 %v12571_v58 }
0x12c8   : > { %9120 = vmatprep.subr.bf16.mxu1 %v12576_v51 }
0x12cb   : > { %9121 = vmatpush1.bf16.msra.mxu1 %v12574_v59 }
0x12cc   : > { %9122 = vmatprep.subr.bf16.mxu1 %v12579_v52 }
0x12cf   : > { %9123 = vmatpush1.bf16.msra.mxu1 %v12577_v1 }
0x12d2   : > { %9125 = vmatmul.mubr.bf16.vlgmr.msra.gmra.mrb[80].mxu1 %v14740_v2 }
0x12e5   : > { %v8880_v3 = vpop.f32.mrb[68].mxu1  ;;  %v8921_v4 = vpop.f32.mrb[72].mxu0 }
0x12e6   : > { %v10924_v5 = vpack.c.bf16 %v8921_v4, %v8880_v3  ;;  %v8882_v6 = vpop.f32.mrb[69].mxu1  ;;  %v8923_v8 = vpop.f32.mrb[73].mxu0 }
0x12e7   : > { %v10922_v9 = vpack.c.bf16 %v8923_v8, %v8882_v6  ;;  %v8884_v10 = vpop.f32.mrb[70].mxu1  ;;  %v8925_v11 = vpop.f32.mrb[74].mxu0 }
0x12e8   : > { %v8885_v12 = vpop.f32.mrb[71].mxu1  ;;  %v8926_v13 = vpop.f32.mrb[75].mxu0 }
0x12e9   : > { %10923 = vmatprep.subr.bf16.mxu0 %v10922_v9 }
0x12ea   : > { %10925 = vmatpush1.bf16.msra.mxu0 %v10924_v5 }
0x1325   : > { %v8962_v14 = vpop.f32.mrb[72].mxu1 }
0x1326   : > { %v9003_v15 = vpop.f32.mrb[76].mxu0  ;;  %v8964_v16 = vpop.f32.mrb[73].mxu1 }
0x1327   : > { %v10928_v17 = vpack.c.bf16 %v9003_v15, %v8962_v14  ;;  %v9005_v18 = vpop.f32.mrb[77].mxu0  ;;  %v8966_v19 = vpop.f32.mrb[74].mxu1 }
0x1328   : > { %v10926_v22 = vpack.c.bf16 %v9005_v18, %v8964_v16  ;;  %v9007_v2 = vpop.f32.mrb[78].mxu0  ;;  %v8967_v62 = vpop.f32.mrb[75].mxu1 }
0x1329   : > { %v9008_v23 = vpop.f32.mrb[79].mxu0 }
0x132a   : > { %10927 = vmatprep.subr.bf16.mxu0 %v10926_v22 }
0x132b   : > { %10929 = vmatpush1.bf16.msra.mxu0 %v10928_v17 }
0x1365   : > { %v9044_v24 = vpop.f32.mrb[76].mxu1 }
0x1366   : > { %v9085_v25 = vpop.f32.mrb[80].mxu0  ;;  %v9046_v27 = vpop.f32.mrb[77].mxu1 }
0x1367   : > { %v10932_v29 = vpack.c.bf16 %v9085_v25, %v9044_v24  ;;  %v9087_v30 = vpop.f32.mrb[81].mxu0  ;;  %v9048_v31 = vpop.f32.mrb[78].mxu1 }
0x1368   : > { %v10930_v60 = vpack.c.bf16 %v9087_v30, %v9046_v27  ;;  %v9089_v32 = vpop.f32.mrb[82].mxu0  ;;  %v9049_v33 = vpop.f32.mrb[79].mxu1 }
0x1369   : > { %v9090_v34 = vpop.f32.mrb[83].mxu0 }
0x136a   : > { %10931 = vmatprep.subr.bf16.mxu0 %v10930_v60 }
0x136b   : > { %10933 = vmatpush1.bf16.msra.mxu0 %v10932_v29 }
0x13a5   : > { %v9126_v61 = vpop.f32.mrb[80].mxu1 }
0x13a6   : > { %v9128_v53 = vpop.f32.mrb[81].mxu1 }
0x13a7   : > { %v9130_v35 = vpop.f32.mrb[82].mxu1  ;;  %9164 = vmatprep.subr.mxu0 %v9128_v53 }
0x13a8   : > { %v9131_v0 = vpop.f32.mrb[83].mxu1  ;;  %9165 = vmatpush1.msra.mxu0 %v9126_v61 }
0x13a9   : > { %10650 = vmatmul.mubr.msk.f32.vlgmr.msra.gmra.mrb[62].mxu0 %vm9144_vm6, %v6924_v63 }
0x147c   : > { %v9214_v39 = vpop.f32.mrb[62].mxu0 }
0x147d   : > { %v9215_v40 = vadd.f32 %v9214_v39, %v9137_v37  ;;  %v9216_v41 = vpop.f32.mrb[63].mxu0 }
0x147e   : > { %v9217_v42 = vadd.f32 %v9216_v41, %v9141_v38 }
0x147f   : > { %v9219_v43 = vadd.f32 %v9215_v40, %v14723_v20 }
0x1480   : > { %v9220_v7 = vadd.f32 %v9217_v42, %v14725_v21 }
0x1481   : > { %v9221_v44 = vmax.f32 %v9219_v43, 0.0 }
0x1482   : > { %v9222_v45 = vmax.f32 %v9220_v7, 0.0 }
0x1484   : > { %v9225_v26 = vcombine.low %v9221_v44, %v9222_v45  ;;  %v9226_v28 = vcombine.high %v9221_v44, %v9222_v45 }
0x1486   : > { %9229 = vst [vmem:[%s1625_s11] sm:$0xff] %v9225_v26  ;;  %9230 = vst [vmem:[%s1625_s11 + $0x8] sm:$0xff] %v9226_v28 }
0x1487   : > { %13507 = shalt.err (!%p13504_p4)
}
0x1488   : > { %s13508_s11 = scalar_lea.hbm %s14771_s2, 256  ;;  %s13512_s0 = scalar_lea.hbm %s15000_s5, 512 }
0x1489   : > { %p13509_p0 = scmp.ne.s32.totalorder %s14771_s2, %s13508_s11  ;;  %p13513_p13 = scmp.lt.u32.totalorder %s14771_s2, %s15000_s5 }
0x148a   : > { %p13514_p8 = scmp.lt.u32.totalorder %s13512_s0, %s13508_s11  ;;  %p13516_p10 = scmp.lt.u32.totalorder %s13508_s11, %s14771_s2 }
0x148b   : > { %p13510_p2 = pnand %p13509_p0, %p15002_p1 }
0x148c   : > { %p13515_p9 = por %p13514_p8, %p13513_p13 }
0x148d   : > { %p13511_p11 = pneg %p13510_p2 }
0x148e   : > { %p13517_p3 = por %p13516_p10, %p13515_p9 }
0x1490   : > { %p13518_p6 = pnand %p13517_p3, %p13511_p11 }
0x1492   : > { %13521 = shalt.err (!%p13518_p6)
}
0x1493   : > { %s13720_s1 = smov 128   ;;  %s13721_s4 = smov 8  }
0x1494   : > { %11090 = dma.vmem_to_hbm [thread:$0]  (%p15002_p1), %s14768_s10, 256, %s14771_s2, %s9232_s6, %s13720_s1, %s13720_s1, %s13721_s4  }
0x1495 PF: > { %s15003_s22 = sld [smem:[#allocation104_spill]]  ;;  %s15004_s7 = sld [smem:[#allocation109_spill]] }
0x1496   : > { %p15006_p5 = scmp.ge.s32.totalorder %s13628_s18, 2 }
0x149b   : > { %s9261_s5 = sand.u32 1, %s15003_s22   ;;  %p15005_p12 = scmp.ne.s32.totalorder %s15004_s7, 0 }
0x149c   : > { %s9262_s11 = scalar_lea.sflag [#allocation4], %s9261_s5 }
0x149d   : > { %p11097_p7 = pnand %p15006_p5, %p15005_p12 }
0x149f   : > { %13611 = dma.done.wait (!%p11097_p7), %s9262_s11, 256  }
0x14a0   : > { %13613 = vsyncadd (!%p11097_p7), %s9262_s11, 4294967040  ;;  %s15007_s18 = sld [smem:[#allocation105_spill]]  ;;  %s15008_s8 = sld [smem:[#allocation106_spill]] }
0x14a1   : > { %s15009_s0 = smov %s13620_s15  ;;  %s15010_s15 = smov %s13624_s16 }
0x14a6   : > { %p107_p4 = scmp.ge.s32.totalorder %s15007_s18, 4   ;;  %s15011_s16 = smov %s15008_s8 }
0x14a8   :  { %109 = sbr.rel (!%p107_p4) target bundleno = 96 (0x60), region = 391 }
0x14af   :  { %9267 = vsyncpa [#allocation3], 1 }
0x14b0   :  { %9269 = vsyncpa [#allocation3 + $0x1], 1 }
0x14b1   :  { %9270 = vsyncpa [#allocation6], 1 }
0x14b2   :  { %9271 = vsyncpa [#allocation9], 1 }
0x14b3   :  { %9272 = vsyncpa [#allocation12], 1 }
0x14b4   :  { %9273 = vsyncpa [#allocation15], 1 }
0x14b5   :  { %9274 = vsyncpa [#allocation18], 1 }
0x14b6   :  { %9275 = vsyncpa [#allocation21], 1 }
0x14b7   :  { %9276 = vsyncpa [#allocation24], 1 }
0x14b8   :  { %9277 = vsyncpa [#allocation27], 1 }
0x14b9   :  { %9278 = vsyncpa [#allocation30], 1 }
0x14ba   :  { %9279 = vsyncpa [#allocation33], 1 }
0x14bb   :  { %9280 = vsyncpa [#allocation36], 1 }
0x14bc   :  { %9281 = vsyncpa [#allocation39], 1 }
0x14bd   :  { %9282 = vsyncpa [#allocation42], 1 }
0x14be   :  { %9283 = vsyncpa [#allocation45], 1 }
0x14bf   :  { %9284 = vsyncpa [#allocation48], 1 }
0x14c0   :  { %9285 = vsyncpa [#allocation51], 1 }
0x14c1   :  { %9286 = vsyncpa [#allocation54], 1 }
0x14c2   :  { %9287 = vsyncpa [#allocation4], 1 }
0x14c3   :  { %9289 = vsyncpa [#allocation4 + $0x1], 1 }

</bundles_post_ra>
